<compile_context>
chip_gen: v5e
topology: v5e:2x2
jax: 0.10.0
libtpu: 0.0.40
codegen_flags: <defaults>
</compile_context>

<pallas_src>
import numpy as np

import jax
import jax.numpy as jnp
from jax.experimental import pallas as pl
from jax.experimental.pallas import tpu as pltpu


BLOCK_B = 16   # samples per grid step; 16 suits v5e's 128-wide MXU, 32 for v6e/v7x.


# ----------------------------- fused Pallas kernel ------------------------------

def _convnet_kernel(x_ref, w1_ref, b1_ref, w2_ref, b2_ref,
                    f1w_ref, f1b_ref, f2w_ref, f2b_ref, f3w_ref, f3b_ref,
                    o_ref, p1a_ref, p1b_ref):
    f32 = jnp.float32
    B = o_ref.shape[0]                       # batch block (samples per grid step)

    # ---- conv1 (5x5, 3->6) + ReLU + 2x2 max-pool --------------------------------
    # Branch r = (conv output row) mod 4.  Accumulator row q*B + b = conv row 4q+r
    # of sample b.  Lanes [0:84] = even-w outputs (wp*6 + ch), lanes [128:212] =
    # odd-w outputs (pool W-parity folded into 128-lane-aligned weight halves).
    def conv1_branch(r):
        acc = jnp.zeros((7 * B, 256), f32)
        for i in range(5):
            m = r + i                                        # image row = 4q + m
            blk = x_ref[(m // 4) * B:(m // 4 + 7) * B,
                        (m % 4) * 128:(m % 4) * 128 + 128]   # (7B, 128), aligned
            acc = acc + jnp.dot(blk, w1_ref[i],
                                preferred_element_type=f32)  # (7B, 256)
        return jnp.maximum(acc[:, :84], acc[:, 128:212])     # W-pool -> (7B, 84)

    b1 = b1_ref[...]                                          # (1, 84)
    # pooled1 even rows 2q   <- conv rows 4q,   4q+1 (branches 0, 1)
    # pooled1 odd  rows 2q+1 <- conv rows 4q+2, 4q+3 (branches 2, 3)
    p1a_ref[...] = conv1_branch(0)
    p1a_ref[...] = jnp.maximum(jnp.maximum(p1a_ref[...], conv1_branch(1)) + b1, 0.0)
    p1b_ref[...] = conv1_branch(2)
    p1b_ref[...] = jnp.maximum(jnp.maximum(p1b_ref[...], conv1_branch(3)) + b1, 0.0)

    # ---- conv2 (5x5, 6->16) + ReLU + 2x2 max-pool -------------------------------
    # Branch t = (conv2 output row) mod 2; needed pooled1 row = 2s + t + i.
    def conv2_branch(t):
        acc = jnp.zeros((5 * B, 256), f32)
        for i in range(5):
            m = t + i
            src = p1a_ref if m % 2 == 0 else p1b_ref
            blk = src[(m // 2) * B:(m // 2 + 5) * B, :]       # (5B, 84), aligned
            acc = acc + jnp.dot(blk, w2_ref[i],
                                preferred_element_type=f32)   # (5B, 256)
        return jnp.maximum(acc[:, :80], acc[:, 128:208])      # W-pool -> (5B, 80)

    b2 = b2_ref[...]                                           # (1, 80)
    p2 = jnp.maximum(jnp.maximum(conv2_branch(0), conv2_branch(1)) + b2, 0.0)  # (5B,80)

    # ---- fc1 -> relu -> fc2 -> relu -> fc3 ---------------------------------------
    f1 = f1b_ref[...]                                          # (1, 120), broadcast
    for h in range(5):
        f1 = f1 + jnp.dot(p2[h * B:(h + 1) * B, :], f1w_ref[h],
                          preferred_element_type=f32)          # (B,80)@(80,120)
    f1 = jnp.maximum(f1, 0.0)
    f2 = jnp.maximum(jnp.dot(f1, f2w_ref[...],
                             preferred_element_type=f32) + f2b_ref[...], 0.0)  # (B,84)
    # fc3 weights/bias are zero-padded to 128 cols -> lane-dense unmasked store.
    o_ref[...] = jnp.dot(f2, f3w_ref[...],
                         preferred_element_type=f32) + f3b_ref[...]            # (B,128)


# ------------------------ one-time host-side weight folding ---------------------

def _fold_conv(w, k_pad, pooled_w):
    """Fold (O,C,5,5) conv weights into per-kernel-row GEMM matrices.

    Returns M of shape (5, k_pad, 256) with
      M[i, (2*wp + p + j)*C + c, p*128 + wp*O + o] = w[o, c, i, j]
    i.e. column half p (starting at a 128-lane boundary) holds the even/odd output
    columns of the fused 2x2 max-pool; unused rows/cols are zero (K padding).
    """
    O, C, K, _ = w.shape
    M = np.zeros((K, k_pad, 256), np.float32)
    for i in range(K):
        for p in range(2):
            for wp in range(pooled_w):
                col0 = p * 128 + wp * O
                w_out = 2 * wp + p
                for j in range(K):
                    row0 = (w_out + j) * C
                    M[i, row0:row0 + C, col0:col0 + O] = w[:, :, i, j].T
    return M


def prepare_params(p):
    """One-time re-layout of the PyTorch-convention weights for the fused kernel."""
    w1 = np.asarray(p["w1"], np.float32)      # (6, 3, 5, 5)
    b1 = np.asarray(p["b1"], np.float32)
    w2 = np.asarray(p["w2"], np.float32)      # (16, 6, 5, 5)
    b2 = np.asarray(p["b2"], np.float32)
    wf1 = np.asarray(p["w_fc1"], np.float32)  # (120, 400), K ordered (c, h, w)
    bf1 = np.asarray(p["b_fc1"], np.float32)
    wf2 = np.asarray(p["w_fc2"], np.float32)  # (84, 120)
    bf2 = np.asarray(p["b_fc2"], np.float32)
    wf3 = np.asarray(p["w_fc3"], np.float32)  # (10, 84)
    bf3 = np.asarray(p["b_fc3"], np.float32)

    w1f = _fold_conv(w1, k_pad=128, pooled_w=14)    # (5, 128, 256), K padded to 128
    w2f = _fold_conv(w2, k_pad=84, pooled_w=5)      # (5, 84, 256)
    b1t = np.tile(b1, 14)[None, :]                  # (1, 84)
    b2t = np.tile(b2, 5)[None, :]                   # (1, 80)
    # fc1: reorder its K axis from torch's (c*25 + h*5 + w) to per-h (w*16 + c).
    wf1r = wf1.reshape(120, 16, 5, 5).transpose(2, 3, 1, 0).reshape(5, 80, 120)
    # fc3: zero-pad to 128 output lanes so the kernel's final store is lane-dense.
    wf3p = np.zeros((84, 128), np.float32)
    wf3p[:, :10] = wf3.T
    bf3p = np.zeros((1, 128), np.float32)
    bf3p[0, :10] = bf3

    return {
        "w1f": jnp.asarray(w1f), "b1t": jnp.asarray(b1t),
        "w2f": jnp.asarray(w2f), "b2t": jnp.asarray(b2t),
        "wf1r": jnp.asarray(wf1r), "bf1": jnp.asarray(bf1[None, :]),
        "wf2t": jnp.asarray(wf2.T), "bf2": jnp.asarray(bf2[None, :]),
        "wf3p": jnp.asarray(wf3p), "bf3p": jnp.asarray(bf3p),
    }


# --------------------------------- forward pass ---------------------------------

def convnet_forward(x_nchw, fp, block_b=BLOCK_B):
    n, c, h, w = x_nchw.shape
    assert (c, h, w) == (3, 32, 32), "LeNet flatten (16*5*5) requires 3x32x32 input"
    assert block_b % 8 == 0, "batch block must be a multiple of the sublane tile"
    n_pad = ((n + block_b - 1) // block_b) * block_b
    n_blocks = n_pad // block_b

    # NHWC; pack 4 consecutive image rows per sublane group, each row in its own
    # 128-lane slot (96 used + 32 zero); batch minor on the sublane axis so the
    # kernel's conv1 LHS is a plain aligned 2-D slice (rows = s*B + b).
    x = jnp.transpose(x_nchw, (0, 2, 3, 1)).reshape(n, 8, 4, 96)
    x = jnp.pad(x, ((0, n_pad - n), (0, 0), (0, 0), (0, 32)))     # (n_pad, 8, 4, 128)
    x = x.reshape(n_blocks, block_b, 8, 512).transpose(0, 2, 1, 3)
    x = x.reshape(n_pad * 8, 512)                                  # rows: g*8B + s*B + b

    out = pl.pallas_call(
        _convnet_kernel,
        out_shape=jax.ShapeDtypeStruct((n_pad, 128), jnp.float32),
        grid=(n_blocks,),
        in_specs=[
            pl.BlockSpec((8 * block_b, 512), lambda g: (g, 0)),   # packed input block
            pl.BlockSpec((5, 128, 256), lambda g: (0, 0, 0)),     # conv1 folded weights
            pl.BlockSpec((1, 84), lambda g: (0, 0)),              # conv1 bias (tiled)
            pl.BlockSpec((5, 84, 256), lambda g: (0, 0, 0)),      # conv2 folded weights
            pl.BlockSpec((1, 80), lambda g: (0, 0)),              # conv2 bias (tiled)
            pl.BlockSpec((5, 80, 120), lambda g: (0, 0, 0)),      # fc1 weights (per h)
            pl.BlockSpec((1, 120), lambda g: (0, 0)),
            pl.BlockSpec((120, 84), lambda g: (0, 0)),            # fc2 (pre-transposed)
            pl.BlockSpec((1, 84), lambda g: (0, 0)),
            pl.BlockSpec((84, 128), lambda g: (0, 0)),            # fc3 (pre-T, padded)
            pl.BlockSpec((1, 128), lambda g: (0, 0)),
        ],
        out_specs=pl.BlockSpec((block_b, 128), lambda g: (g, 0)),
        scratch_shapes=[
            pltpu.VMEM((7 * block_b, 84), jnp.float32),   # pooled1 even rows
            pltpu.VMEM((7 * block_b, 84), jnp.float32),   # pooled1 odd rows
        ],
        compiler_params=pltpu.CompilerParams(
            dimension_semantics=("parallel",)),
    )(x, fp["w1f"], fp["b1t"], fp["w2f"], fp["b2t"],
      fp["wf1r"], fp["bf1"], fp["wf2t"], fp["bf2"], fp["wf3p"], fp["bf3p"])

    return out[:n, :10]


# ------------------------------ pure-JAX reference -------------------------------

def reference_forward(x_nchw, p):
    dn = ("NCHW", "OIHW", "NCHW")

    def conv(x, w, b):
        y = jax.lax.conv_general_dilated(x, w, (1, 1), "VALID",
                                         dimension_numbers=dn)
        return jax.nn.relu(y + b[None, :, None, None])

    def pool(x):
        return jax.lax.reduce_window(x, -jnp.inf, jax.lax.max,
                                     (1, 1, 2, 2), (1, 1, 2, 2), "VALID")

    x = pool(conv(x_nchw, p["w1"], p["b1"]))
    x = pool(conv(x, p["w2"], p["b2"]))
    x = x.reshape(x.shape[0], -1)
    x = jax.nn.relu(x @ p["w_fc1"].T + p["b_fc1"])
    x = jax.nn.relu(x @ p["w_fc2"].T + p["b_fc2"])
    return x @ p["w_fc3"].T + p["b_fc3"]


# ------------------------------------- main ---------------------------------------

def init_params(key):
    ks = jax.random.split(key, 10)
    s = 0.1
    return {
        "w1": jax.random.normal(ks[0], (6, 3, 5, 5), jnp.float32) * s,
        "b1": jax.random.normal(ks[1], (6,), jnp.float32) * s,
        "w2": jax.random.normal(ks[2], (16, 6, 5, 5), jnp.float32) * s,
        "b2": jax.random.normal(ks[3], (16,), jnp.float32) * s,
        "w_fc1": jax.random.normal(ks[4], (120, 400), jnp.float32) * s,
        "b_fc1": jax.random.normal(ks[5], (120,), jnp.float32) * s,
        "w_fc2": jax.random.normal(ks[6], (84, 120), jnp.float32) * s,
        "b_fc2": jax.random.normal(ks[7], (84,), jnp.float32) * s,
        "w_fc3": jax.random.normal(ks[8], (10, 84), jnp.float32) * s,
        "b_fc3": jax.random.normal(ks[9], (10,), jnp.float32) * s,
    }


if __name__ == "__main__":
    key = jax.random.PRNGKey(0)
    k_param, k_x = jax.random.split(key)
    params = init_params(k_param)
    # Spatial size must be 32 so the flatten is 16*5*5, as in the module.
    # Batch 32 -> two batch-blocks of 16 (>= 2 grid steps, so v7x uses both cores).
    x = jax.random.normal(k_x, (32, 3, 32, 32), jnp.float32)

    fused_params = prepare_params(params)          # one-time weight re-layout
    fwd = jax.jit(convnet_forward)
    out = jax.block_until_ready(fwd(x, fused_params))
    assert out.shape == (32, 10) and out.dtype == jnp.float32

    ref = jax.block_until_ready(reference_forward(x, params))
    if not jnp.allclose(out, ref, atol=1e-2, rtol=1e-2):
        raise AssertionError("Pallas ConvNet output mismatch vs reference")

    print("KERNEL_OK")
</pallas_src>

<mosaic_0001>
module attributes {stable_mosaic.version = 11 : i64} {
  func.func @_convnet_kernel(%arg0: i32, %arg1: memref<128x512xf32, #tpu.memory_space<vmem>>, %arg2: memref<5x128x256xf32, #tpu.memory_space<vmem>>, %arg3: memref<1x84xf32, #tpu.memory_space<vmem>>, %arg4: memref<5x84x256xf32, #tpu.memory_space<vmem>>, %arg5: memref<1x80xf32, #tpu.memory_space<vmem>>, %arg6: memref<5x80x120xf32, #tpu.memory_space<vmem>>, %arg7: memref<1x120xf32, #tpu.memory_space<vmem>>, %arg8: memref<120x84xf32, #tpu.memory_space<vmem>>, %arg9: memref<1x84xf32, #tpu.memory_space<vmem>>, %arg10: memref<84x128xf32, #tpu.memory_space<vmem>>, %arg11: memref<1x128xf32, #tpu.memory_space<vmem>>, %arg12: memref<16x128xf32, #tpu.memory_space<vmem>>, %arg13: memref<112x84xf32, #tpu.memory_space<vmem>>, %arg14: memref<112x84xf32, #tpu.memory_space<vmem>>) attributes {dimension_semantics = [#tpu.dimension_semantics<parallel>], iteration_bounds = array<i64: 2>, scalar_prefetch = 0 : i64, scratch_operands = 2 : i64, tpu.core_type = #tpu.core_type<tc>, window_params = [{transform_indices = @transform_0, window_bounds = array<i64: 128, 512>}, {pipeline_mode = #tpu.pipeline_mode<synchronous>, transform_indices = @transform_1, window_bounds = array<i64: 5, 128, 256>}, {pipeline_mode = #tpu.pipeline_mode<synchronous>, transform_indices = @transform_2, window_bounds = array<i64: 1, 84>}, {pipeline_mode = #tpu.pipeline_mode<synchronous>, transform_indices = @transform_3, window_bounds = array<i64: 5, 84, 256>}, {pipeline_mode = #tpu.pipeline_mode<synchronous>, transform_indices = @transform_4, window_bounds = array<i64: 1, 80>}, {pipeline_mode = #tpu.pipeline_mode<synchronous>, transform_indices = @transform_5, window_bounds = array<i64: 5, 80, 120>}, {pipeline_mode = #tpu.pipeline_mode<synchronous>, transform_indices = @transform_6, window_bounds = array<i64: 1, 120>}, {pipeline_mode = #tpu.pipeline_mode<synchronous>, transform_indices = @transform_7, window_bounds = array<i64: 120, 84>}, {pipeline_mode = #tpu.pipeline_mode<synchronous>, transform_indices = @transform_8, window_bounds = array<i64: 1, 84>}, {pipeline_mode = #tpu.pipeline_mode<synchronous>, transform_indices = @transform_9, window_bounds = array<i64: 84, 128>}, {pipeline_mode = #tpu.pipeline_mode<synchronous>, transform_indices = @transform_10, window_bounds = array<i64: 1, 128>}, {transform_indices = @transform_11, window_bounds = array<i64: 16, 128>}]} {
    %c0 = arith.constant 0 : index
    %c0_0 = arith.constant 0 : index
    %0 = vector.load %arg3[%c0, %c0_0] : memref<1x84xf32, #tpu.memory_space<vmem>>, vector<1x84xf32>
    %cst = arith.constant 0.000000e+00 : f32
    %1 = vector.broadcast %cst : f32 to vector<112x256xf32>
    %c0_1 = arith.constant 0 : index
    %c0_2 = arith.constant 0 : index
    %2 = vector.load %arg1[%c0_1, %c0_2] : memref<128x512xf32, #tpu.memory_space<vmem>>, vector<112x128xf32>
    %c0_3 = arith.constant 0 : index
    %c0_4 = arith.constant 0 : index
    %c0_5 = arith.constant 0 : index
    %3 = vector.load %arg2[%c0_3, %c0_4, %c0_5] : memref<5x128x256xf32, #tpu.memory_space<vmem>>, vector<1x128x256xf32>
    %4 = vector.shape_cast %3 : vector<1x128x256xf32> to vector<128x256xf32>
    %cst_6 = arith.constant dense<0.000000e+00> : vector<112x256xf32>
    %5 = tpu.matmul %2, %4, %cst_6 {dimension_numbers = #tpu.dot_dimension_numbers<[1], [0], [0], [1], [0, 0, 1, 1], [], []>} : vector<112x128xf32>, vector<128x256xf32>, vector<112x256xf32> -> vector<112x256xf32>
    %6 = arith.addf %1, %5 : vector<112x256xf32>
    %c0_7 = arith.constant 0 : index
    %c128 = arith.constant 128 : index
    %7 = vector.load %arg1[%c0_7, %c128] : memref<128x512xf32, #tpu.memory_space<vmem>>, vector<112x128xf32>
    %c1 = arith.constant 1 : index
    %c0_8 = arith.constant 0 : index
    %c0_9 = arith.constant 0 : index
    %8 = vector.load %arg2[%c1, %c0_8, %c0_9] : memref<5x128x256xf32, #tpu.memory_space<vmem>>, vector<1x128x256xf32>
    %9 = vector.shape_cast %8 : vector<1x128x256xf32> to vector<128x256xf32>
    %cst_10 = arith.constant dense<0.000000e+00> : vector<112x256xf32>
    %10 = tpu.matmul %7, %9, %cst_10 {dimension_numbers = #tpu.dot_dimension_numbers<[1], [0], [0], [1], [0, 0, 1, 1], [], []>} : vector<112x128xf32>, vector<128x256xf32>, vector<112x256xf32> -> vector<112x256xf32>
    %11 = arith.addf %6, %10 : vector<112x256xf32>
    %c0_11 = arith.constant 0 : index
    %c256 = arith.constant 256 : index
    %12 = vector.load %arg1[%c0_11, %c256] : memref<128x512xf32, #tpu.memory_space<vmem>>, vector<112x128xf32>
    %c2 = arith.constant 2 : index
    %c0_12 = arith.constant 0 : index
    %c0_13 = arith.constant 0 : index
    %13 = vector.load %arg2[%c2, %c0_12, %c0_13] : memref<5x128x256xf32, #tpu.memory_space<vmem>>, vector<1x128x256xf32>
    %14 = vector.shape_cast %13 : vector<1x128x256xf32> to vector<128x256xf32>
    %cst_14 = arith.constant dense<0.000000e+00> : vector<112x256xf32>
    %15 = tpu.matmul %12, %14, %cst_14 {dimension_numbers = #tpu.dot_dimension_numbers<[1], [0], [0], [1], [0, 0, 1, 1], [], []>} : vector<112x128xf32>, vector<128x256xf32>, vector<112x256xf32> -> vector<112x256xf32>
    %16 = arith.addf %11, %15 : vector<112x256xf32>
    %c0_15 = arith.constant 0 : index
    %c384 = arith.constant 384 : index
    %17 = vector.load %arg1[%c0_15, %c384] : memref<128x512xf32, #tpu.memory_space<vmem>>, vector<112x128xf32>
    %c3 = arith.constant 3 : index
    %c0_16 = arith.constant 0 : index
    %c0_17 = arith.constant 0 : index
    %18 = vector.load %arg2[%c3, %c0_16, %c0_17] : memref<5x128x256xf32, #tpu.memory_space<vmem>>, vector<1x128x256xf32>
    %19 = vector.shape_cast %18 : vector<1x128x256xf32> to vector<128x256xf32>
    %cst_18 = arith.constant dense<0.000000e+00> : vector<112x256xf32>
    %20 = tpu.matmul %17, %19, %cst_18 {dimension_numbers = #tpu.dot_dimension_numbers<[1], [0], [0], [1], [0, 0, 1, 1], [], []>} : vector<112x128xf32>, vector<128x256xf32>, vector<112x256xf32> -> vector<112x256xf32>
    %21 = arith.addf %16, %20 : vector<112x256xf32>
    %c16 = arith.constant 16 : index
    %c0_19 = arith.constant 0 : index
    %22 = vector.load %arg1[%c16, %c0_19] : memref<128x512xf32, #tpu.memory_space<vmem>>, vector<112x128xf32>
    %c4 = arith.constant 4 : index
    %c0_20 = arith.constant 0 : index
    %c0_21 = arith.constant 0 : index
    %23 = vector.load %arg2[%c4, %c0_20, %c0_21] : memref<5x128x256xf32, #tpu.memory_space<vmem>>, vector<1x128x256xf32>
    %24 = vector.shape_cast %23 : vector<1x128x256xf32> to vector<128x256xf32>
    %cst_22 = arith.constant dense<0.000000e+00> : vector<112x256xf32>
    %25 = tpu.matmul %22, %24, %cst_22 {dimension_numbers = #tpu.dot_dimension_numbers<[1], [0], [0], [1], [0, 0, 1, 1], [], []>} : vector<112x128xf32>, vector<128x256xf32>, vector<112x256xf32> -> vector<112x256xf32>
    %26 = arith.addf %21, %25 : vector<112x256xf32>
    %27 = vector.extract_strided_slice %26 {offsets = [0, 0], sizes = [112, 84], strides = [1, 1]} : vector<112x256xf32> to vector<112x84xf32>
    %28 = vector.extract_strided_slice %26 {offsets = [0, 128], sizes = [112, 84], strides = [1, 1]} : vector<112x256xf32> to vector<112x84xf32>
    %29 = arith.maximumf %27, %28 : vector<112x84xf32>
    %c0_23 = arith.constant 0 : index
    %c0_24 = arith.constant 0 : index
    %30 = vector.load %arg13[%c0_23, %c0_24] : memref<112x84xf32, #tpu.memory_space<vmem>>, vector<112x84xf32>
    tpu.vector_store %arg13[%c0_23, %c0_24], %29 {strides = array<i32>} : memref<112x84xf32, #tpu.memory_space<vmem>>, vector<112x84xf32>,
    %c0_25 = arith.constant 0 : index
    %c0_26 = arith.constant 0 : index
    %31 = vector.load %arg13[%c0_25, %c0_26] : memref<112x84xf32, #tpu.memory_space<vmem>>, vector<112x84xf32>
    %cst_27 = arith.constant 0.000000e+00 : f32
    %32 = vector.broadcast %cst_27 : f32 to vector<112x256xf32>
    %c0_28 = arith.constant 0 : index
    %c128_29 = arith.constant 128 : index
    %33 = vector.load %arg1[%c0_28, %c128_29] : memref<128x512xf32, #tpu.memory_space<vmem>>, vector<112x128xf32>
    %c0_30 = arith.constant 0 : index
    %c0_31 = arith.constant 0 : index
    %c0_32 = arith.constant 0 : index
    %34 = vector.load %arg2[%c0_30, %c0_31, %c0_32] : memref<5x128x256xf32, #tpu.memory_space<vmem>>, vector<1x128x256xf32>
    %35 = vector.shape_cast %34 : vector<1x128x256xf32> to vector<128x256xf32>
    %cst_33 = arith.constant dense<0.000000e+00> : vector<112x256xf32>
    %36 = tpu.matmul %33, %35, %cst_33 {dimension_numbers = #tpu.dot_dimension_numbers<[1], [0], [0], [1], [0, 0, 1, 1], [], []>} : vector<112x128xf32>, vector<128x256xf32>, vector<112x256xf32> -> vector<112x256xf32>
    %37 = arith.addf %32, %36 : vector<112x256xf32>
    %c0_34 = arith.constant 0 : index
    %c256_35 = arith.constant 256 : index
    %38 = vector.load %arg1[%c0_34, %c256_35] : memref<128x512xf32, #tpu.memory_space<vmem>>, vector<112x128xf32>
    %c1_36 = arith.constant 1 : index
    %c0_37 = arith.constant 0 : index
    %c0_38 = arith.constant 0 : index
    %39 = vector.load %arg2[%c1_36, %c0_37, %c0_38] : memref<5x128x256xf32, #tpu.memory_space<vmem>>, vector<1x128x256xf32>
    %40 = vector.shape_cast %39 : vector<1x128x256xf32> to vector<128x256xf32>
    %cst_39 = arith.constant dense<0.000000e+00> : vector<112x256xf32>
    %41 = tpu.matmul %38, %40, %cst_39 {dimension_numbers = #tpu.dot_dimension_numbers<[1], [0], [0], [1], [0, 0, 1, 1], [], []>} : vector<112x128xf32>, vector<128x256xf32>, vector<112x256xf32> -> vector<112x256xf32>
    %42 = arith.addf %37, %41 : vector<112x256xf32>
    %c0_40 = arith.constant 0 : index
    %c384_41 = arith.constant 384 : index
    %43 = vector.load %arg1[%c0_40, %c384_41] : memref<128x512xf32, #tpu.memory_space<vmem>>, vector<112x128xf32>
    %c2_42 = arith.constant 2 : index
    %c0_43 = arith.constant 0 : index
    %c0_44 = arith.constant 0 : index
    %44 = vector.load %arg2[%c2_42, %c0_43, %c0_44] : memref<5x128x256xf32, #tpu.memory_space<vmem>>, vector<1x128x256xf32>
    %45 = vector.shape_cast %44 : vector<1x128x256xf32> to vector<128x256xf32>
    %cst_45 = arith.constant dense<0.000000e+00> : vector<112x256xf32>
    %46 = tpu.matmul %43, %45, %cst_45 {dimension_numbers = #tpu.dot_dimension_numbers<[1], [0], [0], [1], [0, 0, 1, 1], [], []>} : vector<112x128xf32>, vector<128x256xf32>, vector<112x256xf32> -> vector<112x256xf32>
    %47 = arith.addf %42, %46 : vector<112x256xf32>
    %c16_46 = arith.constant 16 : index
    %c0_47 = arith.constant 0 : index
    %48 = vector.load %arg1[%c16_46, %c0_47] : memref<128x512xf32, #tpu.memory_space<vmem>>, vector<112x128xf32>
    %c3_48 = arith.constant 3 : index
    %c0_49 = arith.constant 0 : index
    %c0_50 = arith.constant 0 : index
    %49 = vector.load %arg2[%c3_48, %c0_49, %c0_50] : memref<5x128x256xf32, #tpu.memory_space<vmem>>, vector<1x128x256xf32>
    %50 = vector.shape_cast %49 : vector<1x128x256xf32> to vector<128x256xf32>
    %cst_51 = arith.constant dense<0.000000e+00> : vector<112x256xf32>
    %51 = tpu.matmul %48, %50, %cst_51 {dimension_numbers = #tpu.dot_dimension_numbers<[1], [0], [0], [1], [0, 0, 1, 1], [], []>} : vector<112x128xf32>, vector<128x256xf32>, vector<112x256xf32> -> vector<112x256xf32>
    %52 = arith.addf %47, %51 : vector<112x256xf32>
    %c16_52 = arith.constant 16 : index
    %c128_53 = arith.constant 128 : index
    %53 = vector.load %arg1[%c16_52, %c128_53] : memref<128x512xf32, #tpu.memory_space<vmem>>, vector<112x128xf32>
    %c4_54 = arith.constant 4 : index
    %c0_55 = arith.constant 0 : index
    %c0_56 = arith.constant 0 : index
    %54 = vector.load %arg2[%c4_54, %c0_55, %c0_56] : memref<5x128x256xf32, #tpu.memory_space<vmem>>, vector<1x128x256xf32>
    %55 = vector.shape_cast %54 : vector<1x128x256xf32> to vector<128x256xf32>
    %cst_57 = arith.constant dense<0.000000e+00> : vector<112x256xf32>
    %56 = tpu.matmul %53, %55, %cst_57 {dimension_numbers = #tpu.dot_dimension_numbers<[1], [0], [0], [1], [0, 0, 1, 1], [], []>} : vector<112x128xf32>, vector<128x256xf32>, vector<112x256xf32> -> vector<112x256xf32>
    %57 = arith.addf %52, %56 : vector<112x256xf32>
    %58 = vector.extract_strided_slice %57 {offsets = [0, 0], sizes = [112, 84], strides = [1, 1]} : vector<112x256xf32> to vector<112x84xf32>
    %59 = vector.extract_strided_slice %57 {offsets = [0, 128], sizes = [112, 84], strides = [1, 1]} : vector<112x256xf32> to vector<112x84xf32>
    %60 = arith.maximumf %58, %59 : vector<112x84xf32>
    %61 = arith.maximumf %31, %60 : vector<112x84xf32>
    %62 = vector.broadcast %0 : vector<1x84xf32> to vector<112x84xf32>
    %63 = arith.addf %61, %62 : vector<112x84xf32>
    %cst_58 = arith.constant 0.000000e+00 : f32
    %64 = vector.broadcast %cst_58 : f32 to vector<112x84xf32>
    %65 = arith.maximumf %63, %64 : vector<112x84xf32>
    %c0_59 = arith.constant 0 : index
    %c0_60 = arith.constant 0 : index
    %66 = vector.load %arg13[%c0_59, %c0_60] : memref<112x84xf32, #tpu.memory_space<vmem>>, vector<112x84xf32>
    tpu.vector_store %arg13[%c0_59, %c0_60], %65 {strides = array<i32>} : memref<112x84xf32, #tpu.memory_space<vmem>>, vector<112x84xf32>,
    %cst_61 = arith.constant 0.000000e+00 : f32
    %67 = vector.broadcast %cst_61 : f32 to vector<112x256xf32>
    %c0_62 = arith.constant 0 : index
    %c256_63 = arith.constant 256 : index
    %68 = vector.load %arg1[%c0_62, %c256_63] : memref<128x512xf32, #tpu.memory_space<vmem>>, vector<112x128xf32>
    %c0_64 = arith.constant 0 : index
    %c0_65 = arith.constant 0 : index
    %c0_66 = arith.constant 0 : index
    %69 = vector.load %arg2[%c0_64, %c0_65, %c0_66] : memref<5x128x256xf32, #tpu.memory_space<vmem>>, vector<1x128x256xf32>
    %70 = vector.shape_cast %69 : vector<1x128x256xf32> to vector<128x256xf32>
    %cst_67 = arith.constant dense<0.000000e+00> : vector<112x256xf32>
    %71 = tpu.matmul %68, %70, %cst_67 {dimension_numbers = #tpu.dot_dimension_numbers<[1], [0], [0], [1], [0, 0, 1, 1], [], []>} : vector<112x128xf32>, vector<128x256xf32>, vector<112x256xf32> -> vector<112x256xf32>
    %72 = arith.addf %67, %71 : vector<112x256xf32>
    %c0_68 = arith.constant 0 : index
    %c384_69 = arith.constant 384 : index
    %73 = vector.load %arg1[%c0_68, %c384_69] : memref<128x512xf32, #tpu.memory_space<vmem>>, vector<112x128xf32>
    %c1_70 = arith.constant 1 : index
    %c0_71 = arith.constant 0 : index
    %c0_72 = arith.constant 0 : index
    %74 = vector.load %arg2[%c1_70, %c0_71, %c0_72] : memref<5x128x256xf32, #tpu.memory_space<vmem>>, vector<1x128x256xf32>
    %75 = vector.shape_cast %74 : vector<1x128x256xf32> to vector<128x256xf32>
    %cst_73 = arith.constant dense<0.000000e+00> : vector<112x256xf32>
    %76 = tpu.matmul %73, %75, %cst_73 {dimension_numbers = #tpu.dot_dimension_numbers<[1], [0], [0], [1], [0, 0, 1, 1], [], []>} : vector<112x128xf32>, vector<128x256xf32>, vector<112x256xf32> -> vector<112x256xf32>
    %77 = arith.addf %72, %76 : vector<112x256xf32>
    %c16_74 = arith.constant 16 : index
    %c0_75 = arith.constant 0 : index
    %78 = vector.load %arg1[%c16_74, %c0_75] : memref<128x512xf32, #tpu.memory_space<vmem>>, vector<112x128xf32>
    %c2_76 = arith.constant 2 : index
    %c0_77 = arith.constant 0 : index
    %c0_78 = arith.constant 0 : index
    %79 = vector.load %arg2[%c2_76, %c0_77, %c0_78] : memref<5x128x256xf32, #tpu.memory_space<vmem>>, vector<1x128x256xf32>
    %80 = vector.shape_cast %79 : vector<1x128x256xf32> to vector<128x256xf32>
    %cst_79 = arith.constant dense<0.000000e+00> : vector<112x256xf32>
    %81 = tpu.matmul %78, %80, %cst_79 {dimension_numbers = #tpu.dot_dimension_numbers<[1], [0], [0], [1], [0, 0, 1, 1], [], []>} : vector<112x128xf32>, vector<128x256xf32>, vector<112x256xf32> -> vector<112x256xf32>
    %82 = arith.addf %77, %81 : vector<112x256xf32>
    %c16_80 = arith.constant 16 : index
    %c128_81 = arith.constant 128 : index
    %83 = vector.load %arg1[%c16_80, %c128_81] : memref<128x512xf32, #tpu.memory_space<vmem>>, vector<112x128xf32>
    %c3_82 = arith.constant 3 : index
    %c0_83 = arith.constant 0 : index
    %c0_84 = arith.constant 0 : index
    %84 = vector.load %arg2[%c3_82, %c0_83, %c0_84] : memref<5x128x256xf32, #tpu.memory_space<vmem>>, vector<1x128x256xf32>
    %85 = vector.shape_cast %84 : vector<1x128x256xf32> to vector<128x256xf32>
    %cst_85 = arith.constant dense<0.000000e+00> : vector<112x256xf32>
    %86 = tpu.matmul %83, %85, %cst_85 {dimension_numbers = #tpu.dot_dimension_numbers<[1], [0], [0], [1], [0, 0, 1, 1], [], []>} : vector<112x128xf32>, vector<128x256xf32>, vector<112x256xf32> -> vector<112x256xf32>
    %87 = arith.addf %82, %86 : vector<112x256xf32>
    %c16_86 = arith.constant 16 : index
    %c256_87 = arith.constant 256 : index
    %88 = vector.load %arg1[%c16_86, %c256_87] : memref<128x512xf32, #tpu.memory_space<vmem>>, vector<112x128xf32>
    %c4_88 = arith.constant 4 : index
    %c0_89 = arith.constant 0 : index
    %c0_90 = arith.constant 0 : index
    %89 = vector.load %arg2[%c4_88, %c0_89, %c0_90] : memref<5x128x256xf32, #tpu.memory_space<vmem>>, vector<1x128x256xf32>
    %90 = vector.shape_cast %89 : vector<1x128x256xf32> to vector<128x256xf32>
    %cst_91 = arith.constant dense<0.000000e+00> : vector<112x256xf32>
    %91 = tpu.matmul %88, %90, %cst_91 {dimension_numbers = #tpu.dot_dimension_numbers<[1], [0], [0], [1], [0, 0, 1, 1], [], []>} : vector<112x128xf32>, vector<128x256xf32>, vector<112x256xf32> -> vector<112x256xf32>
    %92 = arith.addf %87, %91 : vector<112x256xf32>
    %93 = vector.extract_strided_slice %92 {offsets = [0, 0], sizes = [112, 84], strides = [1, 1]} : vector<112x256xf32> to vector<112x84xf32>
    %94 = vector.extract_strided_slice %92 {offsets = [0, 128], sizes = [112, 84], strides = [1, 1]} : vector<112x256xf32> to vector<112x84xf32>
    %95 = arith.maximumf %93, %94 : vector<112x84xf32>
    %c0_92 = arith.constant 0 : index
    %c0_93 = arith.constant 0 : index
    %96 = vector.load %arg14[%c0_92, %c0_93] : memref<112x84xf32, #tpu.memory_space<vmem>>, vector<112x84xf32>
    tpu.vector_store %arg14[%c0_92, %c0_93], %95 {strides = array<i32>} : memref<112x84xf32, #tpu.memory_space<vmem>>, vector<112x84xf32>,
    %c0_94 = arith.constant 0 : index
    %c0_95 = arith.constant 0 : index
    %97 = vector.load %arg14[%c0_94, %c0_95] : memref<112x84xf32, #tpu.memory_space<vmem>>, vector<112x84xf32>
    %cst_96 = arith.constant 0.000000e+00 : f32
    %98 = vector.broadcast %cst_96 : f32 to vector<112x256xf32>
    %c0_97 = arith.constant 0 : index
    %c384_98 = arith.constant 384 : index
    %99 = vector.load %arg1[%c0_97, %c384_98] : memref<128x512xf32, #tpu.memory_space<vmem>>, vector<112x128xf32>
    %c0_99 = arith.constant 0 : index
    %c0_100 = arith.constant 0 : index
    %c0_101 = arith.constant 0 : index
    %100 = vector.load %arg2[%c0_99, %c0_100, %c0_101] : memref<5x128x256xf32, #tpu.memory_space<vmem>>, vector<1x128x256xf32>
    %101 = vector.shape_cast %100 : vector<1x128x256xf32> to vector<128x256xf32>
    %cst_102 = arith.constant dense<0.000000e+00> : vector<112x256xf32>
    %102 = tpu.matmul %99, %101, %cst_102 {dimension_numbers = #tpu.dot_dimension_numbers<[1], [0], [0], [1], [0, 0, 1, 1], [], []>} : vector<112x128xf32>, vector<128x256xf32>, vector<112x256xf32> -> vector<112x256xf32>
    %103 = arith.addf %98, %102 : vector<112x256xf32>
    %c16_103 = arith.constant 16 : index
    %c0_104 = arith.constant 0 : index
    %104 = vector.load %arg1[%c16_103, %c0_104] : memref<128x512xf32, #tpu.memory_space<vmem>>, vector<112x128xf32>
    %c1_105 = arith.constant 1 : index
    %c0_106 = arith.constant 0 : index
    %c0_107 = arith.constant 0 : index
    %105 = vector.load %arg2[%c1_105, %c0_106, %c0_107] : memref<5x128x256xf32, #tpu.memory_space<vmem>>, vector<1x128x256xf32>
    %106 = vector.shape_cast %105 : vector<1x128x256xf32> to vector<128x256xf32>
    %cst_108 = arith.constant dense<0.000000e+00> : vector<112x256xf32>
    %107 = tpu.matmul %104, %106, %cst_108 {dimension_numbers = #tpu.dot_dimension_numbers<[1], [0], [0], [1], [0, 0, 1, 1], [], []>} : vector<112x128xf32>, vector<128x256xf32>, vector<112x256xf32> -> vector<112x256xf32>
    %108 = arith.addf %103, %107 : vector<112x256xf32>
    %c16_109 = arith.constant 16 : index
    %c128_110 = arith.constant 128 : index
    %109 = vector.load %arg1[%c16_109, %c128_110] : memref<128x512xf32, #tpu.memory_space<vmem>>, vector<112x128xf32>
    %c2_111 = arith.constant 2 : index
    %c0_112 = arith.constant 0 : index
    %c0_113 = arith.constant 0 : index
    %110 = vector.load %arg2[%c2_111, %c0_112, %c0_113] : memref<5x128x256xf32, #tpu.memory_space<vmem>>, vector<1x128x256xf32>
    %111 = vector.shape_cast %110 : vector<1x128x256xf32> to vector<128x256xf32>
    %cst_114 = arith.constant dense<0.000000e+00> : vector<112x256xf32>
    %112 = tpu.matmul %109, %111, %cst_114 {dimension_numbers = #tpu.dot_dimension_numbers<[1], [0], [0], [1], [0, 0, 1, 1], [], []>} : vector<112x128xf32>, vector<128x256xf32>, vector<112x256xf32> -> vector<112x256xf32>
    %113 = arith.addf %108, %112 : vector<112x256xf32>
    %c16_115 = arith.constant 16 : index
    %c256_116 = arith.constant 256 : index
    %114 = vector.load %arg1[%c16_115, %c256_116] : memref<128x512xf32, #tpu.memory_space<vmem>>, vector<112x128xf32>
    %c3_117 = arith.constant 3 : index
    %c0_118 = arith.constant 0 : index
    %c0_119 = arith.constant 0 : index
    %115 = vector.load %arg2[%c3_117, %c0_118, %c0_119] : memref<5x128x256xf32, #tpu.memory_space<vmem>>, vector<1x128x256xf32>
    %116 = vector.shape_cast %115 : vector<1x128x256xf32> to vector<128x256xf32>
    %cst_120 = arith.constant dense<0.000000e+00> : vector<112x256xf32>
    %117 = tpu.matmul %114, %116, %cst_120 {dimension_numbers = #tpu.dot_dimension_numbers<[1], [0], [0], [1], [0, 0, 1, 1], [], []>} : vector<112x128xf32>, vector<128x256xf32>, vector<112x256xf32> -> vector<112x256xf32>
    %118 = arith.addf %113, %117 : vector<112x256xf32>
    %c16_121 = arith.constant 16 : index
    %c384_122 = arith.constant 384 : index
    %119 = vector.load %arg1[%c16_121, %c384_122] : memref<128x512xf32, #tpu.memory_space<vmem>>, vector<112x128xf32>
    %c4_123 = arith.constant 4 : index
    %c0_124 = arith.constant 0 : index
    %c0_125 = arith.constant 0 : index
    %120 = vector.load %arg2[%c4_123, %c0_124, %c0_125] : memref<5x128x256xf32, #tpu.memory_space<vmem>>, vector<1x128x256xf32>
    %121 = vector.shape_cast %120 : vector<1x128x256xf32> to vector<128x256xf32>
    %cst_126 = arith.constant dense<0.000000e+00> : vector<112x256xf32>
    %122 = tpu.matmul %119, %121, %cst_126 {dimension_numbers = #tpu.dot_dimension_numbers<[1], [0], [0], [1], [0, 0, 1, 1], [], []>} : vector<112x128xf32>, vector<128x256xf32>, vector<112x256xf32> -> vector<112x256xf32>
    %123 = arith.addf %118, %122 : vector<112x256xf32>
    %124 = vector.extract_strided_slice %123 {offsets = [0, 0], sizes = [112, 84], strides = [1, 1]} : vector<112x256xf32> to vector<112x84xf32>
    %125 = vector.extract_strided_slice %123 {offsets = [0, 128], sizes = [112, 84], strides = [1, 1]} : vector<112x256xf32> to vector<112x84xf32>
    %126 = arith.maximumf %124, %125 : vector<112x84xf32>
    %127 = arith.maximumf %97, %126 : vector<112x84xf32>
    %128 = vector.broadcast %0 : vector<1x84xf32> to vector<112x84xf32>
    %129 = arith.addf %127, %128 : vector<112x84xf32>
    %cst_127 = arith.constant 0.000000e+00 : f32
    %130 = vector.broadcast %cst_127 : f32 to vector<112x84xf32>
    %131 = arith.maximumf %129, %130 : vector<112x84xf32>
    %c0_128 = arith.constant 0 : index
    %c0_129 = arith.constant 0 : index
    %132 = vector.load %arg14[%c0_128, %c0_129] : memref<112x84xf32, #tpu.memory_space<vmem>>, vector<112x84xf32>
    tpu.vector_store %arg14[%c0_128, %c0_129], %131 {strides = array<i32>} : memref<112x84xf32, #tpu.memory_space<vmem>>, vector<112x84xf32>,
    %c0_130 = arith.constant 0 : index
    %c0_131 = arith.constant 0 : index
    %133 = vector.load %arg5[%c0_130, %c0_131] : memref<1x80xf32, #tpu.memory_space<vmem>>, vector<1x80xf32>
    %cst_132 = arith.constant 0.000000e+00 : f32
    %134 = vector.broadcast %cst_132 : f32 to vector<80x256xf32>
    %c0_133 = arith.constant 0 : index
    %c0_134 = arith.constant 0 : index
    %135 = vector.load %arg13[%c0_133, %c0_134] : memref<112x84xf32, #tpu.memory_space<vmem>>, vector<80x84xf32>
    %c0_135 = arith.constant 0 : index
    %c0_136 = arith.constant 0 : index
    %c0_137 = arith.constant 0 : index
    %136 = vector.load %arg4[%c0_135, %c0_136, %c0_137] : memref<5x84x256xf32, #tpu.memory_space<vmem>>, vector<1x84x256xf32>
    %137 = vector.shape_cast %136 : vector<1x84x256xf32> to vector<84x256xf32>
    %cst_138 = arith.constant dense<0.000000e+00> : vector<80x256xf32>
    %138 = tpu.matmul %135, %137, %cst_138 {dimension_numbers = #tpu.dot_dimension_numbers<[1], [0], [0], [1], [0, 0, 1, 1], [], []>} : vector<80x84xf32>, vector<84x256xf32>, vector<80x256xf32> -> vector<80x256xf32>
    %139 = arith.addf %134, %138 : vector<80x256xf32>
    %c0_139 = arith.constant 0 : index
    %c0_140 = arith.constant 0 : index
    %140 = vector.load %arg14[%c0_139, %c0_140] : memref<112x84xf32, #tpu.memory_space<vmem>>, vector<80x84xf32>
    %c1_141 = arith.constant 1 : index
    %c0_142 = arith.constant 0 : index
    %c0_143 = arith.constant 0 : index
    %141 = vector.load %arg4[%c1_141, %c0_142, %c0_143] : memref<5x84x256xf32, #tpu.memory_space<vmem>>, vector<1x84x256xf32>
    %142 = vector.shape_cast %141 : vector<1x84x256xf32> to vector<84x256xf32>
    %cst_144 = arith.constant dense<0.000000e+00> : vector<80x256xf32>
    %143 = tpu.matmul %140, %142, %cst_144 {dimension_numbers = #tpu.dot_dimension_numbers<[1], [0], [0], [1], [0, 0, 1, 1], [], []>} : vector<80x84xf32>, vector<84x256xf32>, vector<80x256xf32> -> vector<80x256xf32>
    %144 = arith.addf %139, %143 : vector<80x256xf32>
    %c16_145 = arith.constant 16 : index
    %c0_146 = arith.constant 0 : index
    %145 = vector.load %arg13[%c16_145, %c0_146] : memref<112x84xf32, #tpu.memory_space<vmem>>, vector<80x84xf32>
    %c2_147 = arith.constant 2 : index
    %c0_148 = arith.constant 0 : index
    %c0_149 = arith.constant 0 : index
    %146 = vector.load %arg4[%c2_147, %c0_148, %c0_149] : memref<5x84x256xf32, #tpu.memory_space<vmem>>, vector<1x84x256xf32>
    %147 = vector.shape_cast %146 : vector<1x84x256xf32> to vector<84x256xf32>
    %cst_150 = arith.constant dense<0.000000e+00> : vector<80x256xf32>
    %148 = tpu.matmul %145, %147, %cst_150 {dimension_numbers = #tpu.dot_dimension_numbers<[1], [0], [0], [1], [0, 0, 1, 1], [], []>} : vector<80x84xf32>, vector<84x256xf32>, vector<80x256xf32> -> vector<80x256xf32>
    %149 = arith.addf %144, %148 : vector<80x256xf32>
    %c16_151 = arith.constant 16 : index
    %c0_152 = arith.constant 0 : index
    %150 = vector.load %arg14[%c16_151, %c0_152] : memref<112x84xf32, #tpu.memory_space<vmem>>, vector<80x84xf32>
    %c3_153 = arith.constant 3 : index
    %c0_154 = arith.constant 0 : index
    %c0_155 = arith.constant 0 : index
    %151 = vector.load %arg4[%c3_153, %c0_154, %c0_155] : memref<5x84x256xf32, #tpu.memory_space<vmem>>, vector<1x84x256xf32>
    %152 = vector.shape_cast %151 : vector<1x84x256xf32> to vector<84x256xf32>
    %cst_156 = arith.constant dense<0.000000e+00> : vector<80x256xf32>
    %153 = tpu.matmul %150, %152, %cst_156 {dimension_numbers = #tpu.dot_dimension_numbers<[1], [0], [0], [1], [0, 0, 1, 1], [], []>} : vector<80x84xf32>, vector<84x256xf32>, vector<80x256xf32> -> vector<80x256xf32>
    %154 = arith.addf %149, %153 : vector<80x256xf32>
    %c32 = arith.constant 32 : index
    %c0_157 = arith.constant 0 : index
    %155 = vector.load %arg13[%c32, %c0_157] : memref<112x84xf32, #tpu.memory_space<vmem>>, vector<80x84xf32>
    %c4_158 = arith.constant 4 : index
    %c0_159 = arith.constant 0 : index
    %c0_160 = arith.constant 0 : index
    %156 = vector.load %arg4[%c4_158, %c0_159, %c0_160] : memref<5x84x256xf32, #tpu.memory_space<vmem>>, vector<1x84x256xf32>
    %157 = vector.shape_cast %156 : vector<1x84x256xf32> to vector<84x256xf32>
    %cst_161 = arith.constant dense<0.000000e+00> : vector<80x256xf32>
    %158 = tpu.matmul %155, %157, %cst_161 {dimension_numbers = #tpu.dot_dimension_numbers<[1], [0], [0], [1], [0, 0, 1, 1], [], []>} : vector<80x84xf32>, vector<84x256xf32>, vector<80x256xf32> -> vector<80x256xf32>
    %159 = arith.addf %154, %158 : vector<80x256xf32>
    %160 = vector.extract_strided_slice %159 {offsets = [0, 0], sizes = [80, 80], strides = [1, 1]} : vector<80x256xf32> to vector<80x80xf32>
    %161 = vector.extract_strided_slice %159 {offsets = [0, 128], sizes = [80, 80], strides = [1, 1]} : vector<80x256xf32> to vector<80x80xf32>
    %162 = arith.maximumf %160, %161 : vector<80x80xf32>
    %cst_162 = arith.constant 0.000000e+00 : f32
    %163 = vector.broadcast %cst_162 : f32 to vector<80x256xf32>
    %c0_163 = arith.constant 0 : index
    %c0_164 = arith.constant 0 : index
    %164 = vector.load %arg14[%c0_163, %c0_164] : memref<112x84xf32, #tpu.memory_space<vmem>>, vector<80x84xf32>
    %c0_165 = arith.constant 0 : index
    %c0_166 = arith.constant 0 : index
    %c0_167 = arith.constant 0 : index
    %165 = vector.load %arg4[%c0_165, %c0_166, %c0_167] : memref<5x84x256xf32, #tpu.memory_space<vmem>>, vector<1x84x256xf32>
    %166 = vector.shape_cast %165 : vector<1x84x256xf32> to vector<84x256xf32>
    %cst_168 = arith.constant dense<0.000000e+00> : vector<80x256xf32>
    %167 = tpu.matmul %164, %166, %cst_168 {dimension_numbers = #tpu.dot_dimension_numbers<[1], [0], [0], [1], [0, 0, 1, 1], [], []>} : vector<80x84xf32>, vector<84x256xf32>, vector<80x256xf32> -> vector<80x256xf32>
    %168 = arith.addf %163, %167 : vector<80x256xf32>
    %c16_169 = arith.constant 16 : index
    %c0_170 = arith.constant 0 : index
    %169 = vector.load %arg13[%c16_169, %c0_170] : memref<112x84xf32, #tpu.memory_space<vmem>>, vector<80x84xf32>
    %c1_171 = arith.constant 1 : index
    %c0_172 = arith.constant 0 : index
    %c0_173 = arith.constant 0 : index
    %170 = vector.load %arg4[%c1_171, %c0_172, %c0_173] : memref<5x84x256xf32, #tpu.memory_space<vmem>>, vector<1x84x256xf32>
    %171 = vector.shape_cast %170 : vector<1x84x256xf32> to vector<84x256xf32>
    %cst_174 = arith.constant dense<0.000000e+00> : vector<80x256xf32>
    %172 = tpu.matmul %169, %171, %cst_174 {dimension_numbers = #tpu.dot_dimension_numbers<[1], [0], [0], [1], [0, 0, 1, 1], [], []>} : vector<80x84xf32>, vector<84x256xf32>, vector<80x256xf32> -> vector<80x256xf32>
    %173 = arith.addf %168, %172 : vector<80x256xf32>
    %c16_175 = arith.constant 16 : index
    %c0_176 = arith.constant 0 : index
    %174 = vector.load %arg14[%c16_175, %c0_176] : memref<112x84xf32, #tpu.memory_space<vmem>>, vector<80x84xf32>
    %c2_177 = arith.constant 2 : index
    %c0_178 = arith.constant 0 : index
    %c0_179 = arith.constant 0 : index
    %175 = vector.load %arg4[%c2_177, %c0_178, %c0_179] : memref<5x84x256xf32, #tpu.memory_space<vmem>>, vector<1x84x256xf32>
    %176 = vector.shape_cast %175 : vector<1x84x256xf32> to vector<84x256xf32>
    %cst_180 = arith.constant dense<0.000000e+00> : vector<80x256xf32>
    %177 = tpu.matmul %174, %176, %cst_180 {dimension_numbers = #tpu.dot_dimension_numbers<[1], [0], [0], [1], [0, 0, 1, 1], [], []>} : vector<80x84xf32>, vector<84x256xf32>, vector<80x256xf32> -> vector<80x256xf32>
    %178 = arith.addf %173, %177 : vector<80x256xf32>
    %c32_181 = arith.constant 32 : index
    %c0_182 = arith.constant 0 : index
    %179 = vector.load %arg13[%c32_181, %c0_182] : memref<112x84xf32, #tpu.memory_space<vmem>>, vector<80x84xf32>
    %c3_183 = arith.constant 3 : index
    %c0_184 = arith.constant 0 : index
    %c0_185 = arith.constant 0 : index
    %180 = vector.load %arg4[%c3_183, %c0_184, %c0_185] : memref<5x84x256xf32, #tpu.memory_space<vmem>>, vector<1x84x256xf32>
    %181 = vector.shape_cast %180 : vector<1x84x256xf32> to vector<84x256xf32>
    %cst_186 = arith.constant dense<0.000000e+00> : vector<80x256xf32>
    %182 = tpu.matmul %179, %181, %cst_186 {dimension_numbers = #tpu.dot_dimension_numbers<[1], [0], [0], [1], [0, 0, 1, 1], [], []>} : vector<80x84xf32>, vector<84x256xf32>, vector<80x256xf32> -> vector<80x256xf32>
    %183 = arith.addf %178, %182 : vector<80x256xf32>
    %c32_187 = arith.constant 32 : index
    %c0_188 = arith.constant 0 : index
    %184 = vector.load %arg14[%c32_187, %c0_188] : memref<112x84xf32, #tpu.memory_space<vmem>>, vector<80x84xf32>
    %c4_189 = arith.constant 4 : index
    %c0_190 = arith.constant 0 : index
    %c0_191 = arith.constant 0 : index
    %185 = vector.load %arg4[%c4_189, %c0_190, %c0_191] : memref<5x84x256xf32, #tpu.memory_space<vmem>>, vector<1x84x256xf32>
    %186 = vector.shape_cast %185 : vector<1x84x256xf32> to vector<84x256xf32>
    %cst_192 = arith.constant dense<0.000000e+00> : vector<80x256xf32>
    %187 = tpu.matmul %184, %186, %cst_192 {dimension_numbers = #tpu.dot_dimension_numbers<[1], [0], [0], [1], [0, 0, 1, 1], [], []>} : vector<80x84xf32>, vector<84x256xf32>, vector<80x256xf32> -> vector<80x256xf32>
    %188 = arith.addf %183, %187 : vector<80x256xf32>
    %189 = vector.extract_strided_slice %188 {offsets = [0, 0], sizes = [80, 80], strides = [1, 1]} : vector<80x256xf32> to vector<80x80xf32>
    %190 = vector.extract_strided_slice %188 {offsets = [0, 128], sizes = [80, 80], strides = [1, 1]} : vector<80x256xf32> to vector<80x80xf32>
    %191 = arith.maximumf %189, %190 : vector<80x80xf32>
    %192 = arith.maximumf %162, %191 : vector<80x80xf32>
    %193 = vector.broadcast %133 : vector<1x80xf32> to vector<80x80xf32>
    %194 = arith.addf %192, %193 : vector<80x80xf32>
    %cst_193 = arith.constant 0.000000e+00 : f32
    %195 = vector.broadcast %cst_193 : f32 to vector<80x80xf32>
    %196 = arith.maximumf %194, %195 : vector<80x80xf32>
    %c0_194 = arith.constant 0 : index
    %c0_195 = arith.constant 0 : index
    %197 = vector.load %arg7[%c0_194, %c0_195] : memref<1x120xf32, #tpu.memory_space<vmem>>, vector<1x120xf32>
    %198 = vector.extract_strided_slice %196 {offsets = [0, 0], sizes = [16, 80], strides = [1, 1]} : vector<80x80xf32> to vector<16x80xf32>
    %c0_196 = arith.constant 0 : index
    %c0_197 = arith.constant 0 : index
    %c0_198 = arith.constant 0 : index
    %199 = vector.load %arg6[%c0_196, %c0_197, %c0_198] : memref<5x80x120xf32, #tpu.memory_space<vmem>>, vector<1x80x120xf32>
    %200 = vector.shape_cast %199 : vector<1x80x120xf32> to vector<80x120xf32>
    %cst_199 = arith.constant dense<0.000000e+00> : vector<16x120xf32>
    %201 = tpu.matmul %198, %200, %cst_199 {dimension_numbers = #tpu.dot_dimension_numbers<[1], [0], [0], [1], [0, 0, 1, 1], [], []>} : vector<16x80xf32>, vector<80x120xf32>, vector<16x120xf32> -> vector<16x120xf32>
    %202 = vector.broadcast %197 : vector<1x120xf32> to vector<16x120xf32>
    %203 = arith.addf %202, %201 : vector<16x120xf32>
    %204 = vector.extract_strided_slice %196 {offsets = [16, 0], sizes = [16, 80], strides = [1, 1]} : vector<80x80xf32> to vector<16x80xf32>
    %c1_200 = arith.constant 1 : index
    %c0_201 = arith.constant 0 : index
    %c0_202 = arith.constant 0 : index
    %205 = vector.load %arg6[%c1_200, %c0_201, %c0_202] : memref<5x80x120xf32, #tpu.memory_space<vmem>>, vector<1x80x120xf32>
    %206 = vector.shape_cast %205 : vector<1x80x120xf32> to vector<80x120xf32>
    %cst_203 = arith.constant dense<0.000000e+00> : vector<16x120xf32>
    %207 = tpu.matmul %204, %206, %cst_203 {dimension_numbers = #tpu.dot_dimension_numbers<[1], [0], [0], [1], [0, 0, 1, 1], [], []>} : vector<16x80xf32>, vector<80x120xf32>, vector<16x120xf32> -> vector<16x120xf32>
    %208 = arith.addf %203, %207 : vector<16x120xf32>
    %209 = vector.extract_strided_slice %196 {offsets = [32, 0], sizes = [16, 80], strides = [1, 1]} : vector<80x80xf32> to vector<16x80xf32>
    %c2_204 = arith.constant 2 : index
    %c0_205 = arith.constant 0 : index
    %c0_206 = arith.constant 0 : index
    %210 = vector.load %arg6[%c2_204, %c0_205, %c0_206] : memref<5x80x120xf32, #tpu.memory_space<vmem>>, vector<1x80x120xf32>
    %211 = vector.shape_cast %210 : vector<1x80x120xf32> to vector<80x120xf32>
    %cst_207 = arith.constant dense<0.000000e+00> : vector<16x120xf32>
    %212 = tpu.matmul %209, %211, %cst_207 {dimension_numbers = #tpu.dot_dimension_numbers<[1], [0], [0], [1], [0, 0, 1, 1], [], []>} : vector<16x80xf32>, vector<80x120xf32>, vector<16x120xf32> -> vector<16x120xf32>
    %213 = arith.addf %208, %212 : vector<16x120xf32>
    %214 = vector.extract_strided_slice %196 {offsets = [48, 0], sizes = [16, 80], strides = [1, 1]} : vector<80x80xf32> to vector<16x80xf32>
    %c3_208 = arith.constant 3 : index
    %c0_209 = arith.constant 0 : index
    %c0_210 = arith.constant 0 : index
    %215 = vector.load %arg6[%c3_208, %c0_209, %c0_210] : memref<5x80x120xf32, #tpu.memory_space<vmem>>, vector<1x80x120xf32>
    %216 = vector.shape_cast %215 : vector<1x80x120xf32> to vector<80x120xf32>
    %cst_211 = arith.constant dense<0.000000e+00> : vector<16x120xf32>
    %217 = tpu.matmul %214, %216, %cst_211 {dimension_numbers = #tpu.dot_dimension_numbers<[1], [0], [0], [1], [0, 0, 1, 1], [], []>} : vector<16x80xf32>, vector<80x120xf32>, vector<16x120xf32> -> vector<16x120xf32>
    %218 = arith.addf %213, %217 : vector<16x120xf32>
    %219 = vector.extract_strided_slice %196 {offsets = [64, 0], sizes = [16, 80], strides = [1, 1]} : vector<80x80xf32> to vector<16x80xf32>
    %c4_212 = arith.constant 4 : index
    %c0_213 = arith.constant 0 : index
    %c0_214 = arith.constant 0 : index
    %220 = vector.load %arg6[%c4_212, %c0_213, %c0_214] : memref<5x80x120xf32, #tpu.memory_space<vmem>>, vector<1x80x120xf32>
    %221 = vector.shape_cast %220 : vector<1x80x120xf32> to vector<80x120xf32>
    %cst_215 = arith.constant dense<0.000000e+00> : vector<16x120xf32>
    %222 = tpu.matmul %219, %221, %cst_215 {dimension_numbers = #tpu.dot_dimension_numbers<[1], [0], [0], [1], [0, 0, 1, 1], [], []>} : vector<16x80xf32>, vector<80x120xf32>, vector<16x120xf32> -> vector<16x120xf32>
    %223 = arith.addf %218, %222 : vector<16x120xf32>
    %cst_216 = arith.constant 0.000000e+00 : f32
    %224 = vector.broadcast %cst_216 : f32 to vector<16x120xf32>
    %225 = arith.maximumf %223, %224 : vector<16x120xf32>
    %c0_217 = arith.constant 0 : index
    %c0_218 = arith.constant 0 : index
    %226 = vector.load %arg8[%c0_217, %c0_218] : memref<120x84xf32, #tpu.memory_space<vmem>>, vector<120x84xf32>
    %cst_219 = arith.constant dense<0.000000e+00> : vector<16x84xf32>
    %227 = tpu.matmul %225, %226, %cst_219 {dimension_numbers = #tpu.dot_dimension_numbers<[1], [0], [0], [1], [0, 0, 1, 1], [], []>} : vector<16x120xf32>, vector<120x84xf32>, vector<16x84xf32> -> vector<16x84xf32>
    %c0_220 = arith.constant 0 : index
    %c0_221 = arith.constant 0 : index
    %228 = vector.load %arg9[%c0_220, %c0_221] : memref<1x84xf32, #tpu.memory_space<vmem>>, vector<1x84xf32>
    %229 = vector.broadcast %228 : vector<1x84xf32> to vector<16x84xf32>
    %230 = arith.addf %227, %229 : vector<16x84xf32>
    %cst_222 = arith.constant 0.000000e+00 : f32
    %231 = vector.broadcast %cst_222 : f32 to vector<16x84xf32>
    %232 = arith.maximumf %230, %231 : vector<16x84xf32>
    %c0_223 = arith.constant 0 : index
    %c0_224 = arith.constant 0 : index
    %233 = vector.load %arg10[%c0_223, %c0_224] : memref<84x128xf32, #tpu.memory_space<vmem>>, vector<84x128xf32>
    %cst_225 = arith.constant dense<0.000000e+00> : vector<16x128xf32>
    %234 = tpu.matmul %232, %233, %cst_225 {dimension_numbers = #tpu.dot_dimension_numbers<[1], [0], [0], [1], [0, 0, 1, 1], [], []>} : vector<16x84xf32>, vector<84x128xf32>, vector<16x128xf32> -> vector<16x128xf32>
    %c0_226 = arith.constant 0 : index
    %c0_227 = arith.constant 0 : index
    %235 = vector.load %arg11[%c0_226, %c0_227] : memref<1x128xf32, #tpu.memory_space<vmem>>, vector<1x128xf32>
    %236 = vector.broadcast %235 : vector<1x128xf32> to vector<16x128xf32>
    %237 = arith.addf %234, %236 : vector<16x128xf32>
    %c0_228 = arith.constant 0 : index
    %c0_229 = arith.constant 0 : index
    %238 = vector.load %arg12[%c0_228, %c0_229] : memref<16x128xf32, #tpu.memory_space<vmem>>, vector<16x128xf32>
    tpu.vector_store %arg12[%c0_228, %c0_229], %237 {strides = array<i32>} : memref<16x128xf32, #tpu.memory_space<vmem>>, vector<16x128xf32>,
    return
  }
  func.func @transform_0(%arg0: i32) -> (i32, i32) {
    %c0_i32 = arith.constant 0 : i32
    %c0_i32_0 = arith.constant 0 : i32
    return %arg0, %c0_i32 : i32, i32
  }
  func.func @transform_1(%arg0: i32) -> (i32, i32, i32) {
    %c0_i32 = arith.constant 0 : i32
    %c0_i32_0 = arith.constant 0 : i32
    %c0_i32_1 = arith.constant 0 : i32
    %c0_i32_2 = arith.constant 0 : i32
    return %c0_i32, %c0_i32_0, %c0_i32_1 : i32, i32, i32
  }
  func.func @transform_2(%arg0: i32) -> (i32, i32) {
    %c0_i32 = arith.constant 0 : i32
    %c0_i32_0 = arith.constant 0 : i32
    %c0_i32_1 = arith.constant 0 : i32
    return %c0_i32, %c0_i32_0 : i32, i32
  }
  func.func @transform_3(%arg0: i32) -> (i32, i32, i32) {
    %c0_i32 = arith.constant 0 : i32
    %c0_i32_0 = arith.constant 0 : i32
    %c0_i32_1 = arith.constant 0 : i32
    %c0_i32_2 = arith.constant 0 : i32
    return %c0_i32, %c0_i32_0, %c0_i32_1 : i32, i32, i32
  }
  func.func @transform_4(%arg0: i32) -> (i32, i32) {
    %c0_i32 = arith.constant 0 : i32
    %c0_i32_0 = arith.constant 0 : i32
    %c0_i32_1 = arith.constant 0 : i32
    return %c0_i32, %c0_i32_0 : i32, i32
  }
  func.func @transform_5(%arg0: i32) -> (i32, i32, i32) {
    %c0_i32 = arith.constant 0 : i32
    %c0_i32_0 = arith.constant 0 : i32
    %c0_i32_1 = arith.constant 0 : i32
    %c0_i32_2 = arith.constant 0 : i32
    return %c0_i32, %c0_i32_0, %c0_i32_1 : i32, i32, i32
  }
  func.func @transform_6(%arg0: i32) -> (i32, i32) {
    %c0_i32 = arith.constant 0 : i32
    %c0_i32_0 = arith.constant 0 : i32
    %c0_i32_1 = arith.constant 0 : i32
    return %c0_i32, %c0_i32_0 : i32, i32
  }
  func.func @transform_7(%arg0: i32) -> (i32, i32) {
    %c0_i32 = arith.constant 0 : i32
    %c0_i32_0 = arith.constant 0 : i32
    %c0_i32_1 = arith.constant 0 : i32
    return %c0_i32, %c0_i32_0 : i32, i32
  }
  func.func @transform_8(%arg0: i32) -> (i32, i32) {
    %c0_i32 = arith.constant 0 : i32
    %c0_i32_0 = arith.constant 0 : i32
    %c0_i32_1 = arith.constant 0 : i32
    return %c0_i32, %c0_i32_0 : i32, i32
  }
  func.func @transform_9(%arg0: i32) -> (i32, i32) {
    %c0_i32 = arith.constant 0 : i32
    %c0_i32_0 = arith.constant 0 : i32
    %c0_i32_1 = arith.constant 0 : i32
    return %c0_i32, %c0_i32_0 : i32, i32
  }
  func.func @transform_10(%arg0: i32) -> (i32, i32) {
    %c0_i32 = arith.constant 0 : i32
    %c0_i32_0 = arith.constant 0 : i32
    %c0_i32_1 = arith.constant 0 : i32
    return %c0_i32, %c0_i32_0 : i32, i32
  }
  func.func @transform_11(%arg0: i32) -> (i32, i32) {
    %c0_i32 = arith.constant 0 : i32
    %c0_i32_0 = arith.constant 0 : i32
    return %arg0, %c0_i32 : i32, i32
  }
}

</mosaic_0001>

<bundles_post_ra>
// kernel: convnet_forward.1
= control target key start
LH: loop header
LB: loop body
LE: loop exit
PB: predicated region body
PF: predicated region fallthrough
CT: control target
= control target key end

     0   :  { %s7148_s17 = smov 0   ;;  %s12491_s0 = inlined_call_operand.vmem [shape: f32[256,512], index: 0, kind: input, shape index: {}]   ;;  %s12492_s1 = inlined_call_operand.vmem [shape: f32[5,128,256], index: 1, kind: input, shape index: {}]   ;;  %s12493_s2 = inlined_call_operand.vmem [shape: f32[1,84], index: 2, kind: input, shape index: {}]   ;;  %s12494_s3 = inlined_call_operand.vmem [shape: f32[5,84,256], index: 3, kind: input, shape index: {}]   ;;  %s12495_s4 = inlined_call_operand.vmem [shape: f32[1,80], index: 4, kind: input, shape index: {}]   ;;  %s12496_s5 = inlined_call_operand.vmem [shape: f32[5,80,120], index: 5, kind: input, shape index: {}]   ;;  %s12497_s6 = inlined_call_operand.vmem [shape: f32[1,120], index: 6, kind: input, shape index: {}]   ;;  %s12498_s7 = inlined_call_operand.vmem [shape: f32[120,84], index: 7, kind: input, shape index: {}]   ;;  %s12499_s8 = inlined_call_operand.vmem [shape: f32[1,84], index: 8, kind: input, shape index: {}]   ;;  %s12500_s9 = inlined_call_operand.vmem [shape: f32[84,128], index: 9, kind: input, shape index: {}]   ;;  %s12501_s10 = inlined_call_operand.vmem [shape: f32[1,128], index: 10, kind: input, shape index: {}]   ;;  %s12502_s11 = inlined_call_operand.vmem [shape: f32[32,128], index: 11, kind: output, shape index: {}]  }
   0x1 LB: > { %s6113_s18 = sadd.s32 4294967295, %s7086_s17   ;;  %p6117_p0 = scmp.ge.s32.totalorder %s7086_s17, 1  ;;  %s7086_s17 = sphi %s7148_s17, %s21_s17  }
   0x2   : > { %p339_p1 = scmp.lt.s32.totalorder %s7086_s17, 3 }
   0x4   : > { %p340_p2 = pnand %p6117_p0, %p339_p1 }
   0x6   : > { %343 = sbr.rel (%p340_p2) target bundleno = 2129 (0x851), region = 64 }
   0xb   : > { %v7159_v0 = vld [vmem:[%s12492_s1 + $0x1f0] sm:$0xff]  ;;  %v7164_v1 = vld [vmem:[%s12492_s1 + $0x1f8] sm:$0xff]  ;;  %v7177_v4 = vld [vmem:[%s12492_s1 + $0x1e0] sm:$0xff]  ;;  %s7292_s28 = sshll.u32 %s6113_s18, 4  ;;  %vm1316_vm0 = vcmask 687104   ;;  %vm4338_vm1 = vcmask 1043456  }
   0xc   : > { %v438_v2 = vld [vmem:[%s12492_s1 + $0xf0] sm:$0xff]  ;;  %487 = vmatpush.msra.mxu0 %v7159_v0  ;;  %546 = vmatpush.msra.mxu1 %v7164_v1  ;;  %v439_v3 = vld [vmem:[%s12492_s1 + $0xf8] sm:$0xff]  ;;  %v7182_v5 = vld [vmem:[%s12492_s1 + $0x1e8] sm:$0xff]  ;;  %p381_p3 = scmp.lt.s32.totalorder %s7292_s28, 31  ;;  %vm5752_vm2 = vcmask 654336   ;;  %vm5976_vm3 = vcmask 982016  }
   0xd   : > { %605 = vmatpush.msra.mxu2 %v438_v2  ;;  %664 = vmatpush.msra.mxu3 %v439_v3  ;;  %v436_v6 = vld [vmem:[%s12492_s1 + $0xe0] sm:$0xff]  ;;  %v437_v7 = vld [vmem:[%s12492_s1 + $0xe8] sm:$0xff]  ;;  %v7193_v8 = vld [vmem:[%s12492_s1 + $0x1d0] sm:$0xff]  ;;  %s6121_s27 = sshll.u32 %s6113_s18, 1 }
   0xe   : > { %488 = vmatpush.msra.mxu0 %v7177_v4  ;;  %547 = vmatpush.msra.mxu1 %v7182_v5  ;;  %v7200_v9 = vld [vmem:[%s12492_s1 + $0x1d8] sm:$0xff]  ;;  %v434_v10 = vld [vmem:[%s12492_s1 + $0xd0] sm:$0xff]  ;;  %v7211_v12 = vld [vmem:[%s12492_s1 + $0x1c0] sm:$0xff]  ;;  %s12732_s28 = smov (!%p381_p3, %s7292_s28), 31  ;;  %p388_p4 = scmp.lt.s32.totalorder %s6121_s27, 3 }
   0xf   : > { %v435_v11 = vld [vmem:[%s12492_s1 + $0xd8] sm:$0xff]  ;;  %606 = vmatpush.msra.mxu2 %v436_v6  ;;  %665 = vmatpush.msra.mxu3 %v437_v7  ;;  %v7216_v13 = vld [vmem:[%s12492_s1 + $0x1c8] sm:$0xff]  ;;  %v432_v14 = vld [vmem:[%s12492_s1 + $0xc0] sm:$0xff]  ;;  %s7000_s24 = sshll.u32 %s12732_s28, 5 }
  0x10   : > { %489 = vmatpush.msra.mxu0 %v7193_v8  ;;  %548 = vmatpush.msra.mxu1 %v7200_v9  ;;  %v433_v15 = vld [vmem:[%s12492_s1 + $0xc8] sm:$0xff]  ;;  %v7229_v16 = vld [vmem:[%s12492_s1 + $0x1b0] sm:$0xff]  ;;  %v7234_v17 = vld [vmem:[%s12492_s1 + $0x1b8] sm:$0xff]  ;;  %s7430_s22 = scalar_lea.vmem %s12491_s0, %s7000_s24  ;;  %s12734_s27 = smov (!%p388_p4, %s6121_s27), 3 }
  0x11   : > { %607 = vmatpush.msra.mxu2 %v434_v10  ;;  %666 = vmatpush.msra.mxu3 %v435_v11  ;;  %v430_v18 = vld [vmem:[%s12492_s1 + $0xb0] sm:$0xff]  ;;  %v431_v19 = vld [vmem:[%s12492_s1 + $0xb8] sm:$0xff]  ;;  %v7247_v20 = vld [vmem:[%s12492_s1 + $0x1a0] sm:$0xff]  ;;  %s6122_s29 = sshll.u32 %s12734_s27, 3 }
  0x12   : > { %490 = vmatpush.msra.mxu0 %v7211_v12  ;;  %549 = vmatpush.msra.mxu1 %v7216_v13  ;;  %v7252_v21 = vld [vmem:[%s12492_s1 + $0x1a8] sm:$0xff]  ;;  %v428_v22 = vld [vmem:[%s12492_s1 + $0xa0] sm:$0xff]  ;;  %v7265_v24 = vld [vmem:[%s12492_s1 + $0x190] sm:$0xff]  ;;  %s391_s13 = scalar_lea.vmem %s12502_s11, %s6122_s29 }
  0x13   : > { %608 = vmatpush.msra.mxu2 %v432_v14  ;;  %667 = vmatpush.msra.mxu3 %v433_v15  ;;  %v429_v23 = vld [vmem:[%s12492_s1 + $0xa8] sm:$0xff]  ;;  %v7270_v25 = vld [vmem:[%s12492_s1 + $0x198] sm:$0xff]  ;;  %v426_v26 = vld [vmem:[%s12492_s1 + $0x90] sm:$0xff] }
  0x14   : > { %491 = vmatpush.msra.mxu0 %v7229_v16  ;;  %550 = vmatpush.msra.mxu1 %v7234_v17  ;;  %v427_v27 = vld [vmem:[%s12492_s1 + $0x98] sm:$0xff]  ;;  %v7283_v28 = vld [vmem:[%s12492_s1 + $0x180] sm:$0xff]  ;;  %v7288_v29 = vld [vmem:[%s12492_s1 + $0x188] sm:$0xff] }
  0x15   : > { %609 = vmatpush.msra.mxu2 %v430_v18  ;;  %668 = vmatpush.msra.mxu3 %v431_v19  ;;  %v424_v30 = vld [vmem:[%s12492_s1 + $0x80] sm:$0xff]  ;;  %v425_v31 = vld [vmem:[%s12492_s1 + $0x88] sm:$0xff]  ;;  %v7305_v32 = vld [vmem:[%s12492_s1 + $0x170] sm:$0xff] }
  0x16   : > { %492 = vmatpush.msra.mxu0 %v7247_v20  ;;  %551 = vmatpush.msra.mxu1 %v7252_v21  ;;  %v7310_v33 = vld [vmem:[%s12492_s1 + $0x178] sm:$0xff]  ;;  %v422_v34 = vld [vmem:[%s12492_s1 + $0x70] sm:$0xff]  ;;  %v7324_v36 = vld [vmem:[%s12492_s1 + $0x160] sm:$0xff] }
  0x17   : > { %610 = vmatpush.msra.mxu2 %v428_v22  ;;  %669 = vmatpush.msra.mxu3 %v429_v23  ;;  %v423_v35 = vld [vmem:[%s12492_s1 + $0x78] sm:$0xff]  ;;  %v7329_v37 = vld [vmem:[%s12492_s1 + $0x168] sm:$0xff]  ;;  %v420_v38 = vld [vmem:[%s12492_s1 + $0x60] sm:$0xff] }
  0x18   : > { %493 = vmatpush.msra.mxu0 %v7265_v24  ;;  %552 = vmatpush.msra.mxu1 %v7270_v25  ;;  %v421_v39 = vld [vmem:[%s12492_s1 + $0x68] sm:$0xff]  ;;  %v7342_v40 = vld [vmem:[%s12492_s1 + $0x150] sm:$0xff]  ;;  %v7347_v41 = vld [vmem:[%s12492_s1 + $0x158] sm:$0xff] }
  0x19   : > { %611 = vmatpush.msra.mxu2 %v426_v26  ;;  %670 = vmatpush.msra.mxu3 %v427_v27  ;;  %v418_v42 = vld [vmem:[%s12492_s1 + $0x50] sm:$0xff]  ;;  %v419_v43 = vld [vmem:[%s12492_s1 + $0x58] sm:$0xff]  ;;  %v7365_v44 = vld [vmem:[%s12492_s1 + $0x140] sm:$0xff] }
  0x1a   : > { %494 = vmatpush.msra.mxu0 %v7283_v28  ;;  %553 = vmatpush.msra.mxu1 %v7288_v29  ;;  %v7370_v45 = vld [vmem:[%s12492_s1 + $0x148] sm:$0xff]  ;;  %v416_v46 = vld [vmem:[%s12492_s1 + $0x40] sm:$0xff]  ;;  %v7383_v48 = vld [vmem:[%s12492_s1 + $0x130] sm:$0xff] }
  0x1b   : > { %612 = vmatpush.msra.mxu2 %v424_v30  ;;  %671 = vmatpush.msra.mxu3 %v425_v31  ;;  %v417_v47 = vld [vmem:[%s12492_s1 + $0x48] sm:$0xff]  ;;  %v7388_v49 = vld [vmem:[%s12492_s1 + $0x138] sm:$0xff]  ;;  %v414_v50 = vld [vmem:[%s12492_s1 + $0x30] sm:$0xff] }
  0x1c   : > { %495 = vmatpush.msra.mxu0 %v7305_v32  ;;  %554 = vmatpush.msra.mxu1 %v7310_v33  ;;  %v415_v51 = vld [vmem:[%s12492_s1 + $0x38] sm:$0xff]  ;;  %v7402_v52 = vld [vmem:[%s12492_s1 + $0x120] sm:$0xff]  ;;  %v7407_v53 = vld [vmem:[%s12492_s1 + $0x128] sm:$0xff] }
  0x1d   : > { %613 = vmatpush.msra.mxu2 %v422_v34  ;;  %672 = vmatpush.msra.mxu3 %v423_v35  ;;  %v412_v54 = vld [vmem:[%s12492_s1 + $0x20] sm:$0xff]  ;;  %v413_v55 = vld [vmem:[%s12492_s1 + $0x28] sm:$0xff]  ;;  %v7420_v56 = vld [vmem:[%s12492_s1 + $0x110] sm:$0xff] }
  0x1e   : > { %496 = vmatpush.msra.mxu0 %v7324_v36  ;;  %555 = vmatpush.msra.mxu1 %v7329_v37  ;;  %v7425_v57 = vld [vmem:[%s12492_s1 + $0x118] sm:$0xff]  ;;  %v410_v58 = vld [vmem:[%s12492_s1 + $0x10] sm:$0xff]  ;;  %v7443_v60 = vld [vmem:[%s12492_s1 + $0x100] sm:$0xff] }
  0x1f   : > { %614 = vmatpush.msra.mxu2 %v420_v38  ;;  %673 = vmatpush.msra.mxu3 %v421_v39  ;;  %v411_v59 = vld [vmem:[%s12492_s1 + $0x18] sm:$0xff]  ;;  %v7448_v61 = vld [vmem:[%s12492_s1 + $0x108] sm:$0xff]  ;;  %v408_v62 = vld [vmem:[%s12492_s1] sm:$0xff] }
  0x20   : > { %497 = vmatpush.msra.mxu0 %v7342_v40  ;;  %556 = vmatpush.msra.mxu1 %v7347_v41  ;;  %v409_v63 = vld [vmem:[%s12492_s1 + $0x8] sm:$0xff]  ;;  %v394_v3 = vld [vmem:[%s7430_s22] sm:$0xff]  ;;  %v6217_v6 = vld [vmem:[%s12492_s1 + $0x3f0] sm:$0xff] }
  0x21   : > { %615 = vmatpush.msra.mxu2 %v418_v42  ;;  %674 = vmatpush.msra.mxu3 %v419_v43  ;;  %v440_v2 = vld [vmem:[%s7430_s22 + $0x8] sm:$0xff]  ;;  %v6218_v7 = vld [vmem:[%s12492_s1 + $0x3f8] sm:$0xff]  ;;  %v7471_v10 = vld [vmem:[%s12492_s1 + $0x2f0] sm:$0xff] }
  0x22   : > { %498 = vmatpush.msra.mxu0 %v7365_v44  ;;  %557 = vmatpush.msra.mxu1 %v7370_v45  ;;  %v7476_v11 = vld [vmem:[%s12492_s1 + $0x2f8] sm:$0xff]  ;;  %v6215_v14 = vld [vmem:[%s12492_s1 + $0x3e0] sm:$0xff]  ;;  %v6216_v15 = vld [vmem:[%s12492_s1 + $0x3e8] sm:$0xff] }
  0x23   : > { %616 = vmatpush.msra.mxu2 %v416_v46  ;;  %675 = vmatpush.msra.mxu3 %v417_v47  ;;  %v7487_v18 = vld [vmem:[%s12492_s1 + $0x2e0] sm:$0xff]  ;;  %v7492_v19 = vld [vmem:[%s12492_s1 + $0x2e8] sm:$0xff]  ;;  %v6213_v22 = vld [vmem:[%s12492_s1 + $0x3d0] sm:$0xff] }
  0x24   : > { %499 = vmatpush.msra.mxu0 %v7383_v48  ;;  %558 = vmatpush.msra.mxu1 %v7388_v49  ;;  %v6214_v23 = vld [vmem:[%s12492_s1 + $0x3d8] sm:$0xff]  ;;  %v7505_v26 = vld [vmem:[%s12492_s1 + $0x2d0] sm:$0xff]  ;;  %v441_v30 = vld [vmem:[%s7430_s22 + $0x28] sm:$0xff] }
  0x25   : > { %617 = vmatpush.msra.mxu2 %v414_v50  ;;  %676 = vmatpush.msra.mxu3 %v415_v51  ;;  %v7510_v27 = vld [vmem:[%s12492_s1 + $0x2d8] sm:$0xff]  ;;  %v395_v31 = vld [vmem:[%s7430_s22 + $0x20] sm:$0xff]  ;;  %v6212_v35 = vld [vmem:[%s12492_s1 + $0x3c8] sm:$0xff] }
  0x26   : > { %500 = vmatpush.msra.mxu0 %v7402_v52  ;;  %559 = vmatpush.msra.mxu1 %v7407_v53  ;;  %v6211_v34 = vld [vmem:[%s12492_s1 + $0x3c0] sm:$0xff]  ;;  %v7532_v39 = vld [vmem:[%s12492_s1 + $0x2c8] sm:$0xff]  ;;  %v6209_v42 = vld [vmem:[%s12492_s1 + $0x3b0] sm:$0xff] }
  0x27   : > { %618 = vmatpush.msra.mxu2 %v412_v54  ;;  %677 = vmatpush.msra.mxu3 %v413_v55  ;;  %v7527_v38 = vld [vmem:[%s12492_s1 + $0x2c0] sm:$0xff]  ;;  %v6210_v43 = vld [vmem:[%s12492_s1 + $0x3b8] sm:$0xff]  ;;  %v6177_v46 = vld [vmem:[%s12492_s1 + $0x2b0] sm:$0xff] }
  0x28   : > { %501 = vmatpush.msra.mxu0 %v7420_v56  ;;  %560 = vmatpush.msra.mxu1 %v7425_v57  ;;  %v6178_v47 = vld [vmem:[%s12492_s1 + $0x2b8] sm:$0xff]  ;;  %v6207_v50 = vld [vmem:[%s12492_s1 + $0x3a0] sm:$0xff]  ;;  %v6208_v51 = vld [vmem:[%s12492_s1 + $0x3a8] sm:$0xff] }
  0x29   : > { %619 = vmatpush.msra.mxu2 %v410_v58  ;;  %678 = vmatpush.msra.mxu3 %v411_v59  ;;  %v6175_v54 = vld [vmem:[%s12492_s1 + $0x2a0] sm:$0xff]  ;;  %v6176_v55 = vld [vmem:[%s12492_s1 + $0x2a8] sm:$0xff] }
  0x2a   : > { %502 = vmatpush.msra.mxu0 %v7443_v60  ;;  %561 = vmatpush.msra.mxu1 %v7448_v61  ;;  %v442_v58 = vld [vmem:[%s7430_s22 + $0x48] sm:$0xff]  ;;  %v7562_v59 = vld [vmem:[%s7430_s22 + $0x40] sm:$0xff] }
  0x2b   : > { %620 = vmatpush.msra.mxu2 %v408_v62  ;;  %679 = vmatpush.msra.mxu3 %v409_v63  ;;  %v6205_v62 = vld [vmem:[%s12492_s1 + $0x390] sm:$0xff]  ;;  %v6206_v63 = vld [vmem:[%s12492_s1 + $0x398] sm:$0xff] }
  0x2c   : > { %503 = vmatmul.f32.vlgmr.msra.gmra.mxu0 %v440_v2  ;;  %562 = vmatmul.f32.vlgmr.msra.gmra.mxu1 %v440_v2  ;;  %v6173_v2 = vld [vmem:[%s12492_s1 + $0x290] sm:$0xff] }
  0x2d   : > { %621 = vmatmul.f32.vlgmr.msra.gmra.mxu2 %v394_v3  ;;  %680 = vmatmul.f32.vlgmr.msra.gmra.mxu3 %v394_v3  ;;  %v6174_v3 = vld [vmem:[%s12492_s1 + $0x298] sm:$0xff] }
  0x2e   : > { %963 = vmatpush.msrb.mxu2 %v6217_v6  ;;  %1022 = vmatpush.msrb.mxu3 %v6218_v7  ;;  %v6203_v6 = vld [vmem:[%s12492_s1 + $0x380] sm:$0xff]  ;;  %v6204_v7 = vld [vmem:[%s12492_s1 + $0x388] sm:$0xff] }
  0x2f   : > { %770 = vmatpush.msrb.mxu0 %v7471_v10  ;;  %829 = vmatpush.msrb.mxu1 %v7476_v11 }
  0x30   : > { %964 = vmatpush.msrb.mxu2 %v6215_v14  ;;  %1023 = vmatpush.msrb.mxu3 %v6216_v15  ;;  %v6171_v14 = vld [vmem:[%s12492_s1 + $0x280] sm:$0xff]  ;;  %v6172_v15 = vld [vmem:[%s12492_s1 + $0x288] sm:$0xff] }
  0x31   : > { %771 = vmatpush.msrb.mxu0 %v7487_v18  ;;  %830 = vmatpush.msrb.mxu1 %v7492_v19 }
  0x32   : > { %965 = vmatpush.msrb.mxu2 %v6213_v22  ;;  %1024 = vmatpush.msrb.mxu3 %v6214_v23  ;;  %v443_v22 = vld [vmem:[%s7430_s22 + $0x68] sm:$0xff]  ;;  %v7592_v23 = vld [vmem:[%s7430_s22 + $0x60] sm:$0xff] }
  0x33   : > { %772 = vmatpush.msrb.mxu0 %v7505_v26  ;;  %831 = vmatpush.msrb.mxu1 %v7510_v27 }
  0x34   : > { %506 = vmatmul.f32.gmra.mxu0 %v441_v30  ;;  %565 = vmatmul.f32.gmra.mxu1 %v441_v30  ;;  %v6201_v30 = vld [vmem:[%s12492_s1 + $0x370] sm:$0xff] }
  0x35   : > { %624 = vmatmul.f32.gmra.mxu2 %v395_v31  ;;  %683 = vmatmul.f32.gmra.mxu3 %v395_v31  ;;  %v6202_v31 = vld [vmem:[%s12492_s1 + $0x378] sm:$0xff] }
  0x36   : > { %966 = vmatpush.msrb.mxu2 %v6211_v34  ;;  %1025 = vmatpush.msrb.mxu3 %v6212_v35  ;;  %v6169_v34 = vld [vmem:[%s12492_s1 + $0x270] sm:$0xff]  ;;  %v6170_v35 = vld [vmem:[%s12492_s1 + $0x278] sm:$0xff] }
  0x37   : > { %773 = vmatpush.msrb.mxu0 %v7527_v38  ;;  %832 = vmatpush.msrb.mxu1 %v7532_v39 }
  0x38   : > { %967 = vmatpush.msrb.mxu2 %v6209_v42  ;;  %1026 = vmatpush.msrb.mxu3 %v6210_v43  ;;  %v6199_v42 = vld [vmem:[%s12492_s1 + $0x360] sm:$0xff]  ;;  %v6200_v43 = vld [vmem:[%s12492_s1 + $0x368] sm:$0xff] }
  0x39   : > { %774 = vmatpush.msrb.mxu0 %v6177_v46  ;;  %833 = vmatpush.msrb.mxu1 %v6178_v47  ;;  %v444_v46 = vld [vmem:[%s7430_s22 + $0x88] sm:$0xff]  ;;  %v7616_v47 = vld [vmem:[%s7430_s22 + $0x80] sm:$0xff] }
  0x3a   : > { %968 = vmatpush.msrb.mxu2 %v6207_v50  ;;  %1027 = vmatpush.msrb.mxu3 %v6208_v51  ;;  %v6167_v50 = vld [vmem:[%s12492_s1 + $0x260] sm:$0xff]  ;;  %v6168_v51 = vld [vmem:[%s12492_s1 + $0x268] sm:$0xff] }
  0x3b   : > { %775 = vmatpush.msrb.mxu0 %v6175_v54  ;;  %834 = vmatpush.msrb.mxu1 %v6176_v55  ;;  %v6197_v54 = vld [vmem:[%s12492_s1 + $0x350] sm:$0xff]  ;;  %v6198_v55 = vld [vmem:[%s12492_s1 + $0x358] sm:$0xff] }
  0x3c   : > { %509 = vmatmul.f32.gmra.mxu0 %v442_v58  ;;  %568 = vmatmul.f32.gmra.mxu1 %v442_v58  ;;  %v445_v58 = vld [vmem:[%s7430_s22 + $0xa8] sm:$0xff] }
  0x3d   : > { %627 = vmatmul.f32.gmra.mxu2 %v7562_v59  ;;  %686 = vmatmul.f32.gmra.mxu3 %v7562_v59 }
  0x3e   : > { %969 = vmatpush.msrb.mxu2 %v6205_v62  ;;  %1028 = vmatpush.msrb.mxu3 %v6206_v63  ;;  %v7634_v62 = vld [vmem:[%s7430_s22 + $0xa0] sm:$0xff]  ;;  %v6165_v63 = vld [vmem:[%s12492_s1 + $0x250] sm:$0xff] }
  0x3f   : > { %776 = vmatpush.msrb.mxu0 %v6173_v2  ;;  %835 = vmatpush.msrb.mxu1 %v6174_v3  ;;  %v6166_v2 = vld [vmem:[%s12492_s1 + $0x258] sm:$0xff]  ;;  %v6195_v3 = vld [vmem:[%s12492_s1 + $0x340] sm:$0xff] }
  0x40   : > { %970 = vmatpush.msrb.mxu2 %v6203_v6  ;;  %1029 = vmatpush.msrb.mxu3 %v6204_v7  ;;  %v6196_v6 = vld [vmem:[%s12492_s1 + $0x348] sm:$0xff] }
  0x41   : > { %777 = vmatpush.msrb.mxu0 %v6171_v14  ;;  %836 = vmatpush.msrb.mxu1 %v6172_v15  ;;  %v446_v7 = vld [vmem:[%s7430_s22 + $0xc8] sm:$0xff]  ;;  %v7652_v14 = vld [vmem:[%s7430_s22 + $0xc0] sm:$0xff] }
  0x42   : > { %971 = vmatpush.msrb.mxu2 %v6201_v30  ;;  %1030 = vmatpush.msrb.mxu3 %v6202_v31  ;;  %v6163_v15 = vld [vmem:[%s12492_s1 + $0x240] sm:$0xff]  ;;  %v6193_v30 = vld [vmem:[%s12492_s1 + $0x330] sm:$0xff]  ;;  %v6194_v31 = vld [vmem:[%s12492_s1 + $0x338] sm:$0xff] }
  0x43   : > { %778 = vmatpush.msrb.mxu0 %v6169_v34  ;;  %837 = vmatpush.msrb.mxu1 %v6170_v35  ;;  %v447_v34 = vld [vmem:[%s7430_s22 + $0xe8] sm:$0xff]  ;;  %v7670_v35 = vld [vmem:[%s7430_s22 + $0xe0] sm:$0xff] }
  0x44   : > { %512 = vmatmul.f32.gmra.mxu0 %v443_v22  ;;  %571 = vmatmul.f32.gmra.mxu1 %v443_v22  ;;  %v6164_v22 = vld [vmem:[%s12492_s1 + $0x248] sm:$0xff] }
  0x45   : > { %630 = vmatmul.f32.gmra.mxu2 %v7592_v23  ;;  %689 = vmatmul.f32.gmra.mxu3 %v7592_v23 }
  0x46   : > { %972 = vmatpush.msrb.mxu2 %v6199_v42  ;;  %1031 = vmatpush.msrb.mxu3 %v6200_v43  ;;  %v6161_v42 = vld [vmem:[%s12492_s1 + $0x230] sm:$0xff]  ;;  %v6162_v43 = vld [vmem:[%s12492_s1 + $0x238] sm:$0xff] }
  0x47   : > { %779 = vmatpush.msrb.mxu0 %v6167_v50  ;;  %838 = vmatpush.msrb.mxu1 %v6168_v51  ;;  %v6192_v50 = vld [vmem:[%s12492_s1 + $0x328] sm:$0xff]  ;;  %v6159_v51 = vld [vmem:[%s12492_s1 + $0x220] sm:$0xff] }
  0x48   : > { %973 = vmatpush.msrb.mxu2 %v6197_v54  ;;  %1032 = vmatpush.msrb.mxu3 %v6198_v55  ;;  %v6160_v54 = vld [vmem:[%s12492_s1 + $0x228] sm:$0xff] }
  0x49   : > { %780 = vmatpush.msrb.mxu0 %v6165_v63  ;;  %839 = vmatpush.msrb.mxu1 %v6166_v2  ;;  %v448_v55 = vld [vmem:[%s7430_s22 + $0x108] sm:$0xff]  ;;  %v6189_v63 = vld [vmem:[%s12492_s1 + $0x310] sm:$0xff]  ;;  %v6190_v2 = vld [vmem:[%s12492_s1 + $0x318] sm:$0xff] }
  0x4a   : > { %974 = vmatpush.msrb.mxu2 %v6195_v3  ;;  %1033 = vmatpush.msrb.mxu3 %v6196_v6  ;;  %v6157_v3 = vld [vmem:[%s12492_s1 + $0x210] sm:$0xff]  ;;  %v6158_v6 = vld [vmem:[%s12492_s1 + $0x218] sm:$0xff] }
  0x4b   : > { %781 = vmatpush.msrb.mxu0 %v6163_v15  ;;  %840 = vmatpush.msrb.mxu1 %v6164_v22  ;;  %v403_v15 = vld [vmem:[%s7430_s22 + $0x120] sm:$0xff] }
  0x4c   : > { %515 = vmatmul.f32.gmra.mxu0 %v444_v46  ;;  %574 = vmatmul.f32.gmra.mxu1 %v444_v46  ;;  %v6191_v46 = vld [vmem:[%s12492_s1 + $0x320] sm:$0xff] }
  0x4d   : > { %633 = vmatmul.f32.gmra.mxu2 %v7616_v47  ;;  %692 = vmatmul.f32.gmra.mxu3 %v7616_v47  ;;  %v6187_v22 = vld [vmem:[%s12492_s1 + $0x300] sm:$0xff] }
  0x4e   : > { %975 = vmatpush.msrb.mxu2 %v6193_v30  ;;  %1034 = vmatpush.msrb.mxu3 %v6194_v31  ;;  %v6188_v30 = vld [vmem:[%s12492_s1 + $0x308] sm:$0xff]  ;;  %v6155_v31 = vld [vmem:[%s12492_s1 + $0x200] sm:$0xff] }
  0x4f   : > { %782 = vmatpush.msrb.mxu0 %v6161_v42  ;;  %841 = vmatpush.msrb.mxu1 %v6162_v43  ;;  %v450_v42 = vld [vmem:[%s7430_s22 + $0x148] sm:$0xff]  ;;  %v404_v43 = vld [vmem:[%s7430_s22 + $0x140] sm:$0xff] }
  0x50   : > { %976 = vmatpush.msrb.mxu2 %v6191_v46  ;;  %1035 = vmatpush.msrb.mxu3 %v6192_v50  ;;  %v6249_v46 = vld [vmem:[%s12492_s1 + $0x4f0] sm:$0xff] }
  0x51   : > { %783 = vmatpush.msrb.mxu0 %v6159_v51  ;;  %842 = vmatpush.msrb.mxu1 %v6160_v54 }
  0x52   : > { %977 = vmatpush.msrb.mxu2 %v6189_v63  ;;  %1036 = vmatpush.msrb.mxu3 %v6190_v2  ;;  %v6233_v63 = vld [vmem:[%s12492_s1 + $0x470] sm:$0xff]  ;;  %v6234_v2 = vld [vmem:[%s12492_s1 + $0x478] sm:$0xff] }
  0x53   : > { %784 = vmatpush.msrb.mxu0 %v6157_v3  ;;  %843 = vmatpush.msrb.mxu1 %v6158_v6  ;;  %v920_v3 = vld [vmem:[%s7430_s22 + $0x98] sm:$0xff] }
  0x54   : > { %518 = vmatmul.f32.gmra.mxu0 %v445_v58  ;;  %577 = vmatmul.f32.gmra.mxu1 %v445_v58  ;;  %v7694_v58 = vld [vmem:[%s7430_s22 + $0x100] sm:$0xff] }
  0x55   : > { %636 = vmatmul.f32.gmra.mxu2 %v7634_v62  ;;  %695 = vmatmul.f32.gmra.mxu3 %v7634_v62 }
  0x56   : > { %978 = vmatpush.msrb.mxu2 %v6187_v22  ;;  %1037 = vmatpush.msrb.mxu3 %v6188_v30 }
  0x57   : > { %785 = vmatpush.msrb.mxu0 %v6155_v31 }
  0x58   : > { %1437 = vmatpush.msra.mxu2 %v7159_v0  ;;  %1496 = vmatpush.msra.mxu3 %v7164_v1  ;;  %v6250_v0 = vld [vmem:[%s12492_s1 + $0x4f8] sm:$0xff]  ;;  %v451_v1 = vld [vmem:[%s7430_s22 + $0x168] sm:$0xff] }
  0x59   : > { %1156 = vmatpush.msra.mxu0 %v6249_v46  ;;  %v921_v46 = vld [vmem:[%s7430_s22 + $0xb8] sm:$0xff] }
  0x5a   : > { %1438 = vmatpush.msra.mxu2 %v7177_v4  ;;  %1497 = vmatpush.msra.mxu3 %v7182_v5  ;;  %v405_v4 = vld [vmem:[%s7430_s22 + $0x160] sm:$0xff] }
  0x5b   : > { %v6247_v5 = vld [vmem:[%s12492_s1 + $0x4e0] sm:$0xff] }
  0x5c   : > { %521 = vmatmul.f32.gmra.mxu0 %v446_v7  ;;  %580 = vmatmul.f32.gmra.mxu1 %v446_v7  ;;  %v449_v7 = vld [vmem:[%s7430_s22 + $0x128] sm:$0xff] }
  0x5d   : > { %639 = vmatmul.f32.gmra.mxu2 %v7652_v14  ;;  %698 = vmatmul.f32.gmra.mxu3 %v7652_v14 }
  0x5e   : > { %1439 = vmatpush.msra.mxu2 %v7193_v8  ;;  %1498 = vmatpush.msra.mxu3 %v7200_v9  ;;  %v6248_v8 = vld [vmem:[%s12492_s1 + $0x4e8] sm:$0xff] }
  0x5f   : > { %1157 = vmatpush.msra.mxu0 %v6247_v5  ;;  %v452_v9 = vld [vmem:[%s7430_s22 + $0x188] sm:$0xff] }
  0x60   : > { %1440 = vmatpush.msra.mxu2 %v7211_v12  ;;  %1499 = vmatpush.msra.mxu3 %v7216_v13  ;;  %v406_v12 = vld [vmem:[%s7430_s22 + $0x180] sm:$0xff]  ;;  %v6245_v13 = vld [vmem:[%s12492_s1 + $0x4d0] sm:$0xff] }
  0x61   : > { %1158 = vmatpush.msra.mxu0 %v6245_v13 }
  0x62   : > { %1441 = vmatpush.msra.mxu2 %v7229_v16  ;;  %1500 = vmatpush.msra.mxu3 %v7234_v17  ;;  %v6246_v16 = vld [vmem:[%s12492_s1 + $0x4d8] sm:$0xff]  ;;  %v453_v17 = vld [vmem:[%s7430_s22 + $0x1a8] sm:$0xff] }
  0x64   : > { %524 = vmatmul.f32.gmra.mxu0 %v447_v34  ;;  %583 = vmatmul.f32.gmra.mxu1 %v447_v34  ;;  %v6156_v34 = vld [vmem:[%s12492_s1 + $0x208] sm:$0xff] }
  0x65   : > { %642 = vmatmul.f32.gmra.mxu2 %v7670_v35  ;;  %701 = vmatmul.f32.gmra.mxu3 %v7670_v35 }
  0x66   : > { %844 = vmatpush.msrb.mxu1 %v6156_v34  ;;  %1442 = vmatpush.msra.mxu2 %v7247_v20  ;;  %v407_v20 = vld [vmem:[%s7430_s22 + $0x1a0] sm:$0xff]  ;;  %v7869_v34 = vld [vmem:[%s7430_s22 + $0xb0] sm:$0xff] }
  0x67   : > { %1501 = vmatpush.msra.mxu3 %v7252_v21  ;;  %v6243_v21 = vld [vmem:[%s12492_s1 + $0x4c0] sm:$0xff] }
  0x68   : > { %1215 = vmatpush.msra.mxu1 %v6250_v0  ;;  %1443 = vmatpush.msra.mxu2 %v7265_v24  ;;  %v6244_v24 = vld [vmem:[%s12492_s1 + $0x4c8] sm:$0xff]  ;;  %v6229_v0 = vld [vmem:[%s12492_s1 + $0x450] sm:$0xff] }
  0x69   : > { %1502 = vmatpush.msra.mxu3 %v7270_v25  ;;  %1159 = vmatpush.msra.mxu0 %v6243_v21  ;;  %v7781_v25 = vld [vmem:[%s7430_s22 + $0x10] sm:$0xff]  ;;  %v6228_v21 = vld [vmem:[%s12492_s1 + $0x448] sm:$0xff] }
  0x6a   : > { %1216 = vmatpush.msra.mxu1 %v6248_v8  ;;  %1444 = vmatpush.msra.mxu2 %v7283_v28  ;;  %v916_v28 = vld [vmem:[%s7430_s22 + $0x18] sm:$0xff] }
  0x6b   : > { %1503 = vmatpush.msra.mxu3 %v7288_v29  ;;  %v6241_v29 = vld [vmem:[%s12492_s1 + $0x4b0] sm:$0xff] }
  0x6c   : > { %527 = vmatmul.f32.gmra.mxu0 %v448_v55  ;;  %586 = vmatmul.f32.gmra.mxu1 %v448_v55  ;;  %v7853_v55 = vld [vmem:[%s7430_s22 + $0x90] sm:$0xff] }
  0x6d   : > { %645 = vmatmul.f32.gmra.mxu2 %v7694_v58  ;;  %704 = vmatmul.f32.gmra.mxu3 %v7694_v58 }
  0x6e   : > { %1217 = vmatpush.msra.mxu1 %v6246_v16  ;;  %1445 = vmatpush.msra.mxu2 %v7305_v32  ;;  %v6242_v32 = vld [vmem:[%s12492_s1 + $0x4b8] sm:$0xff]  ;;  %v7891_v16 = vld [vmem:[%s7430_s22 + $0xd0] sm:$0xff] }
  0x6f   : > { %1504 = vmatpush.msra.mxu3 %v7310_v33  ;;  %1160 = vmatpush.msra.mxu0 %v6241_v29  ;;  %v7799_v33 = vld [vmem:[%s7430_s22 + $0x30] sm:$0xff] }
  0x70   : > { %1446 = vmatpush.msra.mxu2 %v7324_v36  ;;  %1218 = vmatpush.msra.mxu1 %v6244_v24  ;;  %v6239_v36 = vld [vmem:[%s12492_s1 + $0x4a0] sm:$0xff] }
  0x71   : > { %1505 = vmatpush.msra.mxu3 %v7329_v37  ;;  %v6240_v37 = vld [vmem:[%s12492_s1 + $0x4a8] sm:$0xff]  ;;  %1161 = vmatpush.msra.mxu0 %v6239_v36 }
  0x72   : > { %1447 = vmatpush.msra.mxu2 %v7342_v40  ;;  %1219 = vmatpush.msra.mxu1 %v6242_v32  ;;  %v917_v40 = vld [vmem:[%s7430_s22 + $0x38] sm:$0xff] }
  0x73   : > { %1506 = vmatpush.msra.mxu3 %v7347_v41 }
  0x74   : > { %530 = vmatmul.f32.gmra.mxu0 %v449_v7  ;;  %589 = vmatmul.f32.gmra.mxu1 %v449_v7 }
  0x75   : > { %648 = vmatmul.f32.gmra.mxu2 %v403_v15  ;;  %707 = vmatmul.f32.gmra.mxu3 %v403_v15 }
  0x76   : > { %1448 = vmatpush.msra.mxu2 %v7365_v44  ;;  %1507 = vmatpush.msra.mxu3 %v7370_v45  ;;  %v7819_v45 = vld [vmem:[%s7430_s22 + $0x50] sm:$0xff] }
  0x77   : > { %1220 = vmatpush.msra.mxu1 %v6240_v37 }
  0x78   : > { %1449 = vmatpush.msra.mxu2 %v7383_v48  ;;  %1508 = vmatpush.msra.mxu3 %v7388_v49  ;;  %v6237_v48 = vld [vmem:[%s12492_s1 + $0x490] sm:$0xff]  ;;  %v6238_v49 = vld [vmem:[%s12492_s1 + $0x498] sm:$0xff] }
  0x79   : > { %1162 = vmatpush.msra.mxu0 %v6237_v48  ;;  %1221 = vmatpush.msra.mxu1 %v6238_v49  ;;  %v6226_v48 = vld [vmem:[%s12492_s1 + $0x438] sm:$0xff] }
  0x7a   : > { %1450 = vmatpush.msra.mxu2 %v7402_v52  ;;  %1509 = vmatpush.msra.mxu3 %v7407_v53  ;;  %v918_v52 = vld [vmem:[%s7430_s22 + $0x58] sm:$0xff] }
  0x7c   : > { %533 = vmatmul.f32.gmra.mxu0 %v450_v42  ;;  %592 = vmatmul.f32.gmra.mxu1 %v450_v42  ;;  %v6231_v42 = vld [vmem:[%s12492_s1 + $0x460] sm:$0xff] }
  0x7d   : > { %651 = vmatmul.f32.gmra.mxu2 %v404_v43  ;;  %710 = vmatmul.f32.gmra.mxu3 %v404_v43  ;;  %v6232_v43 = vld [vmem:[%s12492_s1 + $0x468] sm:$0xff] }
  0x7e   : > { %1451 = vmatpush.msra.mxu2 %v7420_v56  ;;  %1510 = vmatpush.msra.mxu3 %v7425_v57 }
  0x80   : > { %1452 = vmatpush.msra.mxu2 %v7443_v60  ;;  %1511 = vmatpush.msra.mxu3 %v7448_v61 }
  0x84   : > { %536 = vmatmul.f32.gmra.mxu0 %v451_v1  ;;  %595 = vmatmul.f32.gmra.mxu1 %v451_v1  ;;  %v6230_v1 = vld [vmem:[%s12492_s1 + $0x458] sm:$0xff] }
  0x85   : > { %654 = vmatmul.f32.gmra.mxu2 %v405_v4  ;;  %713 = vmatmul.f32.gmra.mxu3 %v405_v4 }
  0x8c   : > { %539 = vmatmul.f32.gmra.mxu0 %v452_v9  ;;  %598 = vmatmul.f32.gmra.mxu1 %v452_v9 }
  0x8d   : > { %657 = vmatmul.f32.gmra.mxu2 %v406_v12  ;;  %716 = vmatmul.f32.gmra.mxu3 %v406_v12 }
  0x94   : > { %542 = vmatmul.f32.gmra.mxu0 %v453_v17  ;;  %601 = vmatmul.f32.gmra.mxu1 %v453_v17  ;;  %v922_v17 = vld [vmem:[%s7430_s22 + $0xd8] sm:$0xff] }
  0x95   : > { %660 = vmatmul.f32.gmra.mxu2 %v407_v20  ;;  %719 = vmatmul.f32.gmra.mxu3 %v407_v20  ;;  %v6227_v20 = vld [vmem:[%s12492_s1 + $0x440] sm:$0xff] }
  0x9c   : > { %786 = vmatmul.f32.vlgmr.msrb.gmra.mxu0 %v7781_v25  ;;  %845 = vmatmul.f32.vlgmr.msrb.gmra.mxu1 %v7781_v25 }
  0x9d   : > { %979 = vmatmul.f32.vlgmr.msrb.gmra.mxu2 %v916_v28  ;;  %1038 = vmatmul.f32.vlgmr.msrb.gmra.mxu3 %v916_v28 }
  0x9e   : > { %1719 = vmatpush.msrb.mxu2 %v7471_v10  ;;  %1778 = vmatpush.msrb.mxu3 %v7476_v11  ;;  %v7837_v11 = vld [vmem:[%s7430_s22 + $0x70] sm:$0xff] }
  0xa0   : > { %1720 = vmatpush.msrb.mxu2 %v7487_v18  ;;  %1779 = vmatpush.msrb.mxu3 %v7492_v19  ;;  %v6235_v18 = vld [vmem:[%s12492_s1 + $0x480] sm:$0xff]  ;;  %v6236_v19 = vld [vmem:[%s12492_s1 + $0x488] sm:$0xff] }
  0xa1   : > { %1163 = vmatpush.msra.mxu0 %v6235_v18  ;;  %1222 = vmatpush.msra.mxu1 %v6236_v19  ;;  %v7923_v18 = vld [vmem:[%s7430_s22 + $0x110] sm:$0xff]  ;;  %v6223_v19 = vld [vmem:[%s12492_s1 + $0x420] sm:$0xff] }
  0xa2   : > { %1721 = vmatpush.msrb.mxu2 %v7505_v26  ;;  %1780 = vmatpush.msrb.mxu3 %v7510_v27  ;;  %v919_v26 = vld [vmem:[%s7430_s22 + $0x78] sm:$0xff] }
  0xa3   : > { %1164 = vmatpush.msra.mxu0 %v6233_v63  ;;  %1223 = vmatpush.msra.mxu1 %v6234_v2 }
  0xa4   : > { %789 = vmatmul.f32.gmra.mxu0 %v7799_v33  ;;  %848 = vmatmul.f32.gmra.mxu1 %v7799_v33 }
  0xa5   : > { %982 = vmatmul.f32.gmra.mxu2 %v917_v40  ;;  %1041 = vmatmul.f32.gmra.mxu3 %v917_v40  ;;  %v7907_v40 = vld [vmem:[%s7430_s22 + $0xf0] sm:$0xff] }
  0xa6   : > { %1722 = vmatpush.msrb.mxu2 %v7527_v38  ;;  %1781 = vmatpush.msrb.mxu3 %v7532_v39 }
  0xa7   : > { %1165 = vmatpush.msra.mxu0 %v6231_v42  ;;  %1224 = vmatpush.msra.mxu1 %v6232_v43 }
  0xa9   : > { %v504_v41 = vpop.f32.mrf.mxu0  ;;  %v563_v44 = vpop.f32.mrf.mxu1  ;;  %1166 = vmatpush.msra.mxu0 %v6229_v0  ;;  %1225 = vmatpush.msra.mxu1 %v6230_v1 }
  0xab   : > { %1167 = vmatpush.msra.mxu0 %v6227_v20  ;;  %1226 = vmatpush.msra.mxu1 %v6228_v21 }
  0xac   : > { %792 = vmatmul.f32.gmra.mxu0 %v7819_v45  ;;  %851 = vmatmul.f32.gmra.mxu1 %v7819_v45 }
  0xad   : > { %985 = vmatmul.f32.gmra.mxu2 %v918_v52  ;;  %1044 = vmatmul.f32.gmra.mxu3 %v918_v52 }
  0xae   : > { %1227 = vmatpush.msra.mxu1 %v6226_v48  ;;  %v1390_v48 = vld [vmem:[%s12492_s1 + $0xf8] sm:$0xff] }
  0xb0   : > { %v622_v53 = vpop.f32.mrf.mxu2  ;;  %v681_v56 = vpop.f32.mrf.mxu3 }
  0xb1   : > { %v7832_v57 = vadd.f32 %v622_v53, %v504_v41  ;;  %v7834_v60 = vadd.f32 %v681_v56, %v563_v44  ;;  %v507_v61 = vpop.f32.mrf.mxu0  ;;  %v566_v10 = vpop.f32.mrf.mxu1  ;;  %v923_v41 = vld [vmem:[%s7430_s22 + $0xf8] sm:$0xff]  ;;  %v6225_v44 = vld [vmem:[%s12492_s1 + $0x430] sm:$0xff] }
  0xb2   : > { %1168 = vmatpush.msra.mxu0 %v6225_v44  ;;  %v1389_v44 = vld [vmem:[%s12492_s1 + $0xf0] sm:$0xff] }
  0xb4   : > { %795 = vmatmul.f32.gmra.mxu0 %v7837_v11  ;;  %854 = vmatmul.f32.gmra.mxu1 %v7837_v11 }
  0xb5   : > { %988 = vmatmul.f32.gmra.mxu2 %v919_v26  ;;  %1047 = vmatmul.f32.gmra.mxu3 %v919_v26  ;;  %v6224_v26 = vld [vmem:[%s12492_s1 + $0x428] sm:$0xff] }
  0xb6   : > { %1169 = vmatpush.msra.mxu0 %v6223_v19  ;;  %1228 = vmatpush.msra.mxu1 %v6224_v26 }
  0xb8   : > { %v625_v27 = vpop.f32.mrf.mxu2  ;;  %v684_v38 = vpop.f32.mrf.mxu3 }
  0xb9   : > { %v7848_v39 = vadd.f32 %v625_v27, %v507_v61  ;;  %v7850_v50 = vadd.f32 %v684_v38, %v566_v10  ;;  %v510_v51 = vpop.f32.mrf.mxu0  ;;  %v569_v54 = vpop.f32.mrf.mxu1  ;;  %v924_v27 = vld [vmem:[%s7430_s22 + $0x118] sm:$0xff] }
  0xbc   : > { %798 = vmatmul.f32.gmra.mxu0 %v7853_v55  ;;  %857 = vmatmul.f32.gmra.mxu1 %v7853_v55 }
  0xbd   : > { %991 = vmatmul.f32.gmra.mxu2 %v920_v3  ;;  %1050 = vmatmul.f32.gmra.mxu3 %v920_v3 }
  0xc0   : > { %v628_v6 = vpop.f32.mrf.mxu2  ;;  %v687_v7 = vpop.f32.mrf.mxu3 }
  0xc1   : > { %v7864_v15 = vadd.f32 %v628_v6, %v510_v51  ;;  %v7866_v22 = vadd.f32 %v687_v7, %v569_v54  ;;  %v513_v30 = vpop.f32.mrf.mxu0  ;;  %v572_v31 = vpop.f32.mrf.mxu1  ;;  %v7939_v6 = vld [vmem:[%s7430_s22 + $0x130] sm:$0xff] }
  0xc2   : > { %v6221_v7 = vld [vmem:[%s12492_s1 + $0x410] sm:$0xff] }
  0xc3   : > { %1170 = vmatpush.msra.mxu0 %v6221_v7  ;;  %v1385_v7 = vld [vmem:[%s12492_s1 + $0xd0] sm:$0xff] }
  0xc4   : > { %801 = vmatmul.f32.gmra.mxu0 %v7869_v34  ;;  %860 = vmatmul.f32.gmra.mxu1 %v7869_v34 }
  0xc5   : > { %994 = vmatmul.f32.gmra.mxu2 %v921_v46  ;;  %1053 = vmatmul.f32.gmra.mxu3 %v921_v46 }
  0xc8   : > { %v631_v4 = vpop.f32.mrf.mxu2  ;;  %v690_v5 = vpop.f32.mrf.mxu3 }
  0xc9   : > { %v7886_v8 = vadd.f32 %v631_v4, %v513_v30  ;;  %v7888_v9 = vadd.f32 %v690_v5, %v572_v31  ;;  %v516_v12 = vpop.f32.mrf.mxu0  ;;  %v575_v13 = vpop.f32.mrf.mxu1  ;;  %v6222_v30 = vld [vmem:[%s12492_s1 + $0x418] sm:$0xff]  ;;  %v7955_v5 = vld [vmem:[%s7430_s22 + $0x150] sm:$0xff] }
  0xca   : > { %v925_v31 = vld [vmem:[%s7430_s22 + $0x138] sm:$0xff]  ;;  %1229 = vmatpush.msra.mxu1 %v6222_v30 }
  0xcb   : > { %v1386_v30 = vld [vmem:[%s12492_s1 + $0xd8] sm:$0xff] }
  0xcc   : > { %804 = vmatmul.f32.gmra.mxu0 %v7891_v16  ;;  %863 = vmatmul.f32.gmra.mxu1 %v7891_v16 }
  0xcd   : > { %997 = vmatmul.f32.gmra.mxu2 %v922_v17  ;;  %1056 = vmatmul.f32.gmra.mxu3 %v922_v17  ;;  %v926_v17 = vld [vmem:[%s7430_s22 + $0x158] sm:$0xff] }
  0xd0   : > { %v634_v24 = vpop.f32.mrf.mxu2  ;;  %v693_v28 = vpop.f32.mrf.mxu3 }
  0xd1   : > { %v7902_v29 = vadd.f32 %v634_v24, %v516_v12  ;;  %v7904_v32 = vadd.f32 %v693_v28, %v575_v13  ;;  %v519_v36 = vpop.f32.mrf.mxu0  ;;  %v578_v37 = vpop.f32.mrf.mxu1  ;;  %v6219_v12 = vld [vmem:[%s12492_s1 + $0x400] sm:$0xff]  ;;  %v6220_v13 = vld [vmem:[%s12492_s1 + $0x408] sm:$0xff] }
  0xd2   : > { %1171 = vmatpush.msra.mxu0 %v6219_v12  ;;  %1230 = vmatpush.msra.mxu1 %v6220_v13  ;;  %v8009_v13 = vld [vmem:[%s7430_s22 + $0x1b0] sm:$0xff] }
  0xd4   : > { %807 = vmatmul.f32.gmra.mxu0 %v7907_v40  ;;  %866 = vmatmul.f32.gmra.mxu1 %v7907_v40 }
  0xd5   : > { %1000 = vmatmul.f32.gmra.mxu2 %v923_v41  ;;  %1059 = vmatmul.f32.gmra.mxu3 %v923_v41  ;;  %v7971_v41 = vld [vmem:[%s7430_s22 + $0x170] sm:$0xff] }
  0xd6   : > { %1555 = vmatpush.msrb.mxu0 %v1389_v44  ;;  %1614 = vmatpush.msrb.mxu1 %v1390_v48 }
  0xd8   : > { %v637_v49 = vpop.f32.mrf.mxu2  ;;  %v696_v52 = vpop.f32.mrf.mxu3 }
  0xd9   : > { %v7918_v53 = vadd.f32 %v637_v49, %v519_v36  ;;  %v7920_v56 = vadd.f32 %v696_v52, %v578_v37  ;;  %v522_v61 = vpop.f32.mrf.mxu0  ;;  %v581_v10 = vpop.f32.mrf.mxu1  ;;  %v927_v49 = vld [vmem:[%s7430_s22 + $0x178] sm:$0xff] }
  0xdc   : > { %810 = vmatmul.f32.gmra.mxu0 %v7923_v18  ;;  %869 = vmatmul.f32.gmra.mxu1 %v7923_v18 }
  0xdd   : > { %1003 = vmatmul.f32.gmra.mxu2 %v924_v27  ;;  %1062 = vmatmul.f32.gmra.mxu3 %v924_v27 }
  0xe0   : > { %v640_v38 = vpop.f32.mrf.mxu2  ;;  %v699_v51 = vpop.f32.mrf.mxu3 }
  0xe1   : > { %v7934_v54 = vadd.f32 %v640_v38, %v522_v61  ;;  %v7936_v63 = vadd.f32 %v699_v51, %v581_v10  ;;  %v525_v2 = vpop.f32.mrf.mxu0  ;;  %v584_v3 = vpop.f32.mrf.mxu1  ;;  %v7987_v38 = vld [vmem:[%s7430_s22 + $0x190] sm:$0xff]  ;;  %v1387_v51 = vld [vmem:[%s12492_s1 + $0xe0] sm:$0xff] }
  0xe2   : > { %1556 = vmatpush.msrb.mxu0 %v1387_v51  ;;  %v1382_v51 = vld [vmem:[%s12492_s1 + $0xb8] sm:$0xff] }
  0xe4   : > { %813 = vmatmul.f32.gmra.mxu0 %v7939_v6  ;;  %872 = vmatmul.f32.gmra.mxu1 %v7939_v6 }
  0xe5   : > { %1006 = vmatmul.f32.gmra.mxu2 %v925_v31  ;;  %1065 = vmatmul.f32.gmra.mxu3 %v925_v31 }
  0xe6   : > { %1557 = vmatpush.msrb.mxu0 %v1385_v7 }
  0xe8   : > { %v643_v42 = vpop.f32.mrf.mxu2  ;;  %v702_v43 = vpop.f32.mrf.mxu3 }
  0xe9   : > { %v7950_v46 = vadd.f32 %v643_v42, %v525_v2  ;;  %v7952_v0 = vadd.f32 %v702_v43, %v584_v3  ;;  %v528_v1 = vpop.f32.mrf.mxu0  ;;  %v587_v4 = vpop.f32.mrf.mxu1  ;;  %v1388_v2 = vld [vmem:[%s12492_s1 + $0xe8] sm:$0xff]  ;;  %v928_v3 = vld [vmem:[%s7430_s22 + $0x198] sm:$0xff] }
  0xea   : > { %1615 = vmatpush.msrb.mxu1 %v1388_v2 }
  0xec   : > { %816 = vmatmul.f32.gmra.mxu0 %v7955_v5  ;;  %875 = vmatmul.f32.gmra.mxu1 %v7955_v5 }
  0xed   : > { %1009 = vmatmul.f32.gmra.mxu2 %v926_v17  ;;  %1068 = vmatmul.f32.gmra.mxu3 %v926_v17  ;;  %v929_v17 = vld [vmem:[%s7430_s22 + $0x1b8] sm:$0xff] }
  0xee   : > { %1616 = vmatpush.msrb.mxu1 %v1386_v30 }
  0xf0   : > { %v646_v20 = vpop.f32.mrf.mxu2  ;;  %v705_v21 = vpop.f32.mrf.mxu3 }
  0xf1   : > { %v7966_v24 = vadd.f32 %v646_v20, %v528_v1  ;;  %v7968_v28 = vadd.f32 %v705_v21, %v587_v4  ;;  %v531_v36 = vpop.f32.mrf.mxu0  ;;  %v590_v37 = vpop.f32.mrf.mxu1  ;;  %v1383_v20 = vld [vmem:[%s12492_s1 + $0xc0] sm:$0xff]  ;;  %v1384_v21 = vld [vmem:[%s12492_s1 + $0xc8] sm:$0xff] }
  0xf2   : > { %1558 = vmatpush.msrb.mxu0 %v1383_v20  ;;  %1617 = vmatpush.msrb.mxu1 %v1384_v21  ;;  %v6302_v20 = vld [vmem:[%s12492_s1 + $0x298] sm:$0xff] }
  0xf4   : > { %819 = vmatmul.f32.gmra.mxu0 %v7971_v41  ;;  %878 = vmatmul.f32.gmra.mxu1 %v7971_v41 }
  0xf5   : > { %1012 = vmatmul.f32.gmra.mxu2 %v927_v49  ;;  %1071 = vmatmul.f32.gmra.mxu3 %v927_v49 }
  0xf6   : > { %1618 = vmatpush.msrb.mxu1 %v1382_v51 }
  0xf8   : > { %v649_v52 = vpop.f32.mrf.mxu2  ;;  %v708_v61 = vpop.f32.mrf.mxu3 }
  0xf9   : > { %v7982_v10 = vadd.f32 %v649_v52, %v531_v36  ;;  %v7984_v19 = vadd.f32 %v708_v61, %v590_v37  ;;  %v534_v26 = vpop.f32.mrf.mxu0  ;;  %v593_v27 = vpop.f32.mrf.mxu1  ;;  %v6305_v61 = vld [vmem:[%s12492_s1 + $0x2b0] sm:$0xff] }
  0xfa   : > { %1723 = vmatpush.msrb.mxu2 %v6305_v61  ;;  %v1378_v61 = vld [vmem:[%s12492_s1 + $0x98] sm:$0xff] }
  0xfc   : > { %822 = vmatmul.f32.gmra.mxu0 %v7987_v38  ;;  %881 = vmatmul.f32.gmra.mxu1 %v7987_v38 }
  0xfd   : > { %1015 = vmatmul.f32.gmra.mxu2 %v928_v3  ;;  %1074 = vmatmul.f32.gmra.mxu3 %v928_v3 }
 0x100   : > { %v652_v31 = vpop.f32.mrf.mxu2  ;;  %v711_v42 = vpop.f32.mrf.mxu3 }
 0x101   : > { %v8004_v43 = vadd.f32 %v652_v31, %v534_v26  ;;  %v8006_v1 = vadd.f32 %v711_v42, %v593_v27  ;;  %v537_v4 = vpop.f32.mrf.mxu0  ;;  %v596_v12 = vpop.f32.mrf.mxu1  ;;  %v6306_v26 = vld [vmem:[%s12492_s1 + $0x2b8] sm:$0xff]  ;;  %v1381_v27 = vld [vmem:[%s12492_s1 + $0xb0] sm:$0xff]  ;;  %v6304_v42 = vld [vmem:[%s12492_s1 + $0x2a8] sm:$0xff] }
 0x102   : > { %1782 = vmatpush.msrb.mxu3 %v6306_v26  ;;  %1559 = vmatpush.msrb.mxu0 %v1381_v27  ;;  %v6299_v26 = vld [vmem:[%s12492_s1 + $0x280] sm:$0xff]  ;;  %v6300_v27 = vld [vmem:[%s12492_s1 + $0x288] sm:$0xff] }
 0x104   : > { %825 = vmatmul.f32.gmra.mxu0 %v8009_v13  ;;  %884 = vmatmul.f32.gmra.mxu1 %v8009_v13 }
 0x105   : > { %1018 = vmatmul.f32.gmra.mxu2 %v929_v17  ;;  %1077 = vmatmul.f32.gmra.mxu3 %v929_v17  ;;  %v6301_v17 = vld [vmem:[%s12492_s1 + $0x290] sm:$0xff] }
 0x106   : > { %1783 = vmatpush.msrb.mxu3 %v6304_v42  ;;  %v1375_v42 = vld [vmem:[%s12492_s1 + $0x80] sm:$0xff] }
 0x108   : > { %v655_v36 = vpop.f32.mrf.mxu2  ;;  %v714_v37 = vpop.f32.mrf.mxu3  ;;  %1784 = vmatpush.msrb.mxu3 %v6302_v20 }
 0x109   : > { %v8020_v44 = vadd.f32 %v655_v36, %v537_v4  ;;  %v8022_v48 = vadd.f32 %v714_v37, %v596_v12  ;;  %v540_v49 = vpop.f32.mrf.mxu0  ;;  %v599_v52 = vpop.f32.mrf.mxu1  ;;  %v1379_v4 = vld [vmem:[%s12492_s1 + $0xa0] sm:$0xff]  ;;  %v1380_v12 = vld [vmem:[%s12492_s1 + $0xa8] sm:$0xff] }
 0x10a   : > { %1560 = vmatpush.msrb.mxu0 %v1379_v4  ;;  %1619 = vmatpush.msrb.mxu1 %v1380_v12  ;;  %v1376_v4 = vld [vmem:[%s12492_s1 + $0x88] sm:$0xff] }
 0x10b   : > { %1785 = vmatpush.msrb.mxu3 %v6300_v27 }
 0x10c   : > { %1172 = vmatmul.f32.vlgmr.msra.gmra.mxu0 %v7562_v59  ;;  %1231 = vmatmul.f32.vlgmr.msra.gmra.mxu1 %v7562_v59 }
 0x10d   : > { %1453 = vmatmul.f32.vlgmr.msra.gmra.mxu2 %v7781_v25  ;;  %1512 = vmatmul.f32.vlgmr.msra.gmra.mxu3 %v7781_v25  ;;  %v6303_v25 = vld [vmem:[%s12492_s1 + $0x2a0] sm:$0xff] }
 0x10e   : > { %1724 = vmatpush.msrb.mxu2 %v6303_v25  ;;  %1620 = vmatpush.msrb.mxu1 %v1378_v61 }
 0x110   : > { %v658_v2 = vpop.f32.mrf.mxu2  ;;  %v717_v3 = vpop.f32.mrf.mxu3  ;;  %1725 = vmatpush.msrb.mxu2 %v6301_v17  ;;  %1621 = vmatpush.msrb.mxu1 %v1376_v4 }
 0x111   : > { %v8040_v7 = vadd.f32 %v658_v2, %v540_v49  ;;  %v8042_v30 = vadd.f32 %v717_v3, %v599_v52  ;;  %v543_v59 = vpop.f32.mrf.mxu0  ;;  %v602_v31 = vpop.f32.mrf.mxu1 }
 0x112   : > { %1726 = vmatpush.msrb.mxu2 %v6299_v26 }
 0x114   : > { %1175 = vmatmul.f32.gmra.mxu0 %v7592_v23  ;;  %1234 = vmatmul.f32.gmra.mxu1 %v7592_v23 }
 0x115   : > { %1456 = vmatmul.f32.gmra.mxu2 %v7799_v33  ;;  %1515 = vmatmul.f32.gmra.mxu3 %v7799_v33  ;;  %v1377_v33 = vld [vmem:[%s12492_s1 + $0x90] sm:$0xff] }
 0x116   : > { %1561 = vmatpush.msrb.mxu0 %v1377_v33  ;;  %v1374_v33 = vld [vmem:[%s12492_s1 + $0x78] sm:$0xff] }
 0x117   : > { %1622 = vmatpush.msrb.mxu1 %v1374_v33 }
 0x118   : > { %v661_v21 = vpop.f32.mrf.mxu2  ;;  %v720_v36 = vpop.f32.mrf.mxu3  ;;  %1562 = vmatpush.msrb.mxu0 %v1375_v42  ;;  %v1370_v42 = vld [vmem:[%s12492_s1 + $0x58] sm:$0xff] }
 0x119   : > { %v8066_v37 = vadd.f32 %v661_v21, %v543_v59  ;;  %v8068_v49 = vadd.f32 %v720_v36, %v602_v31  ;;  %v787_v23 = vpop.f32.mrf.mxu0  ;;  %v846_v52 = vpop.f32.mrf.mxu1 }
 0x11a   : > { %v888_v51 = vadd.f32 %v787_v23, %v7832_v57  ;;  %v889_v2 = vadd.f32 %v846_v52, %v7834_v60  ;;  %v6297_v57 = vld [vmem:[%s12492_s1 + $0x270] sm:$0xff]  ;;  %v6298_v60 = vld [vmem:[%s12492_s1 + $0x278] sm:$0xff] }
 0x11b   : > { %1727 = vmatpush.msrb.mxu2 %v6297_v57  ;;  %1786 = vmatpush.msrb.mxu3 %v6298_v60  ;;  %v1373_v52 = vld [vmem:[%s12492_s1 + $0x70] sm:$0xff] }
 0x11c   : > { %1178 = vmatmul.f32.gmra.mxu0 %v7616_v47  ;;  %1237 = vmatmul.f32.gmra.mxu1 %v7616_v47 }
 0x11d   : > { %1459 = vmatmul.f32.gmra.mxu2 %v7819_v45  ;;  %1518 = vmatmul.f32.gmra.mxu3 %v7819_v45 }
 0x11e   : > { %1563 = vmatpush.msrb.mxu0 %v1373_v52 }
 0x120   : > { %v980_v3 = vpop.f32.mrf.mxu2  ;;  %v1039_v47 = vpop.f32.mrf.mxu3 }
 0x121   : > { %v8088_v59 = vadd.f32 %v980_v3, %v888_v51  ;;  %v8090_v31 = vadd.f32 %v1039_v47, %v889_v2  ;;  %v790_v45 = vpop.f32.mrf.mxu0  ;;  %v849_v25 = vpop.f32.mrf.mxu1 }
 0x122   : > { %v890_v12 = vadd.f32 %v790_v45, %v7848_v39  ;;  %v891_v17 = vadd.f32 %v849_v25, %v7850_v50  ;;  %v6295_v39 = vld [vmem:[%s12492_s1 + $0x260] sm:$0xff]  ;;  %v6296_v50 = vld [vmem:[%s12492_s1 + $0x268] sm:$0xff]  ;;  %v1369_v25 = vld [vmem:[%s12492_s1 + $0x50] sm:$0xff] }
 0x123   : > { %1728 = vmatpush.msrb.mxu2 %v6295_v39  ;;  %1787 = vmatpush.msrb.mxu3 %v6296_v50 }
 0x124   : > { %1181 = vmatmul.f32.gmra.mxu0 %v7634_v62  ;;  %1240 = vmatmul.f32.gmra.mxu1 %v7634_v62 }
 0x125   : > { %1462 = vmatmul.f32.gmra.mxu2 %v7837_v11  ;;  %1521 = vmatmul.f32.gmra.mxu3 %v7837_v11 }
 0x128   : > { %v983_v20 = vpop.f32.mrf.mxu2  ;;  %v1042_v62 = vpop.f32.mrf.mxu3 }
 0x129   : > { %v8110_v21 = vadd.f32 %v983_v20, %v890_v12  ;;  %v8112_v36 = vadd.f32 %v1042_v62, %v891_v17  ;;  %v793_v11 = vpop.f32.mrf.mxu0  ;;  %v852_v23 = vpop.f32.mrf.mxu1  ;;  %v6291_v62 = vld [vmem:[%s12492_s1 + $0x240] sm:$0xff] }
 0x12a   : > { %v892_v61 = vadd.f32 %v793_v11, %v7864_v15  ;;  %v893_v26 = vadd.f32 %v852_v23, %v7866_v22  ;;  %v6293_v15 = vld [vmem:[%s12492_s1 + $0x250] sm:$0xff]  ;;  %v6294_v22 = vld [vmem:[%s12492_s1 + $0x258] sm:$0xff]  ;;  %v6292_v11 = vld [vmem:[%s12492_s1 + $0x248] sm:$0xff] }
 0x12b   : > { %1729 = vmatpush.msrb.mxu2 %v6293_v15  ;;  %1788 = vmatpush.msrb.mxu3 %v6294_v22 }
 0x12c   : > { %1184 = vmatmul.f32.gmra.mxu0 %v7652_v14  ;;  %1243 = vmatmul.f32.gmra.mxu1 %v7652_v14  ;;  %v1371_v14 = vld [vmem:[%s12492_s1 + $0x60] sm:$0xff] }
 0x12d   : > { %1465 = vmatmul.f32.gmra.mxu2 %v7853_v55  ;;  %1524 = vmatmul.f32.gmra.mxu3 %v7853_v55  ;;  %v1372_v55 = vld [vmem:[%s12492_s1 + $0x68] sm:$0xff] }
 0x12e   : > { %1564 = vmatpush.msrb.mxu0 %v1371_v14  ;;  %1623 = vmatpush.msrb.mxu1 %v1372_v55 }
 0x12f   : > { %1730 = vmatpush.msrb.mxu2 %v6291_v62  ;;  %1789 = vmatpush.msrb.mxu3 %v6292_v11 }
 0x130   : > { %v986_v27 = vpop.f32.mrf.mxu2  ;;  %v1045_v51 = vpop.f32.mrf.mxu3  ;;  %1565 = vmatpush.msrb.mxu0 %v1369_v25  ;;  %1624 = vmatpush.msrb.mxu1 %v1370_v42  ;;  %v1117_v42 = vld [vmem:[%s7430_s22 + $0x140] sm:$0xff] }
 0x131   : > { %v8132_v2 = vadd.f32 %v986_v27, %v892_v61  ;;  %v8134_v3 = vadd.f32 %v1045_v51, %v893_v26  ;;  %v796_v47 = vpop.f32.mrf.mxu0  ;;  %v855_v45 = vpop.f32.mrf.mxu1  ;;  %v1116_v26 = vld [vmem:[%s7430_s22 + $0x120] sm:$0xff]  ;;  %v6289_v27 = vld [vmem:[%s12492_s1 + $0x230] sm:$0xff]  ;;  %v6290_v51 = vld [vmem:[%s12492_s1 + $0x238] sm:$0xff] }
 0x132   : > { %v894_v4 = vadd.f32 %v796_v47, %v7886_v8  ;;  %v895_v57 = vadd.f32 %v855_v45, %v7888_v9  ;;  %v1367_v8 = vld [vmem:[%s12492_s1 + $0x40] sm:$0xff]  ;;  %v1368_v9 = vld [vmem:[%s12492_s1 + $0x48] sm:$0xff]  ;;  %1731 = vmatpush.msrb.mxu2 %v6289_v27  ;;  %1790 = vmatpush.msrb.mxu3 %v6290_v51 }
 0x133   : > { %1566 = vmatpush.msrb.mxu0 %v1367_v8  ;;  %1625 = vmatpush.msrb.mxu1 %v1368_v9 }
 0x134   : > { %1187 = vmatmul.f32.gmra.mxu0 %v7670_v35  ;;  %1246 = vmatmul.f32.gmra.mxu1 %v7670_v35 }
 0x135   : > { %1468 = vmatmul.f32.gmra.mxu2 %v7869_v34  ;;  %1527 = vmatmul.f32.gmra.mxu3 %v7869_v34 }
 0x138   : > { %v989_v60 = vpop.f32.mrf.mxu2  ;;  %v1048_v35 = vpop.f32.mrf.mxu3 }
 0x139   : > { %v8160_v12 = vadd.f32 %v989_v60, %v894_v4  ;;  %v8162_v17 = vadd.f32 %v1048_v35, %v895_v57  ;;  %v799_v34 = vpop.f32.mrf.mxu0  ;;  %v858_v20 = vpop.f32.mrf.mxu1  ;;  %v6287_v4 = vld [vmem:[%s12492_s1 + $0x220] sm:$0xff]  ;;  %v6288_v57 = vld [vmem:[%s12492_s1 + $0x228] sm:$0xff]  ;;  %v6285_v60 = vld [vmem:[%s12492_s1 + $0x210] sm:$0xff] }
 0x13a   : > { %v896_v23 = vadd.f32 %v799_v34, %v7902_v29  ;;  %v897_v52 = vadd.f32 %v858_v20, %v7904_v32  ;;  %v1365_v29 = vld [vmem:[%s12492_s1 + $0x30] sm:$0xff]  ;;  %v1366_v32 = vld [vmem:[%s12492_s1 + $0x38] sm:$0xff]  ;;  %1732 = vmatpush.msrb.mxu2 %v6287_v4  ;;  %1791 = vmatpush.msrb.mxu3 %v6288_v57 }
 0x13b   : > { %1567 = vmatpush.msrb.mxu0 %v1365_v29  ;;  %1626 = vmatpush.msrb.mxu1 %v1366_v32  ;;  %v6286_v35 = vld [vmem:[%s12492_s1 + $0x218] sm:$0xff] }
 0x13c   : > { %1190 = vmatmul.f32.gmra.mxu0 %v7694_v58  ;;  %1249 = vmatmul.f32.gmra.mxu1 %v7694_v58 }
 0x13d   : > { %1471 = vmatmul.f32.gmra.mxu2 %v7891_v16  ;;  %1530 = vmatmul.f32.gmra.mxu3 %v7891_v16 }
 0x13e   : > { %1733 = vmatpush.msrb.mxu2 %v6285_v60  ;;  %1792 = vmatpush.msrb.mxu3 %v6286_v35  ;;  %v6345_v60 = vld [vmem:[%s12492_s1 + $0x3f0] sm:$0xff]  ;;  %v6346_v35 = vld [vmem:[%s12492_s1 + $0x3f8] sm:$0xff] }
 0x140   : > { %v992_v33 = vpop.f32.mrf.mxu2  ;;  %v1051_v58 = vpop.f32.mrf.mxu3 }
 0x141   : > { %v8182_v39 = vadd.f32 %v992_v33, %v896_v23  ;;  %v8184_v50 = vadd.f32 %v1051_v58, %v897_v52  ;;  %v802_v16 = vpop.f32.mrf.mxu0  ;;  %v861_v61 = vpop.f32.mrf.mxu1  ;;  %v1118_v52 = vld [vmem:[%s7430_s22 + $0x160] sm:$0xff]  ;;  %v1361_v33 = vld [vmem:[%s12492_s1 + $0x10] sm:$0xff]  ;;  %v1362_v58 = vld [vmem:[%s12492_s1 + $0x18] sm:$0xff] }
 0x142   : > { %v898_v47 = vadd.f32 %v802_v16, %v7918_v53  ;;  %v899_v45 = vadd.f32 %v861_v61, %v7920_v56  ;;  %v1363_v53 = vld [vmem:[%s12492_s1 + $0x20] sm:$0xff]  ;;  %v1364_v56 = vld [vmem:[%s12492_s1 + $0x28] sm:$0xff] }
 0x143   : > { %1568 = vmatpush.msrb.mxu0 %v1363_v53  ;;  %1627 = vmatpush.msrb.mxu1 %v1364_v56  ;;  %v1120_v56 = vld [vmem:[%s7430_s22 + $0x1a0] sm:$0xff] }
 0x144   : > { %1193 = vmatmul.f32.gmra.mxu0 %v1116_v26  ;;  %1252 = vmatmul.f32.gmra.mxu1 %v1116_v26 }
 0x145   : > { %1474 = vmatmul.f32.gmra.mxu2 %v7907_v40  ;;  %1533 = vmatmul.f32.gmra.mxu3 %v7907_v40 }
 0x146   : > { %1569 = vmatpush.msrb.mxu0 %v1361_v33  ;;  %1628 = vmatpush.msrb.mxu1 %v1362_v58  ;;  %v1121_v58 = vld [vmem:[%s7430_s22 + $0x1c0] sm:$0xff] }
 0x148   : > { %v995_v14 = vpop.f32.mrf.mxu2  ;;  %v1054_v55 = vpop.f32.mrf.mxu3 }
 0x149   : > { %v8203_v15 = vadd.f32 %v995_v14, %v898_v47  ;;  %v8205_v22 = vadd.f32 %v1054_v55, %v899_v45  ;;  %v805_v40 = vpop.f32.mrf.mxu0  ;;  %v864_v25 = vpop.f32.mrf.mxu1  ;;  %v1119_v47 = vld [vmem:[%s7430_s22 + $0x180] sm:$0xff]  ;;  %v1360_v14 = vld [vmem:[%s12492_s1 + $0x8] sm:$0xff] }
 0x14a   : > { %v900_v34 = vadd.f32 %v805_v40, %v7934_v54  ;;  %v901_v20 = vadd.f32 %v864_v25, %v7936_v63  ;;  %v6283_v54 = vld [vmem:[%s12492_s1 + $0x200] sm:$0xff]  ;;  %v6284_v63 = vld [vmem:[%s12492_s1 + $0x208] sm:$0xff]  ;;  %1629 = vmatpush.msrb.mxu1 %v1360_v14 }
 0x14b   : > { %1734 = vmatpush.msrb.mxu2 %v6283_v54  ;;  %1793 = vmatpush.msrb.mxu3 %v6284_v63  ;;  %v1359_v45 = vld [vmem:[%s12492_s1] sm:$0xff]  ;;  %v6341_v63 = vld [vmem:[%s12492_s1 + $0x3d0] sm:$0xff] }
 0x14c   : > { %1196 = vmatmul.f32.gmra.mxu0 %v1117_v42  ;;  %1255 = vmatmul.f32.gmra.mxu1 %v1117_v42  ;;  %v6343_v54 = vld [vmem:[%s12492_s1 + $0x3e0] sm:$0xff] }
 0x14d   : > { %1477 = vmatmul.f32.gmra.mxu2 %v7923_v18  ;;  %1536 = vmatmul.f32.gmra.mxu3 %v7923_v18  ;;  %v1122_v14 = vld [vmem:[%s7430_s22 + $0x1e0] sm:$0xff] }
 0x14e   : > { %1570 = vmatpush.msrb.mxu0 %v1359_v45  ;;  %1970 = vmatpush.msra.mxu1 %v6346_v35  ;;  %v1673_v35 = vld [vmem:[%s7430_s22 + $0x18] sm:$0xff] }
 0x150   : > { %v998_v62 = vpop.f32.mrf.mxu2  ;;  %v1057_v11 = vpop.f32.mrf.mxu3  ;;  %1911 = vmatpush.msra.mxu0 %v6345_v60  ;;  %v1345_v60 = vld [vmem:[%s7430_s22 + $0x8] sm:$0xff] }
 0x151   : > { %v8230_v8 = vadd.f32 %v998_v62, %v900_v34  ;;  %v8232_v9 = vadd.f32 %v1057_v11, %v901_v20  ;;  %v808_v18 = vpop.f32.mrf.mxu0  ;;  %v867_v23 = vpop.f32.mrf.mxu1 }
 0x152   : > { %v902_v16 = vadd.f32 %v808_v18, %v7950_v46  ;;  %v903_v61 = vadd.f32 %v867_v23, %v7952_v0  ;;  %v6377_v46 = vld [vmem:[%s12492_s1 + $0x4f0] sm:$0xff]  ;;  %v6378_v0 = vld [vmem:[%s12492_s1 + $0x4f8] sm:$0xff]  ;;  %1912 = vmatpush.msra.mxu0 %v6343_v54 }
 0x153   : > { %2103 = vmatpush.msra.mxu2 %v6377_v46  ;;  %2162 = vmatpush.msra.mxu3 %v6378_v0  ;;  %v6339_v46 = vld [vmem:[%s12492_s1 + $0x3c0] sm:$0xff] }
 0x154   : > { %1199 = vmatmul.f32.gmra.mxu0 %v1118_v52  ;;  %1258 = vmatmul.f32.gmra.mxu1 %v1118_v52 }
 0x155   : > { %1480 = vmatmul.f32.gmra.mxu2 %v7939_v6  ;;  %1539 = vmatmul.f32.gmra.mxu3 %v7939_v6 }
 0x156   : > { %1913 = vmatpush.msra.mxu0 %v6341_v63  ;;  %v6336_v63 = vld [vmem:[%s12492_s1 + $0x3a8] sm:$0xff] }
 0x158   : > { %v1001_v26 = vpop.f32.mrf.mxu2  ;;  %v1060_v27 = vpop.f32.mrf.mxu3  ;;  %1914 = vmatpush.msra.mxu0 %v6339_v46 }
 0x159   : > { %v8251_v51 = vadd.f32 %v1001_v26, %v902_v16  ;;  %v8253_v29 = vadd.f32 %v1060_v27, %v903_v61  ;;  %v811_v6 = vpop.f32.mrf.mxu0  ;;  %v870_v32 = vpop.f32.mrf.mxu1 }
 0x15a   : > { %v904_v55 = vadd.f32 %v811_v6, %v7966_v24  ;;  %v905_v40 = vadd.f32 %v870_v32, %v7968_v28  ;;  %v6375_v24 = vld [vmem:[%s12492_s1 + $0x4e0] sm:$0xff]  ;;  %v6376_v28 = vld [vmem:[%s12492_s1 + $0x4e8] sm:$0xff] }
 0x15b   : > { %2104 = vmatpush.msra.mxu2 %v6375_v24  ;;  %2163 = vmatpush.msra.mxu3 %v6376_v28  ;;  %v6337_v24 = vld [vmem:[%s12492_s1 + $0x3b0] sm:$0xff]  ;;  %v6338_v28 = vld [vmem:[%s12492_s1 + $0x3b8] sm:$0xff] }
 0x15c   : > { %1202 = vmatmul.f32.gmra.mxu0 %v1119_v47  ;;  %1261 = vmatmul.f32.gmra.mxu1 %v1119_v47 }
 0x15d   : > { %1483 = vmatmul.f32.gmra.mxu2 %v7955_v5  ;;  %1542 = vmatmul.f32.gmra.mxu3 %v7955_v5 }
 0x15e   : > { %1915 = vmatpush.msra.mxu0 %v6337_v24  ;;  %v1676_v24 = vld [vmem:[%s7430_s22 + $0x78] sm:$0xff] }
 0x160   : > { %v1004_v25 = vpop.f32.mrf.mxu2  ;;  %v1063_v42 = vpop.f32.mrf.mxu3 }
 0x161   : > { %v8272_v4 = vadd.f32 %v1004_v25, %v904_v55  ;;  %v8274_v57 = vadd.f32 %v1063_v42, %v905_v40  ;;  %v814_v5 = vpop.f32.mrf.mxu0  ;;  %v873_v53 = vpop.f32.mrf.mxu1  ;;  %v6369_v42 = vld [vmem:[%s12492_s1 + $0x4b0] sm:$0xff] }
 0x162   : > { %v906_v34 = vadd.f32 %v814_v5, %v7982_v10  ;;  %v907_v20 = vadd.f32 %v873_v53, %v7984_v19  ;;  %v6373_v10 = vld [vmem:[%s12492_s1 + $0x4d0] sm:$0xff]  ;;  %v6374_v19 = vld [vmem:[%s12492_s1 + $0x4d8] sm:$0xff] }
 0x163   : > { %2105 = vmatpush.msra.mxu2 %v6373_v10  ;;  %2164 = vmatpush.msra.mxu3 %v6374_v19  ;;  %v1346_v10 = vld [vmem:[%s7430_s22 + $0x28] sm:$0xff]  ;;  %v6335_v19 = vld [vmem:[%s12492_s1 + $0x3a0] sm:$0xff] }
 0x164   : > { %1205 = vmatmul.f32.gmra.mxu0 %v1120_v56  ;;  %1264 = vmatmul.f32.gmra.mxu1 %v1120_v56 }
 0x165   : > { %1486 = vmatmul.f32.gmra.mxu2 %v7971_v41  ;;  %1545 = vmatmul.f32.gmra.mxu3 %v7971_v41  ;;  %v6344_v41 = vld [vmem:[%s12492_s1 + $0x3e8] sm:$0xff] }
 0x166   : > { %1971 = vmatpush.msra.mxu1 %v6344_v41  ;;  %1916 = vmatpush.msra.mxu0 %v6335_v19 }
 0x168   : > { %v1007_v62 = vpop.f32.mrf.mxu2  ;;  %v1066_v11 = vpop.f32.mrf.mxu3 }
 0x169   : > { %v8293_v18 = vadd.f32 %v1007_v62, %v906_v34  ;;  %v8295_v23 = vadd.f32 %v1066_v11, %v907_v20  ;;  %v817_v52 = vpop.f32.mrf.mxu0  ;;  %v876_v33 = vpop.f32.mrf.mxu1 }
 0x16a   : > { %v908_v16 = vadd.f32 %v817_v52, %v8004_v43  ;;  %v909_v61 = vadd.f32 %v876_v33, %v8006_v1  ;;  %v6371_v43 = vld [vmem:[%s12492_s1 + $0x4c0] sm:$0xff]  ;;  %v6372_v1 = vld [vmem:[%s12492_s1 + $0x4c8] sm:$0xff] }
 0x16b   : > { %2106 = vmatpush.msra.mxu2 %v6371_v43  ;;  %2165 = vmatpush.msra.mxu3 %v6372_v1  ;;  %v6367_v52 = vld [vmem:[%s12492_s1 + $0x4a0] sm:$0xff]  ;;  %v6368_v33 = vld [vmem:[%s12492_s1 + $0x4a8] sm:$0xff] }
 0x16c   : > { %1208 = vmatmul.f32.gmra.mxu0 %v1121_v58  ;;  %1267 = vmatmul.f32.gmra.mxu1 %v1121_v58 }
 0x16d   : > { %1489 = vmatmul.f32.gmra.mxu2 %v7987_v38  ;;  %1548 = vmatmul.f32.gmra.mxu3 %v7987_v38  ;;  %v6342_v38 = vld [vmem:[%s12492_s1 + $0x3d8] sm:$0xff] }
 0x16e   : > { %1972 = vmatpush.msra.mxu1 %v6342_v38  ;;  %2107 = vmatpush.msra.mxu2 %v6369_v42 }
 0x170   : > { %v1010_v26 = vpop.f32.mrf.mxu2  ;;  %v1069_v27 = vpop.f32.mrf.mxu3  ;;  %2108 = vmatpush.msra.mxu2 %v6367_v52  ;;  %v6329_v52 = vld [vmem:[%s12492_s1 + $0x370] sm:$0xff] }
 0x171   : > { %v8320_v6 = vadd.f32 %v1010_v26, %v908_v16  ;;  %v8322_v32 = vadd.f32 %v1069_v27, %v909_v61  ;;  %v820_v47 = vpop.f32.mrf.mxu0  ;;  %v879_v45 = vpop.f32.mrf.mxu1  ;;  %v6365_v16 = vld [vmem:[%s12492_s1 + $0x490] sm:$0xff]  ;;  %v6366_v26 = vld [vmem:[%s12492_s1 + $0x498] sm:$0xff] }
 0x172   : > { %v910_v0 = vadd.f32 %v820_v47, %v8020_v44  ;;  %v911_v55 = vadd.f32 %v879_v45, %v8022_v48  ;;  %v6370_v44 = vld [vmem:[%s12492_s1 + $0x4b8] sm:$0xff]  ;;  %2109 = vmatpush.msra.mxu2 %v6365_v16 }
 0x173   : > { %2166 = vmatpush.msra.mxu3 %v6370_v44 }
 0x174   : > { %1211 = vmatmul.f32.gmra.mxu0 %v1122_v14  ;;  %1270 = vmatmul.f32.gmra.mxu1 %v1122_v14 }
 0x175   : > { %1492 = vmatmul.f32.gmra.mxu2 %v8009_v13  ;;  %1551 = vmatmul.f32.gmra.mxu3 %v8009_v13  ;;  %v6340_v13 = vld [vmem:[%s12492_s1 + $0x3c8] sm:$0xff] }
 0x176   : > { %1973 = vmatpush.msra.mxu1 %v6340_v13  ;;  %2167 = vmatpush.msra.mxu3 %v6368_v33  ;;  %v6333_v13 = vld [vmem:[%s12492_s1 + $0x390] sm:$0xff]  ;;  %v6330_v33 = vld [vmem:[%s12492_s1 + $0x378] sm:$0xff] }
 0x177   : > { %1917 = vmatpush.msra.mxu0 %v6333_v13  ;;  %v6357_v13 = vld [vmem:[%s12492_s1 + $0x450] sm:$0xff] }
 0x178   : > { %v1013_v40 = vpop.f32.mrf.mxu2  ;;  %v1072_v25 = vpop.f32.mrf.mxu3  ;;  %1974 = vmatpush.msra.mxu1 %v6338_v28  ;;  %2168 = vmatpush.msra.mxu3 %v6366_v26  ;;  %v6327_v26 = vld [vmem:[%s12492_s1 + $0x360] sm:$0xff] }
 0x179   : > { %v8347_v48 = vadd.f32 %v1013_v40, %v910_v0  ;;  %v8349_v5 = vadd.f32 %v1072_v25, %v911_v55  ;;  %v823_v53 = vpop.f32.mrf.mxu0  ;;  %v882_v56 = vpop.f32.mrf.mxu1  ;;  %v1675_v0 = vld [vmem:[%s7430_s22 + $0x58] sm:$0xff]  ;;  %v6364_v40 = vld [vmem:[%s12492_s1 + $0x488] sm:$0xff] }
 0x17a   : > { %v912_v34 = vadd.f32 %v823_v53, %v8040_v7  ;;  %v913_v20 = vadd.f32 %v882_v56, %v8042_v30  ;;  %v1674_v30 = vld [vmem:[%s7430_s22 + $0x38] sm:$0xff]  ;;  %1975 = vmatpush.msra.mxu1 %v6336_v63  ;;  %2169 = vmatpush.msra.mxu3 %v6364_v40  ;;  %v8417_v56 = vld [vmem:[%s7430_s22 + $0x68] sm:$0xff] }
 0x17b   : > { %v1677_v63 = vld [vmem:[%s7430_s22 + $0x98] sm:$0xff] }
 0x17c   : > { %1571 = vmatmul.f32.vlgmr.msrb.gmra.mxu0 %v1345_v60  ;;  %1630 = vmatmul.f32.vlgmr.msrb.gmra.mxu1 %v1345_v60 }
 0x17d   : > { %1735 = vmatmul.f32.vlgmr.msrb.gmra.mxu2 %v1673_v35  ;;  %1794 = vmatmul.f32.vlgmr.msrb.gmra.mxu3 %v1673_v35 }
 0x180   : > { %v1016_v62 = vpop.f32.mrf.mxu2  ;;  %v1075_v11 = vpop.f32.mrf.mxu3 }
 0x181   : > { %v8367_v58 = vadd.f32 %v1016_v62, %v912_v34  ;;  %v8369_v54 = vadd.f32 %v1075_v11, %v913_v20  ;;  %v826_v41 = vpop.f32.mrf.mxu0  ;;  %v885_v7 = vpop.f32.mrf.mxu1  ;;  %v6331_v34 = vld [vmem:[%s12492_s1 + $0x380] sm:$0xff]  ;;  %v6362_v20 = vld [vmem:[%s12492_s1 + $0x478] sm:$0xff] }
 0x182   : > { %v914_v61 = vadd.f32 %v826_v41, %v8066_v37  ;;  %v915_v38 = vadd.f32 %v885_v7, %v8068_v49  ;;  %v8392_v37 = vld [vmem:[%s7430_s22 + $0x48] sm:$0xff]  ;;  %1918 = vmatpush.msra.mxu0 %v6331_v34  ;;  %2170 = vmatpush.msra.mxu3 %v6362_v20 }
 0x184   : > { %1574 = vmatmul.f32.gmra.mxu0 %v1346_v10  ;;  %1633 = vmatmul.f32.gmra.mxu1 %v1346_v10  ;;  %v8448_v10 = vld [vmem:[%s7430_s22 + $0x88] sm:$0xff] }
 0x185   : > { %1738 = vmatmul.f32.gmra.mxu2 %v1674_v30  ;;  %1797 = vmatmul.f32.gmra.mxu3 %v1674_v30 }
 0x186   : > { %1919 = vmatpush.msra.mxu0 %v6329_v52 }
 0x188   : > { %v1019_v27 = vpop.f32.mrf.mxu2  ;;  %v1078_v47 = vpop.f32.mrf.mxu3  ;;  %1920 = vmatpush.msra.mxu0 %v6327_v26  ;;  %v6321_v26 = vld [vmem:[%s12492_s1 + $0x330] sm:$0xff] }
 0x189   : > { %v8387_v45 = vadd.f32 %v1019_v27, %v914_v61  ;;  %v8389_v14 = vadd.f32 %v1078_v47, %v915_v38  ;;  %v1173_v43 = vpop.f32.mrf.mxu0  ;;  %v1232_v1 = vpop.f32.mrf.mxu1  ;;  %v6359_v61 = vld [vmem:[%s12492_s1 + $0x460] sm:$0xff]  ;;  %v6328_v27 = vld [vmem:[%s12492_s1 + $0x368] sm:$0xff] }
 0x18a   : > { %v1274_v49 = vadd.f32 %v1173_v43, %v8088_v59  ;;  %v1275_v46 = vadd.f32 %v1232_v1, %v8090_v31  ;;  %v6334_v59 = vld [vmem:[%s12492_s1 + $0x398] sm:$0xff]  ;;  %v6363_v31 = vld [vmem:[%s12492_s1 + $0x480] sm:$0xff]  ;;  %v8473_v1 = vld [vmem:[%s7430_s22 + $0xa8] sm:$0xff] }
 0x18b   : > { %1976 = vmatpush.msra.mxu1 %v6334_v59  ;;  %2110 = vmatpush.msra.mxu2 %v6363_v31  ;;  %v6326_v59 = vld [vmem:[%s12492_s1 + $0x358] sm:$0xff] }
 0x18c   : > { %v1302_v55 = vmax.f32 %v1274_v49, %v1275_v46  ;;  %1577 = vmatmul.f32.gmra.mxu0 %v8392_v37  ;;  %1636 = vmatmul.f32.gmra.mxu1 %v8392_v37 }
 0x18d   : > { %1741 = vmatmul.f32.gmra.mxu2 %v1675_v0  ;;  %1800 = vmatmul.f32.gmra.mxu3 %v1675_v0  ;;  %v1678_v0 = vld [vmem:[%s7430_s22 + $0xb8] sm:$0xff] }
 0x18e   : > { %1317 = vst.msk [vmem:[#allocation2] sm:$0xff] %vm1316_vm0, %v1302_v55 }
 0x190   : > { %v8412_v25 = vpop.f32.mrf.mxu2  ;;  %v8414_v42 = vpop.f32.mrf.mxu3 }
 0x191   : > { %v1176_v44 = vpop.f32.mrf.mxu0  ;;  %v1235_v53 = vpop.f32.mrf.mxu1 }
 0x192   : > { %v1276_v60 = vadd.f32 %v1176_v44, %v8110_v21  ;;  %v1277_v35 = vadd.f32 %v1235_v53, %v8112_v36  ;;  %v6332_v21 = vld [vmem:[%s12492_s1 + $0x388] sm:$0xff]  ;;  %v6361_v36 = vld [vmem:[%s12492_s1 + $0x470] sm:$0xff] }
 0x193   : > { %1977 = vmatpush.msra.mxu1 %v6332_v21  ;;  %2111 = vmatpush.msra.mxu2 %v6361_v36  ;;  %v6355_v21 = vld [vmem:[%s12492_s1 + $0x440] sm:$0xff]  ;;  %v6324_v36 = vld [vmem:[%s12492_s1 + $0x348] sm:$0xff] }
 0x194   : > { %v1303_v28 = vmax.f32 %v1276_v60, %v1277_v35  ;;  %1580 = vmatmul.f32.gmra.mxu0 %v8417_v56  ;;  %1639 = vmatmul.f32.gmra.mxu1 %v8417_v56  ;;  %v8498_v60 = vld [vmem:[%s7430_s22 + $0xc8] sm:$0xff] }
 0x195   : > { %1744 = vmatmul.f32.gmra.mxu2 %v1676_v24  ;;  %1803 = vmatmul.f32.gmra.mxu3 %v1676_v24 }
 0x196   : > { %1318 = vst.msk [vmem:[#allocation2 + $0x8] sm:$0xff] %vm1316_vm0, %v1303_v28  ;;  %1978 = vmatpush.msra.mxu1 %v6330_v33  ;;  %2112 = vmatpush.msra.mxu2 %v6359_v61  ;;  %v1679_v28 = vld [vmem:[%s7430_s22 + $0xd8] sm:$0xff]  ;;  %v6353_v33 = vld [vmem:[%s12492_s1 + $0x430] sm:$0xff] }
 0x197   : > { %v1680_v61 = vld [vmem:[%s7430_s22 + $0xf8] sm:$0xff] }
 0x198   : > { %v8437_v62 = vpop.f32.mrf.mxu2  ;;  %v8439_v11 = vpop.f32.mrf.mxu3  ;;  %1979 = vmatpush.msra.mxu1 %v6328_v27  ;;  %2113 = vmatpush.msra.mxu2 %v6357_v13 }
 0x199   : > { %v1179_v41 = vpop.f32.mrf.mxu0  ;;  %v1238_v7 = vpop.f32.mrf.mxu1 }
 0x19a   : > { %v1278_v30 = vadd.f32 %v1179_v41, %v8132_v2  ;;  %v1279_v19 = vadd.f32 %v1238_v7, %v8134_v3  ;;  %v6360_v2 = vld [vmem:[%s12492_s1 + $0x468] sm:$0xff]  ;;  %1980 = vmatpush.msra.mxu1 %v6326_v59  ;;  %2114 = vmatpush.msra.mxu2 %v6355_v21  ;;  %v6354_v41 = vld [vmem:[%s12492_s1 + $0x438] sm:$0xff]  ;;  %v6319_v59 = vld [vmem:[%s12492_s1 + $0x320] sm:$0xff] }
 0x19b   : > { %2171 = vmatpush.msra.mxu3 %v6360_v2 }
 0x19c   : > { %v1304_v16 = vmax.f32 %v1278_v30, %v1279_v19  ;;  %1583 = vmatmul.f32.gmra.mxu0 %v8448_v10  ;;  %1642 = vmatmul.f32.gmra.mxu1 %v8448_v10  ;;  %v8529_v19 = vld [vmem:[%s7430_s22 + $0xe8] sm:$0xff] }
 0x19d   : > { %1747 = vmatmul.f32.gmra.mxu2 %v1677_v63  ;;  %1806 = vmatmul.f32.gmra.mxu3 %v1677_v63 }
 0x19e   : > { %1319 = vst.msk [vmem:[#allocation2 + $0x10] sm:$0xff] %vm1316_vm0, %v1304_v16  ;;  %1981 = vmatpush.msra.mxu1 %v6324_v36  ;;  %2115 = vmatpush.msra.mxu2 %v6353_v33  ;;  %v6317_v33 = vld [vmem:[%s12492_s1 + $0x310] sm:$0xff] }
 0x1a0   : > { %v8462_v3 = vpop.f32.mrf.mxu2  ;;  %v8464_v38 = vpop.f32.mrf.mxu3 }
 0x1a1   : > { %v1182_v47 = vpop.f32.mrf.mxu0  ;;  %v1241_v43 = vpop.f32.mrf.mxu1 }
 0x1a2   : > { %v1280_v49 = vadd.f32 %v1182_v47, %v8160_v12  ;;  %v1281_v46 = vadd.f32 %v1241_v43, %v8162_v17  ;;  %v6358_v12 = vld [vmem:[%s12492_s1 + $0x458] sm:$0xff]  ;;  %v6325_v17 = vld [vmem:[%s12492_s1 + $0x350] sm:$0xff]  ;;  %v6351_v47 = vld [vmem:[%s12492_s1 + $0x420] sm:$0xff] }
 0x1a3   : > { %2172 = vmatpush.msra.mxu3 %v6358_v12  ;;  %1921 = vmatpush.msra.mxu0 %v6325_v17  ;;  %v6352_v43 = vld [vmem:[%s12492_s1 + $0x428] sm:$0xff]  ;;  %v1681_v12 = vld [vmem:[%s7430_s22 + $0x118] sm:$0xff] }
 0x1a4   : > { %v1305_v55 = vmax.f32 %v1280_v49, %v1281_v46  ;;  %1586 = vmatmul.f32.gmra.mxu0 %v8473_v1  ;;  %1645 = vmatmul.f32.gmra.mxu1 %v8473_v1 }
 0x1a5   : > { %1750 = vmatmul.f32.gmra.mxu2 %v1678_v0  ;;  %1809 = vmatmul.f32.gmra.mxu3 %v1678_v0  ;;  %v8554_v0 = vld [vmem:[%s7430_s22 + $0x108] sm:$0xff] }
 0x1a6   : > { %1320 = vst.msk [vmem:[#allocation2 + $0x18] sm:$0xff] %vm1316_vm0, %v1305_v55  ;;  %2116 = vmatpush.msra.mxu2 %v6351_v47  ;;  %v6315_v47 = vld [vmem:[%s12492_s1 + $0x300] sm:$0xff] }
 0x1a8   : > { %v8493_v31 = vpop.f32.mrf.mxu2  ;;  %v8495_v40 = vpop.f32.mrf.mxu3 }
 0x1a9   : > { %v1185_v44 = vpop.f32.mrf.mxu0  ;;  %v1244_v53 = vpop.f32.mrf.mxu1 }
 0x1aa   : > { %v1282_v35 = vadd.f32 %v1185_v44, %v8182_v39  ;;  %v1283_v24 = vadd.f32 %v1244_v53, %v8184_v50  ;;  %v6356_v39 = vld [vmem:[%s12492_s1 + $0x448] sm:$0xff]  ;;  %v6323_v50 = vld [vmem:[%s12492_s1 + $0x340] sm:$0xff]  ;;  %v6350_v44 = vld [vmem:[%s12492_s1 + $0x418] sm:$0xff] }
 0x1ab   : > { %2173 = vmatpush.msra.mxu3 %v6356_v39  ;;  %1922 = vmatpush.msra.mxu0 %v6323_v50  ;;  %v1682_v50 = vld [vmem:[%s7430_s22 + $0x138] sm:$0xff] }
 0x1ac   : > { %v1306_v34 = vmax.f32 %v1282_v35, %v1283_v24  ;;  %1589 = vmatmul.f32.gmra.mxu0 %v8498_v60  ;;  %1648 = vmatmul.f32.gmra.mxu1 %v8498_v60 }
 0x1ad   : > { %1753 = vmatmul.f32.gmra.mxu2 %v1679_v28  ;;  %1812 = vmatmul.f32.gmra.mxu3 %v1679_v28 }
 0x1ae   : > { %1321 = vst.msk [vmem:[#allocation2 + $0x20] sm:$0xff] %vm1316_vm0, %v1306_v34  ;;  %2174 = vmatpush.msra.mxu3 %v6354_v41  ;;  %1923 = vmatpush.msra.mxu0 %v6321_v26  ;;  %v8579_v34 = vld [vmem:[%s7430_s22 + $0x128] sm:$0xff] }
 0x1af   : > { %v6348_v41 = vld [vmem:[%s12492_s1 + $0x408] sm:$0xff] }
 0x1b0   : > { %v8518_v20 = vpop.f32.mrf.mxu2  ;;  %v8520_v52 = vpop.f32.mrf.mxu3  ;;  %2175 = vmatpush.msra.mxu3 %v6352_v43  ;;  %1924 = vmatpush.msra.mxu0 %v6319_v59  ;;  %v6316_v43 = vld [vmem:[%s12492_s1 + $0x308] sm:$0xff] }
 0x1b1   : > { %v1188_v7 = vpop.f32.mrf.mxu0  ;;  %v1247_v30 = vpop.f32.mrf.mxu1 }
 0x1b2   : > { %v1284_v63 = vadd.f32 %v1188_v7, %v8203_v15  ;;  %v1285_v16 = vadd.f32 %v1247_v30, %v8205_v22  ;;  %v6322_v15 = vld [vmem:[%s12492_s1 + $0x338] sm:$0xff]  ;;  %2176 = vmatpush.msra.mxu3 %v6350_v44  ;;  %1925 = vmatpush.msra.mxu0 %v6317_v33 }
 0x1b3   : > { %1982 = vmatpush.msra.mxu1 %v6322_v15  ;;  %v1683_v15 = vld [vmem:[%s7430_s22 + $0x158] sm:$0xff] }
 0x1b4   : > { %v1307_v2 = vmax.f32 %v1284_v63, %v1285_v16  ;;  %1592 = vmatmul.f32.gmra.mxu0 %v8529_v19  ;;  %1651 = vmatmul.f32.gmra.mxu1 %v8529_v19 }
 0x1b5   : > { %1756 = vmatmul.f32.gmra.mxu2 %v1680_v61  ;;  %1815 = vmatmul.f32.gmra.mxu3 %v1680_v61  ;;  %v8604_v61 = vld [vmem:[%s7430_s22 + $0x148] sm:$0xff] }
 0x1b6   : > { %1322 = vst.msk [vmem:[#allocation2 + $0x28] sm:$0xff] %vm1316_vm0, %v1307_v2  ;;  %2177 = vmatpush.msra.mxu3 %v6348_v41  ;;  %1926 = vmatpush.msra.mxu0 %v6315_v47 }
 0x1b8   : > { %v8543_v22 = vpop.f32.mrf.mxu2  ;;  %v8545_v27 = vpop.f32.mrf.mxu3 }
 0x1b9   : > { %v1191_v49 = vpop.f32.mrf.mxu0  ;;  %v1250_v46 = vpop.f32.mrf.mxu1 }
 0x1ba   : > { %v1286_v55 = vadd.f32 %v1191_v49, %v8230_v8  ;;  %v1287_v13 = vadd.f32 %v1250_v46, %v8232_v9  ;;  %v6320_v8 = vld [vmem:[%s12492_s1 + $0x328] sm:$0xff]  ;;  %v6349_v9 = vld [vmem:[%s12492_s1 + $0x410] sm:$0xff] }
 0x1bb   : > { %1983 = vmatpush.msra.mxu1 %v6320_v8  ;;  %2117 = vmatpush.msra.mxu2 %v6349_v9  ;;  %v8635_v8 = vld [vmem:[%s7430_s22 + $0x168] sm:$0xff] }
 0x1bc   : > { %v1308_v17 = vmax.f32 %v1286_v55, %v1287_v13  ;;  %1595 = vmatmul.f32.gmra.mxu0 %v8554_v0  ;;  %1654 = vmatmul.f32.gmra.mxu1 %v8554_v0  ;;  %v6409_v13 = vld [vmem:[%s12492_s1 + $0x1f0] sm:$0xff] }
 0x1bd   : > { %1759 = vmatmul.f32.gmra.mxu2 %v1681_v12  ;;  %1818 = vmatmul.f32.gmra.mxu3 %v1681_v12  ;;  %v6410_v12 = vld [vmem:[%s12492_s1 + $0x1f8] sm:$0xff] }
 0x1be   : > { %1323 = vst.msk [vmem:[#allocation2 + $0x30] sm:$0xff] %vm1316_vm0, %v1308_v17  ;;  %2414 = vmatpush.msrb.mxu0 %v6409_v13 }
 0x1c0   : > { %v8574_v53 = vpop.f32.mrf.mxu2  ;;  %v8576_v35 = vpop.f32.mrf.mxu3 }
 0x1c1   : > { %v1194_v24 = vpop.f32.mrf.mxu0  ;;  %v1253_v28 = vpop.f32.mrf.mxu1 }
 0x1c2   : > { %v1288_v21 = vadd.f32 %v1194_v24, %v8251_v51  ;;  %v1289_v39 = vadd.f32 %v1253_v28, %v8253_v29  ;;  %v6318_v51 = vld [vmem:[%s12492_s1 + $0x318] sm:$0xff]  ;;  %v6347_v29 = vld [vmem:[%s12492_s1 + $0x400] sm:$0xff] }
 0x1c3   : > { %1984 = vmatpush.msra.mxu1 %v6318_v51  ;;  %2118 = vmatpush.msra.mxu2 %v6347_v29  ;;  %v1684_v24 = vld [vmem:[%s7430_s22 + $0x178] sm:$0xff]  ;;  %v8660_v29 = vld [vmem:[%s7430_s22 + $0x188] sm:$0xff] }
 0x1c4   : > { %v1309_v36 = vmax.f32 %v1288_v21, %v1289_v39  ;;  %1598 = vmatmul.f32.gmra.mxu0 %v8579_v34  ;;  %1657 = vmatmul.f32.gmra.mxu1 %v8579_v34  ;;  %v2364_v21 = vld [vmem:[%s12492_s1 + $0xe0] sm:$0xff] }
 0x1c5   : > { %1762 = vmatmul.f32.gmra.mxu2 %v1682_v50  ;;  %1821 = vmatmul.f32.gmra.mxu3 %v1682_v50  ;;  %v6407_v50 = vld [vmem:[%s12492_s1 + $0x1e0] sm:$0xff] }
 0x1c6   : > { %1324 = vst.msk [vmem:[#allocation2 + $0x38] sm:$0xff] %vm1316_vm0, %v1309_v36  ;;  %1985 = vmatpush.msra.mxu1 %v6316_v43  ;;  %v6408_v36 = vld [vmem:[%s12492_s1 + $0x1e8] sm:$0xff]  ;;  %2415 = vmatpush.msrb.mxu0 %v6407_v50  ;;  %v1865_v50 = vld [vmem:[%s7430_s22 + $0x40] sm:$0xff] }
 0x1c8   : > { %v8599_v7 = vpop.f32.mrf.mxu2  ;;  %v8601_v30 = vpop.f32.mrf.mxu3  ;;  %2473 = vmatpush.msrb.mxu1 %v6410_v12 }
 0x1c9   : > { %v1197_v63 = vpop.f32.mrf.mxu0  ;;  %v1256_v16 = vpop.f32.mrf.mxu1 }
 0x1ca   : > { %v1290_v2 = vadd.f32 %v1197_v63, %v8272_v4  ;;  %v1291_v26 = vadd.f32 %v1256_v16, %v8274_v57  ;;  %v2366_v4 = vld [vmem:[%s12492_s1 + $0xf0] sm:$0xff]  ;;  %v2367_v57 = vld [vmem:[%s12492_s1 + $0xf8] sm:$0xff]  ;;  %2474 = vmatpush.msrb.mxu1 %v6408_v36 }
 0x1cb   : > { %2532 = vmatpush.msrb.mxu2 %v2366_v4  ;;  %2591 = vmatpush.msrb.mxu3 %v2367_v57  ;;  %v1685_v16 = vld [vmem:[%s7430_s22 + $0x198] sm:$0xff]  ;;  %v8685_v57 = vld [vmem:[%s7430_s22 + $0x1a8] sm:$0xff]  ;;  %v2358_v36 = vld [vmem:[%s12492_s1 + $0xb0] sm:$0xff] }
 0x1cc   : > { %v1310_v49 = vmax.f32 %v1290_v2, %v1291_v26  ;;  %1601 = vmatmul.f32.gmra.mxu0 %v8604_v61  ;;  %1660 = vmatmul.f32.gmra.mxu1 %v8604_v61  ;;  %v2362_v2 = vld [vmem:[%s12492_s1 + $0xd0] sm:$0xff]  ;;  %v2363_v26 = vld [vmem:[%s12492_s1 + $0xd8] sm:$0xff] }
 0x1cd   : > { %1765 = vmatmul.f32.gmra.mxu2 %v1683_v15  ;;  %1824 = vmatmul.f32.gmra.mxu3 %v1683_v15 }
 0x1ce   : > { %1325 = vst.msk [vmem:[#allocation2 + $0x40] sm:$0xff] %vm1316_vm0, %v1310_v49  ;;  %2533 = vmatpush.msrb.mxu2 %v2364_v21 }
 0x1d0   : > { %v8624_v46 = vpop.f32.mrf.mxu2  ;;  %v8626_v55 = vpop.f32.mrf.mxu3  ;;  %2534 = vmatpush.msrb.mxu2 %v2362_v2 }
 0x1d1   : > { %12524 = vst [vmem:[#allocation4_spill] sm:$0xff] %v8626_v55  ;;  %v1200_v17 = vpop.f32.mrf.mxu0  ;;  %v1259_v59 = vpop.f32.mrf.mxu1  ;;  %v2325_v55 = vld [vmem:[%s7430_s22 + $0x70] sm:$0xff] }
 0x1d2   : > { %v1292_v9 = vadd.f32 %v1200_v17, %v8293_v18  ;;  %v1293_v44 = vadd.f32 %v1259_v59, %v8295_v23  ;;  %v2365_v18 = vld [vmem:[%s12492_s1 + $0xe8] sm:$0xff]  ;;  %v1686_v17 = vld [vmem:[%s7430_s22 + $0x1b8] sm:$0xff]  ;;  %v2360_v59 = vld [vmem:[%s12492_s1 + $0xc0] sm:$0xff] }
 0x1d3   : > { %2592 = vmatpush.msrb.mxu3 %v2365_v18  ;;  %2535 = vmatpush.msrb.mxu2 %v2360_v59 }
 0x1d4   : > { %v1311_v28 = vmax.f32 %v1292_v9, %v1293_v44  ;;  %1604 = vmatmul.f32.gmra.mxu0 %v8635_v8  ;;  %1663 = vmatmul.f32.gmra.mxu1 %v8635_v8  ;;  %v2361_v9 = vld [vmem:[%s12492_s1 + $0xc8] sm:$0xff] }
 0x1d5   : > { %1768 = vmatmul.f32.gmra.mxu2 %v1684_v24  ;;  %1827 = vmatmul.f32.gmra.mxu3 %v1684_v24 }
 0x1d6   : > { %1326 = vst.msk [vmem:[#allocation2 + $0x48] sm:$0xff] %vm1316_vm0, %v1311_v28  ;;  %2593 = vmatpush.msrb.mxu3 %v2363_v26  ;;  %2536 = vmatpush.msrb.mxu2 %v2358_v36 }
 0x1d8   : > { %v8649_v23 = vpop.f32.mrf.mxu2  ;;  %v8651_v39 = vpop.f32.mrf.mxu3  ;;  %2594 = vmatpush.msrb.mxu3 %v2361_v9 }
 0x1d9   : > { %12525 = vst [vmem:[#allocation5_spill] sm:$0xff] %v8649_v23  ;;  %v1203_v33 = vpop.f32.mrf.mxu0  ;;  %v1262_v51 = vpop.f32.mrf.mxu1 }
 0x1da   : > { %12526 = vst [vmem:[#allocation6_spill] sm:$0xff] %v8651_v39  ;;  %v1294_v41 = vadd.f32 %v1203_v33, %v8320_v6  ;;  %v1295_v63 = vadd.f32 %v1262_v51, %v8322_v32  ;;  %v6405_v6 = vld [vmem:[%s12492_s1 + $0x1d0] sm:$0xff]  ;;  %v6406_v32 = vld [vmem:[%s12492_s1 + $0x1d8] sm:$0xff] }
 0x1db   : > { %2416 = vmatpush.msrb.mxu0 %v6405_v6  ;;  %2475 = vmatpush.msrb.mxu1 %v6406_v32  ;;  %v2359_v33 = vld [vmem:[%s12492_s1 + $0xb8] sm:$0xff]  ;;  %v1866_v6 = vld [vmem:[%s7430_s22 + $0x60] sm:$0xff]  ;;  %v2357_v32 = vld [vmem:[%s12492_s1 + $0xa8] sm:$0xff] }
 0x1dc   : > { %v1312_v15 = vmax.f32 %v1294_v41, %v1295_v63  ;;  %1607 = vmatmul.f32.gmra.mxu0 %v8660_v29  ;;  %1666 = vmatmul.f32.gmra.mxu1 %v8660_v29 }
 0x1dd   : > { %1771 = vmatmul.f32.gmra.mxu2 %v1685_v16  ;;  %1830 = vmatmul.f32.gmra.mxu3 %v1685_v16  ;;  %v6401_v16 = vld [vmem:[%s12492_s1 + $0x1b0] sm:$0xff] }
 0x1de   : > { %1327 = vst.msk [vmem:[#allocation2 + $0x50] sm:$0xff] %vm1316_vm0, %v1312_v15  ;;  %2595 = vmatpush.msrb.mxu3 %v2359_v33 }
 0x1e0   : > { %v8680_v47 = vpop.f32.mrf.mxu2  ;;  %v8682_v43 = vpop.f32.mrf.mxu3  ;;  %2596 = vmatpush.msrb.mxu3 %v2357_v32 }
 0x1e1   : > { %12527 = vst [vmem:[#allocation7_spill] sm:$0xff] %v8680_v47  ;;  %v1206_v49 = vpop.f32.mrf.mxu0  ;;  %v1265_v4 = vpop.f32.mrf.mxu1  ;;  %v6442_v47 = vld [vmem:[%s12492_s1 + $0x2f8] sm:$0xff] }
 0x1e2   : > { %12528 = vst [vmem:[#allocation8_spill] sm:$0xff] %v8682_v43  ;;  %v1296_v13 = vadd.f32 %v1206_v49, %v8347_v48  ;;  %v1297_v12 = vadd.f32 %v1265_v4, %v8349_v5  ;;  %v6403_v48 = vld [vmem:[%s12492_s1 + $0x1c0] sm:$0xff]  ;;  %v6404_v5 = vld [vmem:[%s12492_s1 + $0x1c8] sm:$0xff] }
 0x1e3   : > { %2417 = vmatpush.msrb.mxu0 %v6403_v48  ;;  %2476 = vmatpush.msrb.mxu1 %v6404_v5  ;;  %v6397_v5 = vld [vmem:[%s12492_s1 + $0x190] sm:$0xff]  ;;  %v1876_v43 = vld [vmem:[%s7430_s22 + $0x1a0] sm:$0xff] }
 0x1e4   : > { %v1313_v44 = vmax.f32 %v1296_v13, %v1297_v12  ;;  %1610 = vmatmul.f32.gmra.mxu0 %v8685_v57  ;;  %1669 = vmatmul.f32.gmra.mxu1 %v8685_v57  ;;  %v6399_v13 = vld [vmem:[%s12492_s1 + $0x1a0] sm:$0xff]  ;;  %v6400_v12 = vld [vmem:[%s12492_s1 + $0x1a8] sm:$0xff] }
 0x1e5   : > { %1774 = vmatmul.f32.gmra.mxu2 %v1686_v17  ;;  %1833 = vmatmul.f32.gmra.mxu3 %v1686_v17 }
 0x1e6   : > { %1328 = vst.msk [vmem:[#allocation2 + $0x58] sm:$0xff] %vm1316_vm0, %v1313_v44  ;;  %2418 = vmatpush.msrb.mxu0 %v6401_v16  ;;  %v6396_v16 = vld [vmem:[%s12492_s1 + $0x188] sm:$0xff] }
 0x1e8   : > { %v8705_v24 = vpop.f32.mrf.mxu2  ;;  %v8707_v28 = vpop.f32.mrf.mxu3  ;;  %2419 = vmatpush.msrb.mxu0 %v6399_v13  ;;  %v2348_v13 = vld [vmem:[%s12492_s1 + $0x60] sm:$0xff] }
 0x1e9   : > { %12529 = vst [vmem:[#allocation9_spill] sm:$0xff] %v8705_v24  ;;  %v1209_v21 = vpop.f32.mrf.mxu0  ;;  %v1268_v18 = vpop.f32.mrf.mxu1 }
 0x1ea   : > { %12530 = vst [vmem:[#allocation10_spill] sm:$0xff] %v8707_v28  ;;  %v1298_v51 = vadd.f32 %v1209_v21, %v8367_v58  ;;  %v1299_v41 = vadd.f32 %v1268_v18, %v8369_v54  ;;  %v6402_v58 = vld [vmem:[%s12492_s1 + $0x1b8] sm:$0xff]  ;;  %2420 = vmatpush.msrb.mxu0 %v6397_v5  ;;  %v2352_v18 = vld [vmem:[%s12492_s1 + $0x80] sm:$0xff]  ;;  %v6380_v28 = vld [vmem:[%s12492_s1 + $0x108] sm:$0xff] }
 0x1eb   : > { %2477 = vmatpush.msrb.mxu1 %v6402_v58  ;;  %v6398_v21 = vld [vmem:[%s12492_s1 + $0x198] sm:$0xff]  ;;  %v2350_v58 = vld [vmem:[%s12492_s1 + $0x70] sm:$0xff]  ;;  %v1870_v5 = vld [vmem:[%s7430_s22 + $0xe0] sm:$0xff] }
 0x1ec   : > { %v1314_v63 = vmax.f32 %v1298_v51, %v1299_v41  ;;  %1927 = vmatmul.f32.vlgmr.msra.gmra.mxu0 %v1865_v50  ;;  %1986 = vmatmul.f32.vlgmr.msra.gmra.mxu1 %v1865_v50  ;;  %v2353_v50 = vld [vmem:[%s12492_s1 + $0x88] sm:$0xff] }
 0x1ed   : > { %2119 = vmatmul.f32.vlgmr.msra.gmra.mxu2 %v8392_v37  ;;  %2178 = vmatmul.f32.vlgmr.msra.gmra.mxu3 %v8392_v37  ;;  %v2356_v37 = vld [vmem:[%s12492_s1 + $0xa0] sm:$0xff] }
 0x1ee   : > { %1329 = vst.msk [vmem:[#allocation2 + $0x60] sm:$0xff] %vm1316_vm0, %v1314_v63  ;;  %2537 = vmatpush.msrb.mxu2 %v2356_v37  ;;  %2478 = vmatpush.msrb.mxu1 %v6400_v12  ;;  %v1868_v63 = vld [vmem:[%s7430_s22 + $0xa0] sm:$0xff]  ;;  %v2349_v12 = vld [vmem:[%s12492_s1 + $0x68] sm:$0xff] }
 0x1f0   : > { %v8727_v54 = vpop.f32.mrf.mxu2  ;;  %v8729_v2 = vpop.f32.mrf.mxu3  ;;  %2479 = vmatpush.msrb.mxu1 %v6398_v21  ;;  %v6391_v21 = vld [vmem:[%s12492_s1 + $0x160] sm:$0xff] }
 0x1f1   : > { %12531 = vst [vmem:[#allocation11_spill] sm:$0xff] %v8727_v54  ;;  %v1212_v26 = vpop.f32.mrf.mxu0  ;;  %v1271_v15 = vpop.f32.mrf.mxu1  ;;  %v1875_v54 = vld [vmem:[%s7430_s22 + $0x180] sm:$0xff] }
 0x1f2   : > { %12532 = vst [vmem:[#allocation12_spill] sm:$0xff] %v8729_v2  ;;  %v1300_v49 = vadd.f32 %v1212_v26, %v8387_v45  ;;  %v1301_v4 = vadd.f32 %v1271_v15, %v8389_v14  ;;  %v2354_v45 = vld [vmem:[%s12492_s1 + $0x90] sm:$0xff]  ;;  %v2355_v14 = vld [vmem:[%s12492_s1 + $0x98] sm:$0xff]  ;;  %2480 = vmatpush.msrb.mxu1 %v6396_v16 }
 0x1f3   : > { %2538 = vmatpush.msrb.mxu2 %v2354_v45  ;;  %2597 = vmatpush.msrb.mxu3 %v2355_v14  ;;  %v2351_v26 = vld [vmem:[%s12492_s1 + $0x78] sm:$0xff] }
 0x1f4   : > { %v1315_v17 = vmax.f32 %v1300_v49, %v1301_v4  ;;  %1930 = vmatmul.f32.gmra.mxu0 %v1866_v6  ;;  %1989 = vmatmul.f32.gmra.mxu1 %v1866_v6  ;;  %v1869_v49 = vld [vmem:[%s7430_s22 + $0xc0] sm:$0xff]  ;;  %v6394_v4 = vld [vmem:[%s12492_s1 + $0x178] sm:$0xff] }
 0x1f5   : > { %2122 = vmatmul.f32.gmra.mxu2 %v8417_v56  ;;  %2181 = vmatmul.f32.gmra.mxu3 %v8417_v56  ;;  %v1867_v56 = vld [vmem:[%s7430_s22 + $0x80] sm:$0xff] }
 0x1f6   : > { %1330 = vst.msk [vmem:[#allocation2 + $0x68] sm:$0xff] %vm1316_vm0, %v1315_v17  ;;  %2539 = vmatpush.msrb.mxu2 %v2352_v18  ;;  %2598 = vmatpush.msrb.mxu3 %v2353_v50  ;;  %v6392_v18 = vld [vmem:[%s12492_s1 + $0x168] sm:$0xff]  ;;  %v2347_v50 = vld [vmem:[%s12492_s1 + $0x58] sm:$0xff] }
 0x1f7   : > { %2481 = vmatpush.msrb.mxu1 %v6394_v4  ;;  %v2345_v4 = vld [vmem:[%s12492_s1 + $0x48] sm:$0xff] }
 0x1f8   : > { %v8755_v59 = vpop.f32.mrf.mxu2  ;;  %v8757_v9 = vpop.f32.mrf.mxu3  ;;  %2540 = vmatpush.msrb.mxu2 %v2350_v58  ;;  %2599 = vmatpush.msrb.mxu3 %v2351_v26 }
 0x1f9   : > { %12533 = vst [vmem:[#allocation13_spill] sm:$0xff] %v8755_v59  ;;  %v8759_v44 = vpop.f32.mrf.mxu0  ;;  %v8761_v48 = vpop.f32.mrf.mxu1  ;;  %2482 = vmatpush.msrb.mxu1 %v6392_v18  ;;  %v6382_v59 = vld [vmem:[%s12492_s1 + $0x118] sm:$0xff] }
 0x1fa   : > { %12534 = vst [vmem:[#allocation14_spill] sm:$0xff] %v8757_v9  ;;  %2541 = vmatpush.msrb.mxu2 %v2348_v13  ;;  %2600 = vmatpush.msrb.mxu3 %v2349_v12  ;;  %v6387_v13 = vld [vmem:[%s12492_s1 + $0x140] sm:$0xff]  ;;  %v6388_v12 = vld [vmem:[%s12492_s1 + $0x148] sm:$0xff] }
 0x1fb   : > { %v1874_v9 = vld [vmem:[%s7430_s22 + $0x160] sm:$0xff] }
 0x1fc   : > { %1933 = vmatmul.f32.gmra.mxu0 %v1867_v56  ;;  %1992 = vmatmul.f32.gmra.mxu1 %v1867_v56 }
 0x1fd   : > { %2125 = vmatmul.f32.gmra.mxu2 %v8448_v10  ;;  %2184 = vmatmul.f32.gmra.mxu3 %v8448_v10  ;;  %v6395_v10 = vld [vmem:[%s12492_s1 + $0x180] sm:$0xff] }
 0x1fe   : > { %2421 = vmatpush.msrb.mxu0 %v6395_v10  ;;  %2601 = vmatpush.msrb.mxu3 %v2347_v50  ;;  %v6390_v10 = vld [vmem:[%s12492_s1 + $0x158] sm:$0xff]  ;;  %v1872_v50 = vld [vmem:[%s7430_s22 + $0x120] sm:$0xff] }
 0x1ff   : > { %2483 = vmatpush.msrb.mxu1 %v6390_v10  ;;  %v6385_v10 = vld [vmem:[%s12492_s1 + $0x130] sm:$0xff] }
 0x200   : > { %v8778_v36 = vpop.f32.mrf.mxu2  ;;  %v8780_v33 = vpop.f32.mrf.mxu3  ;;  %2602 = vmatpush.msrb.mxu3 %v2345_v4 }
 0x201   : > { %v8782_v51 = vpop.f32.mrf.mxu0  ;;  %v8784_v41 = vpop.f32.mrf.mxu1  ;;  %2484 = vmatpush.msrb.mxu1 %v6388_v12 }
 0x204   : > { %1936 = vmatmul.f32.gmra.mxu0 %v1868_v63  ;;  %1995 = vmatmul.f32.gmra.mxu1 %v1868_v63  ;;  %v6389_v63 = vld [vmem:[%s12492_s1 + $0x150] sm:$0xff] }
 0x205   : > { %2128 = vmatmul.f32.gmra.mxu2 %v8473_v1  ;;  %2187 = vmatmul.f32.gmra.mxu3 %v8473_v1  ;;  %v6393_v1 = vld [vmem:[%s12492_s1 + $0x170] sm:$0xff] }
 0x206   : > { %2422 = vmatpush.msrb.mxu0 %v6393_v1  ;;  %v1871_v1 = vld [vmem:[%s7430_s22 + $0x100] sm:$0xff] }
 0x208   : > { %v8801_v15 = vpop.f32.mrf.mxu2  ;;  %v8803_v6 = vpop.f32.mrf.mxu3  ;;  %2423 = vmatpush.msrb.mxu0 %v6391_v21 }
 0x209   : > { %v8805_v37 = vpop.f32.mrf.mxu0  ;;  %v8807_v32 = vpop.f32.mrf.mxu1 }
 0x20a   : > { %2424 = vmatpush.msrb.mxu0 %v6389_v63  ;;  %v2343_v63 = vld [vmem:[%s12492_s1 + $0x38] sm:$0xff] }
 0x20b   : > { %2603 = vmatpush.msrb.mxu3 %v2343_v63  ;;  %v6383_v63 = vld [vmem:[%s12492_s1 + $0x120] sm:$0xff] }
 0x20c   : > { %1939 = vmatmul.f32.gmra.mxu0 %v1869_v49  ;;  %1998 = vmatmul.f32.gmra.mxu1 %v1869_v49 }
 0x20d   : > { %2131 = vmatmul.f32.gmra.mxu2 %v8498_v60  ;;  %2190 = vmatmul.f32.gmra.mxu3 %v8498_v60  ;;  %v2346_v60 = vld [vmem:[%s12492_s1 + $0x50] sm:$0xff] }
 0x20e   : > { %2542 = vmatpush.msrb.mxu2 %v2346_v60  ;;  %2425 = vmatpush.msrb.mxu0 %v6387_v13 }
 0x210   : > { %v8824_v17 = vpop.f32.mrf.mxu2  ;;  %v8826_v45 = vpop.f32.mrf.mxu3  ;;  %2426 = vmatpush.msrb.mxu0 %v6385_v10  ;;  %v6384_v10 = vld [vmem:[%s12492_s1 + $0x128] sm:$0xff] }
 0x211   : > { %v8828_v14 = vpop.f32.mrf.mxu0  ;;  %v8830_v56 = vpop.f32.mrf.mxu1 }
 0x212   : > { %2427 = vmatpush.msrb.mxu0 %v6383_v63 }
 0x214   : > { %1942 = vmatmul.f32.gmra.mxu0 %v1870_v5  ;;  %2001 = vmatmul.f32.gmra.mxu1 %v1870_v5 }
 0x215   : > { %2134 = vmatmul.f32.gmra.mxu2 %v8529_v19  ;;  %2193 = vmatmul.f32.gmra.mxu3 %v8529_v19  ;;  %v2344_v19 = vld [vmem:[%s12492_s1 + $0x40] sm:$0xff] }
 0x216   : > { %2543 = vmatpush.msrb.mxu2 %v2344_v19 }
 0x218   : > { %v8853_v16 = vpop.f32.mrf.mxu2  ;;  %v8855_v58 = vpop.f32.mrf.mxu3 }
 0x219   : > { %v8857_v26 = vpop.f32.mrf.mxu0  ;;  %v8859_v49 = vpop.f32.mrf.mxu1 }
 0x21c   : > { %1945 = vmatmul.f32.gmra.mxu0 %v1871_v1  ;;  %2004 = vmatmul.f32.gmra.mxu1 %v1871_v1  ;;  %v6386_v1 = vld [vmem:[%s12492_s1 + $0x138] sm:$0xff] }
 0x21d   : > { %2137 = vmatmul.f32.gmra.mxu2 %v8554_v0  ;;  %2196 = vmatmul.f32.gmra.mxu3 %v8554_v0  ;;  %v2342_v0 = vld [vmem:[%s12492_s1 + $0x30] sm:$0xff] }
 0x21e   : > { %2544 = vmatpush.msrb.mxu2 %v2342_v0  ;;  %2485 = vmatpush.msrb.mxu1 %v6386_v1  ;;  %v2341_v0 = vld [vmem:[%s12492_s1 + $0x28] sm:$0xff]  ;;  %v2338_v1 = vld [vmem:[%s12492_s1 + $0x10] sm:$0xff] }
 0x21f   : > { %2604 = vmatpush.msrb.mxu3 %v2341_v0 }
 0x220   : > { %v8876_v5 = vpop.f32.mrf.mxu2  ;;  %v8878_v21 = vpop.f32.mrf.mxu3  ;;  %2486 = vmatpush.msrb.mxu1 %v6384_v10 }
 0x221   : > { %v8880_v18 = vpop.f32.mrf.mxu0  ;;  %v8882_v60 = vpop.f32.mrf.mxu1 }
 0x222   : > { %2487 = vmatpush.msrb.mxu1 %v6382_v59 }
 0x224   : > { %1948 = vmatmul.f32.gmra.mxu0 %v1872_v50  ;;  %2007 = vmatmul.f32.gmra.mxu1 %v1872_v50  ;;  %v1873_v50 = vld [vmem:[%s7430_s22 + $0x140] sm:$0xff] }
 0x225   : > { %2140 = vmatmul.f32.gmra.mxu2 %v8579_v34  ;;  %2199 = vmatmul.f32.gmra.mxu3 %v8579_v34  ;;  %v2340_v34 = vld [vmem:[%s12492_s1 + $0x20] sm:$0xff] }
 0x226   : > { %2545 = vmatpush.msrb.mxu2 %v2340_v34  ;;  %v2339_v34 = vld [vmem:[%s12492_s1 + $0x18] sm:$0xff]  ;;  %2488 = vmatpush.msrb.mxu1 %v6380_v28 }
 0x227   : > { %2605 = vmatpush.msrb.mxu3 %v2339_v34  ;;  %v2337_v34 = vld [vmem:[%s12492_s1 + $0x8] sm:$0xff] }
 0x228   : > { %v8899_v19 = vpop.f32.mrf.mxu2  ;;  %v8901_v4 = vpop.f32.mrf.mxu3  ;;  %2546 = vmatpush.msrb.mxu2 %v2338_v1  ;;  %v2336_v1 = vld [vmem:[%s12492_s1] sm:$0xff]  ;;  %2755 = vmatpush.msra.mxu1 %v6442_v47 }
 0x229   : > { %v8903_v13 = vpop.f32.mrf.mxu0  ;;  %v8905_v12 = vpop.f32.mrf.mxu1  ;;  %2606 = vmatpush.msrb.mxu3 %v2337_v34  ;;  %v6474_v34 = vld [vmem:[%s12492_s1 + $0x3f8] sm:$0xff] }
 0x22a   : > { %2547 = vmatpush.msrb.mxu2 %v2336_v1  ;;  %v6473_v1 = vld [vmem:[%s12492_s1 + $0x3f0] sm:$0xff] }
 0x22b   : > { %2947 = vmatpush.msra.mxu3 %v6474_v34  ;;  %v6472_v34 = vld [vmem:[%s12492_s1 + $0x3e8] sm:$0xff] }
 0x22c   : > { %1951 = vmatmul.f32.gmra.mxu0 %v1873_v50  ;;  %2010 = vmatmul.f32.gmra.mxu1 %v1873_v50 }
 0x22d   : > { %2143 = vmatmul.f32.gmra.mxu2 %v8604_v61  ;;  %2202 = vmatmul.f32.gmra.mxu3 %v8604_v61  ;;  %v6381_v61 = vld [vmem:[%s12492_s1 + $0x110] sm:$0xff] }
 0x22e   : > { %2428 = vmatpush.msrb.mxu0 %v6381_v61  ;;  %2888 = vmatpush.msra.mxu2 %v6473_v1  ;;  %v6471_v1 = vld [vmem:[%s12492_s1 + $0x3e0] sm:$0xff] }
 0x22f   : > { %2948 = vmatpush.msra.mxu3 %v6472_v34  ;;  %v2069_v34 = vld [vmem:[%s7430_s22 + $0x1c8] sm:$0xff] }
 0x230   : > { %v8928_v0 = vpop.f32.mrf.mxu2  ;;  %v8930_v63 = vpop.f32.mrf.mxu3  ;;  %2889 = vmatpush.msra.mxu2 %v6471_v1  ;;  %v6439_v1 = vld [vmem:[%s12492_s1 + $0x2e0] sm:$0xff] }
 0x231   : > { %v8932_v10 = vpop.f32.mrf.mxu0  ;;  %v8934_v50 = vpop.f32.mrf.mxu1 }
 0x234   : > { %1954 = vmatmul.f32.gmra.mxu0 %v1874_v9  ;;  %2013 = vmatmul.f32.gmra.mxu1 %v1874_v9 }
 0x235   : > { %2146 = vmatmul.f32.gmra.mxu2 %v8635_v8  ;;  %2205 = vmatmul.f32.gmra.mxu3 %v8635_v8  ;;  %v6379_v8 = vld [vmem:[%s12492_s1 + $0x100] sm:$0xff] }
 0x236   : > { %2429 = vmatpush.msrb.mxu0 %v6379_v8 }
 0x238   : > { %v8951_v2 = vpop.f32.mrf.mxu2  ;;  %v8953_v61 = vpop.f32.mrf.mxu3 }
 0x239   : > { %v8955_v59 = vpop.f32.mrf.mxu0  ;;  %v8957_v9 = vpop.f32.mrf.mxu1 }
 0x23a   : > { %12535 = vst [vmem:[#allocation15_spill] sm:$0xff] %v8955_v59  ;;  %v1576_v59 = vadd.f32 %v8782_v51, %v8437_v62  ;;  %v6459_v62 = vld [vmem:[%s12492_s1 + $0x380] sm:$0xff] }
 0x23b   : > { %12536 = vst [vmem:[#allocation16_spill] sm:$0xff] %v8957_v9  ;;  %v1632_v9 = vadd.f32 %v8761_v48, %v8414_v42  ;;  %v6461_v48 = vld [vmem:[%s12492_s1 + $0x390] sm:$0xff] }
 0x23c   : > { %1957 = vmatmul.f32.gmra.mxu0 %v1875_v54  ;;  %2016 = vmatmul.f32.gmra.mxu1 %v1875_v54  ;;  %v1839_v51 = vadd.f32 %v8801_v15, %v1576_v59 }
 0x23d   : > { %2149 = vmatmul.f32.gmra.mxu2 %v8660_v29  ;;  %2208 = vmatmul.f32.gmra.mxu3 %v8660_v29  ;;  %v6441_v29 = vld [vmem:[%s12492_s1 + $0x2f0] sm:$0xff] }
 0x23e   : > { %2696 = vmatpush.msra.mxu0 %v6441_v29 }
 0x240   : > { %v8974_v24 = vpop.f32.mrf.mxu2  ;;  %v8976_v8 = vpop.f32.mrf.mxu3  ;;  %2697 = vmatpush.msra.mxu0 %v6439_v1  ;;  %v6437_v1 = vld [vmem:[%s12492_s1 + $0x2d0] sm:$0xff] }
 0x241   : > { %12537 = vst [vmem:[#allocation17_spill] sm:$0xff] %v8974_v24  ;;  %v8978_v28 = vpop.f32.mrf.mxu0  ;;  %v8980_v54 = vpop.f32.mrf.mxu1  ;;  %v6465_v24 = vld [vmem:[%s12492_s1 + $0x3b0] sm:$0xff] }
 0x242   : > { %12538 = vst [vmem:[#allocation18_spill] sm:$0xff] %v8976_v8  ;;  %2698 = vmatpush.msra.mxu0 %v6437_v1  ;;  %v2323_v8 = vld [vmem:[%s7430_s22 + $0x30] sm:$0xff] }
 0x243   : > { %12539 = vst [vmem:[#allocation19_spill] sm:$0xff] %v8978_v28  ;;  %v1877_v28 = vld [vmem:[%s7430_s22 + $0x1c0] sm:$0xff] }
 0x244   : > { %12540 = vst [vmem:[#allocation20_spill] sm:$0xff] %v8980_v54  ;;  %1960 = vmatmul.f32.gmra.mxu0 %v1876_v43  ;;  %2019 = vmatmul.f32.gmra.mxu1 %v1876_v43  ;;  %v6440_v43 = vld [vmem:[%s12492_s1 + $0x2e8] sm:$0xff] }
 0x245   : > { %2152 = vmatmul.f32.gmra.mxu2 %v8685_v57  ;;  %2211 = vmatmul.f32.gmra.mxu3 %v8685_v57  ;;  %v6469_v57 = vld [vmem:[%s12492_s1 + $0x3d0] sm:$0xff] }
 0x246   : > { %2756 = vmatpush.msra.mxu1 %v6440_v43  ;;  %2890 = vmatpush.msra.mxu2 %v6469_v57  ;;  %v6438_v43 = vld [vmem:[%s12492_s1 + $0x2d8] sm:$0xff] }
 0x248   : > { %v8997_v54 = vpop.f32.mrf.mxu2  ;;  %v8999_v47 = vpop.f32.mrf.mxu3  ;;  %2757 = vmatpush.msra.mxu1 %v6438_v43 }
 0x249   : > { %12541 = vst [vmem:[#allocation21_spill] sm:$0xff] %v8997_v54  ;;  %v9001_v29 = vpop.f32.mrf.mxu0  ;;  %v9003_v39 = vpop.f32.mrf.mxu1 }
 0x24a   : > { %12542 = vst [vmem:[#allocation22_spill] sm:$0xff] %v8999_v47  ;;  %v2070_v47 = vld [vmem:[%s7430_s22 + $0x1e8] sm:$0xff] }
 0x24b   : > { %12543 = vst [vmem:[#allocation23_spill] sm:$0xff] %v9001_v29 }
 0x24c   : > { %12544 = vst [vmem:[#allocation24_spill] sm:$0xff] %v9003_v39  ;;  %v6470_v39 = vld [vmem:[%s12492_s1 + $0x3d8] sm:$0xff]  ;;  %1963 = vmatmul.f32.gmra.mxu0 %v1877_v28  ;;  %2022 = vmatmul.f32.gmra.mxu1 %v1877_v28 }
 0x24d   : > { %2949 = vmatpush.msra.mxu3 %v6470_v39  ;;  %2155 = vmatmul.f32.gmra.mxu2 %v2069_v34 }
 0x24e   : > { %2214 = vmatmul.f32.gmra.mxu3 %v2069_v34  ;;  %v1878_v34 = vld [vmem:[%s7430_s22 + $0x1e0] sm:$0xff] }
 0x250   : > { %v9025_v29 = vpop.f32.mrf.mxu2  ;;  %v9027_v57 = vpop.f32.mrf.mxu3 }
 0x251   : > { %12545 = vst [vmem:[#allocation25_spill] sm:$0xff] %v9025_v29  ;;  %v9029_v39 = vpop.f32.mrf.mxu0  ;;  %v9031_v28 = vpop.f32.mrf.mxu1  ;;  %v2368_v29 = vld [vmem:[%s7430_s22 + $0x18] sm:$0xff] }
 0x252   : > { %12546 = vst [vmem:[#allocation26_spill] sm:$0xff] %v9027_v57  ;;  %v2322_v57 = vld [vmem:[%s7430_s22 + $0x10] sm:$0xff] }
 0x253   : > { %12547 = vst [vmem:[#allocation27_spill] sm:$0xff] %v9029_v39  ;;  %v2369_v39 = vld [vmem:[%s7430_s22 + $0x38] sm:$0xff] }
 0x254   : > { %12548 = vst [vmem:[#allocation28_spill] sm:$0xff] %v9031_v28  ;;  %1966 = vmatmul.f32.gmra.mxu0 %v1878_v34  ;;  %2025 = vmatmul.f32.gmra.mxu1 %v1878_v34  ;;  %v6467_v28 = vld [vmem:[%s12492_s1 + $0x3c0] sm:$0xff]  ;;  %v6468_v34 = vld [vmem:[%s12492_s1 + $0x3c8] sm:$0xff] }
 0x255   : > { %2158 = vmatmul.f32.gmra.mxu2 %v2070_v47  ;;  %2950 = vmatpush.msra.mxu3 %v6468_v34 }
 0x256   : > { %2217 = vmatmul.f32.gmra.mxu3 %v2070_v47  ;;  %v6435_v47 = vld [vmem:[%s12492_s1 + $0x2c0] sm:$0xff]  ;;  %2891 = vmatpush.msra.mxu2 %v6467_v28  ;;  %v6434_v28 = vld [vmem:[%s12492_s1 + $0x2b8] sm:$0xff] }
 0x257   : > { %2699 = vmatpush.msra.mxu0 %v6435_v47 }
 0x258   : > { %v9035_v54 = vpop.f32.mrf.mxu2  ;;  %v9037_v1 = vpop.f32.mrf.mxu3  ;;  %2892 = vmatpush.msra.mxu2 %v6465_v24  ;;  %v6463_v24 = vld [vmem:[%s12492_s1 + $0x3a0] sm:$0xff] }
 0x259   : > { %12549 = vst [vmem:[#allocation29_spill] sm:$0xff] %v9035_v54  ;;  %v9039_v43 = vpop.f32.mrf.mxu0  ;;  %v9041_v23 = vpop.f32.mrf.mxu1 }
 0x25a   : > { %12550 = vst [vmem:[#allocation30_spill] sm:$0xff] %v9037_v1  ;;  %2893 = vmatpush.msra.mxu2 %v6463_v24  ;;  %v1635_v24 = vadd.f32 %v8784_v41, %v8439_v11  ;;  %v6460_v11 = vld [vmem:[%s12492_s1 + $0x388] sm:$0xff] }
 0x25b   : > { %12551 = vst [vmem:[#allocation31_spill] sm:$0xff] %v9039_v43 }
 0x25c   : > { %12552 = vst [vmem:[#allocation32_spill] sm:$0xff] %v9041_v23  ;;  %2430 = vmatmul.f32.vlgmr.msrb.gmra.mxu0 %v2368_v29  ;;  %2489 = vmatmul.f32.vlgmr.msrb.gmra.mxu1 %v2368_v29  ;;  %v6436_v23 = vld [vmem:[%s12492_s1 + $0x2c8] sm:$0xff]  ;;  %v1840_v41 = vadd.f32 %v8803_v6, %v1635_v24 }
 0x25d   : > { %2548 = vmatmul.f32.vlgmr.msrb.gmra.mxu2 %v2322_v57  ;;  %2758 = vmatpush.msra.mxu1 %v6436_v23  ;;  %v6433_v23 = vld [vmem:[%s12492_s1 + $0x2b0] sm:$0xff]  ;;  %v6428_v24 = vld [vmem:[%s12492_s1 + $0x288] sm:$0xff] }
 0x25e   : > { %2607 = vmatmul.f32.vlgmr.msrb.gmra.mxu3 %v2322_v57  ;;  %v6466_v57 = vld [vmem:[%s12492_s1 + $0x3b8] sm:$0xff]  ;;  %2700 = vmatpush.msra.mxu0 %v6433_v23 }
 0x25f   : > { %2951 = vmatpush.msra.mxu3 %v6466_v57  ;;  %2759 = vmatpush.msra.mxu1 %v6434_v28  ;;  %v6431_v57 = vld [vmem:[%s12492_s1 + $0x2a0] sm:$0xff] }
 0x260   : > { %v9057_v43 = vpop.f32.mrf.mxu2  ;;  %v9059_v1 = vpop.f32.mrf.mxu3  ;;  %2701 = vmatpush.msra.mxu0 %v6431_v57  ;;  %2894 = vmatpush.msra.mxu2 %v6461_v48  ;;  %v6430_v57 = vld [vmem:[%s12492_s1 + $0x298] sm:$0xff] }
 0x261   : > { %12553 = vst [vmem:[#allocation33_spill] sm:$0xff] %v9057_v43  ;;  %v9061_v54 = vpop.f32.mrf.mxu0  ;;  %v9063_v29 = vpop.f32.mrf.mxu1  ;;  %v1573_v43 = vadd.f32 %v8759_v44, %v8412_v25  ;;  %v6432_v25 = vld [vmem:[%s12492_s1 + $0x2a8] sm:$0xff]  ;;  %v1838_v44 = vadd.f32 %v8780_v33, %v1632_v9 }
 0x262   : > { %12554 = vst [vmem:[#allocation34_spill] sm:$0xff] %v9059_v1  ;;  %v2324_v1 = vld [vmem:[%s7430_s22 + $0x50] sm:$0xff]  ;;  %2760 = vmatpush.msra.mxu1 %v6432_v25  ;;  %v1331_v25 = vld [vmem:[#allocation2] sm:$0xff]  ;;  %2895 = vmatpush.msra.mxu2 %v6459_v62 }
 0x263   : > { %12555 = vst [vmem:[#allocation35_spill] sm:$0xff] %v9061_v54  ;;  %v2370_v54 = vld [vmem:[%s7430_s22 + $0x58] sm:$0xff]  ;;  %v1837_v42 = vadd.f32 %v8778_v36, %v1573_v43 }
 0x264   : > { %12556 = vst [vmem:[#allocation36_spill] sm:$0xff] %v9063_v29  ;;  %2433 = vmatmul.f32.gmra.mxu0 %v2369_v39  ;;  %2492 = vmatmul.f32.gmra.mxu1 %v2369_v39 }
 0x265   : > { %2551 = vmatmul.f32.gmra.mxu2 %v2323_v8  ;;  %2761 = vmatpush.msra.mxu1 %v6430_v57 }
 0x266   : > { %2610 = vmatmul.f32.gmra.mxu3 %v2323_v8  ;;  %v6464_v8 = vld [vmem:[%s12492_s1 + $0x3a8] sm:$0xff] }
 0x267   : > { %2952 = vmatpush.msra.mxu3 %v6464_v8  ;;  %v6429_v8 = vld [vmem:[%s12492_s1 + $0x290] sm:$0xff]  ;;  %2762 = vmatpush.msra.mxu1 %v6428_v24 }
 0x268   : > { %v9079_v34 = vpop.f32.mrf.mxu2  ;;  %v9081_v47 = vpop.f32.mrf.mxu3  ;;  %2702 = vmatpush.msra.mxu0 %v6429_v8 }
 0x269   : > { %12557 = vst [vmem:[#allocation37_spill] sm:$0xff] %v9079_v34  ;;  %v1928_v29 = vpop.f32.mrf.mxu0  ;;  %v1987_v39 = vpop.f32.mrf.mxu1  ;;  %v2371_v34 = vld [vmem:[%s7430_s22 + $0x78] sm:$0xff] }
 0x26a   : > { %12558 = vst [vmem:[#allocation38_spill] sm:$0xff] %v9081_v47  ;;  %v2029_v23 = vadd.f32 %v1928_v29, %v1837_v42  ;;  %v2030_v28 = vadd.f32 %v1987_v39, %v1838_v44  ;;  %v9118_v39 = vld [vmem:[%s12493_s2] ss:$0 sm:$0xff] }
 0x26c   : > { %2436 = vmatmul.f32.gmra.mxu0 %v2370_v54  ;;  %2495 = vmatmul.f32.gmra.mxu1 %v2370_v54  ;;  %v6462_v54 = vld [vmem:[%s12492_s1 + $0x398] sm:$0xff] }
 0x26d   : > { %2554 = vmatmul.f32.gmra.mxu2 %v2324_v1  ;;  %2953 = vmatpush.msra.mxu3 %v6462_v54 }
 0x26e   : > { %2613 = vmatmul.f32.gmra.mxu3 %v2324_v1 }
 0x26f   : > { %2954 = vmatpush.msra.mxu3 %v6460_v11 }
 0x270   : > { %v2120_v36 = vpop.f32.mrf.mxu2  ;;  %v2179_v33 = vpop.f32.mrf.mxu3 }
 0x271   : > { %v2221_v9 = vadd.f32 %v2120_v36, %v2029_v23  ;;  %v2222_v1 = vadd.f32 %v2179_v33, %v2030_v28  ;;  %v1931_v43 = vpop.f32.mrf.mxu0  ;;  %v1990_v47 = vpop.f32.mrf.mxu1  ;;  %v2372_v33 = vld [vmem:[%s7430_s22 + $0x98] sm:$0xff] }
 0x272   : > { %v2031_v44 = vadd.f32 %v1931_v43, %v1839_v51  ;;  %v2032_v48 = vadd.f32 %v1990_v47, %v1840_v41  ;;  %v6427_v43 = vld [vmem:[%s12492_s1 + $0x280] sm:$0xff] }
 0x273   : > { %v2249_v29 = vmax.f32 %v2221_v9, %v2222_v1  ;;  %v2326_v9 = vld [vmem:[%s7430_s22 + $0x90] sm:$0xff]  ;;  %v1638_v1 = vadd.f32 %v8807_v32, %v8464_v38  ;;  %v6458_v38 = vld [vmem:[%s12492_s1 + $0x378] sm:$0xff]  ;;  %2703 = vmatpush.msra.mxu0 %v6427_v43 }
 0x274   : > { %2439 = vmatmul.f32.gmra.mxu0 %v2371_v34  ;;  %2498 = vmatmul.f32.gmra.mxu1 %v2371_v34 }
 0x275   : > { %v2263_v42 = vmax.f32 %v1331_v25, %v2249_v29  ;;  %2557 = vmatmul.f32.gmra.mxu2 %v2325_v55  ;;  %v1332_v29 = vld [vmem:[#allocation2 + $0x8] sm:$0xff]  ;;  %v1842_v32 = vadd.f32 %v8826_v45, %v1638_v1  ;;  %2955 = vmatpush.msra.mxu3 %v6458_v38  ;;  %v2328_v38 = vld [vmem:[%s7430_s22 + $0xd0] sm:$0xff] }
 0x276   : > { %2616 = vmatmul.f32.gmra.mxu3 %v2325_v55  ;;  %v1579_v55 = vadd.f32 %v8805_v37, %v8462_v3  ;;  %v6457_v3 = vld [vmem:[%s12492_s1 + $0x370] sm:$0xff] }
 0x277   : > { %v2280_v34 = vadd.f32 %v9118_v39, %v2263_v42  ;;  %2896 = vmatpush.msra.mxu2 %v6457_v3  ;;  %v2374_v3 = vld [vmem:[%s7430_s22 + $0xd8] sm:$0xff] }
 0x278   : > { %v2123_v54 = vpop.f32.mrf.mxu2  ;;  %v2182_v23 = vpop.f32.mrf.mxu3  ;;  %v1841_v37 = vadd.f32 %v8824_v17, %v1579_v55 }
 0x279   : > { %v2294_v28 = vmax.f32 %v2280_v34, 0.0  ;;  %v2223_v36 = vadd.f32 %v2123_v54, %v2031_v44  ;;  %v2224_v15 = vadd.f32 %v2182_v23, %v2032_v48  ;;  %v1934_v59 = vpop.f32.mrf.mxu0  ;;  %v1993_v6 = vpop.f32.mrf.mxu1  ;;  %v2373_v44 = vld [vmem:[%s7430_s22 + $0xb8] sm:$0xff]  ;;  %v2327_v48 = vld [vmem:[%s7430_s22 + $0xb0] sm:$0xff]  ;;  %v1582_v54 = vadd.f32 %v8828_v14, %v8493_v31  ;;  %v6455_v31 = vld [vmem:[%s12492_s1 + $0x360] sm:$0xff] }
 0x27a   : > { %v2033_v25 = vadd.f32 %v1934_v59, %v1841_v37  ;;  %v2034_v62 = vadd.f32 %v1993_v6, %v1842_v32  ;;  %v1641_v23 = vadd.f32 %v8830_v56, %v8495_v40  ;;  %v1333_v59 = vld [vmem:[#allocation2 + $0x10] sm:$0xff]  ;;  %v6456_v40 = vld [vmem:[%s12492_s1 + $0x368] sm:$0xff]  ;;  %2897 = vmatpush.msra.mxu2 %v6455_v31  ;;  %v1585_v37 = vadd.f32 %v8857_v26, %v8518_v20 }
 0x27b   : > { %2308 = vst.msk [vmem:[#allocation2] sm:$0xff] %vm1316_vm0, %v2294_v28  ;;  %v2250_v47 = vmax.f32 %v2223_v36, %v2224_v15  ;;  %v6425_v36 = vld [vmem:[%s12492_s1 + $0x270] sm:$0xff]  ;;  %v6426_v15 = vld [vmem:[%s12492_s1 + $0x278] sm:$0xff]  ;;  %v1843_v14 = vadd.f32 %v8853_v16, %v1582_v54  ;;  %2956 = vmatpush.msra.mxu3 %v6456_v40  ;;  %v1644_v32 = vadd.f32 %v8859_v49, %v8520_v52  ;;  %v6451_v40 = vld [vmem:[%s12492_s1 + $0x340] sm:$0xff] }
 0x27c   : > { %2442 = vmatmul.f32.gmra.mxu0 %v2372_v33  ;;  %2501 = vmatmul.f32.gmra.mxu1 %v2372_v33  ;;  %v1844_v56 = vadd.f32 %v8855_v58, %v1641_v23  ;;  %v6453_v20 = vld [vmem:[%s12492_s1 + $0x350] sm:$0xff]  ;;  %v6454_v52 = vld [vmem:[%s12492_s1 + $0x358] sm:$0xff]  ;;  %v1845_v26 = vadd.f32 %v8876_v5, %v1585_v37 }
 0x27d   : > { %v2264_v8 = vmax.f32 %v1332_v29, %v2250_v47  ;;  %2560 = vmatmul.f32.gmra.mxu2 %v2326_v9  ;;  %2704 = vmatpush.msra.mxu0 %v6425_v36  ;;  %v1846_v49 = vadd.f32 %v8878_v21, %v1644_v32  ;;  %v2329_v36 = vld [vmem:[%s7430_s22 + $0xf0] sm:$0xff] }
 0x27e   : > { %2619 = vmatmul.f32.gmra.mxu3 %v2326_v9  ;;  %2763 = vmatpush.msra.mxu1 %v6426_v15  ;;  %v1588_v15 = vadd.f32 %v8880_v18, %v8543_v22  ;;  %v6419_v22 = vld [vmem:[%s12492_s1 + $0x240] sm:$0xff]  ;;  %v6449_v32 = vld [vmem:[%s12492_s1 + $0x330] sm:$0xff] }
 0x27f   : > { %v2281_v57 = vadd.f32 %v9118_v39, %v2264_v8  ;;  %2898 = vmatpush.msra.mxu2 %v6453_v20  ;;  %2957 = vmatpush.msra.mxu3 %v6454_v52 }
 0x280   : > { %v2126_v11 = vpop.f32.mrf.mxu2  ;;  %v2185_v51 = vpop.f32.mrf.mxu3  ;;  %v1847_v18 = vadd.f32 %v8899_v19, %v1588_v15 }
 0x281   : > { %v2295_v41 = vmax.f32 %v2281_v57, 0.0  ;;  %v2225_v42 = vadd.f32 %v2126_v11, %v2033_v25  ;;  %v2226_v17 = vadd.f32 %v2185_v51, %v2034_v62  ;;  %v1937_v34 = vpop.f32.mrf.mxu0  ;;  %v1996_v45 = vpop.f32.mrf.mxu1  ;;  %v6423_v57 = vld [vmem:[%s12492_s1 + $0x260] sm:$0xff]  ;;  %v6424_v25 = vld [vmem:[%s12492_s1 + $0x268] sm:$0xff]  ;;  %v1334_v62 = vld [vmem:[#allocation2 + $0x18] sm:$0xff]  ;;  %2899 = vmatpush.msra.mxu2 %v6451_v40 }
 0x282   : > { %v2035_v9 = vadd.f32 %v1937_v34, %v1843_v14  ;;  %v2036_v55 = vadd.f32 %v1996_v45, %v1844_v56  ;;  %v6421_v51 = vld [vmem:[%s12492_s1 + $0x250] sm:$0xff]  ;;  %2705 = vmatpush.msra.mxu0 %v6423_v57  ;;  %2764 = vmatpush.msra.mxu1 %v6424_v25  ;;  %v6452_v14 = vld [vmem:[%s12492_s1 + $0x348] sm:$0xff]  ;;  %v1335_v56 = vld [vmem:[#allocation2 + $0x20] sm:$0xff] }
 0x283   : > { %2309 = vst.msk [vmem:[#allocation2 + $0x8] sm:$0xff] %vm1316_vm0, %v2295_v41  ;;  %v2251_v28 = vmax.f32 %v2225_v42, %v2226_v17  ;;  %v6422_v41 = vld [vmem:[%s12492_s1 + $0x258] sm:$0xff]  ;;  %2958 = vmatpush.msra.mxu3 %v6452_v14  ;;  %v1336_v57 = vld [vmem:[#allocation2 + $0x28] sm:$0xff]  ;;  %2900 = vmatpush.msra.mxu2 %v6449_v32 }
 0x284   : > { %2445 = vmatmul.f32.gmra.mxu0 %v2373_v44  ;;  %2504 = vmatmul.f32.gmra.mxu1 %v2373_v44 }
 0x285   : > { %v2265_v6 = vmax.f32 %v1333_v59, %v2251_v28  ;;  %2563 = vmatmul.f32.gmra.mxu2 %v2327_v48  ;;  %2706 = vmatpush.msra.mxu0 %v6421_v51  ;;  %v2375_v28 = vld [vmem:[%s7430_s22 + $0xf8] sm:$0xff]  ;;  %v1647_v59 = vadd.f32 %v8882_v60, %v8545_v27  ;;  %v6420_v27 = vld [vmem:[%s12492_s1 + $0x248] sm:$0xff] }
 0x286   : > { %2622 = vmatmul.f32.gmra.mxu3 %v2327_v48  ;;  %2765 = vmatpush.msra.mxu1 %v6422_v41 }
 0x287   : > { %v2282_v33 = vadd.f32 %v9118_v39, %v2265_v6  ;;  %v1848_v60 = vadd.f32 %v8901_v4, %v1647_v59  ;;  %2707 = vmatpush.msra.mxu0 %v6419_v22 }
 0x288   : > { %v2129_v1 = vpop.f32.mrf.mxu2  ;;  %v2188_v47 = vpop.f32.mrf.mxu3  ;;  %2766 = vmatpush.msra.mxu1 %v6420_v27  ;;  %v2378_v27 = vld [vmem:[%s7430_s22 + $0x158] sm:$0xff] }
 0x289   : > { %v2296_v43 = vmax.f32 %v2282_v33, 0.0  ;;  %v2227_v24 = vadd.f32 %v2129_v1, %v2035_v9  ;;  %v2228_v16 = vadd.f32 %v2188_v47, %v2036_v55  ;;  %v1940_v29 = vpop.f32.mrf.mxu0  ;;  %v1999_v58 = vpop.f32.mrf.mxu1 }
 0x28a   : > { %v2037_v5 = vadd.f32 %v1940_v29, %v1845_v26  ;;  %v2038_v17 = vadd.f32 %v1999_v58, %v1846_v49  ;;  %v2376_v29 = vld [vmem:[%s7430_s22 + $0x118] sm:$0xff]  ;;  %v2330_v58 = vld [vmem:[%s7430_s22 + $0x110] sm:$0xff] }
 0x28b   : > { %2310 = vst.msk [vmem:[#allocation2 + $0x10] sm:$0xff] %vm1316_vm0, %v2296_v43  ;;  %v2252_v8 = vmax.f32 %v2227_v24, %v2228_v16 }
 0x28c   : > { %2448 = vmatmul.f32.gmra.mxu0 %v2374_v3  ;;  %2507 = vmatmul.f32.gmra.mxu1 %v2374_v3  ;;  %v1591_v3 = vadd.f32 %v8903_v13, %v8574_v53  ;;  %v6417_v53 = vld [vmem:[%s12492_s1 + $0x230] sm:$0xff] }
 0x28d   : > { %v2266_v11 = vmax.f32 %v1334_v62, %v2252_v8  ;;  %2566 = vmatmul.f32.gmra.mxu2 %v2328_v38  ;;  %v6450_v8 = vld [vmem:[%s12492_s1 + $0x338] sm:$0xff]  ;;  %2708 = vmatpush.msra.mxu0 %v6417_v53 }
 0x28e   : > { %2625 = vmatmul.f32.gmra.mxu3 %v2328_v38  ;;  %v1650_v38 = vadd.f32 %v8905_v12, %v8576_v35  ;;  %v6418_v35 = vld [vmem:[%s12492_s1 + $0x238] sm:$0xff]  ;;  %v1849_v13 = vadd.f32 %v8928_v0, %v1591_v3  ;;  %v12563_v3 = vld [vmem:[#allocation18_spill] sm:$0xff] }
 0x28f   : > { %v2283_v42 = vadd.f32 %v9118_v39, %v2266_v11  ;;  %2959 = vmatpush.msra.mxu3 %v6450_v8  ;;  %2767 = vmatpush.msra.mxu1 %v6418_v35 }
 0x290   : > { %v2132_v21 = vpop.f32.mrf.mxu2  ;;  %v2191_v34 = vpop.f32.mrf.mxu3  ;;  %v1850_v12 = vadd.f32 %v8930_v63, %v1650_v38 }
 0x291   : > { %v2297_v45 = vmax.f32 %v2283_v42, 0.0  ;;  %v2229_v44 = vadd.f32 %v2132_v21, %v2037_v5  ;;  %v2230_v48 = vadd.f32 %v2191_v34, %v2038_v17  ;;  %v1943_v54 = vpop.f32.mrf.mxu0  ;;  %v2002_v23 = vpop.f32.mrf.mxu1  ;;  %v2377_v42 = vld [vmem:[%s7430_s22 + $0x138] sm:$0xff]  ;;  %v2331_v5 = vld [vmem:[%s7430_s22 + $0x130] sm:$0xff]  ;;  %v1594_v17 = vadd.f32 %v8932_v10, %v8599_v7  ;;  %v6415_v7 = vld [vmem:[%s12492_s1 + $0x220] sm:$0xff] }
 0x292   : > { %v2039_v9 = vadd.f32 %v1943_v54, %v1847_v18  ;;  %v2040_v55 = vadd.f32 %v2002_v23, %v1848_v60  ;;  %v1653_v21 = vadd.f32 %v8934_v50, %v8601_v30  ;;  %v6416_v30 = vld [vmem:[%s12492_s1 + $0x228] sm:$0xff]  ;;  %v6445_v23 = vld [vmem:[%s12492_s1 + $0x310] sm:$0xff]  ;;  %2709 = vmatpush.msra.mxu0 %v6415_v7  ;;  %v6414_v60 = vld [vmem:[%s12492_s1 + $0x218] sm:$0xff] }
 0x293   : > { %2311 = vst.msk [vmem:[#allocation2 + $0x18] sm:$0xff] %vm1316_vm0, %v2297_v45  ;;  %v2253_v31 = vmax.f32 %v2229_v44, %v2230_v48  ;;  %v6447_v45 = vld [vmem:[%s12492_s1 + $0x320] sm:$0xff]  ;;  %v6448_v44 = vld [vmem:[%s12492_s1 + $0x328] sm:$0xff]  ;;  %v1337_v48 = vld [vmem:[#allocation2 + $0x30] sm:$0xff]  ;;  %v1851_v10 = vadd.f32 %v8951_v2, %v1594_v17  ;;  %2768 = vmatpush.msra.mxu1 %v6416_v30 }
 0x294   : > { %2451 = vmatmul.f32.gmra.mxu0 %v2375_v28  ;;  %2510 = vmatmul.f32.gmra.mxu1 %v2375_v28  ;;  %v1852_v50 = vadd.f32 %v8953_v61, %v1653_v21  ;;  %v6446_v28 = vld [vmem:[%s12492_s1 + $0x318] sm:$0xff]  ;;  %v6413_v18 = vld [vmem:[%s12492_s1 + $0x210] sm:$0xff]  ;;  %v1339_v21 = vld [vmem:[#allocation2 + $0x40] sm:$0xff] }
 0x295   : > { %v2267_v6 = vmax.f32 %v1335_v56, %v2253_v31  ;;  %2569 = vmatmul.f32.gmra.mxu2 %v2329_v36  ;;  %2960 = vmatpush.msra.mxu3 %v6448_v44  ;;  %v6538_v17 = vld [vmem:[%s12492_s1 + $0x1f8] sm:$0xff]  ;;  %v12569_v44 = vld [vmem:[#allocation22_spill] sm:$0xff] }
 0x296   : > { %2628 = vmatmul.f32.gmra.mxu3 %v2329_v36  ;;  %2901 = vmatpush.msra.mxu2 %v6447_v45 }
 0x297   : > { %v2284_v33 = vadd.f32 %v9118_v39, %v2267_v6  ;;  %2961 = vmatpush.msra.mxu3 %v6446_v28  ;;  %v2332_v6 = vld [vmem:[%s7430_s22 + $0x150] sm:$0xff]  ;;  %2710 = vmatpush.msra.mxu0 %v6413_v18 }
 0x298   : > { %v2135_v1 = vpop.f32.mrf.mxu2  ;;  %v2194_v47 = vpop.f32.mrf.mxu3  ;;  %2902 = vmatpush.msra.mxu2 %v6445_v23  ;;  %2769 = vmatpush.msra.mxu1 %v6414_v60 }
 0x299   : > { %v2298_v43 = vmax.f32 %v2284_v33, 0.0  ;;  %v2231_v24 = vadd.f32 %v2135_v1, %v2039_v9  ;;  %v2232_v19 = vadd.f32 %v2194_v47, %v2040_v55  ;;  %v1946_v16 = vpop.f32.mrf.mxu0  ;;  %v2005_v4 = vpop.f32.mrf.mxu1  ;;  %v12559_v33 = vld [vmem:[#allocation15_spill] sm:$0xff]  ;;  %v12560_v55 = vld [vmem:[#allocation4_spill] sm:$0xff] }
 0x29a   : > { %v2041_v20 = vadd.f32 %v1946_v16, %v1849_v13  ;;  %v2042_v52 = vadd.f32 %v2005_v4, %v1850_v12  ;;  %v1597_v9 = vadd.f32 %v12559_v33, %v8624_v46  ;;  %v12561_v1 = vld [vmem:[#allocation16_spill] sm:$0xff]  ;;  %v1338_v16 = vld [vmem:[#allocation2 + $0x38] sm:$0xff]  ;;  %v6412_v4 = vld [vmem:[%s12492_s1 + $0x208] sm:$0xff] }
 0x29b   : > { %2312 = vst.msk [vmem:[#allocation2 + $0x20] sm:$0xff] %vm1316_vm0, %v2298_v43  ;;  %v2254_v37 = vmax.f32 %v2231_v24, %v2232_v19  ;;  %v1656_v47 = vadd.f32 %v12561_v1, %v12560_v55  ;;  %v6443_v24 = vld [vmem:[%s12492_s1 + $0x300] sm:$0xff]  ;;  %v6444_v19 = vld [vmem:[%s12492_s1 + $0x308] sm:$0xff]  ;;  %2770 = vmatpush.msra.mxu1 %v6412_v4  ;;  %v6506_v33 = vld [vmem:[%s12492_s1 + $0x4f8] sm:$0xff] }
 0x29c   : > { %2454 = vmatmul.f32.gmra.mxu0 %v2376_v29  ;;  %2513 = vmatmul.f32.gmra.mxu1 %v2376_v29  ;;  %v6411_v46 = vld [vmem:[%s12492_s1 + $0x200] sm:$0xff]  ;;  %v12562_v29 = vld [vmem:[#allocation17_spill] sm:$0xff] }
 0x29d   : > { %v2268_v25 = vmax.f32 %v1336_v57, %v2254_v37  ;;  %2572 = vmatmul.f32.gmra.mxu2 %v2330_v58  ;;  %v1854_v38 = vadd.f32 %v12563_v3, %v1656_v47  ;;  %2962 = vmatpush.msra.mxu3 %v6444_v19  ;;  %v6535_v55 = vld [vmem:[%s12492_s1 + $0x1e0] sm:$0xff]  ;;  %v6536_v1 = vld [vmem:[%s12492_s1 + $0x1e8] sm:$0xff] }
 0x29e   : > { %2631 = vmatmul.f32.gmra.mxu3 %v2330_v58  ;;  %v1853_v58 = vadd.f32 %v12562_v29, %v1597_v9  ;;  %2903 = vmatpush.msra.mxu2 %v6443_v24  ;;  %v1340_v9 = vld [vmem:[#allocation2 + $0x48] sm:$0xff]  ;;  %v12575_v24 = vld [vmem:[#allocation26_spill] sm:$0xff] }
 0x29f   : > { %v2285_v62 = vadd.f32 %v9118_v39, %v2268_v25  ;;  %2711 = vmatpush.msra.mxu0 %v6411_v46  ;;  %3419 = vmatpush.msrb.mxu3 %v6538_v17  ;;  %v12574_v47 = vld [vmem:[#allocation25_spill] sm:$0xff] }
 0x2a0   : > { %v2138_v26 = vpop.f32.mrf.mxu2  ;;  %v2197_v49 = vpop.f32.mrf.mxu3  ;;  %3139 = vmatpush.msrb.mxu1 %v6506_v33 }
 0x2a1   : > { %v2299_v11 = vmax.f32 %v2285_v62, 0.0  ;;  %v2233_v51 = vadd.f32 %v2138_v26, %v2041_v20  ;;  %v2234_v0 = vadd.f32 %v2197_v49, %v2042_v52  ;;  %v1949_v41 = vpop.f32.mrf.mxu0  ;;  %v2008_v63 = vpop.f32.mrf.mxu1  ;;  %v2379_v52 = vld [vmem:[%s7430_s22 + $0x178] sm:$0xff]  ;;  %v2333_v26 = vld [vmem:[%s7430_s22 + $0x170] sm:$0xff]  ;;  %v12564_v49 = vld [vmem:[#allocation5_spill] sm:$0xff]  ;;  %3420 = vmatpush.msrb.mxu3 %v6536_v1 }
 0x2a2   : > { %v2043_v15 = vadd.f32 %v1949_v41, %v1851_v10  ;;  %v2044_v2 = vadd.f32 %v2008_v63, %v1852_v50  ;;  %v12567_v41 = vld [vmem:[#allocation20_spill] sm:$0xff]  ;;  %v12586_v1 = vld [vmem:[#allocation33_spill] sm:$0xff] }
 0x2a3   : > { %2313 = vst.msk [vmem:[#allocation2 + $0x28] sm:$0xff] %vm1316_vm0, %v2299_v11  ;;  %v2255_v34 = vmax.f32 %v2233_v51, %v2234_v0  ;;  %v12565_v11 = vld [vmem:[#allocation19_spill] sm:$0xff]  ;;  %v12566_v0 = vld [vmem:[#allocation6_spill] sm:$0xff] }
 0x2a4   : > { %2457 = vmatmul.f32.gmra.mxu0 %v2377_v42  ;;  %2516 = vmatmul.f32.gmra.mxu1 %v2377_v42  ;;  %v1600_v51 = vadd.f32 %v12565_v11, %v12564_v49  ;;  %v1659_v63 = vadd.f32 %v12567_v41, %v12566_v0  ;;  %v6503_v49 = vld [vmem:[%s12492_s1 + $0x4e0] sm:$0xff]  ;;  %v6504_v11 = vld [vmem:[%s12492_s1 + $0x4e8] sm:$0xff]  ;;  %v6533_v0 = vld [vmem:[%s12492_s1 + $0x1d0] sm:$0xff] }
 0x2a5   : > { %v2269_v54 = vmax.f32 %v1337_v48, %v2255_v34  ;;  %2575 = vmatmul.f32.gmra.mxu2 %v2331_v5  ;;  %v12568_v34 = vld [vmem:[#allocation21_spill] sm:$0xff]  ;;  %v6534_v41 = vld [vmem:[%s12492_s1 + $0x1d8] sm:$0xff]  ;;  %3140 = vmatpush.msrb.mxu1 %v6504_v11  ;;  %v12590_v11 = vld [vmem:[#allocation14_spill] sm:$0xff] }
 0x2a6   : > { %2634 = vmatmul.f32.gmra.mxu3 %v2331_v5  ;;  %v6537_v5 = vld [vmem:[%s12492_s1 + $0x1f0] sm:$0xff]  ;;  %v1855_v45 = vadd.f32 %v12568_v34, %v1600_v51  ;;  %v1856_v48 = vadd.f32 %v12569_v44, %v1659_v63  ;;  %v12580_v63 = vld [vmem:[#allocation29_spill] sm:$0xff]  ;;  %v6531_v44 = vld [vmem:[%s12492_s1 + $0x1c0] sm:$0xff] }
 0x2a7   : > { %v2286_v36 = vadd.f32 %v9118_v39, %v2269_v54  ;;  %3360 = vmatpush.msrb.mxu2 %v6537_v5  ;;  %v1341_v51 = vld [vmem:[#allocation2 + $0x50] sm:$0xff]  ;;  %3421 = vmatpush.msrb.mxu3 %v6534_v41 }
 0x2a8   : > { %v2141_v61 = vpop.f32.mrf.mxu2  ;;  %v2200_v59 = vpop.f32.mrf.mxu3  ;;  %v12581_v5 = vld [vmem:[#allocation30_spill] sm:$0xff] }
 0x2a9   : > { %v2300_v31 = vmax.f32 %v2286_v36, 0.0  ;;  %v2235_v40 = vadd.f32 %v2141_v61, %v2043_v15  ;;  %v2236_v14 = vadd.f32 %v2200_v59, %v2044_v2  ;;  %v1952_v56 = vpop.f32.mrf.mxu0  ;;  %v2011_v22 = vpop.f32.mrf.mxu1  ;;  %v2380_v59 = vld [vmem:[%s7430_s22 + $0x198] sm:$0xff]  ;;  %3361 = vmatpush.msrb.mxu2 %v6535_v55  ;;  %v6501_v34 = vld [vmem:[%s12492_s1 + $0x4d0] sm:$0xff] }
 0x2aa   : > { %v2045_v8 = vadd.f32 %v1952_v56, %v1853_v58  ;;  %v2046_v57 = vadd.f32 %v2011_v22, %v1854_v38  ;;  %v12572_v22 = vld [vmem:[#allocation8_spill] sm:$0xff]  ;;  %v1342_v55 = vld [vmem:[#allocation2 + $0x58] sm:$0xff] }
 0x2ab   : > { %2314 = vst.msk [vmem:[#allocation2 + $0x30] sm:$0xff] %vm1316_vm0, %v2300_v31  ;;  %v2256_v43 = vmax.f32 %v2235_v40, %v2236_v14  ;;  %v2334_v31 = vld [vmem:[%s7430_s22 + $0x190] sm:$0xff]  ;;  %v12570_v40 = vld [vmem:[#allocation7_spill] sm:$0xff]  ;;  %3362 = vmatpush.msrb.mxu2 %v6533_v0 }
 0x2ac   : > { %2460 = vmatmul.f32.gmra.mxu0 %v2378_v27  ;;  %2519 = vmatmul.f32.gmra.mxu1 %v2378_v27  ;;  %v12571_v14 = vld [vmem:[#allocation23_spill] sm:$0xff]  ;;  %v12573_v27 = vld [vmem:[#allocation24_spill] sm:$0xff] }
 0x2ad   : > { %v2270_v37 = vmax.f32 %v1338_v16, %v2256_v43  ;;  %2578 = vmatmul.f32.gmra.mxu2 %v2332_v6  ;;  %v1603_v56 = vadd.f32 %v12571_v14, %v12570_v40  ;;  %v1662_v18 = vadd.f32 %v12573_v27, %v12572_v22  ;;  %v6529_v40 = vld [vmem:[%s12492_s1 + $0x1b0] sm:$0xff]  ;;  %v6530_v14 = vld [vmem:[%s12492_s1 + $0x1b8] sm:$0xff] }
 0x2ae   : > { %2637 = vmatmul.f32.gmra.mxu3 %v2332_v6  ;;  %v6505_v6 = vld [vmem:[%s12492_s1 + $0x4f0] sm:$0xff]  ;;  %3363 = vmatpush.msrb.mxu2 %v6531_v44  ;;  %v12582_v22 = vld [vmem:[#allocation11_spill] sm:$0xff] }
 0x2af   : > { %v2287_v32 = vadd.f32 %v9118_v39, %v2270_v37  ;;  %v1857_v43 = vadd.f32 %v12574_v47, %v1603_v56  ;;  %v1858_v19 = vadd.f32 %v12575_v24, %v1662_v18  ;;  %3080 = vmatpush.msrb.mxu0 %v6505_v6  ;;  %v2842_v56 = vld [vmem:[%s7430_s22 + $0x48] sm:$0xff]  ;;  %v12583_v27 = vld [vmem:[#allocation31_spill] sm:$0xff]  ;;  %v12585_v6 = vld [vmem:[#allocation32_spill] sm:$0xff] }
 0x2b0   : > { %v2144_v53 = vpop.f32.mrf.mxu2  ;;  %v2203_v35 = vpop.f32.mrf.mxu3  ;;  %v1609_v18 = vadd.f32 %v12583_v27, %v12582_v22  ;;  %3364 = vmatpush.msrb.mxu2 %v6529_v40  ;;  %v6526_v44 = vld [vmem:[%s12492_s1 + $0x198] sm:$0xff]  ;;  %v2844_v40 = vld [vmem:[%s7430_s22 + $0x88] sm:$0xff]  ;;  %v6523_v27 = vld [vmem:[%s12492_s1 + $0x180] sm:$0xff] }
 0x2b1   : > { %v2301_v13 = vmax.f32 %v2287_v32, 0.0  ;;  %v2237_v12 = vadd.f32 %v2144_v53, %v2045_v8  ;;  %v2238_v25 = vadd.f32 %v2203_v35, %v2046_v57  ;;  %v1955_v62 = vpop.f32.mrf.mxu0  ;;  %v2014_v20 = vpop.f32.mrf.mxu1  ;;  %v2381_v53 = vld [vmem:[%s7430_s22 + $0x1b8] sm:$0xff]  ;;  %v2335_v35 = vld [vmem:[%s7430_s22 + $0x1b0] sm:$0xff]  ;;  %3081 = vmatpush.msrb.mxu0 %v6503_v49 }
 0x2b2   : > { %v2047_v10 = vadd.f32 %v1955_v62, %v1855_v45  ;;  %v2048_v50 = vadd.f32 %v2014_v20, %v1856_v48  ;;  %v12578_v62 = vld [vmem:[#allocation10_spill] sm:$0xff]  ;;  %v12579_v20 = vld [vmem:[#allocation28_spill] sm:$0xff]  ;;  %v6502_v45 = vld [vmem:[%s12492_s1 + $0x4d8] sm:$0xff]  ;;  %v1861_v47 = vadd.f32 %v12586_v1, %v1609_v18 }
 0x2b3   : > { %2315 = vst.msk [vmem:[#allocation2 + $0x38] sm:$0xff] %vm1316_vm0, %v2301_v13  ;;  %v2257_v42 = vmax.f32 %v2237_v12, %v2238_v25  ;;  %v12576_v13 = vld [vmem:[#allocation9_spill] sm:$0xff]  ;;  %v12577_v12 = vld [vmem:[#allocation27_spill] sm:$0xff]  ;;  %3082 = vmatpush.msrb.mxu0 %v6501_v34  ;;  %3141 = vmatpush.msrb.mxu1 %v6502_v45  ;;  %v6525_v45 = vld [vmem:[%s12492_s1 + $0x190] sm:$0xff] }
 0x2b4   : > { %2463 = vmatmul.f32.gmra.mxu0 %v2379_v52  ;;  %2522 = vmatmul.f32.gmra.mxu1 %v2379_v52  ;;  %v1606_v25 = vadd.f32 %v12577_v12, %v12576_v13  ;;  %v1665_v52 = vadd.f32 %v12579_v20, %v12578_v62  ;;  %v6532_v48 = vld [vmem:[%s12492_s1 + $0x1c8] sm:$0xff]  ;;  %v6527_v13 = vld [vmem:[%s12492_s1 + $0x1a0] sm:$0xff] }
 0x2b5   : > { %v2271_v7 = vmax.f32 %v1339_v21, %v2257_v42  ;;  %2581 = vmatmul.f32.gmra.mxu2 %v2333_v26  ;;  %3422 = vmatpush.msrb.mxu3 %v6532_v48  ;;  %v6528_v12 = vld [vmem:[%s12492_s1 + $0x1a8] sm:$0xff] }
 0x2b6   : > { %2640 = vmatmul.f32.gmra.mxu3 %v2333_v26  ;;  %v1859_v42 = vadd.f32 %v12580_v63, %v1606_v25  ;;  %v1860_v17 = vadd.f32 %v12581_v5, %v1665_v52  ;;  %v6495_v25 = vld [vmem:[%s12492_s1 + $0x4a0] sm:$0xff]  ;;  %v2843_v62 = vld [vmem:[%s7430_s22 + $0x68] sm:$0xff]  ;;  %3365 = vmatpush.msrb.mxu2 %v6527_v13 }
 0x2b7   : > { %v2288_v30 = vadd.f32 %v9118_v39, %v2271_v7  ;;  %3423 = vmatpush.msrb.mxu3 %v6530_v14  ;;  %v6496_v20 = vld [vmem:[%s12492_s1 + $0x4a8] sm:$0xff]  ;;  %v1343_v63 = vld [vmem:[#allocation2 + $0x60] sm:$0xff] }
 0x2b8   : > { %v2147_v54 = vpop.f32.mrf.mxu2  ;;  %v2206_v23 = vpop.f32.mrf.mxu3  ;;  %v12588_v52 = vld [vmem:[#allocation13_spill] sm:$0xff]  ;;  %3366 = vmatpush.msrb.mxu2 %v6525_v45  ;;  %v6519_v13 = vld [vmem:[%s12492_s1 + $0x160] sm:$0xff] }
 0x2b9   : > { %v2302_v28 = vmax.f32 %v2288_v30, 0.0  ;;  %v2239_v36 = vadd.f32 %v2147_v54, %v2047_v10  ;;  %v2240_v15 = vadd.f32 %v2206_v23, %v2048_v50  ;;  %v1958_v2 = vpop.f32.mrf.mxu0  ;;  %v2017_v61 = vpop.f32.mrf.mxu1  ;;  %v6499_v50 = vld [vmem:[%s12492_s1 + $0x4c0] sm:$0xff]  ;;  %v6500_v54 = vld [vmem:[%s12492_s1 + $0x4c8] sm:$0xff]  ;;  %3424 = vmatpush.msrb.mxu3 %v6528_v12 }
 0x2ba   : > { %v2049_v4 = vadd.f32 %v1958_v2, %v1857_v43  ;;  %v2050_v29 = vadd.f32 %v2017_v61, %v1858_v19  ;;  %3083 = vmatpush.msrb.mxu0 %v6499_v50  ;;  %3142 = vmatpush.msrb.mxu1 %v6500_v54  ;;  %v12587_v43 = vld [vmem:[#allocation34_spill] sm:$0xff]  ;;  %v6524_v18 = vld [vmem:[%s12492_s1 + $0x188] sm:$0xff] }
 0x2bb   : > { %2316 = vst.msk [vmem:[#allocation2 + $0x40] sm:$0xff] %vm1316_vm0, %v2302_v28  ;;  %v2258_v60 = vmax.f32 %v2239_v36, %v2240_v15  ;;  %3425 = vmatpush.msrb.mxu3 %v6526_v44  ;;  %3367 = vmatpush.msrb.mxu2 %v6523_v27  ;;  %v2846_v12 = vld [vmem:[%s7430_s22 + $0xc8] sm:$0xff]  ;;  %v6513_v27 = vld [vmem:[%s12492_s1 + $0x130] sm:$0xff] }
 0x2bc   : > { %2466 = vmatmul.f32.gmra.mxu0 %v2380_v59  ;;  %2525 = vmatmul.f32.gmra.mxu1 %v2380_v59 }
 0x2bd   : > { %v2272_v16 = vmax.f32 %v1340_v9, %v2258_v60  ;;  %2584 = vmatmul.f32.gmra.mxu2 %v2334_v31  ;;  %v12584_v60 = vld [vmem:[#allocation12_spill] sm:$0xff]  ;;  %3426 = vmatpush.msrb.mxu3 %v6524_v18  ;;  %v6514_v18 = vld [vmem:[%s12492_s1 + $0x138] sm:$0xff] }
 0x2be   : > { %2643 = vmatmul.f32.gmra.mxu3 %v2334_v31  ;;  %v9386_v31 = vld [vmem:[%s7430_s22 + $0x40] sm:$0xff]  ;;  %v1668_v33 = vadd.f32 %v12585_v6, %v12584_v60 }
 0x2bf   : > { %v2289_v46 = vadd.f32 %v9118_v39, %v2272_v16  ;;  %v6497_v16 = vld [vmem:[%s12492_s1 + $0x4b0] sm:$0xff] }
 0x2c0   : > { %v2150_v58 = vpop.f32.mrf.mxu2  ;;  %v2209_v3 = vpop.f32.mrf.mxu3  ;;  %v1862_v24 = vadd.f32 %v12587_v43, %v1668_v33  ;;  %3084 = vmatpush.msrb.mxu0 %v6497_v16  ;;  %v2845_v16 = vld [vmem:[%s7430_s22 + $0xa8] sm:$0xff] }
 0x2c1   : > { %v2303_v38 = vmax.f32 %v2289_v46, 0.0  ;;  %v2241_v37 = vadd.f32 %v2150_v58, %v2049_v4  ;;  %v2242_v32 = vadd.f32 %v2209_v3, %v2050_v29  ;;  %v1961_v8 = vpop.f32.mrf.mxu0  ;;  %v2020_v57 = vpop.f32.mrf.mxu1  ;;  %v6498_v46 = vld [vmem:[%s12492_s1 + $0x4b8] sm:$0xff] }
 0x2c2   : > { %v2051_v30 = vadd.f32 %v1961_v8, %v1859_v42  ;;  %v2052_v10 = vadd.f32 %v2020_v57, %v1860_v17  ;;  %3143 = vmatpush.msrb.mxu1 %v6498_v46  ;;  %3085 = vmatpush.msrb.mxu0 %v6495_v25  ;;  %v12592_v42 = vld [vmem:[#allocation37_spill] sm:$0xff]  ;;  %v12593_v17 = vld [vmem:[#allocation38_spill] sm:$0xff] }
 0x2c3   : > { %2317 = vst.msk [vmem:[#allocation2 + $0x48] sm:$0xff] %vm1316_vm0, %v2303_v38  ;;  %v2259_v26 = vmax.f32 %v2241_v37, %v2242_v32  ;;  %v9412_v37 = vld [vmem:[%s7430_s22 + $0x60] sm:$0xff]  ;;  %v6521_v46 = vld [vmem:[%s12492_s1 + $0x170] sm:$0xff]  ;;  %v6520_v25 = vld [vmem:[%s12492_s1 + $0x168] sm:$0xff] }
 0x2c4   : > { %2469 = vmatmul.f32.gmra.mxu0 %v2381_v53  ;;  %2528 = vmatmul.f32.gmra.mxu1 %v2381_v53 }
 0x2c5   : > { %v2273_v21 = vmax.f32 %v1341_v51, %v2259_v26  ;;  %2587 = vmatmul.f32.gmra.mxu2 %v2335_v35  ;;  %v12589_v26 = vld [vmem:[#allocation35_spill] sm:$0xff]  ;;  %v12591_v51 = vld [vmem:[#allocation36_spill] sm:$0xff]  ;;  %3144 = vmatpush.msrb.mxu1 %v6496_v20 }
 0x2c6   : > { %2646 = vmatmul.f32.gmra.mxu3 %v2335_v35  ;;  %v1612_v49 = vadd.f32 %v12589_v26, %v12588_v52  ;;  %v1671_v0 = vadd.f32 %v12591_v51, %v12590_v11  ;;  %3368 = vmatpush.msrb.mxu2 %v6521_v46  ;;  %v9509_v52 = vld [vmem:[%s7430_s22 + $0xe0] sm:$0xff] }
 0x2c7   : > { %v2290_v7 = vadd.f32 %v9118_v39, %v2273_v21 }
 0x2c8   : > { %v2153_v23 = vpop.f32.mrf.mxu2  ;;  %v2212_v28 = vpop.f32.mrf.mxu3  ;;  %v1863_v5 = vadd.f32 %v12592_v42, %v1612_v49  ;;  %v1864_v21 = vadd.f32 %v12593_v17, %v1671_v0  ;;  %3369 = vmatpush.msrb.mxu2 %v6519_v13  ;;  %v6487_v0 = vld [vmem:[%s12492_s1 + $0x460] sm:$0xff]  ;;  %v2847_v42 = vld [vmem:[%s7430_s22 + $0xe8] sm:$0xff]  ;;  %v6485_v17 = vld [vmem:[%s12492_s1 + $0x450] sm:$0xff] }
 0x2c9   : > { %v2304_v36 = vmax.f32 %v2290_v7, 0.0  ;;  %v2243_v15 = vadd.f32 %v2153_v23, %v2051_v30  ;;  %v2244_v2 = vadd.f32 %v2212_v28, %v2052_v10  ;;  %v1964_v61 = vpop.f32.mrf.mxu0  ;;  %v2023_v59 = vpop.f32.mrf.mxu1 }
 0x2ca   : > { %v2053_v29 = vadd.f32 %v1964_v61, %v1861_v47  ;;  %v2054_v58 = vadd.f32 %v2023_v59, %v1862_v24  ;;  %v6493_v61 = vld [vmem:[%s12492_s1 + $0x490] sm:$0xff]  ;;  %v6494_v59 = vld [vmem:[%s12492_s1 + $0x498] sm:$0xff]  ;;  %v9468_v24 = vld [vmem:[%s7430_s22 + $0xa0] sm:$0xff] }
 0x2cb   : > { %2318 = vst.msk [vmem:[#allocation2 + $0x50] sm:$0xff] %vm1316_vm0, %v2304_v36  ;;  %v2260_v9 = vmax.f32 %v2243_v15, %v2244_v2  ;;  %v9444_v2 = vld [vmem:[%s7430_s22 + $0x80] sm:$0xff]  ;;  %3086 = vmatpush.msrb.mxu0 %v6493_v61  ;;  %3145 = vmatpush.msrb.mxu1 %v6494_v59 }
 0x2cc   : > { %2712 = vmatmul.f32.vlgmr.msra.gmra.mxu0 %v9386_v31  ;;  %2771 = vmatmul.f32.vlgmr.msra.gmra.mxu1 %v9386_v31 }
 0x2cd   : > { %v2274_v19 = vmax.f32 %v1342_v55, %v2260_v9  ;;  %2904 = vmatmul.f32.vlgmr.msra.gmra.mxu2 %v2842_v56 }
 0x2ce   : > { %2963 = vmatmul.f32.vlgmr.msra.gmra.mxu3 %v2842_v56  ;;  %v1344_v56 = vld [vmem:[#allocation2 + $0x68] sm:$0xff] }
 0x2cf   : > { %v2291_v4 = vadd.f32 %v9118_v39, %v2274_v19  ;;  %v6491_v19 = vld [vmem:[%s12492_s1 + $0x480] sm:$0xff] }
 0x2d0   : > { %v2156_v3 = vpop.f32.mrf.mxu2  ;;  %3087 = vmatpush.msrb.mxu0 %v6491_v19 }
 0x2d1   : > { %v2215_v38 = vpop.f32.mrf.mxu3  ;;  %v2305_v32 = vmax.f32 %v2291_v4, 0.0  ;;  %v2245_v8 = vadd.f32 %v2156_v3, %v2053_v29  ;;  %v1967_v53 = vpop.f32.mrf.mxu0  ;;  %v6522_v4 = vld [vmem:[%s12492_s1 + $0x178] sm:$0xff]  ;;  %v9487_v3 = vld [vmem:[%s7430_s22 + $0xc0] sm:$0xff] }
 0x2d2   : > { %v2246_v57 = vadd.f32 %v2215_v38, %v2054_v58  ;;  %v2026_v35 = vpop.f32.mrf.mxu1  ;;  %v2055_v7 = vadd.f32 %v1967_v53, %v1863_v5  ;;  %3427 = vmatpush.msrb.mxu3 %v6522_v4  ;;  %v6489_v53 = vld [vmem:[%s12492_s1 + $0x470] sm:$0xff]  ;;  %v6518_v5 = vld [vmem:[%s12492_s1 + $0x158] sm:$0xff]  ;;  %v6511_v4 = vld [vmem:[%s12492_s1 + $0x120] sm:$0xff] }
 0x2d3   : > { %2319 = vst.msk [vmem:[#allocation2 + $0x58] sm:$0xff] %vm1316_vm0, %v2305_v32  ;;  %v2056_v30 = vadd.f32 %v2026_v35, %v1864_v21  ;;  %v6490_v35 = vld [vmem:[%s12492_s1 + $0x478] sm:$0xff]  ;;  %3088 = vmatpush.msrb.mxu0 %v6489_v53  ;;  %v6509_v53 = vld [vmem:[%s12492_s1 + $0x110] sm:$0xff] }
 0x2d4   : > { %v2261_v41 = vmax.f32 %v2245_v8, %v2246_v57  ;;  %2715 = vmatmul.f32.gmra.mxu0 %v9412_v37  ;;  %2774 = vmatmul.f32.gmra.mxu1 %v9412_v37  ;;  %v6486_v21 = vld [vmem:[%s12492_s1 + $0x458] sm:$0xff] }
 0x2d5   : > { %2907 = vmatmul.f32.gmra.mxu2 %v2843_v62  ;;  %3428 = vmatpush.msrb.mxu3 %v6520_v25 }
 0x2d6   : > { %v2275_v34 = vmax.f32 %v1343_v63, %v2261_v41  ;;  %2966 = vmatmul.f32.gmra.mxu3 %v2843_v62  ;;  %v6488_v41 = vld [vmem:[%s12492_s1 + $0x468] sm:$0xff]  ;;  %v6517_v63 = vld [vmem:[%s12492_s1 + $0x150] sm:$0xff]  ;;  %3089 = vmatpush.msrb.mxu0 %v6487_v0 }
 0x2d7   : > { %3370 = vmatpush.msrb.mxu2 %v6517_v63  ;;  %3429 = vmatpush.msrb.mxu3 %v6518_v5  ;;  %v6477_v0 = vld [vmem:[%s12492_s1 + $0x410] sm:$0xff]  ;;  %v2851_v63 = vld [vmem:[%s7430_s22 + $0x168] sm:$0xff] }
 0x2d8   : > { %v2292_v48 = vadd.f32 %v9118_v39, %v2275_v34  ;;  %v2159_v10 = vpop.f32.mrf.mxu2  ;;  %3090 = vmatpush.msrb.mxu0 %v6485_v17  ;;  %v6508_v5 = vld [vmem:[%s12492_s1 + $0x108] sm:$0xff] }
 0x2d9   : > { %v2218_v50 = vpop.f32.mrf.mxu3  ;;  %v2247_v23 = vadd.f32 %v2159_v10, %v2055_v7  ;;  %v2431_v36 = vpop.f32.mrf.mxu0  ;;  %v9541_v10 = vld [vmem:[%s7430_s22 + $0x100] sm:$0xff] }
 0x2da   : > { %v2306_v54 = vmax.f32 %v2292_v48, 0.0  ;;  %v2248_v28 = vadd.f32 %v2218_v50, %v2056_v30  ;;  %v2490_v15 = vpop.f32.mrf.mxu1  ;;  %v6515_v50 = vld [vmem:[%s12492_s1 + $0x140] sm:$0xff] }
 0x2db   : > { %3371 = vmatpush.msrb.mxu2 %v6515_v50  ;;  %v9635_v50 = vld [vmem:[%s7430_s22 + $0x180] sm:$0xff] }
 0x2dc   : > { %2320 = vst.msk [vmem:[#allocation2 + $0x60] sm:$0xff] %vm1316_vm0, %v2306_v54  ;;  %v2262_v14 = vmax.f32 %v2247_v23, %v2248_v28  ;;  %2718 = vmatmul.f32.gmra.mxu0 %v9444_v2  ;;  %2777 = vmatmul.f32.gmra.mxu1 %v9444_v2  ;;  %v6516_v54 = vld [vmem:[%s12492_s1 + $0x148] sm:$0xff]  ;;  %v6483_v28 = vld [vmem:[%s12492_s1 + $0x440] sm:$0xff] }
 0x2dd   : > { %2910 = vmatmul.f32.gmra.mxu2 %v2844_v40  ;;  %v2848_v23 = vld [vmem:[%s7430_s22 + $0x108] sm:$0xff]  ;;  %3430 = vmatpush.msrb.mxu3 %v6516_v54  ;;  %v6475_v54 = vld [vmem:[%s12492_s1 + $0x400] sm:$0xff] }
 0x2de   : > { %v2276_v22 = vmax.f32 %v1344_v56, %v2262_v14  ;;  %2969 = vmatmul.f32.gmra.mxu3 %v2844_v40  ;;  %3091 = vmatpush.msrb.mxu0 %v6483_v28  ;;  %v2852_v28 = vld [vmem:[%s7430_s22 + $0x188] sm:$0xff] }
 0x2df   : > { %3372 = vmatpush.msrb.mxu2 %v6513_v27  ;;  %3431 = vmatpush.msrb.mxu3 %v6514_v18 }
 0x2e0   : > { %v2293_v60 = vadd.f32 %v9118_v39, %v2276_v22  ;;  %v2549_v6 = vpop.f32.mrf.mxu2  ;;  %v6492_v39 = vld [vmem:[%s12492_s1 + $0x488] sm:$0xff]  ;;  %v9563_v22 = vld [vmem:[%s7430_s22 + $0x120] sm:$0xff] }
 0x2e1   : > { %v2608_v33 = vpop.f32.mrf.mxu3  ;;  %v9463_v55 = vadd.f32 %v2549_v6, %v2431_v36  ;;  %v2434_v47 = vpop.f32.mrf.mxu0  ;;  %3146 = vmatpush.msrb.mxu1 %v6492_v39  ;;  %v6484_v36 = vld [vmem:[%s12492_s1 + $0x448] sm:$0xff]  ;;  %v6481_v6 = vld [vmem:[%s12492_s1 + $0x430] sm:$0xff]  ;;  %3373 = vmatpush.msrb.mxu2 %v6511_v4 }
 0x2e2   : > { %v2307_v9 = vmax.f32 %v2293_v60, 0.0  ;;  %v9465_v1 = vadd.f32 %v2608_v33, %v2490_v15  ;;  %v2493_v43 = vpop.f32.mrf.mxu1  ;;  %v2849_v60 = vld [vmem:[%s7430_s22 + $0x128] sm:$0xff]  ;;  %v6482_v33 = vld [vmem:[%s12492_s1 + $0x438] sm:$0xff]  ;;  %3092 = vmatpush.msrb.mxu0 %v6481_v6 }
 0x2e3   : > { %3147 = vmatpush.msrb.mxu1 %v6490_v35  ;;  %v6510_v35 = vld [vmem:[%s12492_s1 + $0x118] sm:$0xff]  ;;  %3374 = vmatpush.msrb.mxu2 %v6509_v53 }
 0x2e4   : > { %2321 = vst.msk [vmem:[#allocation2 + $0x68] sm:$0xff] %vm1316_vm0, %v2307_v9  ;;  %2721 = vmatmul.f32.gmra.mxu0 %v9468_v24  ;;  %2780 = vmatmul.f32.gmra.mxu1 %v9468_v24 }
 0x2e5   : > { %2913 = vmatmul.f32.gmra.mxu2 %v2845_v16  ;;  %3148 = vmatpush.msrb.mxu1 %v6488_v41  ;;  %v6478_v41 = vld [vmem:[%s12492_s1 + $0x418] sm:$0xff] }
 0x2e6   : > { %2972 = vmatmul.f32.gmra.mxu3 %v2845_v16 }
 0x2e7   : > { %3149 = vmatpush.msrb.mxu1 %v6486_v21 }
 0x2e8   : > { %v2552_v29 = vpop.f32.mrf.mxu2 }
 0x2e9   : > { %v2611_v58 = vpop.f32.mrf.mxu3  ;;  %v9489_v38 = vadd.f32 %v2552_v29, %v2434_v47  ;;  %v2437_v8 = vpop.f32.mrf.mxu0  ;;  %3150 = vmatpush.msrb.mxu1 %v6484_v36  ;;  %v6512_v29 = vld [vmem:[%s12492_s1 + $0x128] sm:$0xff]  ;;  %v6569_v36 = vld [vmem:[%s12492_s1 + $0x2f0] sm:$0xff] }
 0x2ea   : > { %v9491_v32 = vadd.f32 %v2611_v58, %v2493_v43  ;;  %v2496_v57 = vpop.f32.mrf.mxu1  ;;  %v9581_v43 = vld [vmem:[%s7430_s22 + $0x140] sm:$0xff]  ;;  %3432 = vmatpush.msrb.mxu3 %v6512_v29 }
 0x2eb   : > { %3151 = vmatpush.msrb.mxu1 %v6482_v33  ;;  %v6479_v58 = vld [vmem:[%s12492_s1 + $0x420] sm:$0xff]  ;;  %v3312_v33 = vld [vmem:[%s12492_s1 + $0xf0] sm:$0xff] }
 0x2ec   : > { %2724 = vmatmul.f32.gmra.mxu0 %v9487_v3  ;;  %2783 = vmatmul.f32.gmra.mxu1 %v9487_v3 }
 0x2ed   : > { %2916 = vmatmul.f32.gmra.mxu2 %v2846_v12  ;;  %3093 = vmatpush.msrb.mxu0 %v6479_v58 }
 0x2ee   : > { %2975 = vmatmul.f32.gmra.mxu3 %v2846_v12 }
 0x2ef   : > { %3433 = vmatpush.msrb.mxu3 %v6510_v35  ;;  %3094 = vmatpush.msrb.mxu0 %v6477_v0  ;;  %v9679_v35 = vld [vmem:[%s7430_s22 + $0x1c0] sm:$0xff]  ;;  %v6566_v0 = vld [vmem:[%s12492_s1 + $0x2d8] sm:$0xff] }
 0x2f0   : > { %v2555_v62 = vpop.f32.mrf.mxu2 }
 0x2f1   : > { %v2614_v20 = vpop.f32.mrf.mxu3  ;;  %v9511_v26 = vadd.f32 %v2555_v62, %v2437_v8  ;;  %v2440_v11 = vpop.f32.mrf.mxu0  ;;  %v2850_v8 = vld [vmem:[%s7430_s22 + $0x148] sm:$0xff]  ;;  %3434 = vmatpush.msrb.mxu3 %v6508_v5  ;;  %3095 = vmatpush.msrb.mxu0 %v6475_v54  ;;  %v9707_v54 = vld [vmem:[%s7430_s22 + $0x1e0] sm:$0xff] }
 0x2f2   : > { %v9513_v49 = vadd.f32 %v2614_v20, %v2496_v57  ;;  %v2499_v51 = vpop.f32.mrf.mxu1  ;;  %v6480_v57 = vld [vmem:[%s12492_s1 + $0x428] sm:$0xff] }
 0x2f3   : > { %3152 = vmatpush.msrb.mxu1 %v6480_v57  ;;  %3478 = vmatpush.msra.mxu0 %v3312_v33 }
 0x2f4   : > { %2727 = vmatmul.f32.gmra.mxu0 %v9509_v52  ;;  %2786 = vmatmul.f32.gmra.mxu1 %v9509_v52 }
 0x2f5   : > { %2919 = vmatmul.f32.gmra.mxu2 %v2847_v42  ;;  %3153 = vmatpush.msrb.mxu1 %v6478_v41  ;;  %v3308_v41 = vld [vmem:[%s12492_s1 + $0xd0] sm:$0xff] }
 0x2f6   : > { %2978 = vmatmul.f32.gmra.mxu3 %v2847_v42  ;;  %v6507_v42 = vld [vmem:[%s12492_s1 + $0x100] sm:$0xff] }
 0x2f7   : > { %3375 = vmatpush.msrb.mxu2 %v6507_v42 }
 0x2f8   : > { %v2558_v34 = vpop.f32.mrf.mxu2 }
 0x2f9   : > { %v2617_v45 = vpop.f32.mrf.mxu3  ;;  %v9536_v44 = vadd.f32 %v2558_v34, %v2440_v11  ;;  %v2443_v7 = vpop.f32.mrf.mxu0  ;;  %3642 = vmatpush.msra.mxu2 %v6569_v36  ;;  %v6564_v36 = vld [vmem:[%s12492_s1 + $0x2c8] sm:$0xff] }
 0x2fa   : > { %v9538_v48 = vadd.f32 %v2617_v45, %v2499_v51  ;;  %v2502_v30 = vpop.f32.mrf.mxu1  ;;  %v9613_v51 = vld [vmem:[%s7430_s22 + $0x160] sm:$0xff] }
 0x2fc   : > { %2730 = vmatmul.f32.gmra.mxu0 %v9541_v10  ;;  %2789 = vmatmul.f32.gmra.mxu1 %v9541_v10 }
 0x2fd   : > { %2922 = vmatmul.f32.gmra.mxu2 %v2848_v23 }
 0x2fe   : > { %2981 = vmatmul.f32.gmra.mxu3 %v2848_v23  ;;  %v6476_v23 = vld [vmem:[%s12492_s1 + $0x408] sm:$0xff] }
 0x2ff   : > { %3154 = vmatpush.msrb.mxu1 %v6476_v23  ;;  %v2855_v23 = vld [vmem:[%s7430_s22 + $0x1e8] sm:$0xff] }
 0x300   : > { %v2561_v15 = vpop.f32.mrf.mxu2 }
 0x301   : > { %v2620_v61 = vpop.f32.mrf.mxu3  ;;  %v9558_v59 = vadd.f32 %v2561_v15, %v2443_v7  ;;  %v2446_v14 = vpop.f32.mrf.mxu0  ;;  %v6570_v15 = vld [vmem:[%s12492_s1 + $0x2f8] sm:$0xff] }
 0x302   : > { %v9560_v40 = vadd.f32 %v2620_v61, %v2502_v30  ;;  %v2505_v56 = vpop.f32.mrf.mxu1  ;;  %3701 = vmatpush.msra.mxu3 %v6570_v15  ;;  %v3306_v15 = vld [vmem:[%s12492_s1 + $0xc0] sm:$0xff] }
 0x304   : > { %2733 = vmatmul.f32.gmra.mxu0 %v9563_v22  ;;  %2792 = vmatmul.f32.gmra.mxu1 %v9563_v22 }
 0x305   : > { %2925 = vmatmul.f32.gmra.mxu2 %v2849_v60 }
 0x306   : > { %2984 = vmatmul.f32.gmra.mxu3 %v2849_v60 }
 0x308   : > { %v2564_v9 = vpop.f32.mrf.mxu2 }
 0x309   : > { %v2623_v47 = vpop.f32.mrf.mxu3  ;;  %v9583_v19 = vadd.f32 %v2564_v9, %v2446_v14  ;;  %v2449_v16 = vpop.f32.mrf.mxu0  ;;  %v3313_v9 = vld [vmem:[%s12492_s1 + $0xf8] sm:$0xff] }
 0x30a   : > { %v9585_v39 = vadd.f32 %v2623_v47, %v2505_v56  ;;  %v2508_v46 = vpop.f32.mrf.mxu1  ;;  %v9653_v56 = vld [vmem:[%s7430_s22 + $0x1a0] sm:$0xff]  ;;  %3537 = vmatpush.msra.mxu1 %v3313_v9 }
 0x30b   : > { %v6567_v47 = vld [vmem:[%s12492_s1 + $0x2e0] sm:$0xff] }
 0x30c   : > { %2736 = vmatmul.f32.gmra.mxu0 %v9581_v43  ;;  %2795 = vmatmul.f32.gmra.mxu1 %v9581_v43 }
 0x30d   : > { %2928 = vmatmul.f32.gmra.mxu2 %v2850_v8 }
 0x30e   : > { %2987 = vmatmul.f32.gmra.mxu3 %v2850_v8  ;;  %3643 = vmatpush.msra.mxu2 %v6567_v47 }
 0x310   : > { %v2567_v13 = vpop.f32.mrf.mxu2 }
 0x311   : > { %v2626_v12 = vpop.f32.mrf.mxu3  ;;  %v9608_v25 = vadd.f32 %v2567_v13, %v2449_v16  ;;  %v2452_v20 = vpop.f32.mrf.mxu0  ;;  %v2853_v16 = vld [vmem:[%s7430_s22 + $0x1a8] sm:$0xff]  ;;  %v3310_v13 = vld [vmem:[%s12492_s1 + $0xe0] sm:$0xff] }
 0x312   : > { %v9610_v62 = vadd.f32 %v2626_v12, %v2508_v46  ;;  %v2511_v11 = vpop.f32.mrf.mxu1  ;;  %v6568_v46 = vld [vmem:[%s12492_s1 + $0x2e8] sm:$0xff]  ;;  %3479 = vmatpush.msra.mxu0 %v3310_v13 }
 0x313   : > { %3702 = vmatpush.msra.mxu3 %v6568_v46  ;;  %v3311_v12 = vld [vmem:[%s12492_s1 + $0xe8] sm:$0xff]  ;;  %v6561_v46 = vld [vmem:[%s12492_s1 + $0x2b0] sm:$0xff] }
 0x314   : > { %2739 = vmatmul.f32.gmra.mxu0 %v9613_v51  ;;  %2798 = vmatmul.f32.gmra.mxu1 %v9613_v51 }
 0x315   : > { %2931 = vmatmul.f32.gmra.mxu2 %v2851_v63  ;;  %3538 = vmatpush.msra.mxu1 %v3311_v12 }
 0x316   : > { %2990 = vmatmul.f32.gmra.mxu3 %v2851_v63  ;;  %v3309_v63 = vld [vmem:[%s12492_s1 + $0xd8] sm:$0xff]  ;;  %3480 = vmatpush.msra.mxu0 %v3308_v41  ;;  %v3035_v41 = vld [vmem:[%s7430_s22 + $0x70] sm:$0xff] }
 0x317   : > { %3703 = vmatpush.msra.mxu3 %v6566_v0  ;;  %3539 = vmatpush.msra.mxu1 %v3309_v63  ;;  %v6560_v63 = vld [vmem:[%s12492_s1 + $0x2a8] sm:$0xff] }
 0x318   : > { %v2570_v17 = vpop.f32.mrf.mxu2  ;;  %3481 = vmatpush.msra.mxu0 %v3306_v15 }
 0x319   : > { %v2629_v21 = vpop.f32.mrf.mxu3  ;;  %v9630_v34 = vadd.f32 %v2570_v17, %v2452_v20  ;;  %v2455_v7 = vpop.f32.mrf.mxu0  ;;  %v2854_v20 = vld [vmem:[%s7430_s22 + $0x1c8] sm:$0xff]  ;;  %3704 = vmatpush.msra.mxu3 %v6564_v36 }
 0x31a   : > { %v9632_v45 = vadd.f32 %v2629_v21, %v2511_v11  ;;  %v2514_v30 = vpop.f32.mrf.mxu1  ;;  %v6565_v11 = vld [vmem:[%s12492_s1 + $0x2d0] sm:$0xff] }
 0x31b   : > { %3644 = vmatpush.msra.mxu2 %v6565_v11 }
 0x31c   : > { %2742 = vmatmul.f32.gmra.mxu0 %v9635_v50  ;;  %2801 = vmatmul.f32.gmra.mxu1 %v9635_v50 }
 0x31d   : > { %2934 = vmatmul.f32.gmra.mxu2 %v2852_v28 }
 0x31e   : > { %2993 = vmatmul.f32.gmra.mxu3 %v2852_v28  ;;  %v6563_v28 = vld [vmem:[%s12492_s1 + $0x2c0] sm:$0xff] }
 0x31f   : > { %3645 = vmatpush.msra.mxu2 %v6563_v28 }
 0x320   : > { %v2573_v61 = vpop.f32.mrf.mxu2 }
 0x321   : > { %v2632_v14 = vpop.f32.mrf.mxu3  ;;  %v9655_v27 = vadd.f32 %v2573_v61, %v2455_v7  ;;  %v2458_v60 = vpop.f32.mrf.mxu0  ;;  %v3307_v61 = vld [vmem:[%s12492_s1 + $0xc8] sm:$0xff]  ;;  %3646 = vmatpush.msra.mxu2 %v6561_v46 }
 0x322   : > { %v9657_v18 = vadd.f32 %v2632_v14, %v2514_v30  ;;  %v2517_v6 = vpop.f32.mrf.mxu1  ;;  %3540 = vmatpush.msra.mxu1 %v3307_v61 }
 0x324   : > { %2745 = vmatmul.f32.gmra.mxu0 %v9653_v56  ;;  %2804 = vmatmul.f32.gmra.mxu1 %v9653_v56 }
 0x325   : > { %2937 = vmatmul.f32.gmra.mxu2 %v2853_v16 }
 0x326   : > { %2996 = vmatmul.f32.gmra.mxu3 %v2853_v16  ;;  %v3034_v16 = vld [vmem:[%s7430_s22 + $0x50] sm:$0xff] }
 0x328   : > { %v2576_v4 = vpop.f32.mrf.mxu2 }
 0x329   : > { %v2635_v29 = vpop.f32.mrf.mxu3  ;;  %v9674_v58 = vadd.f32 %v2576_v4, %v2458_v60  ;;  %v2461_v57 = vpop.f32.mrf.mxu0  ;;  %v6562_v4 = vld [vmem:[%s12492_s1 + $0x2b8] sm:$0xff] }
 0x32a   : > { %v9676_v8 = vadd.f32 %v2635_v29, %v2517_v6  ;;  %v2520_v53 = vpop.f32.mrf.mxu1  ;;  %3705 = vmatpush.msra.mxu3 %v6562_v4  ;;  %v3304_v29 = vld [vmem:[%s12492_s1 + $0xb0] sm:$0xff] }
 0x32b   : > { %3482 = vmatpush.msra.mxu0 %v3304_v29 }
 0x32c   : > { %2748 = vmatmul.f32.gmra.mxu0 %v9679_v35  ;;  %2807 = vmatmul.f32.gmra.mxu1 %v9679_v35 }
 0x32d   : > { %2940 = vmatmul.f32.gmra.mxu2 %v2854_v20  ;;  %3706 = vmatpush.msra.mxu3 %v6560_v63 }
 0x32e   : > { %2999 = vmatmul.f32.gmra.mxu3 %v2854_v20 }
 0x330   : > { %v2579_v42 = vpop.f32.mrf.mxu2 }
 0x331   : > { %v2638_v5 = vpop.f32.mrf.mxu3  ;;  %v9702_v17 = vadd.f32 %v2579_v42, %v2461_v57  ;;  %v2464_v7 = vpop.f32.mrf.mxu0  ;;  %v3305_v57 = vld [vmem:[%s12492_s1 + $0xb8] sm:$0xff]  ;;  %v3302_v42 = vld [vmem:[%s12492_s1 + $0xa0] sm:$0xff] }
 0x332   : > { %v9704_v21 = vadd.f32 %v2638_v5, %v2520_v53  ;;  %v2523_v30 = vpop.f32.mrf.mxu1  ;;  %3541 = vmatpush.msra.mxu1 %v3305_v57  ;;  %v3303_v5 = vld [vmem:[%s12492_s1 + $0xa8] sm:$0xff]  ;;  %3483 = vmatpush.msra.mxu0 %v3302_v42 }
 0x334   : > { %2751 = vmatmul.f32.gmra.mxu0 %v9707_v54  ;;  %2810 = vmatmul.f32.gmra.mxu1 %v9707_v54 }
 0x335   : > { %2943 = vmatmul.f32.gmra.mxu2 %v2855_v23  ;;  %3542 = vmatpush.msra.mxu1 %v3303_v5 }
 0x336   : > { %3002 = vmatmul.f32.gmra.mxu3 %v2855_v23 }
 0x338   : > { %v2582_v14 = vpop.f32.mrf.mxu2 }
 0x339   : > { %v2641_v60 = vpop.f32.mrf.mxu3  ;;  %v9724_v6 = vadd.f32 %v2582_v14, %v2464_v7  ;;  %v2467_v9 = vpop.f32.mrf.mxu0  ;;  %v6557_v7 = vld [vmem:[%s12492_s1 + $0x290] sm:$0xff] }
 0x33a   : > { %v9726_v33 = vadd.f32 %v2641_v60, %v2523_v30  ;;  %v2526_v47 = vpop.f32.mrf.mxu1  ;;  %v6558_v30 = vld [vmem:[%s12492_s1 + $0x298] sm:$0xff]  ;;  %v3036_v60 = vld [vmem:[%s7430_s22 + $0x90] sm:$0xff] }
 0x33b   : > { %3707 = vmatpush.msra.mxu3 %v6558_v30 }
 0x33c   : > { %3096 = vmatmul.f32.vlgmr.msrb.gmra.mxu0 %v3034_v16  ;;  %3155 = vmatmul.f32.vlgmr.msrb.gmra.mxu1 %v3034_v16  ;;  %v6556_v16 = vld [vmem:[%s12492_s1 + $0x288] sm:$0xff] }
 0x33d   : > { %3376 = vmatmul.f32.vlgmr.msrb.gmra.mxu2 %v9386_v31  ;;  %3708 = vmatpush.msra.mxu3 %v6556_v16 }
 0x33e   : > { %3435 = vmatmul.f32.vlgmr.msrb.gmra.mxu3 %v9386_v31  ;;  %v6559_v31 = vld [vmem:[%s12492_s1 + $0x2a0] sm:$0xff] }
 0x33f   : > { %3647 = vmatpush.msra.mxu2 %v6559_v31  ;;  %v3299_v31 = vld [vmem:[%s12492_s1 + $0x88] sm:$0xff] }
 0x340   : > { %v2585_v53 = vpop.f32.mrf.mxu2 }
 0x341   : > { %v2644_v13 = vpop.f32.mrf.mxu3  ;;  %v9743_v12 = vadd.f32 %v2585_v53, %v2467_v9  ;;  %v2470_v11 = vpop.f32.mrf.mxu0  ;;  %3648 = vmatpush.msra.mxu2 %v6557_v7  ;;  %v3301_v9 = vld [vmem:[%s12492_s1 + $0x98] sm:$0xff] }
 0x342   : > { %v9745_v20 = vadd.f32 %v2644_v13, %v2526_v47  ;;  %v2529_v0 = vpop.f32.mrf.mxu1  ;;  %3543 = vmatpush.msra.mxu1 %v3301_v9  ;;  %v6555_v47 = vld [vmem:[%s12492_s1 + $0x280] sm:$0xff] }
 0x343   : > { %3649 = vmatpush.msra.mxu2 %v6555_v47 }
 0x344   : > { %3099 = vmatmul.f32.gmra.mxu0 %v3035_v41  ;;  %3158 = vmatmul.f32.gmra.mxu1 %v3035_v41  ;;  %v3298_v41 = vld [vmem:[%s12492_s1 + $0x80] sm:$0xff] }
 0x345   : > { %3379 = vmatmul.f32.gmra.mxu2 %v9412_v37  ;;  %3544 = vmatpush.msra.mxu1 %v3299_v31 }
 0x346   : > { %3438 = vmatmul.f32.gmra.mxu3 %v9412_v37  ;;  %v3300_v37 = vld [vmem:[%s12492_s1 + $0x90] sm:$0xff] }
 0x347   : > { %3484 = vmatpush.msra.mxu0 %v3300_v37 }
 0x348   : > { %v2588_v23 = vpop.f32.mrf.mxu2 }
 0x349   : > { %v2647_v28 = vpop.f32.mrf.mxu3  ;;  %v9768_v36 = vadd.f32 %v2588_v23, %v2470_v11  ;;  %v2713_v61 = vpop.f32.mrf.mxu0  ;;  %3485 = vmatpush.msra.mxu0 %v3298_v41  ;;  %v3293_v41 = vld [vmem:[%s12492_s1 + $0x58] sm:$0xff] }
 0x34a   : > { %v9770_v15 = vadd.f32 %v2647_v28, %v2529_v0  ;;  %v2772_v14 = vpop.f32.mrf.mxu1  ;;  %v2814_v46 = vadd.f32 %v2713_v61, %v9463_v55  ;;  %v3037_v0 = vld [vmem:[%s7430_s22 + $0xb0] sm:$0xff] }
 0x34b   : > { %v2815_v4 = vadd.f32 %v2772_v14, %v9465_v1  ;;  %v6553_v55 = vld [vmem:[%s12492_s1 + $0x270] sm:$0xff]  ;;  %v6554_v1 = vld [vmem:[%s12492_s1 + $0x278] sm:$0xff] }
 0x34c   : > { %3102 = vmatmul.f32.gmra.mxu0 %v3036_v60  ;;  %3161 = vmatmul.f32.gmra.mxu1 %v3036_v60  ;;  %v3038_v61 = vld [vmem:[%s7430_s22 + $0xd0] sm:$0xff]  ;;  %v3297_v60 = vld [vmem:[%s12492_s1 + $0x78] sm:$0xff] }
 0x34d   : > { %3382 = vmatmul.f32.gmra.mxu2 %v9444_v2  ;;  %3709 = vmatpush.msra.mxu3 %v6554_v1  ;;  %v3296_v14 = vld [vmem:[%s12492_s1 + $0x70] sm:$0xff] }
 0x34e   : > { %3441 = vmatmul.f32.gmra.mxu3 %v9444_v2  ;;  %3650 = vmatpush.msra.mxu2 %v6553_v55 }
 0x34f   : > { %3486 = vmatpush.msra.mxu0 %v3296_v14  ;;  %3545 = vmatpush.msra.mxu1 %v3297_v60 }
 0x350   : > { %v2905_v29 = vpop.f32.mrf.mxu2 }
 0x351   : > { %v2964_v57 = vpop.f32.mrf.mxu3  ;;  %v9789_v53 = vadd.f32 %v2905_v29, %v2814_v46  ;;  %v2716_v2 = vpop.f32.mrf.mxu0 }
 0x352   : > { %v9791_v13 = vadd.f32 %v2964_v57, %v2815_v4  ;;  %v2775_v11 = vpop.f32.mrf.mxu1  ;;  %v2816_v63 = vadd.f32 %v2716_v2, %v9489_v38  ;;  %v6551_v38 = vld [vmem:[%s12492_s1 + $0x260] sm:$0xff]  ;;  %v3039_v2 = vld [vmem:[%s7430_s22 + $0xf0] sm:$0xff] }
 0x353   : > { %v2817_v42 = vadd.f32 %v2775_v11, %v9491_v32  ;;  %v6552_v32 = vld [vmem:[%s12492_s1 + $0x268] sm:$0xff]  ;;  %3651 = vmatpush.msra.mxu2 %v6551_v38  ;;  %v3294_v11 = vld [vmem:[%s12492_s1 + $0x60] sm:$0xff] }
 0x354   : > { %3105 = vmatmul.f32.gmra.mxu0 %v3037_v0  ;;  %3164 = vmatmul.f32.gmra.mxu1 %v3037_v0  ;;  %v3292_v0 = vld [vmem:[%s12492_s1 + $0x50] sm:$0xff] }
 0x355   : > { %3385 = vmatmul.f32.gmra.mxu2 %v9468_v24  ;;  %3710 = vmatpush.msra.mxu3 %v6552_v32 }
 0x356   : > { %3444 = vmatmul.f32.gmra.mxu3 %v9468_v24  ;;  %3487 = vmatpush.msra.mxu0 %v3294_v11 }
 0x358   : > { %v2908_v5 = vpop.f32.mrf.mxu2  ;;  %3488 = vmatpush.msra.mxu0 %v3292_v0 }
 0x359   : > { %v2967_v7 = vpop.f32.mrf.mxu3  ;;  %v9810_v30 = vadd.f32 %v2908_v5, %v2816_v63  ;;  %v2719_v24 = vpop.f32.mrf.mxu0 }
 0x35a   : > { %v9812_v23 = vadd.f32 %v2967_v7, %v2817_v42  ;;  %v2778_v28 = vpop.f32.mrf.mxu1  ;;  %v2818_v37 = vadd.f32 %v2719_v24, %v9511_v26  ;;  %v6549_v26 = vld [vmem:[%s12492_s1 + $0x250] sm:$0xff] }
 0x35b   : > { %v2819_v9 = vadd.f32 %v2778_v28, %v9513_v49  ;;  %v6550_v49 = vld [vmem:[%s12492_s1 + $0x258] sm:$0xff]  ;;  %3652 = vmatpush.msra.mxu2 %v6549_v26  ;;  %v3040_v24 = vld [vmem:[%s7430_s22 + $0x110] sm:$0xff]  ;;  %v6547_v28 = vld [vmem:[%s12492_s1 + $0x240] sm:$0xff] }
 0x35c   : > { %3108 = vmatmul.f32.gmra.mxu0 %v3038_v61  ;;  %3167 = vmatmul.f32.gmra.mxu1 %v3038_v61  ;;  %v6548_v61 = vld [vmem:[%s12492_s1 + $0x248] sm:$0xff] }
 0x35d   : > { %3388 = vmatmul.f32.gmra.mxu2 %v9487_v3  ;;  %3711 = vmatpush.msra.mxu3 %v6550_v49 }
 0x35e   : > { %3447 = vmatmul.f32.gmra.mxu3 %v9487_v3  ;;  %v3295_v3 = vld [vmem:[%s12492_s1 + $0x68] sm:$0xff]  ;;  %3653 = vmatpush.msra.mxu2 %v6547_v28 }
 0x35f   : > { %3546 = vmatpush.msra.mxu1 %v3295_v3  ;;  %3712 = vmatpush.msra.mxu3 %v6548_v61 }
 0x360   : > { %v2911_v47 = vpop.f32.mrf.mxu2 }
 0x361   : > { %v2970_v16 = vpop.f32.mrf.mxu3  ;;  %v9831_v46 = vadd.f32 %v2911_v47, %v2818_v37  ;;  %v2722_v29 = vpop.f32.mrf.mxu0  ;;  %3547 = vmatpush.msra.mxu1 %v3293_v41 }
 0x362   : > { %v9833_v4 = vadd.f32 %v2970_v16, %v2819_v9  ;;  %v2781_v57 = vpop.f32.mrf.mxu1  ;;  %v2820_v31 = vadd.f32 %v2722_v29, %v9536_v44  ;;  %v3290_v44 = vld [vmem:[%s12492_s1 + $0x40] sm:$0xff]  ;;  %v3041_v16 = vld [vmem:[%s7430_s22 + $0x130] sm:$0xff] }
 0x363   : > { %v2821_v55 = vadd.f32 %v2781_v57, %v9538_v48  ;;  %v3291_v48 = vld [vmem:[%s12492_s1 + $0x48] sm:$0xff]  ;;  %3489 = vmatpush.msra.mxu0 %v3290_v44  ;;  %v6545_v29 = vld [vmem:[%s12492_s1 + $0x230] sm:$0xff]  ;;  %v6546_v57 = vld [vmem:[%s12492_s1 + $0x238] sm:$0xff] }
 0x364   : > { %3111 = vmatmul.f32.gmra.mxu0 %v3039_v2  ;;  %3170 = vmatmul.f32.gmra.mxu1 %v3039_v2 }
 0x365   : > { %3391 = vmatmul.f32.gmra.mxu2 %v9509_v52  ;;  %3548 = vmatpush.msra.mxu1 %v3291_v48 }
 0x366   : > { %3450 = vmatmul.f32.gmra.mxu3 %v9509_v52  ;;  %3654 = vmatpush.msra.mxu2 %v6545_v29 }
 0x367   : > { %3713 = vmatpush.msra.mxu3 %v6546_v57 }
 0x368   : > { %v2914_v1 = vpop.f32.mrf.mxu2 }
 0x369   : > { %v2973_v63 = vpop.f32.mrf.mxu3  ;;  %v9858_v42 = vadd.f32 %v2914_v1, %v2820_v31  ;;  %v2725_v52 = vpop.f32.mrf.mxu0  ;;  %v3042_v31 = vld [vmem:[%s7430_s22 + $0x150] sm:$0xff]  ;;  %v6544_v1 = vld [vmem:[%s12492_s1 + $0x228] sm:$0xff] }
 0x36a   : > { %v9860_v5 = vadd.f32 %v2973_v63, %v2821_v55  ;;  %v2784_v7 = vpop.f32.mrf.mxu1  ;;  %v2822_v14 = vadd.f32 %v2725_v52, %v9558_v59  ;;  %v3288_v59 = vld [vmem:[%s12492_s1 + $0x30] sm:$0xff]  ;;  %v6543_v55 = vld [vmem:[%s12492_s1 + $0x220] sm:$0xff]  ;;  %3714 = vmatpush.msra.mxu3 %v6544_v1  ;;  %v6542_v52 = vld [vmem:[%s12492_s1 + $0x218] sm:$0xff] }
 0x36b   : > { %v2823_v60 = vadd.f32 %v2784_v7, %v9560_v40  ;;  %v3289_v40 = vld [vmem:[%s12492_s1 + $0x38] sm:$0xff]  ;;  %3490 = vmatpush.msra.mxu0 %v3288_v59  ;;  %3655 = vmatpush.msra.mxu2 %v6543_v55  ;;  %v6541_v63 = vld [vmem:[%s12492_s1 + $0x210] sm:$0xff] }
 0x36c   : > { %3114 = vmatmul.f32.gmra.mxu0 %v3040_v24  ;;  %3173 = vmatmul.f32.gmra.mxu1 %v3040_v24 }
 0x36d   : > { %3394 = vmatmul.f32.gmra.mxu2 %v9541_v10  ;;  %3549 = vmatpush.msra.mxu1 %v3289_v40 }
 0x36e   : > { %3453 = vmatmul.f32.gmra.mxu3 %v9541_v10  ;;  %3656 = vmatpush.msra.mxu2 %v6541_v63  ;;  %v6601_v63 = vld [vmem:[%s12492_s1 + $0x3f0] sm:$0xff] }
 0x36f   : > { %3715 = vmatpush.msra.mxu3 %v6542_v52  ;;  %v6602_v52 = vld [vmem:[%s12492_s1 + $0x3f8] sm:$0xff] }
 0x370   : > { %v2917_v38 = vpop.f32.mrf.mxu2 }
 0x371   : > { %v2976_v32 = vpop.f32.mrf.mxu3  ;;  %v9879_v37 = vadd.f32 %v2917_v38, %v2822_v14  ;;  %v2728_v10 = vpop.f32.mrf.mxu0  ;;  %v3284_v38 = vld [vmem:[%s12492_s1 + $0x10] sm:$0xff] }
 0x372   : > { %v9881_v9 = vadd.f32 %v2976_v32, %v2823_v60  ;;  %v2787_v47 = vpop.f32.mrf.mxu1  ;;  %v2824_v2 = vadd.f32 %v2728_v10, %v9583_v19  ;;  %v3286_v19 = vld [vmem:[%s12492_s1 + $0x20] sm:$0xff]  ;;  %v3043_v60 = vld [vmem:[%s7430_s22 + $0x170] sm:$0xff]  ;;  %v3285_v32 = vld [vmem:[%s12492_s1 + $0x18] sm:$0xff] }
 0x373   : > { %v2825_v11 = vadd.f32 %v2787_v47, %v9585_v39  ;;  %v3287_v39 = vld [vmem:[%s12492_s1 + $0x28] sm:$0xff]  ;;  %3491 = vmatpush.msra.mxu0 %v3286_v19 }
 0x374   : > { %3117 = vmatmul.f32.gmra.mxu0 %v3041_v16  ;;  %3176 = vmatmul.f32.gmra.mxu1 %v3041_v16 }
 0x375   : > { %3397 = vmatmul.f32.gmra.mxu2 %v9563_v22  ;;  %3550 = vmatpush.msra.mxu1 %v3287_v39  ;;  %v3045_v39 = vld [vmem:[%s7430_s22 + $0x1b0] sm:$0xff] }
 0x376   : > { %3456 = vmatmul.f32.gmra.mxu3 %v9563_v22  ;;  %3492 = vmatpush.msra.mxu0 %v3284_v38 }
 0x377   : > { %3551 = vmatpush.msra.mxu1 %v3285_v32  ;;  %v3046_v32 = vld [vmem:[%s7430_s22 + $0x1d0] sm:$0xff] }
 0x378   : > { %v2920_v3 = vpop.f32.mrf.mxu2 }
 0x379   : > { %v2979_v26 = vpop.f32.mrf.mxu3  ;;  %v9900_v49 = vadd.f32 %v2920_v3, %v2824_v2  ;;  %v2731_v22 = vpop.f32.mrf.mxu0  ;;  %v3044_v2 = vld [vmem:[%s7430_s22 + $0x190] sm:$0xff]  ;;  %v3283_v3 = vld [vmem:[%s12492_s1 + $0x8] sm:$0xff] }
 0x37a   : > { %v9902_v0 = vadd.f32 %v2979_v26, %v2825_v11  ;;  %v2790_v41 = vpop.f32.mrf.mxu1  ;;  %v2826_v7 = vadd.f32 %v2731_v22, %v9608_v25  ;;  %v6539_v25 = vld [vmem:[%s12492_s1 + $0x200] sm:$0xff]  ;;  %3552 = vmatpush.msra.mxu1 %v3283_v3  ;;  %v3047_v3 = vld [vmem:[%s7430_s22 + $0x1f0] sm:$0xff] }
 0x37b   : > { %v2827_v24 = vadd.f32 %v2790_v41, %v9610_v62  ;;  %v6540_v62 = vld [vmem:[%s12492_s1 + $0x208] sm:$0xff]  ;;  %3657 = vmatpush.msra.mxu2 %v6539_v25  ;;  %v3282_v11 = vld [vmem:[%s12492_s1] sm:$0xff] }
 0x37c   : > { %3120 = vmatmul.f32.gmra.mxu0 %v3042_v31  ;;  %3179 = vmatmul.f32.gmra.mxu1 %v3042_v31  ;;  %v6599_v25 = vld [vmem:[%s12492_s1 + $0x3e0] sm:$0xff] }
 0x37d   : > { %3400 = vmatmul.f32.gmra.mxu2 %v9581_v43  ;;  %3716 = vmatpush.msra.mxu3 %v6540_v62  ;;  %v6597_v62 = vld [vmem:[%s12492_s1 + $0x3d0] sm:$0xff] }
 0x37e   : > { %3459 = vmatmul.f32.gmra.mxu3 %v9581_v43  ;;  %3493 = vmatpush.msra.mxu0 %v3282_v11 }
 0x37f   : > { %3893 = vmatpush.msrb.mxu1 %v6602_v52  ;;  %v3596_v52 = vld [vmem:[%s7430_s22 + $0x48] sm:$0xff] }
 0x380   : > { %v2923_v28 = vpop.f32.mrf.mxu2  ;;  %3834 = vmatpush.msrb.mxu0 %v6601_v63  ;;  %v3268_v63 = vld [vmem:[%s7430_s22 + $0x18] sm:$0xff] }
 0x381   : > { %v2982_v61 = vpop.f32.mrf.mxu3  ;;  %v9927_v44 = vadd.f32 %v2923_v28, %v2826_v7  ;;  %v2734_v43 = vpop.f32.mrf.mxu0 }
 0x382   : > { %v9929_v48 = vadd.f32 %v2982_v61, %v2827_v24  ;;  %v2793_v14 = vpop.f32.mrf.mxu1  ;;  %v2828_v10 = vadd.f32 %v2734_v43, %v9630_v34  ;;  %v6633_v34 = vld [vmem:[%s12492_s1 + $0x4f0] sm:$0xff]  ;;  %3835 = vmatpush.msrb.mxu0 %v6599_v25 }
 0x383   : > { %v2829_v47 = vadd.f32 %v2793_v14, %v9632_v45  ;;  %v6634_v45 = vld [vmem:[%s12492_s1 + $0x4f8] sm:$0xff]  ;;  %4026 = vmatpush.msrb.mxu2 %v6633_v34  ;;  %v6595_v34 = vld [vmem:[%s12492_s1 + $0x3c0] sm:$0xff] }
 0x384   : > { %3123 = vmatmul.f32.gmra.mxu0 %v3043_v60  ;;  %3182 = vmatmul.f32.gmra.mxu1 %v3043_v60 }
 0x385   : > { %3403 = vmatmul.f32.gmra.mxu2 %v9613_v51  ;;  %4085 = vmatpush.msrb.mxu3 %v6634_v45 }
 0x386   : > { %3462 = vmatmul.f32.gmra.mxu3 %v9613_v51  ;;  %3836 = vmatpush.msrb.mxu0 %v6597_v62  ;;  %v6592_v62 = vld [vmem:[%s12492_s1 + $0x3a8] sm:$0xff] }
 0x388   : > { %v2926_v16 = vpop.f32.mrf.mxu2  ;;  %3837 = vmatpush.msrb.mxu0 %v6595_v34 }
 0x389   : > { %v2985_v29 = vpop.f32.mrf.mxu3  ;;  %v9948_v57 = vadd.f32 %v2926_v16, %v2828_v10  ;;  %v2737_v51 = vpop.f32.mrf.mxu0 }
 0x38a   : > { %v9950_v59 = vadd.f32 %v2985_v29, %v2829_v47  ;;  %v2796_v40 = vpop.f32.mrf.mxu1  ;;  %v2830_v26 = vadd.f32 %v2737_v51, %v9655_v27  ;;  %v6631_v27 = vld [vmem:[%s12492_s1 + $0x4e0] sm:$0xff] }
 0x38b   : > { %v2831_v22 = vadd.f32 %v2796_v40, %v9657_v18  ;;  %v6632_v18 = vld [vmem:[%s12492_s1 + $0x4e8] sm:$0xff]  ;;  %4027 = vmatpush.msrb.mxu2 %v6631_v27  ;;  %v6593_v27 = vld [vmem:[%s12492_s1 + $0x3b0] sm:$0xff] }
 0x38c   : > { %3126 = vmatmul.f32.gmra.mxu0 %v3044_v2  ;;  %3185 = vmatmul.f32.gmra.mxu1 %v3044_v2 }
 0x38d   : > { %3406 = vmatmul.f32.gmra.mxu2 %v9635_v50  ;;  %4086 = vmatpush.msrb.mxu3 %v6632_v18  ;;  %v6594_v18 = vld [vmem:[%s12492_s1 + $0x3b8] sm:$0xff] }
 0x38e   : > { %3465 = vmatmul.f32.gmra.mxu3 %v9635_v50  ;;  %3838 = vmatpush.msrb.mxu0 %v6593_v27  ;;  %v3599_v27 = vld [vmem:[%s7430_s22 + $0xa8] sm:$0xff] }
 0x390   : > { %v2929_v41 = vpop.f32.mrf.mxu2 }
 0x391   : > { %v2988_v31 = vpop.f32.mrf.mxu3  ;;  %v9969_v55 = vadd.f32 %v2929_v41, %v2830_v26  ;;  %v2740_v50 = vpop.f32.mrf.mxu0 }
 0x392   : > { %v9971_v1 = vadd.f32 %v2988_v31, %v2831_v22  ;;  %v2799_v19 = vpop.f32.mrf.mxu1  ;;  %v2832_v7 = vadd.f32 %v2740_v50, %v9674_v58  ;;  %v6629_v58 = vld [vmem:[%s12492_s1 + $0x4d0] sm:$0xff] }
 0x393   : > { %v2833_v24 = vadd.f32 %v2799_v19, %v9676_v8  ;;  %v6630_v8 = vld [vmem:[%s12492_s1 + $0x4d8] sm:$0xff]  ;;  %4028 = vmatpush.msrb.mxu2 %v6629_v58  ;;  %v6625_v31 = vld [vmem:[%s12492_s1 + $0x4b0] sm:$0xff] }
 0x394   : > { %3129 = vmatmul.f32.gmra.mxu0 %v3045_v39  ;;  %3188 = vmatmul.f32.gmra.mxu1 %v3045_v39  ;;  %v3269_v58 = vld [vmem:[%s7430_s22 + $0x38] sm:$0xff] }
 0x395   : > { %3409 = vmatmul.f32.gmra.mxu2 %v9653_v56  ;;  %4087 = vmatpush.msrb.mxu3 %v6630_v8  ;;  %v6591_v8 = vld [vmem:[%s12492_s1 + $0x3a0] sm:$0xff] }
 0x396   : > { %3468 = vmatmul.f32.gmra.mxu3 %v9653_v56  ;;  %v6600_v56 = vld [vmem:[%s12492_s1 + $0x3e8] sm:$0xff]  ;;  %3839 = vmatpush.msrb.mxu0 %v6591_v8 }
 0x397   : > { %3894 = vmatpush.msrb.mxu1 %v6600_v56 }
 0x398   : > { %v2932_v28 = vpop.f32.mrf.mxu2 }
 0x399   : > { %v2991_v61 = vpop.f32.mrf.mxu3  ;;  %v9990_v43 = vadd.f32 %v2932_v28, %v2832_v7  ;;  %v2743_v60 = vpop.f32.mrf.mxu0 }
 0x39a   : > { %v9992_v14 = vadd.f32 %v2991_v61, %v2833_v24  ;;  %v2802_v38 = vpop.f32.mrf.mxu1  ;;  %v2834_v10 = vadd.f32 %v2743_v60, %v9702_v17  ;;  %v6627_v17 = vld [vmem:[%s12492_s1 + $0x4c0] sm:$0xff] }
 0x39b   : > { %v2835_v47 = vadd.f32 %v2802_v38, %v9704_v21  ;;  %v6628_v21 = vld [vmem:[%s12492_s1 + $0x4c8] sm:$0xff]  ;;  %4029 = vmatpush.msrb.mxu2 %v6627_v17  ;;  %v6623_v60 = vld [vmem:[%s12492_s1 + $0x4a0] sm:$0xff] }
 0x39c   : > { %3132 = vmatmul.f32.gmra.mxu0 %v3046_v32  ;;  %3191 = vmatmul.f32.gmra.mxu1 %v3046_v32  ;;  %v6624_v38 = vld [vmem:[%s12492_s1 + $0x4a8] sm:$0xff] }
 0x39d   : > { %3412 = vmatmul.f32.gmra.mxu2 %v9679_v35  ;;  %4088 = vmatpush.msrb.mxu3 %v6628_v21 }
 0x39e   : > { %3471 = vmatmul.f32.gmra.mxu3 %v9679_v35  ;;  %v6598_v35 = vld [vmem:[%s12492_s1 + $0x3d8] sm:$0xff]  ;;  %4030 = vmatpush.msrb.mxu2 %v6625_v31 }
 0x39f   : > { %3895 = vmatpush.msrb.mxu1 %v6598_v35 }
 0x3a0   : > { %v2935_v16 = vpop.f32.mrf.mxu2  ;;  %4031 = vmatpush.msrb.mxu2 %v6623_v60  ;;  %v6585_v60 = vld [vmem:[%s12492_s1 + $0x370] sm:$0xff] }
 0x3a1   : > { %v2994_v29 = vpop.f32.mrf.mxu3  ;;  %v10017_v51 = vadd.f32 %v2935_v16, %v2834_v10  ;;  %v2746_v2 = vpop.f32.mrf.mxu0  ;;  %v6621_v10 = vld [vmem:[%s12492_s1 + $0x490] sm:$0xff]  ;;  %v6622_v16 = vld [vmem:[%s12492_s1 + $0x498] sm:$0xff] }
 0x3a2   : > { %v10019_v40 = vadd.f32 %v2994_v29, %v2835_v47  ;;  %v2805_v11 = vpop.f32.mrf.mxu1  ;;  %v2836_v45 = vadd.f32 %v2746_v2, %v9724_v6  ;;  %v6626_v6 = vld [vmem:[%s12492_s1 + $0x4b8] sm:$0xff]  ;;  %4032 = vmatpush.msrb.mxu2 %v6621_v10 }
 0x3a3   : > { %v2837_v26 = vadd.f32 %v2805_v11, %v9726_v33  ;;  %4089 = vmatpush.msrb.mxu3 %v6626_v6 }
 0x3a4   : > { %3135 = vmatmul.f32.gmra.mxu0 %v3047_v3  ;;  %3194 = vmatmul.f32.gmra.mxu1 %v3047_v3 }
 0x3a5   : > { %3415 = vmatmul.f32.gmra.mxu2 %v9707_v54  ;;  %4090 = vmatpush.msrb.mxu3 %v6624_v38  ;;  %v6586_v38 = vld [vmem:[%s12492_s1 + $0x378] sm:$0xff] }
 0x3a6   : > { %3474 = vmatmul.f32.gmra.mxu3 %v9707_v54  ;;  %v6596_v54 = vld [vmem:[%s12492_s1 + $0x3c8] sm:$0xff] }
 0x3a7   : > { %3896 = vmatpush.msrb.mxu1 %v6596_v54  ;;  %4091 = vmatpush.msrb.mxu3 %v6622_v16  ;;  %v6589_v54 = vld [vmem:[%s12492_s1 + $0x390] sm:$0xff]  ;;  %v6583_v16 = vld [vmem:[%s12492_s1 + $0x360] sm:$0xff] }
 0x3a8   : > { %v2938_v22 = vpop.f32.mrf.mxu2  ;;  %3840 = vmatpush.msrb.mxu0 %v6589_v54  ;;  %v6613_v54 = vld [vmem:[%s12492_s1 + $0x450] sm:$0xff] }
 0x3a9   : > { %v2997_v41 = vpop.f32.mrf.mxu3  ;;  %v10044_v33 = vadd.f32 %v2938_v22, %v2836_v45  ;;  %v2749_v19 = vpop.f32.mrf.mxu0  ;;  %3897 = vmatpush.msrb.mxu1 %v6594_v18  ;;  %v3598_v45 = vld [vmem:[%s7430_s22 + $0x88] sm:$0xff] }
 0x3aa   : > { %v10046_v50 = vadd.f32 %v2997_v41, %v2837_v26  ;;  %v2808_v39 = vpop.f32.mrf.mxu1  ;;  %v2838_v7 = vadd.f32 %v2749_v19, %v9743_v12  ;;  %v6620_v22 = vld [vmem:[%s12492_s1 + $0x488] sm:$0xff] }
 0x3ab   : > { %v2839_v24 = vadd.f32 %v2808_v39, %v9745_v20  ;;  %v3597_v20 = vld [vmem:[%s7430_s22 + $0x68] sm:$0xff]  ;;  %3898 = vmatpush.msrb.mxu1 %v6592_v62  ;;  %4092 = vmatpush.msrb.mxu3 %v6620_v22  ;;  %v10114_v39 = vld [vmem:[%s7430_s22 + $0x78] sm:$0xff] }
 0x3ac   : > { %3494 = vmatmul.f32.vlgmr.msra.gmra.mxu0 %v3268_v63  ;;  %3553 = vmatmul.f32.vlgmr.msra.gmra.mxu1 %v3268_v63  ;;  %v3600_v62 = vld [vmem:[%s7430_s22 + $0xc8] sm:$0xff] }
 0x3ad   : > { %3658 = vmatmul.f32.vlgmr.msra.gmra.mxu2 %v3596_v52 }
 0x3ae   : > { %3717 = vmatmul.f32.vlgmr.msra.gmra.mxu3 %v3596_v52 }
 0x3b0   : > { %v2941_v28 = vpop.f32.mrf.mxu2 }
 0x3b1   : > { %v3000_v61 = vpop.f32.mrf.mxu3  ;;  %v10064_v32 = vadd.f32 %v2941_v28, %v2838_v7  ;;  %v2752_v56 = vpop.f32.mrf.mxu0  ;;  %v6587_v7 = vld [vmem:[%s12492_s1 + $0x380] sm:$0xff] }
 0x3b2   : > { %v10066_v25 = vadd.f32 %v3000_v61, %v2839_v24  ;;  %v2811_v12 = vpop.f32.mrf.mxu1  ;;  %v2840_v47 = vadd.f32 %v2752_v56, %v9768_v36  ;;  %v10089_v36 = vld [vmem:[%s7430_s22 + $0x58] sm:$0xff]  ;;  %3841 = vmatpush.msrb.mxu0 %v6587_v7 }
 0x3b3   : > { %v2841_v35 = vadd.f32 %v2811_v12, %v9770_v15  ;;  %v6618_v24 = vld [vmem:[%s12492_s1 + $0x478] sm:$0xff] }
 0x3b4   : > { %3497 = vmatmul.f32.gmra.mxu0 %v3269_v58  ;;  %3556 = vmatmul.f32.gmra.mxu1 %v3269_v58  ;;  %v10145_v58 = vld [vmem:[%s7430_s22 + $0x98] sm:$0xff] }
 0x3b5   : > { %3661 = vmatmul.f32.gmra.mxu2 %v3597_v20  ;;  %4093 = vmatpush.msrb.mxu3 %v6618_v24 }
 0x3b6   : > { %3720 = vmatmul.f32.gmra.mxu3 %v3597_v20  ;;  %3842 = vmatpush.msrb.mxu0 %v6585_v60 }
 0x3b8   : > { %v2944_v29 = vpop.f32.mrf.mxu2  ;;  %3843 = vmatpush.msrb.mxu0 %v6583_v16  ;;  %v6577_v16 = vld [vmem:[%s12492_s1 + $0x330] sm:$0xff] }
 0x3b9   : > { %v3003_v2 = vpop.f32.mrf.mxu3  ;;  %v10084_v11 = vadd.f32 %v2944_v29, %v2840_v47  ;;  %v3097_v17 = vpop.f32.mrf.mxu0  ;;  %v6615_v47 = vld [vmem:[%s12492_s1 + $0x460] sm:$0xff]  ;;  %v6584_v29 = vld [vmem:[%s12492_s1 + $0x368] sm:$0xff] }
 0x3ba   : > { %v10086_v3 = vadd.f32 %v3003_v2, %v2841_v35  ;;  %v3156_v21 = vpop.f32.mrf.mxu1  ;;  %v3198_v15 = vadd.f32 %v3097_v17, %v9789_v53  ;;  %v6590_v53 = vld [vmem:[%s12492_s1 + $0x398] sm:$0xff] }
 0x3bb   : > { %v3199_v34 = vadd.f32 %v3156_v21, %v9791_v13  ;;  %v6619_v13 = vld [vmem:[%s12492_s1 + $0x480] sm:$0xff]  ;;  %3899 = vmatpush.msrb.mxu1 %v6590_v53  ;;  %v10170_v21 = vld [vmem:[%s7430_s22 + $0xb8] sm:$0xff] }
 0x3bc   : > { %3500 = vmatmul.f32.gmra.mxu0 %v10089_v36  ;;  %3559 = vmatmul.f32.gmra.mxu1 %v10089_v36  ;;  %v6582_v53 = vld [vmem:[%s12492_s1 + $0x358] sm:$0xff] }
 0x3bd   : > { %v3226_v26 = vmax.f32 %v3198_v15, %v3199_v34  ;;  %3664 = vmatmul.f32.gmra.mxu2 %v3598_v45 }
 0x3be   : > { %3723 = vmatmul.f32.gmra.mxu3 %v3598_v45  ;;  %4033 = vmatpush.msrb.mxu2 %v6619_v13  ;;  %v3601_v45 = vld [vmem:[%s7430_s22 + $0xe8] sm:$0xff] }
 0x3bf   : > { %3240 = vst.msk [vmem:[#allocation3] sm:$0xff] %vm1316_vm0, %v3226_v26 }
 0x3c0   : > { %v10109_v41 = vpop.f32.mrf.mxu2 }
 0x3c1   : > { %v10111_v31 = vpop.f32.mrf.mxu3  ;;  %v3100_v6 = vpop.f32.mrf.mxu0 }
 0x3c2   : > { %v3159_v19 = vpop.f32.mrf.mxu1  ;;  %v3200_v63 = vadd.f32 %v3100_v6, %v9810_v30  ;;  %v6588_v30 = vld [vmem:[%s12492_s1 + $0x388] sm:$0xff] }
 0x3c3   : > { %v3201_v52 = vadd.f32 %v3159_v19, %v9812_v23  ;;  %v6617_v23 = vld [vmem:[%s12492_s1 + $0x470] sm:$0xff]  ;;  %3900 = vmatpush.msrb.mxu1 %v6588_v30  ;;  %v6611_v30 = vld [vmem:[%s12492_s1 + $0x440] sm:$0xff] }
 0x3c4   : > { %3503 = vmatmul.f32.gmra.mxu0 %v10114_v39  ;;  %3562 = vmatmul.f32.gmra.mxu1 %v10114_v39 }
 0x3c5   : > { %v3227_v18 = vmax.f32 %v3200_v63, %v3201_v52  ;;  %3667 = vmatmul.f32.gmra.mxu2 %v3599_v27  ;;  %3901 = vmatpush.msrb.mxu1 %v6586_v38  ;;  %v10195_v63 = vld [vmem:[%s7430_s22 + $0xd8] sm:$0xff]  ;;  %v6609_v38 = vld [vmem:[%s12492_s1 + $0x430] sm:$0xff] }
 0x3c6   : > { %3726 = vmatmul.f32.gmra.mxu3 %v3599_v27  ;;  %4034 = vmatpush.msrb.mxu2 %v6617_v23  ;;  %v6580_v23 = vld [vmem:[%s12492_s1 + $0x348] sm:$0xff] }
 0x3c7   : > { %3241 = vst.msk [vmem:[#allocation3 + $0x8] sm:$0xff] %vm1316_vm0, %v3227_v18  ;;  %3902 = vmatpush.msrb.mxu1 %v6584_v29  ;;  %v3602_v18 = vld [vmem:[%s7430_s22 + $0x108] sm:$0xff] }
 0x3c8   : > { %v10134_v28 = vpop.f32.mrf.mxu2  ;;  %4035 = vmatpush.msrb.mxu2 %v6615_v47  ;;  %v3603_v47 = vld [vmem:[%s7430_s22 + $0x128] sm:$0xff] }
 0x3c9   : > { %v10136_v61 = vpop.f32.mrf.mxu3  ;;  %v3103_v56 = vpop.f32.mrf.mxu0  ;;  %3903 = vmatpush.msrb.mxu1 %v6582_v53  ;;  %v6575_v53 = vld [vmem:[%s12492_s1 + $0x320] sm:$0xff] }
 0x3ca   : > { %v3162_v12 = vpop.f32.mrf.mxu1  ;;  %v3202_v20 = vadd.f32 %v3103_v56, %v9831_v46  ;;  %v6616_v46 = vld [vmem:[%s12492_s1 + $0x468] sm:$0xff]  ;;  %4036 = vmatpush.msrb.mxu2 %v6613_v54  ;;  %v6610_v56 = vld [vmem:[%s12492_s1 + $0x438] sm:$0xff] }
 0x3cb   : > { %v3203_v8 = vadd.f32 %v3162_v12, %v9833_v4  ;;  %4094 = vmatpush.msrb.mxu3 %v6616_v46  ;;  %3904 = vmatpush.msrb.mxu1 %v6580_v23 }
 0x3cc   : > { %3506 = vmatmul.f32.gmra.mxu0 %v10145_v58  ;;  %3565 = vmatmul.f32.gmra.mxu1 %v10145_v58 }
 0x3cd   : > { %v3228_v10 = vmax.f32 %v3202_v20, %v3203_v8  ;;  %3670 = vmatmul.f32.gmra.mxu2 %v3600_v62  ;;  %v10226_v8 = vld [vmem:[%s7430_s22 + $0xf8] sm:$0xff] }
 0x3ce   : > { %3729 = vmatmul.f32.gmra.mxu3 %v3600_v62  ;;  %4037 = vmatpush.msrb.mxu2 %v6611_v30 }
 0x3cf   : > { %3242 = vst.msk [vmem:[#allocation3 + $0x10] sm:$0xff] %vm1316_vm0, %v3228_v10 }
 0x3d0   : > { %v10159_v4 = vpop.f32.mrf.mxu2  ;;  %4038 = vmatpush.msrb.mxu2 %v6609_v38  ;;  %v6573_v38 = vld [vmem:[%s12492_s1 + $0x310] sm:$0xff] }
 0x3d1   : > { %v10161_v35 = vpop.f32.mrf.mxu3  ;;  %v3106_v2 = vpop.f32.mrf.mxu0 }
 0x3d2   : > { %v3165_v17 = vpop.f32.mrf.mxu1  ;;  %v3204_v15 = vadd.f32 %v3106_v2, %v9858_v42  ;;  %v6614_v42 = vld [vmem:[%s12492_s1 + $0x458] sm:$0xff]  ;;  %v6607_v2 = vld [vmem:[%s12492_s1 + $0x420] sm:$0xff] }
 0x3d3   : > { %v3205_v34 = vadd.f32 %v3165_v17, %v9860_v5  ;;  %v6581_v5 = vld [vmem:[%s12492_s1 + $0x350] sm:$0xff]  ;;  %4095 = vmatpush.msrb.mxu3 %v6614_v42  ;;  %v6608_v17 = vld [vmem:[%s12492_s1 + $0x428] sm:$0xff]  ;;  %4039 = vmatpush.msrb.mxu2 %v6607_v2  ;;  %v6571_v2 = vld [vmem:[%s12492_s1 + $0x300] sm:$0xff] }
 0x3d4   : > { %3509 = vmatmul.f32.gmra.mxu0 %v10170_v21  ;;  %3568 = vmatmul.f32.gmra.mxu1 %v10170_v21  ;;  %v3604_v42 = vld [vmem:[%s7430_s22 + $0x148] sm:$0xff] }
 0x3d5   : > { %v3229_v26 = vmax.f32 %v3204_v15, %v3205_v34  ;;  %3673 = vmatmul.f32.gmra.mxu2 %v3601_v45  ;;  %3844 = vmatpush.msrb.mxu0 %v6581_v5 }
 0x3d6   : > { %3732 = vmatmul.f32.gmra.mxu3 %v3601_v45  ;;  %v10251_v45 = vld [vmem:[%s7430_s22 + $0x118] sm:$0xff] }
 0x3d7   : > { %3243 = vst.msk [vmem:[#allocation3 + $0x18] sm:$0xff] %vm1316_vm0, %v3229_v26 }
 0x3d8   : > { %v10190_v13 = vpop.f32.mrf.mxu2 }
 0x3d9   : > { %v10192_v22 = vpop.f32.mrf.mxu3  ;;  %v3109_v6 = vpop.f32.mrf.mxu0 }
 0x3da   : > { %v3168_v19 = vpop.f32.mrf.mxu1  ;;  %v3206_v52 = vadd.f32 %v3109_v6, %v9879_v37  ;;  %v6612_v37 = vld [vmem:[%s12492_s1 + $0x448] sm:$0xff]  ;;  %v6606_v6 = vld [vmem:[%s12492_s1 + $0x418] sm:$0xff] }
 0x3db   : > { %v3207_v27 = vadd.f32 %v3168_v19, %v9881_v9  ;;  %v6579_v9 = vld [vmem:[%s12492_s1 + $0x340] sm:$0xff]  ;;  %4096 = vmatpush.msrb.mxu3 %v6612_v37 }
 0x3dc   : > { %3512 = vmatmul.f32.gmra.mxu0 %v10195_v63  ;;  %3571 = vmatmul.f32.gmra.mxu1 %v10195_v63 }
 0x3dd   : > { %v3230_v7 = vmax.f32 %v3206_v52, %v3207_v27  ;;  %3676 = vmatmul.f32.gmra.mxu2 %v3602_v18  ;;  %3845 = vmatpush.msrb.mxu0 %v6579_v9  ;;  %v3605_v9 = vld [vmem:[%s7430_s22 + $0x168] sm:$0xff] }
 0x3de   : > { %3735 = vmatmul.f32.gmra.mxu3 %v3602_v18 }
 0x3df   : > { %3244 = vst.msk [vmem:[#allocation3 + $0x20] sm:$0xff] %vm1316_vm0, %v3230_v7  ;;  %4097 = vmatpush.msrb.mxu3 %v6610_v56  ;;  %3846 = vmatpush.msrb.mxu0 %v6577_v16  ;;  %v10276_v7 = vld [vmem:[%s7430_s22 + $0x138] sm:$0xff]  ;;  %v6604_v56 = vld [vmem:[%s12492_s1 + $0x408] sm:$0xff] }
 0x3e0   : > { %v10215_v24 = vpop.f32.mrf.mxu2 }
 0x3e1   : > { %v10217_v60 = vpop.f32.mrf.mxu3  ;;  %v3112_v12 = vpop.f32.mrf.mxu0  ;;  %4098 = vmatpush.msrb.mxu3 %v6608_v17  ;;  %3847 = vmatpush.msrb.mxu0 %v6575_v53  ;;  %v6572_v17 = vld [vmem:[%s12492_s1 + $0x308] sm:$0xff] }
 0x3e2   : > { %v3171_v20 = vpop.f32.mrf.mxu1  ;;  %v3208_v62 = vadd.f32 %v3112_v12, %v9900_v49  ;;  %v6578_v49 = vld [vmem:[%s12492_s1 + $0x338] sm:$0xff]  ;;  %v3607_v53 = vld [vmem:[%s7430_s22 + $0x1a8] sm:$0xff] }
 0x3e3   : > { %v3209_v10 = vadd.f32 %v3171_v20, %v9902_v0  ;;  %3905 = vmatpush.msrb.mxu1 %v6578_v49  ;;  %4099 = vmatpush.msrb.mxu3 %v6606_v6  ;;  %v3606_v49 = vld [vmem:[%s7430_s22 + $0x188] sm:$0xff] }
 0x3e4   : > { %3515 = vmatmul.f32.gmra.mxu0 %v10226_v8  ;;  %3574 = vmatmul.f32.gmra.mxu1 %v10226_v8 }
 0x3e5   : > { %v3231_v46 = vmax.f32 %v3208_v62, %v3209_v10  ;;  %3679 = vmatmul.f32.gmra.mxu2 %v3603_v47  ;;  %3848 = vmatpush.msrb.mxu0 %v6573_v38 }
 0x3e6   : > { %3738 = vmatmul.f32.gmra.mxu3 %v3603_v47  ;;  %v10301_v47 = vld [vmem:[%s7430_s22 + $0x158] sm:$0xff] }
 0x3e7   : > { %3245 = vst.msk [vmem:[#allocation3 + $0x28] sm:$0xff] %vm1316_vm0, %v3231_v46  ;;  %4100 = vmatpush.msrb.mxu3 %v6604_v56  ;;  %3849 = vmatpush.msrb.mxu0 %v6571_v2 }
 0x3e8   : > { %v10240_v0 = vpop.f32.mrf.mxu2 }
 0x3e9   : > { %v10242_v29 = vpop.f32.mrf.mxu3  ;;  %v3115_v15 = vpop.f32.mrf.mxu0 }
 0x3ea   : > { %v3174_v34 = vpop.f32.mrf.mxu1  ;;  %v3210_v26 = vadd.f32 %v3115_v15, %v9927_v44  ;;  %v6576_v44 = vld [vmem:[%s12492_s1 + $0x328] sm:$0xff] }
 0x3eb   : > { %v3211_v54 = vadd.f32 %v3174_v34, %v9929_v48  ;;  %v6605_v48 = vld [vmem:[%s12492_s1 + $0x410] sm:$0xff]  ;;  %3906 = vmatpush.msrb.mxu1 %v6576_v44 }
 0x3ec   : > { %3518 = vmatmul.f32.gmra.mxu0 %v10251_v45  ;;  %3577 = vmatmul.f32.gmra.mxu1 %v10251_v45 }
 0x3ed   : > { %v3232_v5 = vmax.f32 %v3210_v26, %v3211_v54  ;;  %3682 = vmatmul.f32.gmra.mxu2 %v3604_v42  ;;  %v10320_v54 = vld [vmem:[%s7430_s22 + $0x178] sm:$0xff] }
 0x3ee   : > { %3741 = vmatmul.f32.gmra.mxu3 %v3604_v42  ;;  %4040 = vmatpush.msrb.mxu2 %v6605_v48 }
 0x3ef   : > { %3246 = vst.msk [vmem:[#allocation3 + $0x30] sm:$0xff] %vm1316_vm0, %v3232_v5 }
 0x3f0   : > { %v10271_v19 = vpop.f32.mrf.mxu2 }
 0x3f1   : > { %v10273_v52 = vpop.f32.mrf.mxu3  ;;  %v3118_v27 = vpop.f32.mrf.mxu0 }
 0x3f2   : > { %v3177_v18 = vpop.f32.mrf.mxu1  ;;  %v3212_v30 = vadd.f32 %v3118_v27, %v9948_v57  ;;  %v6574_v57 = vld [vmem:[%s12492_s1 + $0x318] sm:$0xff] }
 0x3f3   : > { %v3213_v37 = vadd.f32 %v3177_v18, %v9950_v59  ;;  %v6603_v59 = vld [vmem:[%s12492_s1 + $0x400] sm:$0xff]  ;;  %3907 = vmatpush.msrb.mxu1 %v6574_v57  ;;  %v10333_v18 = vld [vmem:[%s7430_s22 + $0x198] sm:$0xff] }
 0x3f4   : > { %3521 = vmatmul.f32.gmra.mxu0 %v10276_v7  ;;  %3580 = vmatmul.f32.gmra.mxu1 %v10276_v7 }
 0x3f5   : > { %v3233_v23 = vmax.f32 %v3212_v30, %v3213_v37  ;;  %3685 = vmatmul.f32.gmra.mxu2 %v3605_v9  ;;  %3908 = vmatpush.msrb.mxu1 %v6572_v17  ;;  %v3608_v37 = vld [vmem:[%s7430_s22 + $0x1c8] sm:$0xff]  ;;  %v3788_v17 = vld [vmem:[%s7430_s22 + $0x50] sm:$0xff] }
 0x3f6   : > { %3744 = vmatmul.f32.gmra.mxu3 %v3605_v9  ;;  %4041 = vmatpush.msrb.mxu2 %v6603_v59  ;;  %v10346_v59 = vld [vmem:[%s7430_s22 + $0x1b8] sm:$0xff] }
 0x3f7   : > { %3247 = vst.msk [vmem:[#allocation3 + $0x38] sm:$0xff] %vm1316_vm0, %v3233_v23 }
 0x3f8   : > { %v10296_v12 = vpop.f32.mrf.mxu2 }
 0x3f9   : > { %12594 = vst [vmem:[#allocation15_spill] sm:$0xff] %v10296_v12  ;;  %v10298_v20 = vpop.f32.mrf.mxu3  ;;  %v3121_v62 = vpop.f32.mrf.mxu0  ;;  %v10586_v12 = vld [vmem:[%s12494_s3 + $0xf8] sm:$0xff] }
 0x3fa   : > { %12595 = vst [vmem:[#allocation4_spill] sm:$0xff] %v10298_v20  ;;  %v3180_v10 = vpop.f32.mrf.mxu1  ;;  %v3214_v46 = vadd.f32 %v3121_v62, %v9969_v55  ;;  %v3609_v62 = vld [vmem:[%s7430_s22 + $0x1e8] sm:$0xff]  ;;  %v3797_v20 = vld [vmem:[%s7430_s22 + $0x170] sm:$0xff] }
 0x3fb   : > { %v3215_v16 = vadd.f32 %v3180_v10, %v9971_v1  ;;  %12614 = vst [vmem:[#allocation28_spill] sm:$0xff] %v10586_v12 }
 0x3fc   : > { %3524 = vmatmul.f32.gmra.mxu0 %v10301_v47  ;;  %3583 = vmatmul.f32.gmra.mxu1 %v10301_v47 }
 0x3fd   : > { %v3234_v15 = vmax.f32 %v3214_v46, %v3215_v16  ;;  %3688 = vmatmul.f32.gmra.mxu2 %v3606_v49 }
 0x3fe   : > { %3747 = vmatmul.f32.gmra.mxu3 %v3606_v49 }
 0x3ff   : > { %3248 = vst.msk [vmem:[#allocation3 + $0x40] sm:$0xff] %vm1316_vm0, %v3234_v15 }
 0x400   : > { %v10315_v55 = vpop.f32.mrf.mxu2 }
 0x401   : > { %12596 = vst [vmem:[#allocation16_spill] sm:$0xff] %v10315_v55  ;;  %v10317_v1 = vpop.f32.mrf.mxu3  ;;  %v3124_v34 = vpop.f32.mrf.mxu0 }
 0x402   : > { %12597 = vst [vmem:[#allocation17_spill] sm:$0xff] %v10317_v1  ;;  %v3183_v26 = vpop.f32.mrf.mxu1  ;;  %v3216_v42 = vadd.f32 %v3124_v34, %v9990_v43  ;;  %v4273_v34 = vld [vmem:[%s12494_s3 + $0xa0] sm:$0xf] }
 0x403   : > { %v3217_v5 = vadd.f32 %v3183_v26, %v9992_v14  ;;  %v4274_v26 = vld [vmem:[%s12494_s3 + $0xa8] sm:$0xf]  ;;  %6679 = vmatpush.msk.msra.mxu2 %vm4338_vm1, %v4273_v34 }
 0x404   : > { %3527 = vmatmul.f32.gmra.mxu0 %v10320_v54  ;;  %3586 = vmatmul.f32.gmra.mxu1 %v10320_v54 }
 0x405   : > { %v3235_v44 = vmax.f32 %v3216_v42, %v3217_v5  ;;  %3691 = vmatmul.f32.gmra.mxu2 %v3607_v53  ;;  %6690 = vmatpush.msk.msra.mxu3 %vm4338_vm1, %v4274_v26  ;;  %v3789_v5 = vld [vmem:[%s7430_s22 + $0x70] sm:$0xff] }
 0x406   : > { %3750 = vmatmul.f32.gmra.mxu3 %v3607_v53  ;;  %v3792_v26 = vld [vmem:[%s7430_s22 + $0xd0] sm:$0xff] }
 0x407   : > { %3249 = vst.msk [vmem:[#allocation3 + $0x48] sm:$0xff] %vm1316_vm0, %v3235_v44 }
 0x408   : > { %v10328_v48 = vpop.f32.mrf.mxu2 }
 0x409   : > { %12598 = vst [vmem:[#allocation18_spill] sm:$0xff] %v10328_v48  ;;  %v10330_v6 = vpop.f32.mrf.mxu3  ;;  %v3127_v27 = vpop.f32.mrf.mxu0 }
 0x40a   : > { %12599 = vst [vmem:[#allocation5_spill] sm:$0xff] %v10330_v6  ;;  %v3186_v43 = vpop.f32.mrf.mxu1  ;;  %v3218_v14 = vadd.f32 %v3127_v27, %v10017_v51  ;;  %v10382_v27 = vld [vmem:[%s12494_s3 + $0x150] sm:$0xf]  ;;  %v4262_v6 = vld [vmem:[%s12494_s3 + $0x48] sm:$0xff] }
 0x40b   : > { %v3219_v30 = vadd.f32 %v3186_v43, %v10019_v40  ;;  %v10387_v43 = vld [vmem:[%s12494_s3 + $0x158] sm:$0xf]  ;;  %6657 = vmatpush.msk.msra.mxu0 %vm4338_vm1, %v10382_v27 }
 0x40c   : > { %3530 = vmatmul.f32.gmra.mxu0 %v10333_v18  ;;  %3589 = vmatmul.f32.gmra.mxu1 %v10333_v18 }
 0x40d   : > { %v3236_v9 = vmax.f32 %v3218_v14, %v3219_v30  ;;  %3694 = vmatmul.f32.gmra.mxu2 %v3608_v37  ;;  %6668 = vmatpush.msk.msra.mxu1 %vm4338_vm1, %v10387_v43 }
 0x40e   : > { %3753 = vmatmul.f32.gmra.mxu3 %v3608_v37 }
 0x40f   : > { %3250 = vst.msk [vmem:[#allocation3 + $0x50] sm:$0xff] %vm1316_vm0, %v3236_v9  ;;  %v3790_v9 = vld [vmem:[%s7430_s22 + $0x90] sm:$0xff] }
 0x410   : > { %v10341_v23 = vpop.f32.mrf.mxu2 }
 0x411   : > { %12600 = vst [vmem:[#allocation19_spill] sm:$0xff] %v10341_v23  ;;  %v10343_v38 = vpop.f32.mrf.mxu3  ;;  %v3130_v57 = vpop.f32.mrf.mxu0  ;;  %v4261_v23 = vld [vmem:[%s12494_s3 + $0x40] sm:$0xff] }
 0x412   : > { %12601 = vst [vmem:[#allocation6_spill] sm:$0xff] %v10343_v38  ;;  %v3189_v51 = vpop.f32.mrf.mxu1  ;;  %v3220_v40 = vadd.f32 %v3130_v57, %v10044_v33  ;;  %v4271_v57 = vld [vmem:[%s12494_s3 + $0x90] sm:$0xff] }
 0x413   : > { %v3221_v56 = vadd.f32 %v3189_v51, %v10046_v50  ;;  %4481 = vmatpush.msra.mxu2 %v4271_v57  ;;  %v10416_v51 = vld [vmem:[%s12494_s3 + $0x140] sm:$0xff]  ;;  %v3796_v38 = vld [vmem:[%s7430_s22 + $0x150] sm:$0xff] }
 0x414   : > { %3533 = vmatmul.f32.gmra.mxu0 %v10346_v59  ;;  %3592 = vmatmul.f32.gmra.mxu1 %v10346_v59  ;;  %v10483_v57 = vld [vmem:[%s12494_s3 + $0x120] sm:$0xff] }
 0x415   : > { %v3237_v10 = vmax.f32 %v3220_v40, %v3221_v56  ;;  %3697 = vmatmul.f32.gmra.mxu2 %v3609_v62  ;;  %v10421_v40 = vld [vmem:[%s12494_s3 + $0x148] sm:$0xff]  ;;  %4351 = vmatpush.msra.mxu0 %v10416_v51 }
 0x416   : > { %3756 = vmatmul.f32.gmra.mxu3 %v3609_v62  ;;  %4398 = vmatpush.msra.mxu1 %v10421_v40 }
 0x417   : > { %3251 = vst.msk [vmem:[#allocation3 + $0x58] sm:$0xff] %vm1316_vm0, %v3237_v10 }
 0x418   : > { %v10354_v46 = vpop.f32.mrf.mxu2 }
 0x419   : > { %12602 = vst [vmem:[#allocation20_spill] sm:$0xff] %v10354_v46  ;;  %v10356_v16 = vpop.f32.mrf.mxu3  ;;  %v3133_v49 = vpop.f32.mrf.mxu0  ;;  %v10548_v46 = vld [vmem:[%s12494_s3 + $0x108] sm:$0xff] }
 0x41a   : > { %12603 = vst [vmem:[#allocation21_spill] sm:$0xff] %v10356_v16  ;;  %v3192_v2 = vpop.f32.mrf.mxu1  ;;  %v3222_v33 = vadd.f32 %v3133_v49, %v10064_v32  ;;  %v3791_v49 = vld [vmem:[%s7430_s22 + $0xb0] sm:$0xff] }
 0x41b   : > { %v3223_v50 = vadd.f32 %v3192_v2, %v10066_v25  ;;  %v4269_v2 = vld [vmem:[%s12494_s3 + $0x80] sm:$0xff]  ;;  %v4263_v16 = vld [vmem:[%s12494_s3 + $0x50] sm:$0xff]  ;;  %12610 = vst [vmem:[#allocation26_spill] sm:$0xff] %v10548_v46 }
 0x41c   : > { %3850 = vmatmul.f32.vlgmr.msrb.gmra.mxu0 %v3788_v17  ;;  %3909 = vmatmul.f32.vlgmr.msrb.gmra.mxu1 %v3788_v17  ;;  %v4270_v17 = vld [vmem:[%s12494_s3 + $0x88] sm:$0xff] }
 0x41d   : > { %v3238_v15 = vmax.f32 %v3222_v33, %v3223_v50  ;;  %4042 = vmatmul.f32.vlgmr.msrb.gmra.mxu2 %v10089_v36 }
 0x41e   : > { %4101 = vmatmul.f32.vlgmr.msrb.gmra.mxu3 %v10089_v36  ;;  %4482 = vmatpush.msra.mxu2 %v4269_v2 }
 0x41f   : > { %3252 = vst.msk [vmem:[#allocation3 + $0x60] sm:$0xff] %vm1316_vm0, %v3238_v15 }
 0x420   : > { %v10372_v32 = vpop.f32.mrf.mxu2 }
 0x421   : > { %12604 = vst [vmem:[#allocation22_spill] sm:$0xff] %v10372_v32  ;;  %v10374_v25 = vpop.f32.mrf.mxu3  ;;  %v3136_v36 = vpop.f32.mrf.mxu0  ;;  %v3795_v32 = vld [vmem:[%s7430_s22 + $0x130] sm:$0xff] }
 0x422   : > { %12605 = vst [vmem:[#allocation7_spill] sm:$0xff] %v10374_v25  ;;  %v3195_v42 = vpop.f32.mrf.mxu1  ;;  %v3224_v53 = vadd.f32 %v3136_v36, %v10084_v11  ;;  %v10454_v36 = vld [vmem:[%s12494_s3 + $0x130] sm:$0xff] }
 0x423   : > { %v3225_v44 = vadd.f32 %v3195_v42, %v10086_v3  ;;  %v10459_v42 = vld [vmem:[%s12494_s3 + $0x138] sm:$0xff]  ;;  %4352 = vmatpush.msra.mxu0 %v10454_v36 }
 0x424   : > { %3853 = vmatmul.f32.gmra.mxu0 %v3789_v5  ;;  %3912 = vmatmul.f32.gmra.mxu1 %v3789_v5  ;;  %v4268_v5 = vld [vmem:[%s12494_s3 + $0x78] sm:$0xff] }
 0x425   : > { %v3239_v11 = vmax.f32 %v3224_v53, %v3225_v44  ;;  %4045 = vmatmul.f32.gmra.mxu2 %v10114_v39  ;;  %4399 = vmatpush.msra.mxu1 %v10459_v42 }
 0x426   : > { %4104 = vmatmul.f32.gmra.mxu3 %v10114_v39  ;;  %v4272_v39 = vld [vmem:[%s12494_s3 + $0x98] sm:$0xff]  ;;  %4353 = vmatpush.msra.mxu0 %v10483_v57 }
 0x427   : > { %3253 = vst.msk [vmem:[#allocation3 + $0x68] sm:$0xff] %vm1316_vm0, %v3239_v11  ;;  %4528 = vmatpush.msra.mxu3 %v4272_v39  ;;  %v10488_v39 = vld [vmem:[%s12494_s3 + $0x128] sm:$0xff] }
 0x428   : > { %v10396_v3 = vpop.f32.mrf.mxu2  ;;  %4400 = vmatpush.msra.mxu1 %v10488_v39 }
 0x429   : > { %12606 = vst [vmem:[#allocation23_spill] sm:$0xff] %v10396_v3  ;;  %v10398_v14 = vpop.f32.mrf.mxu3  ;;  %v10400_v30 = vpop.f32.mrf.mxu0  ;;  %4529 = vmatpush.msra.mxu3 %v4270_v17 }
 0x42a   : > { %12607 = vst [vmem:[#allocation8_spill] sm:$0xff] %v10398_v14  ;;  %v10402_v37 = vpop.f32.mrf.mxu1  ;;  %v10517_v14 = vld [vmem:[%s12494_s3 + $0x118] sm:$0xff] }
 0x42b   : > { %4530 = vmatpush.msra.mxu3 %v4268_v5  ;;  %v4265_v5 = vld [vmem:[%s12494_s3 + $0x60] sm:$0xff]  ;;  %12608 = vst [vmem:[#allocation24_spill] sm:$0xff] %v10517_v14  ;;  %4401 = vmatpush.msra.mxu1 %v10517_v14 }
 0x42c   : > { %3856 = vmatmul.f32.gmra.mxu0 %v3790_v9  ;;  %3915 = vmatmul.f32.gmra.mxu1 %v3790_v9 }
 0x42d   : > { %4048 = vmatmul.f32.gmra.mxu2 %v10145_v58  ;;  %4402 = vmatpush.msra.mxu1 %v10548_v46  ;;  %v4256_v46 = vld [vmem:[%s12494_s3 + $0x18] sm:$0xff] }
 0x42e   : > { %4107 = vmatmul.f32.gmra.mxu3 %v10145_v58 }
 0x42f   : > { %4403 = vmatpush.msra.mxu1 %v10586_v12  ;;  %v4257_v12 = vld [vmem:[%s12494_s3 + $0x20] sm:$0xff] }
 0x430   : > { %v10425_v56 = vpop.f32.mrf.mxu2 }
 0x431   : > { %v10427_v62 = vpop.f32.mrf.mxu3  ;;  %v10429_v58 = vpop.f32.mrf.mxu0 }
 0x432   : > { %v10431_v10 = vpop.f32.mrf.mxu1 }
 0x434   : > { %3859 = vmatmul.f32.gmra.mxu0 %v3791_v49  ;;  %3918 = vmatmul.f32.gmra.mxu1 %v3791_v49 }
 0x435   : > { %4051 = vmatmul.f32.gmra.mxu2 %v10170_v21 }
 0x436   : > { %4110 = vmatmul.f32.gmra.mxu3 %v10170_v21  ;;  %v4267_v21 = vld [vmem:[%s12494_s3 + $0x70] sm:$0xff] }
 0x437   : > { %4483 = vmatpush.msra.mxu2 %v4267_v21  ;;  %v3794_v21 = vld [vmem:[%s7430_s22 + $0x110] sm:$0xff] }
 0x438   : > { %v10442_v33 = vpop.f32.mrf.mxu2 }
 0x439   : > { %v10444_v50 = vpop.f32.mrf.mxu3  ;;  %v10446_v15 = vpop.f32.mrf.mxu0  ;;  %4484 = vmatpush.msra.mxu2 %v4265_v5 }
 0x43a   : > { %v10448_v34 = vpop.f32.mrf.mxu1 }
 0x43b   : > { %4485 = vmatpush.msra.mxu2 %v4263_v16 }
 0x43c   : > { %3862 = vmatmul.f32.gmra.mxu0 %v3792_v26  ;;  %3921 = vmatmul.f32.gmra.mxu1 %v3792_v26 }
 0x43d   : > { %4054 = vmatmul.f32.gmra.mxu2 %v10195_v63 }
 0x43e   : > { %4113 = vmatmul.f32.gmra.mxu3 %v10195_v63  ;;  %v3793_v63 = vld [vmem:[%s7430_s22 + $0xf0] sm:$0xff]  ;;  %4486 = vmatpush.msra.mxu2 %v4261_v23  ;;  %v4260_v23 = vld [vmem:[%s12494_s3 + $0x38] sm:$0xff] }
 0x440   : > { %v10471_v53 = vpop.f32.mrf.mxu2 }
 0x441   : > { %v10473_v44 = vpop.f32.mrf.mxu3  ;;  %v10475_v11 = vpop.f32.mrf.mxu0 }
 0x442   : > { %v10477_v9 = vpop.f32.mrf.mxu1 }
 0x444   : > { %3865 = vmatmul.f32.gmra.mxu0 %v3793_v63  ;;  %3924 = vmatmul.f32.gmra.mxu1 %v3793_v63  ;;  %v4266_v63 = vld [vmem:[%s12494_s3 + $0x68] sm:$0xff] }
 0x445   : > { %4057 = vmatmul.f32.gmra.mxu2 %v10226_v8  ;;  %4531 = vmatpush.msra.mxu3 %v4266_v63 }
 0x446   : > { %4116 = vmatmul.f32.gmra.mxu3 %v10226_v8  ;;  %v10512_v8 = vld [vmem:[%s12494_s3 + $0x110] sm:$0xff] }
 0x447   : > { %4354 = vmatpush.msra.mxu0 %v10512_v8 }
 0x448   : > { %v10494_v49 = vpop.f32.mrf.mxu2 }
 0x449   : > { %v10496_v2 = vpop.f32.mrf.mxu3  ;;  %v10498_v17 = vpop.f32.mrf.mxu0 }
 0x44a   : > { %v10500_v26 = vpop.f32.mrf.mxu1 }
 0x44c   : > { %3868 = vmatmul.f32.gmra.mxu0 %v3794_v21  ;;  %3927 = vmatmul.f32.gmra.mxu1 %v3794_v21  ;;  %v4264_v21 = vld [vmem:[%s12494_s3 + $0x58] sm:$0xff] }
 0x44d   : > { %4060 = vmatmul.f32.gmra.mxu2 %v10251_v45  ;;  %4532 = vmatpush.msra.mxu3 %v4264_v21 }
 0x44e   : > { %4119 = vmatmul.f32.gmra.mxu3 %v10251_v45  ;;  %v10543_v45 = vld [vmem:[%s12494_s3 + $0x100] sm:$0xff] }
 0x44f   : > { %12609 = vst [vmem:[#allocation25_spill] sm:$0xff] %v10543_v45  ;;  %4355 = vmatpush.msra.mxu0 %v10543_v45  ;;  %4533 = vmatpush.msra.mxu3 %v4262_v6  ;;  %v4259_v6 = vld [vmem:[%s12494_s3 + $0x30] sm:$0xff] }
 0x450   : > { %v10523_v5 = vpop.f32.mrf.mxu2  ;;  %4487 = vmatpush.msra.mxu2 %v4259_v6  ;;  %v3798_v6 = vld [vmem:[%s7430_s22 + $0x190] sm:$0xff] }
 0x451   : > { %v10525_v63 = vpop.f32.mrf.mxu3  ;;  %v10527_v3 = vpop.f32.mrf.mxu0  ;;  %4534 = vmatpush.msra.mxu3 %v4260_v23  ;;  %v4255_v23 = vld [vmem:[%s12494_s3 + $0x10] sm:$0xff] }
 0x452   : > { %v10529_v25 = vpop.f32.mrf.mxu1  ;;  %4488 = vmatpush.msra.mxu2 %v4257_v12  ;;  %v10622_v12 = vld [vmem:[%s12494_s3 + $0xe0] sm:$0xff] }
 0x453   : > { %12619 = vst [vmem:[#allocation12_spill] sm:$0xff] %v10622_v12 }
 0x454   : > { %3871 = vmatmul.f32.gmra.mxu0 %v3795_v32  ;;  %3930 = vmatmul.f32.gmra.mxu1 %v3795_v32 }
 0x455   : > { %4063 = vmatmul.f32.gmra.mxu2 %v10276_v7 }
 0x456   : > { %4122 = vmatmul.f32.gmra.mxu3 %v10276_v7  ;;  %4489 = vmatpush.msra.mxu2 %v4255_v23  ;;  %v4253_v23 = vld [vmem:[%s12494_s3] sm:$0xff] }
 0x458   : > { %v10552_v16 = vpop.f32.mrf.mxu2  ;;  %4490 = vmatpush.msra.mxu2 %v4253_v23 }
 0x459   : > { %v10554_v32 = vpop.f32.mrf.mxu3  ;;  %v10556_v7 = vpop.f32.mrf.mxu0 }
 0x45a   : > { %v10558_v21 = vpop.f32.mrf.mxu1 }
 0x45c   : > { %3874 = vmatmul.f32.gmra.mxu0 %v3796_v38  ;;  %3933 = vmatmul.f32.gmra.mxu1 %v3796_v38 }
 0x45d   : > { %4066 = vmatmul.f32.gmra.mxu2 %v10301_v47 }
 0x45e   : > { %4125 = vmatmul.f32.gmra.mxu3 %v10301_v47  ;;  %v10581_v47 = vld [vmem:[%s12494_s3 + $0xf0] sm:$0xff] }
 0x45f   : > { %12613 = vst [vmem:[#allocation10_spill] sm:$0xff] %v10581_v47  ;;  %4356 = vmatpush.msra.mxu0 %v10581_v47 }
 0x460   : > { %v10569_v48 = vpop.f32.mrf.mxu2 }
 0x461   : > { %v10571_v1 = vpop.f32.mrf.mxu3  ;;  %v10573_v55 = vpop.f32.mrf.mxu0  ;;  %4357 = vmatpush.msra.mxu0 %v10622_v12 }
 0x462   : > { %12611 = vst [vmem:[#allocation9_spill] sm:$0xff] %v10573_v55  ;;  %v10575_v38 = vpop.f32.mrf.mxu1 }
 0x463   : > { %12612 = vst [vmem:[#allocation27_spill] sm:$0xff] %v10575_v38 }
 0x464   : > { %3877 = vmatmul.f32.gmra.mxu0 %v3797_v20  ;;  %3936 = vmatmul.f32.gmra.mxu1 %v3797_v20  ;;  %v4258_v20 = vld [vmem:[%s12494_s3 + $0x28] sm:$0xff] }
 0x465   : > { %4069 = vmatmul.f32.gmra.mxu2 %v10320_v54  ;;  %4535 = vmatpush.msra.mxu3 %v4258_v20  ;;  %v10627_v20 = vld [vmem:[%s12494_s3 + $0xe8] sm:$0xff] }
 0x466   : > { %4128 = vmatmul.f32.gmra.mxu3 %v10320_v54  ;;  %12620 = vst [vmem:[#allocation32_spill] sm:$0xff] %v10627_v20  ;;  %4404 = vmatpush.msra.mxu1 %v10627_v20 }
 0x467   : > { %4536 = vmatpush.msra.mxu3 %v4256_v46  ;;  %v4254_v46 = vld [vmem:[%s12494_s3 + $0x8] sm:$0xff] }
 0x468   : > { %v10604_v47 = vpop.f32.mrf.mxu2 }
 0x469   : > { %12615 = vst [vmem:[#allocation29_spill] sm:$0xff] %v10604_v47  ;;  %v10606_v54 = vpop.f32.mrf.mxu3  ;;  %v10608_v38 = vpop.f32.mrf.mxu0  ;;  %4537 = vmatpush.msra.mxu3 %v4254_v46 }
 0x46a   : > { %12616 = vst [vmem:[#allocation30_spill] sm:$0xff] %v10606_v54  ;;  %v10610_v55 = vpop.f32.mrf.mxu1  ;;  %v3799_v54 = vld [vmem:[%s7430_s22 + $0x1b0] sm:$0xff] }
 0x46b   : > { %12617 = vst [vmem:[#allocation11_spill] sm:$0xff] %v10608_v38 }
 0x46c   : > { %12618 = vst [vmem:[#allocation31_spill] sm:$0xff] %v10610_v55  ;;  %3880 = vmatmul.f32.gmra.mxu0 %v3798_v6  ;;  %3939 = vmatmul.f32.gmra.mxu1 %v3798_v6  ;;  %v10651_v6 = vld [vmem:[%s12494_s3 + $0xd0] sm:$0xff] }
 0x46d   : > { %4072 = vmatmul.f32.gmra.mxu2 %v10333_v18  ;;  %12625 = vst [vmem:[#allocation14_spill] sm:$0xff] %v10651_v6  ;;  %4358 = vmatpush.msra.mxu0 %v10651_v6 }
 0x46e   : > { %4131 = vmatmul.f32.gmra.mxu3 %v10333_v18  ;;  %v10656_v18 = vld [vmem:[%s12494_s3 + $0xd8] sm:$0xff] }
 0x46f   : > { %12626 = vst [vmem:[#allocation36_spill] sm:$0xff] %v10656_v18  ;;  %4405 = vmatpush.msra.mxu1 %v10656_v18 }
 0x470   : > { %v10639_v55 = vpop.f32.mrf.mxu2 }
 0x471   : > { %12621 = vst [vmem:[#allocation33_spill] sm:$0xff] %v10639_v55  ;;  %v10641_v38 = vpop.f32.mrf.mxu3  ;;  %v10643_v20 = vpop.f32.mrf.mxu0  ;;  %v3992_v55 = vld [vmem:[%s7430_s22 + $0x1d8] sm:$0xff] }
 0x472   : > { %12622 = vst [vmem:[#allocation34_spill] sm:$0xff] %v10641_v38  ;;  %v10645_v12 = vpop.f32.mrf.mxu1  ;;  %v3800_v38 = vld [vmem:[%s7430_s22 + $0x1d0] sm:$0xff] }
 0x473   : > { %12623 = vst [vmem:[#allocation13_spill] sm:$0xff] %v10643_v20 }
 0x474   : > { %12624 = vst [vmem:[#allocation35_spill] sm:$0xff] %v10645_v12  ;;  %3883 = vmatmul.f32.gmra.mxu0 %v3799_v54  ;;  %3942 = vmatmul.f32.gmra.mxu1 %v3799_v54  ;;  %v10680_v54 = vld [vmem:[%s12494_s3 + $0xc8] sm:$0xff] }
 0x475   : > { %4075 = vmatmul.f32.gmra.mxu2 %v10346_v59  ;;  %12632 = vst [vmem:[#allocation42_spill] sm:$0xff] %v10680_v54  ;;  %4406 = vmatpush.msra.mxu1 %v10680_v54 }
 0x476   : > { %4134 = vmatmul.f32.gmra.mxu3 %v10346_v59  ;;  %v10675_v59 = vld [vmem:[%s12494_s3 + $0xc0] sm:$0xff] }
 0x477   : > { %12631 = vst [vmem:[#allocation41_spill] sm:$0xff] %v10675_v59  ;;  %4359 = vmatpush.msra.mxu0 %v10675_v59 }
 0x478   : > { %v10662_v23 = vpop.f32.mrf.mxu2 }
 0x479   : > { %12627 = vst [vmem:[#allocation37_spill] sm:$0xff] %v10662_v23  ;;  %v10664_v46 = vpop.f32.mrf.mxu3  ;;  %v10666_v12 = vpop.f32.mrf.mxu0  ;;  %v3993_v23 = vld [vmem:[%s7430_s22 + $0x1f8] sm:$0xff] }
 0x47a   : > { %12628 = vst [vmem:[#allocation38_spill] sm:$0xff] %v10664_v46  ;;  %v10668_v20 = vpop.f32.mrf.mxu1  ;;  %v3801_v46 = vld [vmem:[%s7430_s22 + $0x1f0] sm:$0xff] }
 0x47b   : > { %12629 = vst [vmem:[#allocation39_spill] sm:$0xff] %v10666_v12 }
 0x47c   : > { %12630 = vst [vmem:[#allocation40_spill] sm:$0xff] %v10668_v20  ;;  %3886 = vmatmul.f32.gmra.mxu0 %v3800_v38  ;;  %3945 = vmatmul.f32.gmra.mxu1 %v3800_v38 }
 0x47d   : > { %4078 = vmatmul.f32.gmra.mxu2 %v3992_v55 }
 0x47e   : > { %4137 = vmatmul.f32.gmra.mxu3 %v3992_v55 }
 0x480   : > { %v10684_v20 = vpop.f32.mrf.mxu2 }
 0x481   : > { %12633 = vst [vmem:[#allocation43_spill] sm:$0xff] %v10684_v20  ;;  %v10686_v12 = vpop.f32.mrf.mxu3  ;;  %v10688_v38 = vpop.f32.mrf.mxu0  ;;  %v4243_v20 = vld [vmem:[#allocation2] sm:$0xff] }
 0x482   : > { %12634 = vst [vmem:[#allocation44_spill] sm:$0xff] %v10686_v12  ;;  %v10690_v55 = vpop.f32.mrf.mxu1  ;;  %v3496_v12 = vadd.f32 %v10400_v30, %v10109_v41  ;;  %v6764_v41 = vld [vmem:[%s12494_s3 + $0x2a8] sm:$0xff] }
 0x483   : > { %12635 = vst [vmem:[#allocation45_spill] sm:$0xff] %v10688_v38 }
 0x484   : > { %12636 = vst [vmem:[#allocation46_spill] sm:$0xff] %v10690_v55  ;;  %3889 = vmatmul.f32.gmra.mxu0 %v3801_v46  ;;  %3948 = vmatmul.f32.gmra.mxu1 %v3801_v46 }
 0x485   : > { %4081 = vmatmul.f32.gmra.mxu2 %v3993_v23 }
 0x486   : > { %4140 = vmatmul.f32.gmra.mxu3 %v3993_v23 }
 0x488   : > { %v10694_v18 = vpop.f32.mrf.mxu2 }
 0x489   : > { %12637 = vst [vmem:[#allocation47_spill] sm:$0xff] %v10694_v18  ;;  %v10696_v6 = vpop.f32.mrf.mxu3  ;;  %v10698_v59 = vpop.f32.mrf.mxu0 }
 0x48a   : > { %12638 = vst [vmem:[#allocation48_spill] sm:$0xff] %v10696_v6  ;;  %v10700_v54 = vpop.f32.mrf.mxu1  ;;  %v10715_v6 = vld [vmem:[%s12494_s3 + $0xb0] sm:$0xff] }
 0x48b   : > { %12639 = vst [vmem:[#allocation49_spill] sm:$0xff] %v10698_v59  ;;  %4360 = vmatpush.msra.mxu0 %v10715_v6 }
 0x48c   : > { %12640 = vst [vmem:[#allocation50_spill] sm:$0xff] %v10700_v54  ;;  %v10720_v54 = vld [vmem:[%s12494_s3 + $0xb8] sm:$0xff] }
 0x48d   : > { %6680 = vmatmul.msk.f32.vlgmr.msra.gmra.mxu2 %vm1316_vm0, %v4243_v20  ;;  %12645 = vst [vmem:[#allocation55_spill] sm:$0xff] %v10715_v6  ;;  %4407 = vmatpush.msra.mxu1 %v10720_v54 }
 0x48e   : > { %6691 = vmatmul.msk.f32.vlgmr.msra.gmra.mxu3 %vm1316_vm0, %v4243_v20  ;;  %12646 = vst [vmem:[#allocation56_spill] sm:$0xff] %v10720_v54  ;;  %v6765_v20 = vld [vmem:[%s12494_s3 + $0x2b0] sm:$0xf]  ;;  %v3555_v54 = vadd.f32 %v10402_v37, %v10111_v31  ;;  %v3760_v31 = vadd.f32 %v10425_v56, %v3496_v12  ;;  %v3499_v56 = vadd.f32 %v10429_v58, %v10134_v28  ;;  %v10787_v28 = vld [vmem:[#allocation2 + $0x18] sm:$0xff] }
 0x48f   : > { %6767 = vmatpush.msk.msrb.mxu2 %vm4338_vm1, %v6765_v20  ;;  %v6763_v20 = vld [vmem:[%s12494_s3 + $0x2a0] sm:$0xff] }
 0x490   : > { %v10704_v55 = vpop.f32.mrf.mxu2  ;;  %v3761_v30 = vadd.f32 %v10427_v62, %v3555_v54  ;;  %v3558_v62 = vadd.f32 %v10431_v10, %v10136_v61  ;;  %v10777_v54 = vld [vmem:[%s12494_s3 + $0x1f0] sm:$0xff]  ;;  %v6762_v61 = vld [vmem:[%s12494_s3 + $0x298] sm:$0xff]  ;;  %v3762_v58 = vadd.f32 %v10442_v33, %v3499_v56 }
 0x491   : > { %12641 = vst [vmem:[#allocation51_spill] sm:$0xff] %v10704_v55  ;;  %v10706_v38 = vpop.f32.mrf.mxu3  ;;  %v10708_v46 = vpop.f32.mrf.mxu0  ;;  %4827 = vmatpush.msrb.mxu2 %v6763_v20 }
 0x492   : > { %12642 = vst [vmem:[#allocation52_spill] sm:$0xff] %v10706_v38  ;;  %v10710_v23 = vpop.f32.mrf.mxu1  ;;  %v3763_v10 = vadd.f32 %v10444_v50, %v3558_v62  ;;  %v3502_v62 = vadd.f32 %v10446_v15, %v10159_v4  ;;  %v6759_v4 = vld [vmem:[%s12494_s3 + $0x280] sm:$0xff]  ;;  %v3255_v15 = vld [vmem:[#allocation3 + $0x8] sm:$0xff] }
 0x493   : > { %12643 = vst [vmem:[#allocation53_spill] sm:$0xff] %v10708_v46  ;;  %v4244_v46 = vld [vmem:[#allocation2 + $0x8] sm:$0xff] }
 0x494   : > { %12644 = vst [vmem:[#allocation54_spill] sm:$0xff] %v10710_v23  ;;  %v6766_v23 = vld [vmem:[%s12494_s3 + $0x2b8] sm:$0xf] }
 0x495   : > { %6778 = vmatpush.msk.msrb.mxu3 %vm4338_vm1, %v6766_v23  ;;  %6681 = vmatmul.msk.f32.gmra.mxu2 %vm1316_vm0, %v4244_v46  ;;  %v10745_v23 = vld [vmem:[%s12494_s3 + $0x200] sm:$0xf] }
 0x496   : > { %6692 = vmatmul.msk.f32.gmra.mxu3 %vm1316_vm0, %v4244_v46  ;;  %12649 = vst [vmem:[#allocation59_spill] sm:$0xff] %v10745_v23  ;;  %v10750_v46 = vld [vmem:[%s12494_s3 + $0x208] sm:$0xf]  ;;  %6723 = vmatpush.msk.msrb.mxu0 %vm4338_vm1, %v10745_v23 }
 0x497   : > { %12650 = vst [vmem:[#allocation60_spill] sm:$0xff] %v10750_v46  ;;  %6734 = vmatpush.msk.msrb.mxu1 %vm4338_vm1, %v10750_v46  ;;  %4874 = vmatpush.msrb.mxu3 %v6764_v41 }
 0x498   : > { %v10734_v38 = vpop.f32.mrf.mxu2  ;;  %4644 = vmatpush.msrb.mxu0 %v10777_v54 }
 0x499   : > { %12647 = vst [vmem:[#allocation57_spill] sm:$0xff] %v10734_v38  ;;  %v10736_v55 = vpop.f32.mrf.mxu3  ;;  %v3851_v59 = vpop.f32.mrf.mxu0  ;;  %4875 = vmatpush.msrb.mxu3 %v6762_v61 }
 0x49a   : > { %12648 = vst [vmem:[#allocation58_spill] sm:$0xff] %v10736_v55  ;;  %v3910_v18 = vpop.f32.mrf.mxu1  ;;  %v10755_v55 = vld [vmem:[#allocation2 + $0x10] sm:$0xff]  ;;  %v3952_v37 = vadd.f32 %v3851_v59, %v3760_v31 }
 0x49b   : > { %v3953_v38 = vadd.f32 %v3910_v18, %v3761_v30  ;;  %v10782_v18 = vld [vmem:[%s12494_s3 + $0x1f8] sm:$0xff]  ;;  %v6761_v59 = vld [vmem:[%s12494_s3 + $0x290] sm:$0xff] }
 0x49c   : > { %4691 = vmatpush.msrb.mxu1 %v10782_v18  ;;  %4828 = vmatpush.msrb.mxu2 %v6761_v59 }
 0x49d   : > { %6682 = vmatmul.msk.f32.gmra.mxu2 %vm1316_vm0, %v10755_v55 }
 0x49e   : > { %6693 = vmatmul.msk.f32.gmra.mxu3 %vm1316_vm0, %v10755_v55  ;;  %4829 = vmatpush.msrb.mxu2 %v6759_v4 }
 0x4a0   : > { %v4043_v23 = vpop.f32.mrf.mxu2 }
 0x4a1   : > { %v4102_v46 = vpop.f32.mrf.mxu3  ;;  %v4144_v6 = vadd.f32 %v4043_v23, %v3952_v37  ;;  %v3854_v45 = vpop.f32.mrf.mxu0 }
 0x4a2   : > { %v4145_v47 = vadd.f32 %v4102_v46, %v3953_v38  ;;  %v3913_v14 = vpop.f32.mrf.mxu1  ;;  %v3254_v38 = vld [vmem:[#allocation3] sm:$0xff]  ;;  %v3954_v46 = vadd.f32 %v3854_v45, %v3762_v58  ;;  %v10819_v45 = vld [vmem:[%s12494_s3 + $0x1e8] sm:$0xff] }
 0x4a3   : > { %v3955_v33 = vadd.f32 %v3913_v14, %v3763_v10  ;;  %v10814_v14 = vld [vmem:[%s12494_s3 + $0x1e0] sm:$0xff]  ;;  %4692 = vmatpush.msrb.mxu1 %v10819_v45 }
 0x4a4   : > { %v4172_v12 = vmax.f32 %v4144_v6, %v4145_v47  ;;  %v10803_v6 = vld [vmem:[%s12493_s2] ss:$0 sm:$0xff]  ;;  %4645 = vmatpush.msrb.mxu0 %v10814_v14 }
 0x4a5   : > { %6683 = vmatmul.msk.f32.gmra.mxu2 %vm1316_vm0, %v10787_v28 }
 0x4a6   : > { %v4186_v47 = vmax.f32 %v3254_v38, %v4172_v12  ;;  %6694 = vmatmul.msk.f32.gmra.mxu3 %vm1316_vm0, %v10787_v28  ;;  %v3561_v12 = vadd.f32 %v10448_v34, %v10161_v35  ;;  %v10824_v38 = vld [vmem:[#allocation2 + $0x20] sm:$0xff]  ;;  %v6760_v35 = vld [vmem:[%s12494_s3 + $0x288] sm:$0xff]  ;;  %v3764_v34 = vadd.f32 %v10471_v53, %v3502_v62  ;;  %v6758_v53 = vld [vmem:[%s12494_s3 + $0x278] sm:$0xff] }
 0x4a7   : > { %4876 = vmatpush.msrb.mxu3 %v6760_v35  ;;  %v10865_v35 = vld [vmem:[%s12494_s3 + $0x1d8] sm:$0xff] }
 0x4a8   : > { %v4200_v23 = vadd.f32 %v10803_v6, %v4186_v47  ;;  %v4046_v20 = vpop.f32.mrf.mxu2  ;;  %v3765_v61 = vadd.f32 %v10473_v44, %v3561_v12  ;;  %v3505_v12 = vadd.f32 %v10475_v11, %v10190_v13  ;;  %v6753_v13 = vld [vmem:[%s12494_s3 + $0x250] sm:$0xff]  ;;  %v10870_v11 = vld [vmem:[#allocation2 + $0x28] sm:$0xff]  ;;  %4693 = vmatpush.msrb.mxu1 %v10865_v35 }
 0x4a9   : > { %v4105_v50 = vpop.f32.mrf.mxu3  ;;  %v4146_v31 = vadd.f32 %v4046_v20, %v3954_v46  ;;  %v3857_v37 = vpop.f32.mrf.mxu0  ;;  %v6757_v46 = vld [vmem:[%s12494_s3 + $0x270] sm:$0xff]  ;;  %4877 = vmatpush.msrb.mxu3 %v6758_v53  ;;  %v6750_v53 = vld [vmem:[%s12494_s3 + $0x238] sm:$0xff] }
 0x4aa   : > { %v4214_v41 = vmax.f32 %v4200_v23, 0.0  ;;  %v4147_v30 = vadd.f32 %v4105_v50, %v3955_v33  ;;  %v3916_v56 = vpop.f32.mrf.mxu1  ;;  %v3956_v47 = vadd.f32 %v3857_v37, %v3764_v34  ;;  %4830 = vmatpush.msrb.mxu2 %v6757_v46  ;;  %v6755_v37 = vld [vmem:[%s12494_s3 + $0x260] sm:$0xff]  ;;  %v3766_v34 = vadd.f32 %v10494_v49, %v3505_v12  ;;  %v6749_v46 = vld [vmem:[%s12494_s3 + $0x230] sm:$0xff] }
 0x4ab   : > { %v3957_v23 = vadd.f32 %v3916_v56, %v3765_v61  ;;  %v6756_v56 = vld [vmem:[%s12494_s3 + $0x268] sm:$0xff]  ;;  %v3567_v12 = vadd.f32 %v10500_v26, %v10217_v60 }
 0x4ac   : > { %4228 = vst.msk [vmem:[#allocation3] sm:$0xff] %vm1316_vm0, %v4214_v41  ;;  %v4173_v59 = vmax.f32 %v4146_v31, %v4147_v30  ;;  %4831 = vmatpush.msrb.mxu2 %v6755_v37  ;;  %4878 = vmatpush.msrb.mxu3 %v6756_v56  ;;  %v3257_v60 = vld [vmem:[#allocation3 + $0x18] sm:$0xff] }
 0x4ad   : > { %6684 = vmatmul.msk.f32.gmra.mxu2 %vm1316_vm0, %v10824_v38 }
 0x4ae   : > { %v4187_v58 = vmax.f32 %v3255_v15, %v4173_v59  ;;  %6695 = vmatmul.msk.f32.gmra.mxu3 %vm1316_vm0, %v10824_v38  ;;  %v3564_v59 = vadd.f32 %v10477_v9, %v10192_v22  ;;  %v10860_v15 = vld [vmem:[%s12494_s3 + $0x1d0] sm:$0xff]  ;;  %v3256_v22 = vld [vmem:[#allocation3 + $0x10] sm:$0xff]  ;;  %v6754_v9 = vld [vmem:[%s12494_s3 + $0x258] sm:$0xff]  ;;  %4832 = vmatpush.msrb.mxu2 %v6753_v13 }
 0x4af   : > { %4646 = vmatpush.msrb.mxu0 %v10860_v15  ;;  %4879 = vmatpush.msrb.mxu3 %v6754_v9  ;;  %v10916_v13 = vld [vmem:[%s12494_s3 + $0x1c8] sm:$0xff] }
 0x4b0   : > { %v4201_v10 = vadd.f32 %v10803_v6, %v4187_v58  ;;  %v4049_v44 = vpop.f32.mrf.mxu2  ;;  %v3767_v61 = vadd.f32 %v10496_v2, %v3564_v59  ;;  %4694 = vmatpush.msrb.mxu1 %v10916_v13 }
 0x4b1   : > { %v4108_v33 = vpop.f32.mrf.mxu3  ;;  %v4148_v50 = vadd.f32 %v4049_v44, %v3956_v47  ;;  %v3860_v31 = vpop.f32.mrf.mxu0  ;;  %v6752_v47 = vld [vmem:[%s12494_s3 + $0x248] sm:$0xff] }
 0x4b2   : > { %v4215_v20 = vmax.f32 %v4201_v10, 0.0  ;;  %v4149_v41 = vadd.f32 %v4108_v33, %v3957_v23  ;;  %v3919_v30 = vpop.f32.mrf.mxu1  ;;  %v6751_v10 = vld [vmem:[%s12494_s3 + $0x240] sm:$0xff]  ;;  %v3958_v2 = vadd.f32 %v3860_v31, %v3766_v34  ;;  %4880 = vmatpush.msrb.mxu3 %v6752_v47  ;;  %v10936_v34 = vld [vmem:[%s12494_s3 + $0x210] sm:$0xff] }
 0x4b3   : > { %v4275_v62 = vld [vmem:[#allocation3] sm:$0xff]  ;;  %v3959_v23 = vadd.f32 %v3919_v30, %v3767_v61  ;;  %4833 = vmatpush.msrb.mxu2 %v6751_v10  ;;  %v10899_v31 = vld [vmem:[%s12494_s3 + $0x220] sm:$0xff]  ;;  %v3508_v30 = vadd.f32 %v10498_v17, %v10215_v24  ;;  %v10921_v24 = vld [vmem:[%s12494_s3 + $0x228] sm:$0xff] }
 0x4b4   : > { %4229 = vst.msk [vmem:[#allocation3 + $0x8] sm:$0xff] %vm1316_vm0, %v4215_v20  ;;  %v4174_v4 = vmax.f32 %v4148_v50, %v4149_v41  ;;  %6658 = vmatmul.msk.f32.vlgmr.msra.gmra.mxu0 %vm1316_vm0, %v4275_v62  ;;  %6669 = vmatmul.msk.f32.vlgmr.msra.gmra.mxu1 %vm1316_vm0, %v4275_v62  ;;  %v10923_v17 = vld [vmem:[#allocation2 + $0x30] sm:$0xff]  ;;  %v10941_v61 = vld [vmem:[%s12494_s3 + $0x218] sm:$0xff] }
 0x4b5   : > { %6685 = vmatmul.msk.f32.gmra.mxu2 %vm1316_vm0, %v10870_v11  ;;  %4881 = vmatpush.msrb.mxu3 %v6750_v53  ;;  %v3768_v26 = vadd.f32 %v10523_v5, %v3508_v30 }
 0x4b6   : > { %v4188_v58 = vmax.f32 %v3256_v22, %v4174_v4  ;;  %6696 = vmatmul.msk.f32.gmra.mxu3 %vm1316_vm0, %v10870_v11  ;;  %4834 = vmatpush.msrb.mxu2 %v6749_v46  ;;  %v10911_v4 = vld [vmem:[%s12494_s3 + $0x1c0] sm:$0xff]  ;;  %v3769_v22 = vadd.f32 %v10525_v63, %v3567_v12 }
 0x4b7   : > { %4647 = vmatpush.msrb.mxu0 %v10911_v4  ;;  %4882 = vmatpush.msrb.mxu3 %v10921_v24 }
 0x4b8   : > { %v4202_v49 = vadd.f32 %v10803_v6, %v4188_v58  ;;  %v4052_v44 = vpop.f32.mrf.mxu2  ;;  %4835 = vmatpush.msrb.mxu2 %v10899_v31 }
 0x4b9   : > { %v4111_v33 = vpop.f32.mrf.mxu3  ;;  %v4150_v50 = vadd.f32 %v4052_v44, %v3958_v2  ;;  %v3863_v37 = vpop.f32.mrf.mxu0  ;;  %4883 = vmatpush.msrb.mxu3 %v10941_v61 }
 0x4ba   : > { %v4216_v20 = vmax.f32 %v4202_v49, 0.0  ;;  %v4151_v41 = vadd.f32 %v4111_v33, %v3959_v23  ;;  %v3922_v56 = vpop.f32.mrf.mxu1  ;;  %v3960_v63 = vadd.f32 %v3863_v37, %v3768_v26  ;;  %4836 = vmatpush.msrb.mxu2 %v10936_v34  ;;  %v3511_v33 = vadd.f32 %v10527_v3, %v10240_v0  ;;  %v10971_v0 = vld [vmem:[%s12494_s3 + $0x1b8] sm:$0xff]  ;;  %v10985_v3 = vld [vmem:[%s12494_s3 + $0x1a8] sm:$0xff] }
 0x4bb   : > { %v4276_v62 = vld [vmem:[#allocation3 + $0x8] sm:$0xff]  ;;  %v3961_v58 = vadd.f32 %v3922_v56, %v3769_v22  ;;  %6844 = vmatpush.msk.msra.mxu3 %vm4338_vm1, %v10387_v43  ;;  %4695 = vmatpush.msrb.mxu1 %v10971_v0 }
 0x4bc   : > { %4230 = vst.msk [vmem:[#allocation3 + $0x10] sm:$0xff] %vm1316_vm0, %v4216_v20  ;;  %v4175_v59 = vmax.f32 %v4150_v50, %v4151_v41  ;;  %6659 = vmatmul.msk.f32.gmra.mxu0 %vm1316_vm0, %v4276_v62  ;;  %6670 = vmatmul.msk.f32.gmra.mxu1 %vm1316_vm0, %v4276_v62  ;;  %v3570_v20 = vadd.f32 %v10529_v25, %v10242_v29  ;;  %v10976_v29 = vld [vmem:[%s12494_s3 + $0x1a0] sm:$0xff]  ;;  %v3258_v25 = vld [vmem:[#allocation3 + $0x20] sm:$0xff]  ;;  %v10978_v43 = vld [vmem:[#allocation2 + $0x38] sm:$0xff] }
 0x4bd   : > { %6686 = vmatmul.msk.f32.gmra.mxu2 %vm1316_vm0, %v10923_v17  ;;  %v3770_v41 = vadd.f32 %v10552_v16, %v3511_v33  ;;  %4696 = vmatpush.msrb.mxu1 %v10985_v3 }
 0x4be   : > { %v4189_v9 = vmax.f32 %v3257_v60, %v4175_v59  ;;  %6697 = vmatmul.msk.f32.gmra.mxu3 %vm1316_vm0, %v10923_v17  ;;  %6833 = vmatpush.msk.msra.mxu2 %vm4338_vm1, %v10382_v27  ;;  %v10966_v27 = vld [vmem:[%s12494_s3 + $0x1b0] sm:$0xff]  ;;  %v3771_v37 = vadd.f32 %v10554_v32, %v3570_v20 }
 0x4bf   : > { %4648 = vmatpush.msrb.mxu0 %v10966_v27  ;;  %5181 = vmatpush.msra.mxu3 %v10421_v40 }
 0x4c0   : > { %v4203_v5 = vadd.f32 %v10803_v6, %v4189_v9  ;;  %v4055_v10 = vpop.f32.mrf.mxu2  ;;  %5134 = vmatpush.msra.mxu2 %v10416_v51  ;;  %v3573_v51 = vadd.f32 %v10558_v21, %v10273_v52  ;;  %v3259_v52 = vld [vmem:[#allocation3 + $0x28] sm:$0xff] }
 0x4c1   : > { %v4114_v47 = vpop.f32.mrf.mxu3  ;;  %v4152_v2 = vadd.f32 %v4055_v10, %v3960_v63  ;;  %v3866_v46 = vpop.f32.mrf.mxu0  ;;  %4649 = vmatpush.msrb.mxu0 %v10976_v29  ;;  %5182 = vmatpush.msra.mxu3 %v10459_v42  ;;  %v3514_v63 = vadd.f32 %v10556_v7, %v10271_v19  ;;  %v11019_v19 = vld [vmem:[%s12494_s3 + $0x198] sm:$0xff]  ;;  %v11021_v42 = vld [vmem:[#allocation2 + $0x40] sm:$0xff] }
 0x4c2   : > { %v4217_v49 = vmax.f32 %v4203_v5, 0.0  ;;  %v4153_v23 = vadd.f32 %v4114_v47, %v3961_v58  ;;  %v3925_v53 = vpop.f32.mrf.mxu1  ;;  %v3962_v30 = vadd.f32 %v3866_v46, %v3770_v41  ;;  %5135 = vmatpush.msra.mxu2 %v10454_v36  ;;  %v11014_v36 = vld [vmem:[%s12494_s3 + $0x190] sm:$0xff]  ;;  %4697 = vmatpush.msrb.mxu1 %v11019_v19  ;;  %v3773_v21 = vadd.f32 %v10571_v1, %v3573_v51  ;;  %v12651_v1 = vld [vmem:[#allocation24_spill] sm:$0xff]  ;;  %v12655_v41 = vld [vmem:[#allocation9_spill] sm:$0xff] }
 0x4c3   : > { %v10952_v44 = vld [vmem:[#allocation3 + $0x10] sm:$0xff]  ;;  %v3963_v12 = vadd.f32 %v3925_v53, %v3771_v37  ;;  %4650 = vmatpush.msrb.mxu0 %v11014_v36  ;;  %v3772_v7 = vadd.f32 %v10569_v48, %v3514_v63  ;;  %5183 = vmatpush.msra.mxu3 %v10488_v39  ;;  %v12653_v39 = vld [vmem:[#allocation26_spill] sm:$0xff] }
 0x4c4   : > { %4231 = vst.msk [vmem:[#allocation3 + $0x18] sm:$0xff] %vm1316_vm0, %v4217_v49  ;;  %v4176_v50 = vmax.f32 %v4152_v2, %v4153_v23  ;;  %6660 = vmatmul.msk.f32.gmra.mxu0 %vm1316_vm0, %v10952_v44  ;;  %6671 = vmatmul.msk.f32.gmra.mxu1 %vm1316_vm0, %v10952_v44  ;;  %v12660_v51 = vld [vmem:[#allocation10_spill] sm:$0xff] }
 0x4c5   : > { %6687 = vmatmul.msk.f32.gmra.mxu2 %vm1316_vm0, %v10978_v43  ;;  %5184 = vmatpush.msra.mxu3 %v12651_v1 }
 0x4c6   : > { %v4190_v56 = vmax.f32 %v3258_v25, %v4176_v50  ;;  %6698 = vmatmul.msk.f32.gmra.mxu3 %vm1316_vm0, %v10978_v43  ;;  %5136 = vmatpush.msra.mxu2 %v10483_v57  ;;  %v12652_v57 = vld [vmem:[#allocation25_spill] sm:$0xff]  ;;  %v12654_v25 = vld [vmem:[#allocation15_spill] sm:$0xff] }
 0x4c7   : > { %5185 = vmatpush.msra.mxu3 %v12653_v39  ;;  %v3517_v37 = vadd.f32 %v12655_v41, %v12654_v25  ;;  %v12665_v39 = vld [vmem:[#allocation36_spill] sm:$0xff]  ;;  %v12668_v41 = vld [vmem:[#allocation17_spill] sm:$0xff] }
 0x4c8   : > { %v4204_v62 = vadd.f32 %v10803_v6, %v4190_v56  ;;  %v4058_v16 = vpop.f32.mrf.mxu2  ;;  %5137 = vmatpush.msra.mxu2 %v10512_v8  ;;  %v12656_v56 = vld [vmem:[#allocation4_spill] sm:$0xff] }
 0x4c9   : > { %v4117_v32 = vpop.f32.mrf.mxu3  ;;  %v4154_v60 = vadd.f32 %v4058_v16, %v3962_v30  ;;  %v3869_v22 = vpop.f32.mrf.mxu0  ;;  %v11057_v16 = vld [vmem:[%s12494_s3 + $0x188] sm:$0xff]  ;;  %v12666_v25 = vld [vmem:[#allocation16_spill] sm:$0xff] }
 0x4ca   : > { %v4218_v59 = vmax.f32 %v4204_v62, 0.0  ;;  %v4155_v26 = vadd.f32 %v4117_v32, %v3963_v12  ;;  %v3928_v9 = vpop.f32.mrf.mxu1  ;;  %v3964_v47 = vadd.f32 %v3869_v22, %v3772_v7  ;;  %5138 = vmatpush.msra.mxu2 %v12652_v57  ;;  %v12657_v62 = vld [vmem:[#allocation27_spill] sm:$0xff]  ;;  %v11052_v12 = vld [vmem:[%s12494_s3 + $0x180] sm:$0xff]  ;;  %4698 = vmatpush.msrb.mxu1 %v11057_v16  ;;  %v12659_v22 = vld [vmem:[#allocation30_spill] sm:$0xff] }
 0x4cb   : > { %v11000_v5 = vld [vmem:[#allocation3 + $0x18] sm:$0xff]  ;;  %v3965_v49 = vadd.f32 %v3928_v9, %v3773_v21  ;;  %v3576_v30 = vadd.f32 %v12657_v62, %v12656_v56  ;;  %v3260_v32 = vld [vmem:[#allocation3 + $0x30] sm:$0xff]  ;;  %4651 = vmatpush.msrb.mxu0 %v11052_v12  ;;  %v12664_v57 = vld [vmem:[#allocation14_spill] sm:$0xff] }
 0x4cc   : > { %4232 = vst.msk [vmem:[#allocation3 + $0x20] sm:$0xff] %vm1316_vm0, %v4218_v59  ;;  %v4177_v40 = vmax.f32 %v4154_v60, %v4155_v26  ;;  %6661 = vmatmul.msk.f32.gmra.mxu0 %vm1316_vm0, %v11000_v5  ;;  %6672 = vmatmul.msk.f32.gmra.mxu1 %vm1316_vm0, %v11000_v5  ;;  %v11059_v59 = vld [vmem:[#allocation2 + $0x48] sm:$0xff] }
 0x4cd   : > { %6688 = vmatmul.msk.f32.gmra.mxu2 %vm1316_vm0, %v11021_v42  ;;  %v12658_v60 = vld [vmem:[#allocation29_spill] sm:$0xff]  ;;  %v3775_v9 = vadd.f32 %v12659_v22, %v3576_v30  ;;  %v11090_v30 = vld [vmem:[%s12494_s3 + $0x170] sm:$0xff] }
 0x4ce   : > { %v4191_v58 = vmax.f32 %v3259_v52, %v4177_v40  ;;  %6699 = vmatmul.msk.f32.gmra.mxu3 %vm1316_vm0, %v11021_v42  ;;  %v3774_v26 = vadd.f32 %v12658_v60, %v3517_v37  ;;  %5139 = vmatpush.msra.mxu2 %v12660_v51  ;;  %v12661_v40 = vld [vmem:[#allocation28_spill] sm:$0xff]  ;;  %v12669_v37 = vld [vmem:[#allocation31_spill] sm:$0xff]  ;;  %v12670_v60 = vld [vmem:[#allocation33_spill] sm:$0xff] }
 0x4cf   : > { %5186 = vmatpush.msra.mxu3 %v12661_v40  ;;  %v3579_v56 = vadd.f32 %v12669_v37, %v12668_v41  ;;  %4652 = vmatpush.msrb.mxu0 %v11090_v30  ;;  %v12671_v22 = vld [vmem:[#allocation34_spill] sm:$0xff]  ;;  %v12672_v51 = vld [vmem:[#allocation41_spill] sm:$0xff] }
 0x4d0   : > { %v4205_v10 = vadd.f32 %v10803_v6, %v4191_v58  ;;  %v4061_v2 = vpop.f32.mrf.mxu2  ;;  %v12673_v40 = vld [vmem:[#allocation42_spill] sm:$0xff]  ;;  %v12679_v37 = vld [vmem:[#allocation13_spill] sm:$0xff] }
 0x4d1   : > { %v4120_v23 = vpop.f32.mrf.mxu3  ;;  %v4156_v46 = vadd.f32 %v4061_v2, %v3964_v47  ;;  %v3872_v33 = vpop.f32.mrf.mxu0  ;;  %v12662_v47 = vld [vmem:[#allocation12_spill] sm:$0xff]  ;;  %v12678_v41 = vld [vmem:[#allocation18_spill] sm:$0xff] }
 0x4d2   : > { %v4219_v48 = vmax.f32 %v4205_v10, 0.0  ;;  %v4157_v53 = vadd.f32 %v4120_v23, %v3965_v49  ;;  %v3931_v20 = vpop.f32.mrf.mxu1  ;;  %v3966_v7 = vadd.f32 %v3872_v33, %v3774_v26  ;;  %5140 = vmatpush.msra.mxu2 %v12662_v47  ;;  %v12663_v49 = vld [vmem:[#allocation32_spill] sm:$0xff]  ;;  %v12667_v33 = vld [vmem:[#allocation11_spill] sm:$0xff] }
 0x4d3   : > { %v11036_v50 = vld [vmem:[#allocation3 + $0x20] sm:$0xff]  ;;  %v3967_v21 = vadd.f32 %v3931_v20, %v3775_v9  ;;  %5187 = vmatpush.msra.mxu3 %v12663_v49  ;;  %v3520_v20 = vadd.f32 %v12667_v33, %v12666_v25  ;;  %v3777_v9 = vadd.f32 %v12671_v22, %v3579_v56  ;;  %v12674_v47 = vld [vmem:[#allocation55_spill] sm:$0xff]  ;;  %v12675_v49 = vld [vmem:[#allocation56_spill] sm:$0xff]  ;;  %v3523_v56 = vadd.f32 %v12679_v37, %v12678_v41 }
 0x4d4   : > { %4233 = vst.msk [vmem:[#allocation3 + $0x28] sm:$0xff] %vm1316_vm0, %v4219_v48  ;;  %v4178_v8 = vmax.f32 %v4156_v46, %v4157_v53  ;;  %6662 = vmatmul.msk.f32.gmra.mxu0 %vm1316_vm0, %v11036_v50  ;;  %6673 = vmatmul.msk.f32.gmra.mxu1 %vm1316_vm0, %v11036_v50  ;;  %v11113_v25 = vld [vmem:[%s12494_s3 + $0x160] sm:$0xff]  ;;  %v3262_v22 = vld [vmem:[#allocation3 + $0x40] sm:$0xff]  ;;  %v12688_v41 = vld [vmem:[#allocation43_spill] sm:$0xff] }
 0x4d5   : > { %6689 = vmatmul.msk.f32.gmra.mxu2 %vm1316_vm0, %v11059_v59  ;;  %5188 = vmatpush.msra.mxu3 %v12665_v39  ;;  %v3776_v26 = vadd.f32 %v12670_v60, %v3520_v20  ;;  %v12677_v33 = vld [vmem:[#allocation60_spill] sm:$0xff] }
 0x4d6   : > { %v4192_v63 = vmax.f32 %v3260_v32, %v4178_v8  ;;  %6700 = vmatmul.msk.f32.gmra.mxu3 %vm1316_vm0, %v11059_v59  ;;  %5141 = vmatpush.msra.mxu2 %v12664_v57  ;;  %v11095_v8 = vld [vmem:[%s12494_s3 + $0x178] sm:$0xff]  ;;  %v3261_v32 = vld [vmem:[#allocation3 + $0x38] sm:$0xff] }
 0x4d7   : > { %4699 = vmatpush.msrb.mxu1 %v11095_v8  ;;  %5189 = vmatpush.msra.mxu3 %v12673_v40 }
 0x4d8   : > { %v4206_v52 = vadd.f32 %v10803_v6, %v4192_v63  ;;  %v4064_v58 = vpop.f32.mrf.mxu2  ;;  %5142 = vmatpush.msra.mxu2 %v12672_v51  ;;  %4653 = vmatpush.msrb.mxu0 %v11113_v25  ;;  %v12683_v51 = vld [vmem:[#allocation38_spill] sm:$0xff] }
 0x4d9   : > { %v4123_v10 = vpop.f32.mrf.mxu3  ;;  %v4158_v23 = vadd.f32 %v4064_v58, %v3966_v7  ;;  %v3875_v48 = vpop.f32.mrf.mxu0  ;;  %5190 = vmatpush.msra.mxu3 %v12675_v49 }
 0x4da   : > { %v4220_v2 = vmax.f32 %v4206_v52, 0.0  ;;  %v4159_v1 = vadd.f32 %v4123_v10, %v3967_v21  ;;  %v3934_v46 = vpop.f32.mrf.mxu1  ;;  %v3968_v7 = vadd.f32 %v3875_v48, %v3776_v26  ;;  %5143 = vmatpush.msra.mxu2 %v12674_v47  ;;  %v11118_v48 = vld [vmem:[%s12494_s3 + $0x168] sm:$0xff] }
 0x4db   : > { %v11074_v53 = vld [vmem:[#allocation3 + $0x28] sm:$0xff]  ;;  %v3969_v21 = vadd.f32 %v3934_v46, %v3777_v9  ;;  %4700 = vmatpush.msrb.mxu1 %v11118_v48  ;;  %v12682_v9 = vld [vmem:[#allocation37_spill] sm:$0xff] }
 0x4dc   : > { %4234 = vst.msk [vmem:[#allocation3 + $0x30] sm:$0xff] %vm1316_vm0, %v4220_v2  ;;  %v4179_v62 = vmax.f32 %v4158_v23, %v4159_v1  ;;  %6663 = vmatmul.msk.f32.gmra.mxu0 %vm1316_vm0, %v11074_v53  ;;  %6674 = vmatmul.msk.f32.gmra.mxu1 %vm1316_vm0, %v11074_v53  ;;  %v12676_v46 = vld [vmem:[#allocation59_spill] sm:$0xff] }
 0x4dd   : > { %6768 = vmatmul.msk.f32.vlgmr.msrb.gmra.mxu2 %vm1316_vm0, %v10952_v44 }
 0x4de   : > { %v4193_v63 = vmax.f32 %v3261_v32, %v4179_v62  ;;  %6779 = vmatmul.msk.f32.vlgmr.msrb.gmra.mxu3 %vm1316_vm0, %v10952_v44  ;;  %6877 = vmatpush.msk.msrb.mxu2 %vm4338_vm1, %v12676_v46  ;;  %v12680_v62 = vld [vmem:[#allocation5_spill] sm:$0xff]  ;;  %v12681_v32 = vld [vmem:[#allocation35_spill] sm:$0xff]  ;;  %v12687_v46 = vld [vmem:[#allocation40_spill] sm:$0xff] }
 0x4df   : > { %6888 = vmatpush.msk.msrb.mxu3 %vm4338_vm1, %v12677_v33  ;;  %v3582_v60 = vadd.f32 %v12681_v32, %v12680_v62 }
 0x4e0   : > { %v4207_v52 = vadd.f32 %v10803_v6, %v4193_v63  ;;  %v4067_v58 = vpop.f32.mrf.mxu2  ;;  %5322 = vmatpush.msrb.mxu2 %v10777_v54  ;;  %v3778_v63 = vadd.f32 %v12682_v9, %v3523_v56  ;;  %v12689_v56 = vld [vmem:[#allocation44_spill] sm:$0xff] }
 0x4e1   : > { %v4126_v10 = vpop.f32.mrf.mxu3  ;;  %v4160_v23 = vadd.f32 %v4067_v58, %v3968_v7  ;;  %v3878_v57 = vpop.f32.mrf.mxu0  ;;  %5369 = vmatpush.msrb.mxu3 %v10782_v18  ;;  %v3779_v40 = vadd.f32 %v12683_v51, %v3582_v60 }
 0x4e2   : > { %v4221_v2 = vmax.f32 %v4207_v52, 0.0  ;;  %v4161_v1 = vadd.f32 %v4126_v10, %v3969_v21  ;;  %v3937_v39 = vpop.f32.mrf.mxu1  ;;  %5323 = vmatpush.msrb.mxu2 %v10814_v14  ;;  %v3970_v54 = vadd.f32 %v3878_v57, %v3778_v63  ;;  %v12684_v14 = vld [vmem:[#allocation19_spill] sm:$0xff] }
 0x4e3   : > { %v11124_v20 = vld [vmem:[#allocation3 + $0x30] sm:$0xff]  ;;  %5370 = vmatpush.msrb.mxu3 %v10819_v45  ;;  %v3971_v21 = vadd.f32 %v3937_v39, %v3779_v40  ;;  %v12685_v45 = vld [vmem:[#allocation39_spill] sm:$0xff]  ;;  %v12686_v39 = vld [vmem:[#allocation6_spill] sm:$0xff] }
 0x4e4   : > { %4235 = vst.msk [vmem:[#allocation3 + $0x38] sm:$0xff] %vm1316_vm0, %v4221_v2  ;;  %v4180_v26 = vmax.f32 %v4160_v23, %v4161_v1  ;;  %6664 = vmatmul.msk.f32.gmra.mxu0 %vm1316_vm0, %v11124_v20  ;;  %6675 = vmatmul.msk.f32.gmra.mxu1 %vm1316_vm0, %v11124_v20  ;;  %v3526_v57 = vadd.f32 %v12685_v45, %v12684_v14  ;;  %v12695_v45 = vld [vmem:[#allocation48_spill] sm:$0xff] }
 0x4e5   : > { %6769 = vmatmul.msk.f32.gmra.mxu2 %vm1316_vm0, %v11000_v5  ;;  %5371 = vmatpush.msrb.mxu3 %v10865_v35  ;;  %v3585_v33 = vadd.f32 %v12687_v46, %v12686_v39  ;;  %v11166_v35 = vld [vmem:[%s12494_s3 + $0x360] sm:$0xf] }
 0x4e6   : > { %v4194_v52 = vmax.f32 %v3262_v22, %v4180_v26  ;;  %6780 = vmatmul.msk.f32.gmra.mxu3 %vm1316_vm0, %v11000_v5  ;;  %5324 = vmatpush.msrb.mxu2 %v10860_v15  ;;  %v3780_v37 = vadd.f32 %v12688_v41, %v3526_v57 }
 0x4e7   : > { %5372 = vmatpush.msrb.mxu3 %v10916_v13  ;;  %v3263_v13 = vld [vmem:[#allocation3 + $0x48] sm:$0xff]  ;;  %6811 = vmatpush.msk.msra.mxu0 %vm4338_vm1, %v11166_v35  ;;  %v3781_v62 = vadd.f32 %v12689_v56, %v3585_v33 }
 0x4e8   : > { %v4208_v7 = vadd.f32 %v10803_v6, %v4194_v52  ;;  %v4070_v18 = vpop.f32.mrf.mxu2  ;;  %5325 = vmatpush.msrb.mxu2 %v10911_v4  ;;  %v11171_v4 = vld [vmem:[%s12494_s3 + $0x368] sm:$0xf]  ;;  %v11242_v56 = vld [vmem:[%s12494_s3 + $0x338] sm:$0xff] }
 0x4e9   : > { %v4129_v58 = vpop.f32.mrf.mxu3  ;;  %v4162_v47 = vadd.f32 %v4070_v18, %v3970_v54  ;;  %v3881_v2 = vpop.f32.mrf.mxu0  ;;  %6822 = vmatpush.msk.msra.mxu1 %vm4338_vm1, %v11171_v4  ;;  %5373 = vmatpush.msrb.mxu3 %v10971_v0  ;;  %v12691_v0 = vld [vmem:[#allocation45_spill] sm:$0xff] }
 0x4ea   : > { %v4222_v10 = vmax.f32 %v4208_v7, 0.0  ;;  %v4163_v49 = vadd.f32 %v4129_v58, %v3971_v21  ;;  %v3940_v23 = vpop.f32.mrf.mxu1  ;;  %5326 = vmatpush.msrb.mxu2 %v10966_v27  ;;  %v3972_v26 = vadd.f32 %v3881_v2, %v3780_v37  ;;  %v12690_v27 = vld [vmem:[#allocation20_spill] sm:$0xff]  ;;  %v12692_v58 = vld [vmem:[#allocation21_spill] sm:$0xff]  ;;  %v11237_v37 = vld [vmem:[%s12494_s3 + $0x330] sm:$0xff] }
 0x4eb   : > { %v11150_v1 = vld [vmem:[#allocation3 + $0x38] sm:$0xff]  ;;  %v3973_v22 = vadd.f32 %v3940_v23, %v3781_v62  ;;  %5374 = vmatpush.msrb.mxu3 %v10985_v3  ;;  %v3529_v18 = vadd.f32 %v12691_v0, %v12690_v27  ;;  %v11204_v3 = vld [vmem:[%s12494_s3 + $0x350] sm:$0xff]  ;;  %v12694_v23 = vld [vmem:[#allocation47_spill] sm:$0xff] }
 0x4ec   : > { %4236 = vst.msk [vmem:[#allocation3 + $0x40] sm:$0xff] %vm1316_vm0, %v4222_v10  ;;  %v4181_v15 = vmax.f32 %v4162_v47, %v4163_v49  ;;  %6665 = vmatmul.msk.f32.gmra.mxu0 %vm1316_vm0, %v11150_v1  ;;  %6676 = vmatmul.msk.f32.gmra.mxu1 %vm1316_vm0, %v11150_v1  ;;  %v12693_v10 = vld [vmem:[#allocation46_spill] sm:$0xff]  ;;  %v3264_v49 = vld [vmem:[#allocation3 + $0x50] sm:$0xff]  ;;  %v11221_v2 = vld [vmem:[%s12494_s3 + $0x348] sm:$0xff] }
 0x4ed   : > { %6770 = vmatmul.msk.f32.gmra.mxu2 %vm1316_vm0, %v11036_v50  ;;  %5375 = vmatpush.msrb.mxu3 %v11019_v19  ;;  %v3588_v47 = vadd.f32 %v12693_v10, %v12692_v58  ;;  %v11214_v19 = vld [vmem:[%s12494_s3 + $0x340] sm:$0xff]  ;;  %v3782_v14 = vadd.f32 %v12694_v23, %v3529_v18 }
 0x4ee   : > { %v4195_v32 = vmax.f32 %v3263_v13, %v4181_v15  ;;  %6781 = vmatmul.msk.f32.gmra.mxu3 %vm1316_vm0, %v11036_v50  ;;  %5327 = vmatpush.msrb.mxu2 %v10976_v29  ;;  %v12701_v27 = vld [vmem:[#allocation52_spill] sm:$0xff] }
 0x4ef   : > { %5010 = vmatpush.msra.mxu0 %v11204_v3  ;;  %v3783_v57 = vadd.f32 %v12695_v45, %v3588_v47  ;;  %5376 = vmatpush.msrb.mxu3 %v11057_v16 }
 0x4f0   : > { %v4209_v60 = vadd.f32 %v10803_v6, %v4195_v32  ;;  %v4073_v9 = vpop.f32.mrf.mxu2  ;;  %5328 = vmatpush.msrb.mxu2 %v11014_v36  ;;  %v11209_v36 = vld [vmem:[%s12494_s3 + $0x358] sm:$0xff] }
 0x4f1   : > { %v4132_v63 = vpop.f32.mrf.mxu3  ;;  %v4164_v40 = vadd.f32 %v4073_v9, %v3972_v26  ;;  %v3884_v7 = vpop.f32.mrf.mxu0  ;;  %5057 = vmatpush.msra.mxu1 %v11209_v36  ;;  %5011 = vmatpush.msra.mxu0 %v11214_v19  ;;  %v12697_v9 = vld [vmem:[#allocation49_spill] sm:$0xff] }
 0x4f2   : > { %v4223_v51 = vmax.f32 %v4209_v60, 0.0  ;;  %v4165_v52 = vadd.f32 %v4132_v63, %v3973_v22  ;;  %v3943_v54 = vpop.f32.mrf.mxu1  ;;  %v3974_v33 = vadd.f32 %v3884_v7, %v3782_v14  ;;  %5329 = vmatpush.msrb.mxu2 %v11052_v12  ;;  %5377 = vmatpush.msrb.mxu3 %v11095_v8  ;;  %v12696_v22 = vld [vmem:[#allocation22_spill] sm:$0xff] }
 0x4f3   : > { %v11188_v21 = vld [vmem:[#allocation3 + $0x40] sm:$0xff]  ;;  %5058 = vmatpush.msra.mxu1 %v11221_v2  ;;  %v3975_v15 = vadd.f32 %v3943_v54, %v3783_v57  ;;  %5012 = vmatpush.msra.mxu0 %v11237_v37  ;;  %v3532_v63 = vadd.f32 %v12697_v9, %v12696_v22  ;;  %v3265_v54 = vld [vmem:[#allocation3 + $0x58] sm:$0xff]  ;;  %v12702_v57 = vld [vmem:[#allocation23_spill] sm:$0xff] }
 0x4f4   : > { %4237 = vst.msk [vmem:[#allocation3 + $0x48] sm:$0xff] %vm1316_vm0, %v4223_v51  ;;  %v4182_v29 = vmax.f32 %v4164_v40, %v4165_v52  ;;  %6666 = vmatmul.msk.f32.gmra.mxu0 %vm1316_vm0, %v11188_v21  ;;  %6677 = vmatmul.msk.f32.gmra.mxu1 %vm1316_vm0, %v11188_v21  ;;  %v12698_v51 = vld [vmem:[#allocation7_spill] sm:$0xff]  ;;  %v12699_v40 = vld [vmem:[#allocation50_spill] sm:$0xff] }
 0x4f5   : > { %6771 = vmatmul.msk.f32.gmra.mxu2 %vm1316_vm0, %v11074_v53  ;;  %5059 = vmatpush.msra.mxu1 %v11242_v56  ;;  %v3591_v52 = vadd.f32 %v12699_v40, %v12698_v51  ;;  %v12707_v22 = vld [vmem:[#allocation58_spill] sm:$0xff] }
 0x4f6   : > { %v4196_v39 = vmax.f32 %v3264_v49, %v4182_v29  ;;  %6782 = vmatmul.msk.f32.gmra.mxu3 %vm1316_vm0, %v11074_v53  ;;  %5330 = vmatpush.msrb.mxu2 %v11090_v30  ;;  %v12700_v30 = vld [vmem:[#allocation51_spill] sm:$0xff] }
 0x4f7   : > { %5378 = vmatpush.msrb.mxu3 %v11118_v48  ;;  %v3784_v8 = vadd.f32 %v12700_v30, %v3532_v63  ;;  %v3785_v0 = vadd.f32 %v12701_v27, %v3591_v52  ;;  %v11276_v48 = vld [vmem:[%s12494_s3 + $0x328] sm:$0xff]  ;;  %v11304_v30 = vld [vmem:[%s12494_s3 + $0x318] sm:$0xff] }
 0x4f8   : > { %v4210_v46 = vadd.f32 %v10803_v6, %v4196_v39  ;;  %v4076_v13 = vpop.f32.mrf.mxu2  ;;  %5331 = vmatpush.msrb.mxu2 %v11113_v25  ;;  %v11271_v25 = vld [vmem:[%s12494_s3 + $0x320] sm:$0xff]  ;;  %5060 = vmatpush.msra.mxu1 %v11276_v48  ;;  %v12703_v39 = vld [vmem:[#allocation53_spill] sm:$0xff] }
 0x4f9   : > { %v4135_v41 = vpop.f32.mrf.mxu3  ;;  %v4166_v32 = vadd.f32 %v4076_v13, %v3974_v33  ;;  %v3887_v12 = vpop.f32.mrf.mxu0  ;;  %5013 = vmatpush.msra.mxu0 %v11271_v25  ;;  %v12704_v33 = vld [vmem:[#allocation8_spill] sm:$0xff] }
 0x4fa   : > { %v4224_v62 = vmax.f32 %v4210_v46, 0.0  ;;  %v4167_v60 = vadd.f32 %v4135_v41, %v3975_v15  ;;  %v3946_v16 = vpop.f32.mrf.mxu1  ;;  %v3976_v10 = vadd.f32 %v3887_v12, %v3784_v8  ;;  %v3535_v46 = vadd.f32 %v12703_v39, %v12702_v57  ;;  %v12705_v15 = vld [vmem:[#allocation54_spill] sm:$0xff]  ;;  %v12706_v12 = vld [vmem:[#allocation57_spill] sm:$0xff]  ;;  %5061 = vmatpush.msra.mxu1 %v11304_v30  ;;  %v11351_v57 = vld [vmem:[%s12494_s3 + $0x2f8] sm:$0xff] }
 0x4fb   : > { %v11246_v26 = vld [vmem:[#allocation3 + $0x48] sm:$0xff]  ;;  %v3977_v47 = vadd.f32 %v3946_v16, %v3785_v0  ;;  %v3594_v13 = vadd.f32 %v12705_v15, %v12704_v33  ;;  %v11372_v15 = vld [vmem:[%s12494_s3 + $0x2e0] sm:$0xff] }
 0x4fc   : > { %4238 = vst.msk [vmem:[#allocation3 + $0x50] sm:$0xff] %vm1316_vm0, %v4224_v62  ;;  %v4183_v7 = vmax.f32 %v4166_v32, %v4167_v60  ;;  %6667 = vmatmul.msk.f32.gmra.mxu0 %vm1316_vm0, %v11246_v26  ;;  %6678 = vmatmul.msk.f32.gmra.mxu1 %vm1316_vm0, %v11246_v26  ;;  %v3266_v62 = vld [vmem:[#allocation3 + $0x60] sm:$0xff]  ;;  %v3786_v16 = vadd.f32 %v12706_v12, %v3535_v46 }
 0x4fd   : > { %6772 = vmatmul.msk.f32.gmra.mxu2 %vm1316_vm0, %v11124_v20  ;;  %v3787_v9 = vadd.f32 %v12707_v22, %v3594_v13  ;;  %v11377_v13 = vld [vmem:[%s12494_s3 + $0x2e8] sm:$0xff] }
 0x4fe   : > { %v4197_v18 = vmax.f32 %v3265_v54, %v4183_v7  ;;  %6783 = vmatmul.msk.f32.gmra.mxu3 %vm1316_vm0, %v11124_v20  ;;  %v11299_v54 = vld [vmem:[%s12494_s3 + $0x310] sm:$0xff] }
 0x4ff   : > { %5014 = vmatpush.msra.mxu0 %v11299_v54 }
 0x500   : > { %v4211_v58 = vadd.f32 %v10803_v6, %v4197_v18  ;;  %v4079_v29 = vpop.f32.mrf.mxu2 }
 0x501   : > { %v4138_v49 = vpop.f32.mrf.mxu3  ;;  %v4168_v14 = vadd.f32 %v4079_v29, %v3976_v10  ;;  %v3890_v32 = vpop.f32.mrf.mxu0  ;;  %v11325_v29 = vld [vmem:[%s12494_s3 + $0x308] sm:$0xff] }
 0x502   : > { %v4225_v23 = vmax.f32 %v4211_v58, 0.0  ;;  %v4169_v45 = vadd.f32 %v4138_v49, %v3977_v47  ;;  %v3949_v60 = vpop.f32.mrf.mxu1  ;;  %v3978_v40 = vadd.f32 %v3890_v32, %v3786_v16  ;;  %v3267_v58 = vld [vmem:[#allocation3 + $0x68] sm:$0xff]  ;;  %v11320_v47 = vld [vmem:[%s12494_s3 + $0x300] sm:$0xff]  ;;  %5062 = vmatpush.msra.mxu1 %v11325_v29  ;;  %v11392_v32 = vld [vmem:[%s12494_s3 + $0x2d0] sm:$0xff] }
 0x503   : > { %v3979_v52 = vadd.f32 %v3949_v60, %v3787_v9  ;;  %5015 = vmatpush.msra.mxu0 %v11320_v47  ;;  %v11363_v33 = vld [vmem:[#allocation3 + $0x50] sm:$0xff]  ;;  %v11397_v60 = vld [vmem:[%s12494_s3 + $0x2d8] sm:$0xff] }
 0x504   : > { %4239 = vst.msk [vmem:[#allocation3 + $0x58] sm:$0xff] %vm1316_vm0, %v4225_v23  ;;  %v4184_v41 = vmax.f32 %v4168_v14, %v4169_v45  ;;  %6724 = vmatmul.msk.f32.vlgmr.msrb.gmra.mxu0 %vm1316_vm0, %v10755_v55  ;;  %6735 = vmatmul.msk.f32.vlgmr.msrb.gmra.mxu1 %vm1316_vm0, %v10755_v55  ;;  %v11418_v9 = vld [vmem:[%s12494_s3 + $0x2c0] sm:$0xff] }
 0x505   : > { %6773 = vmatmul.msk.f32.gmra.mxu2 %vm1316_vm0, %v11150_v1  ;;  %5063 = vmatpush.msra.mxu1 %v11351_v57 }
 0x506   : > { %v4198_v63 = vmax.f32 %v3266_v62, %v4184_v41  ;;  %6784 = vmatmul.msk.f32.gmra.mxu3 %vm1316_vm0, %v11150_v1 }
 0x507   : > { %5064 = vmatpush.msra.mxu1 %v11377_v13 }
 0x508   : > { %v4212_v51 = vadd.f32 %v10803_v6, %v4198_v63  ;;  %v4082_v7 = vpop.f32.mrf.mxu2  ;;  %v11423_v63 = vld [vmem:[%s12494_s3 + $0x2c8] sm:$0xff] }
 0x509   : > { %v4141_v55 = vpop.f32.mrf.mxu3  ;;  %v4170_v27 = vadd.f32 %v4082_v7, %v3978_v40  ;;  %5065 = vmatpush.msra.mxu1 %v11397_v60  ;;  %v7027_v40 = vld [vmem:[%s12494_s3 + $0xa0] sm:$0xf] }
 0x50a   : > { %v4226_v8 = vmax.f32 %v4212_v51, 0.0  ;;  %v4171_v0 = vadd.f32 %v4141_v55, %v3979_v52  ;;  %v7026_v51 = vld [vmem:[#allocation2 + $0x10] sm:$0xff]  ;;  %v7028_v52 = vld [vmem:[%s12494_s3 + $0xa8] sm:$0xf] }
 0x50b   : > { %v11399_v12 = vld [vmem:[#allocation3 + $0x58] sm:$0xff]  ;;  %5066 = vmatpush.msra.mxu1 %v11423_v63 }
 0x50c   : > { %4240 = vst.msk [vmem:[#allocation3 + $0x60] sm:$0xff] %vm1316_vm0, %v4226_v8  ;;  %v4185_v18 = vmax.f32 %v4170_v27, %v4171_v0  ;;  %6725 = vmatmul.msk.f32.gmra.mxu0 %vm1316_vm0, %v10787_v28  ;;  %6736 = vmatmul.msk.f32.gmra.mxu1 %vm1316_vm0, %v10787_v28  ;;  %v7029_v8 = vld [vmem:[%s12494_s3 + $0x90] sm:$0xff]  ;;  %v7030_v27 = vld [vmem:[%s12494_s3 + $0x98] sm:$0xff] }
 0x50d   : > { %6774 = vmatmul.msk.f32.gmra.mxu2 %vm1316_vm0, %v11188_v21  ;;  %12708 = vst [vmem:[#allocation24_spill] sm:$0xff] %v11399_v12  ;;  %6866 = vmatpush.msk.msrb.mxu1 %vm4338_vm1, %v7028_v52 }
 0x50e   : > { %v4199_v10 = vmax.f32 %v3267_v58, %v4185_v18  ;;  %6785 = vmatmul.msk.f32.gmra.mxu3 %vm1316_vm0, %v11188_v21  ;;  %v7032_v18 = vld [vmem:[%s12494_s3 + $0x88] sm:$0xff]  ;;  %v7035_v58 = vld [vmem:[%s12494_s3 + $0x60] sm:$0xff] }
 0x50f   : > { %5275 = vmatpush.msrb.mxu1 %v7030_v27  ;;  %v7044_v27 = vld [vmem:[%s12494_s3 + $0x28] sm:$0xff] }
 0x510   : > { %v4213_v49 = vadd.f32 %v10803_v6, %v4199_v10  ;;  %v11330_v23 = vpop.f32.mrf.mxu2  ;;  %v11346_v6 = vld [vmem:[%s12494_s3 + $0x2f0] sm:$0xff]  ;;  %v7036_v10 = vld [vmem:[%s12494_s3 + $0x68] sm:$0xff] }
 0x511   : > { %v11332_v14 = vpop.f32.mrf.mxu3  ;;  %5016 = vmatpush.msra.mxu0 %v11346_v6  ;;  %5276 = vmatpush.msrb.mxu1 %v7032_v18 }
 0x512   : > { %v4227_v45 = vmax.f32 %v4213_v49, 0.0 }
 0x513   : > { %5017 = vmatpush.msra.mxu0 %v11372_v15 }
 0x514   : > { %4241 = vst.msk [vmem:[#allocation3 + $0x68] sm:$0xff] %vm1316_vm0, %v4227_v45  ;;  %6726 = vmatmul.msk.f32.gmra.mxu0 %vm1316_vm0, %v10824_v38  ;;  %6737 = vmatmul.msk.f32.gmra.mxu1 %vm1316_vm0, %v10824_v38 }
 0x515   : > { %6775 = vmatmul.msk.f32.gmra.mxu2 %vm1316_vm0, %v11246_v26  ;;  %5018 = vmatpush.msra.mxu0 %v11392_v32 }
 0x516   : > { %6786 = vmatmul.msk.f32.gmra.mxu3 %vm1316_vm0, %v11246_v26 }
 0x517   : > { %5019 = vmatpush.msra.mxu0 %v11418_v9 }
 0x518   : > { %v11355_v39 = vpop.f32.mrf.mxu2 }
 0x519   : > { %v11357_v46 = vpop.f32.mrf.mxu3  ;;  %6855 = vmatpush.msk.msrb.mxu0 %vm4338_vm1, %v7027_v40 }
 0x51b   : > { %5228 = vmatpush.msrb.mxu0 %v7029_v8  ;;  %v7043_v8 = vld [vmem:[%s12494_s3 + $0x20] sm:$0xff] }
 0x51c   : > { %6727 = vmatmul.msk.f32.gmra.mxu0 %vm1316_vm0, %v10870_v11  ;;  %6738 = vmatmul.msk.f32.gmra.mxu1 %vm1316_vm0, %v10870_v11 }
 0x51d   : > { %6776 = vmatmul.msk.f32.gmra.mxu2 %vm1316_vm0, %v11363_v33 }
 0x51e   : > { %6787 = vmatmul.msk.f32.gmra.mxu3 %vm1316_vm0, %v11363_v33 }
 0x520   : > { %v11381_v41 = vpop.f32.mrf.mxu2 }
 0x521   : > { %v11383_v62 = vpop.f32.mrf.mxu3 }
 0x524   : > { %6728 = vmatmul.msk.f32.gmra.mxu0 %vm1316_vm0, %v10923_v17  ;;  %6739 = vmatmul.msk.f32.gmra.mxu1 %vm1316_vm0, %v10923_v17 }
 0x525   : > { %6777 = vmatmul.msk.f32.gmra.mxu2 %vm1316_vm0, %v11399_v12 }
 0x526   : > { %6788 = vmatmul.msk.f32.gmra.mxu3 %vm1316_vm0, %v11399_v12 }
 0x528   : > { %v11407_v16 = vpop.f32.mrf.mxu2 }
 0x529   : > { %v11409_v22 = vpop.f32.mrf.mxu3 }
 0x52c   : > { %6729 = vmatmul.msk.f32.gmra.mxu0 %vm1316_vm0, %v10978_v43  ;;  %6740 = vmatmul.msk.f32.gmra.mxu1 %vm1316_vm0, %v10978_v43 }
 0x52d   : > { %6834 = vmatmul.msk.f32.vlgmr.msra.gmra.mxu2 %vm1316_vm0, %v7026_v51 }
 0x52e   : > { %6845 = vmatmul.msk.f32.vlgmr.msra.gmra.mxu3 %vm1316_vm0, %v7026_v51  ;;  %6921 = vmatpush.msk.msra.mxu2 %vm4338_vm1, %v11166_v35  ;;  %v7038_v51 = vld [vmem:[%s12494_s3 + $0x58] sm:$0xff] }
 0x52f   : > { %6932 = vmatpush.msk.msra.mxu3 %vm4338_vm1, %v11171_v4  ;;  %v7031_v4 = vld [vmem:[%s12494_s3 + $0x80] sm:$0xff] }
 0x530   : > { %v11451_v0 = vpop.f32.mrf.mxu2  ;;  %5590 = vmatpush.msra.mxu2 %v11204_v3  ;;  %5229 = vmatpush.msrb.mxu0 %v7031_v4  ;;  %v7033_v3 = vld [vmem:[%s12494_s3 + $0x70] sm:$0xff] }
 0x531   : > { %v11441_v7 = vpop.f32.mrf.mxu0  ;;  %v11443_v55 = vpop.f32.mrf.mxu1  ;;  %5637 = vmatpush.msra.mxu3 %v11209_v36  ;;  %v7034_v36 = vld [vmem:[%s12494_s3 + $0x78] sm:$0xff] }
 0x532   : > { %v11453_v35 = vpop.f32.mrf.mxu3  ;;  %5230 = vmatpush.msrb.mxu0 %v7033_v3  ;;  %5277 = vmatpush.msrb.mxu1 %v7034_v36  ;;  %v7046_v3 = vld [vmem:[%s12494_s3 + $0x18] sm:$0xff] }
 0x533   : > { %5591 = vmatpush.msra.mxu2 %v11214_v19  ;;  %5638 = vmatpush.msra.mxu3 %v11221_v2  ;;  %v7039_v19 = vld [vmem:[%s12494_s3 + $0x40] sm:$0xff]  ;;  %v7040_v2 = vld [vmem:[%s12494_s3 + $0x48] sm:$0xff] }
 0x534   : > { %6730 = vmatmul.msk.f32.gmra.mxu0 %vm1316_vm0, %v11021_v42  ;;  %6741 = vmatmul.msk.f32.gmra.mxu1 %vm1316_vm0, %v11021_v42 }
 0x535   : > { %6835 = vmatmul.msk.f32.gmra.mxu2 %vm1316_vm0, %v10787_v28  ;;  %5231 = vmatpush.msrb.mxu0 %v7035_v58 }
 0x536   : > { %6846 = vmatmul.msk.f32.gmra.mxu3 %vm1316_vm0, %v10787_v28  ;;  %5278 = vmatpush.msrb.mxu1 %v7036_v10  ;;  %v7037_v28 = vld [vmem:[%s12494_s3 + $0x50] sm:$0xff]  ;;  %v7048_v10 = vld [vmem:[%s12494_s3 + $0x8] sm:$0xff] }
 0x537   : > { %5232 = vmatpush.msrb.mxu0 %v7037_v28  ;;  %5592 = vmatpush.msra.mxu2 %v11237_v37  ;;  %v7041_v37 = vld [vmem:[%s12494_s3 + $0x30] sm:$0xff]  ;;  %v11575_v28 = vld [vmem:[#allocation2 + $0x58] sm:$0xff] }
 0x538   : > { %5279 = vmatpush.msrb.mxu1 %v7038_v51  ;;  %v11495_v40 = vpop.f32.mrf.mxu2  ;;  %5639 = vmatpush.msra.mxu3 %v11242_v56  ;;  %v7042_v56 = vld [vmem:[%s12494_s3 + $0x38] sm:$0xff] }
 0x539   : > { %v11485_v49 = vpop.f32.mrf.mxu0  ;;  %v11487_v45 = vpop.f32.mrf.mxu1  ;;  %5233 = vmatpush.msrb.mxu0 %v7039_v19  ;;  %5593 = vmatpush.msra.mxu2 %v11271_v25  ;;  %v11545_v25 = vld [vmem:[#allocation2 + $0x50] sm:$0xff] }
 0x53a   : > { %v11497_v52 = vpop.f32.mrf.mxu3  ;;  %5280 = vmatpush.msrb.mxu1 %v7040_v2  ;;  %5640 = vmatpush.msra.mxu3 %v11276_v48  ;;  %v7047_v48 = vld [vmem:[%s12494_s3] sm:$0xff]  ;;  %v7054_v2 = vld [vmem:[%s12494_s3 + $0x290] sm:$0xff] }
 0x53b   : > { %5234 = vmatpush.msrb.mxu0 %v7041_v37  ;;  %5594 = vmatpush.msra.mxu2 %v11299_v54  ;;  %v7055_v37 = vld [vmem:[%s12494_s3 + $0x298] sm:$0xff] }
 0x53c   : > { %6731 = vmatmul.msk.f32.gmra.mxu0 %vm1316_vm0, %v11059_v59  ;;  %6742 = vmatmul.msk.f32.gmra.mxu1 %vm1316_vm0, %v11059_v59 }
 0x53d   : > { %5281 = vmatpush.msrb.mxu1 %v7042_v56  ;;  %6836 = vmatmul.msk.f32.gmra.mxu2 %vm1316_vm0, %v10824_v38 }
 0x53e   : > { %6847 = vmatmul.msk.f32.gmra.mxu3 %vm1316_vm0, %v10824_v38  ;;  %5235 = vmatpush.msrb.mxu0 %v7043_v8  ;;  %v7045_v38 = vld [vmem:[%s12494_s3 + $0x10] sm:$0xff] }
 0x53f   : > { %5282 = vmatpush.msrb.mxu1 %v7044_v27  ;;  %5641 = vmatpush.msra.mxu3 %v11304_v30  ;;  %v7056_v27 = vld [vmem:[%s12494_s3 + $0x280] sm:$0xff] }
 0x540   : > { %5236 = vmatpush.msrb.mxu0 %v7045_v38  ;;  %v11539_v36 = vpop.f32.mrf.mxu2  ;;  %5595 = vmatpush.msra.mxu2 %v11320_v47  ;;  %v7057_v38 = vld [vmem:[%s12494_s3 + $0x288] sm:$0xff] }
 0x541   : > { %v11529_v4 = vpop.f32.mrf.mxu0  ;;  %v11531_v18 = vpop.f32.mrf.mxu1  ;;  %5283 = vmatpush.msrb.mxu1 %v7046_v3  ;;  %5642 = vmatpush.msra.mxu3 %v11325_v29  ;;  %v11641_v3 = vld [vmem:[#allocation2 + $0x28] sm:$0xff] }
 0x542   : > { %v11541_v58 = vpop.f32.mrf.mxu3  ;;  %5237 = vmatpush.msrb.mxu0 %v7047_v48  ;;  %5596 = vmatpush.msra.mxu2 %v11346_v6  ;;  %12712 = vst [vmem:[#allocation9_spill] sm:$0xff] %v11641_v3  ;;  %v7059_v48 = vld [vmem:[%s12494_s3 + $0x270] sm:$0xff] }
 0x543   : > { %5284 = vmatpush.msrb.mxu1 %v7048_v10  ;;  %5643 = vmatpush.msra.mxu3 %v11351_v57  ;;  %v7060_v10 = vld [vmem:[%s12494_s3 + $0x278] sm:$0xff] }
 0x544   : > { %6732 = vmatmul.msk.f32.gmra.mxu0 %vm1316_vm0, %v11545_v25  ;;  %6743 = vmatmul.msk.f32.gmra.mxu1 %vm1316_vm0, %v11545_v25 }
 0x545   : > { %6837 = vmatmul.msk.f32.gmra.mxu2 %vm1316_vm0, %v10870_v11  ;;  %5644 = vmatpush.msra.mxu3 %v11377_v13  ;;  %v11597_v13 = vld [vmem:[#allocation2 + $0x20] sm:$0xff] }
 0x546   : > { %6848 = vmatmul.msk.f32.gmra.mxu3 %vm1316_vm0, %v10870_v11  ;;  %5597 = vmatpush.msra.mxu2 %v11372_v15  ;;  %12709 = vst [vmem:[#allocation25_spill] sm:$0xff] %v11597_v13 }
 0x547   : > { %5645 = vmatpush.msra.mxu3 %v11397_v60  ;;  %v7051_v60 = vld [vmem:[%s12494_s3 + $0x2b8] sm:$0xf] }
 0x548   : > { %v11571_v47 = vpop.f32.mrf.mxu2  ;;  %5598 = vmatpush.msra.mxu2 %v11392_v32  ;;  %v7050_v32 = vld [vmem:[%s12494_s3 + $0x2b0] sm:$0xf] }
 0x549   : > { %v11565_v54 = vpop.f32.mrf.mxu0  ;;  %v11567_v30 = vpop.f32.mrf.mxu1  ;;  %5646 = vmatpush.msra.mxu3 %v11423_v63  ;;  %v7053_v63 = vld [vmem:[%s12494_s3 + $0x2a8] sm:$0xff] }
 0x54a   : > { %v11573_v29 = vpop.f32.mrf.mxu3  ;;  %5599 = vmatpush.msra.mxu2 %v11418_v9  ;;  %v7052_v9 = vld [vmem:[%s12494_s3 + $0x2a0] sm:$0xff] }
 0x54c   : > { %6733 = vmatmul.msk.f32.gmra.mxu0 %vm1316_vm0, %v11575_v28  ;;  %6744 = vmatmul.msk.f32.gmra.mxu1 %vm1316_vm0, %v11575_v28 }
 0x54d   : > { %6838 = vmatmul.msk.f32.gmra.mxu2 %vm1316_vm0, %v10923_v17 }
 0x54e   : > { %6849 = vmatmul.msk.f32.gmra.mxu3 %vm1316_vm0, %v10923_v17 }
 0x550   : > { %v11593_v57 = vpop.f32.mrf.mxu2 }
 0x551   : > { %v11589_v11 = vpop.f32.mrf.mxu0  ;;  %v11591_v6 = vpop.f32.mrf.mxu1 }
 0x552   : > { %v11595_v15 = vpop.f32.mrf.mxu3 }
 0x554   : > { %6812 = vmatmul.msk.f32.vlgmr.msra.gmra.mxu0 %vm1316_vm0, %v11597_v13  ;;  %6823 = vmatmul.msk.f32.vlgmr.msra.gmra.mxu1 %vm1316_vm0, %v11597_v13 }
 0x555   : > { %6899 = vmatpush.msk.msra.mxu0 %vm4338_vm1, %v7050_v32  ;;  %6910 = vmatpush.msk.msra.mxu1 %vm4338_vm1, %v7051_v60  ;;  %v7061_v32 = vld [vmem:[%s12494_s3 + $0x260] sm:$0xff]  ;;  %v7062_v60 = vld [vmem:[%s12494_s3 + $0x268] sm:$0xff] }
 0x556   : > { %6839 = vmatmul.msk.f32.gmra.mxu2 %vm1316_vm0, %v10978_v43  ;;  %6850 = vmatmul.msk.f32.gmra.mxu3 %vm1316_vm0, %v10978_v43 }
 0x557   : > { %5436 = vmatpush.msra.mxu0 %v7052_v9  ;;  %5483 = vmatpush.msra.mxu1 %v7053_v63 }
 0x558   : > { %v11631_v56 = vpop.f32.mrf.mxu2 }
 0x559   : > { %v11621_v51 = vpop.f32.mrf.mxu0  ;;  %v11623_v19 = vpop.f32.mrf.mxu1  ;;  %5437 = vmatpush.msra.mxu0 %v7054_v2  ;;  %5484 = vmatpush.msra.mxu1 %v7055_v37  ;;  %12710 = vst [vmem:[#allocation26_spill] sm:$0xff] %v11631_v56  ;;  %v7063_v2 = vld [vmem:[%s12494_s3 + $0x250] sm:$0xff]  ;;  %v7064_v37 = vld [vmem:[%s12494_s3 + $0x258] sm:$0xff] }
 0x55a   : > { %v11633_v8 = vpop.f32.mrf.mxu3 }
 0x55b   : > { %12711 = vst [vmem:[#allocation15_spill] sm:$0xff] %v11633_v8  ;;  %5438 = vmatpush.msra.mxu0 %v7056_v27  ;;  %5485 = vmatpush.msra.mxu1 %v7057_v38 }
 0x55c   : > { %6813 = vmatmul.msk.f32.gmra.mxu0 %vm1316_vm0, %v11641_v3  ;;  %6824 = vmatmul.msk.f32.gmra.mxu1 %vm1316_vm0, %v11641_v3  ;;  %v4540_v3 = vadd.f32 %v11332_v14, %v11443_v55  ;;  %v4543_v14 = vadd.f32 %v11357_v46, %v11487_v45  ;;  %v4499_v46 = vadd.f32 %v11381_v41, %v11529_v4 }
 0x55d   : > { %5439 = vmatpush.msra.mxu0 %v7059_v48  ;;  %5486 = vmatpush.msra.mxu1 %v7060_v10  ;;  %v7065_v48 = vld [vmem:[%s12494_s3 + $0x240] sm:$0xff]  ;;  %v7066_v10 = vld [vmem:[%s12494_s3 + $0x248] sm:$0xff]  ;;  %v4549_v4 = vadd.f32 %v11409_v22, %v11567_v30  ;;  %v4505_v22 = vadd.f32 %v11451_v0, %v11589_v11  ;;  %v4555_v11 = vadd.f32 %v11497_v52, %v11623_v19 }
 0x55e   : > { %6840 = vmatmul.msk.f32.gmra.mxu2 %vm1316_vm0, %v11021_v42  ;;  %6851 = vmatmul.msk.f32.gmra.mxu3 %vm1316_vm0, %v11021_v42 }
 0x55f   : > { %5440 = vmatpush.msra.mxu0 %v7061_v32  ;;  %5487 = vmatpush.msra.mxu1 %v7062_v60  ;;  %v7067_v32 = vld [vmem:[%s12494_s3 + $0x230] sm:$0xff]  ;;  %v7068_v60 = vld [vmem:[%s12494_s3 + $0x238] sm:$0xff] }
 0x560   : > { %v4838_v27 = vpop.f32.mrf.mxu2 }
 0x561   : > { %v11663_v9 = vpop.f32.mrf.mxu0  ;;  %v11665_v63 = vpop.f32.mrf.mxu1  ;;  %5441 = vmatpush.msra.mxu0 %v7063_v2  ;;  %5488 = vmatpush.msra.mxu1 %v7064_v37 }
 0x562   : > { %v4885_v38 = vpop.f32.mrf.mxu3  ;;  %v4511_v52 = vadd.f32 %v11539_v36, %v11663_v9 }
 0x563   : > { %5442 = vmatpush.msra.mxu0 %v7065_v48  ;;  %5489 = vmatpush.msra.mxu1 %v7066_v10 }
 0x564   : > { %6814 = vmatmul.msk.f32.gmra.mxu0 %vm1316_vm0, %v10923_v17  ;;  %6825 = vmatmul.msk.f32.gmra.mxu1 %vm1316_vm0, %v10923_v17 }
 0x565   : > { %5443 = vmatpush.msra.mxu0 %v7067_v32  ;;  %5490 = vmatpush.msra.mxu1 %v7068_v60 }
 0x566   : > { %6841 = vmatmul.msk.f32.gmra.mxu2 %vm1316_vm0, %v11059_v59  ;;  %6852 = vmatmul.msk.f32.gmra.mxu3 %vm1316_vm0, %v11059_v59 }
 0x567   : > { %5444 = vmatpush.msra.mxu0 %v10899_v31  ;;  %5491 = vmatpush.msra.mxu1 %v10921_v24 }
 0x568   : > { %v4841_v37 = vpop.f32.mrf.mxu2 }
 0x569   : > { %v11695_v17 = vpop.f32.mrf.mxu0  ;;  %v11697_v2 = vpop.f32.mrf.mxu1  ;;  %5445 = vmatpush.msra.mxu0 %v10936_v34  ;;  %5492 = vmatpush.msra.mxu1 %v10941_v61 }
 0x56a   : > { %v4888_v48 = vpop.f32.mrf.mxu3  ;;  %v4561_v9 = vadd.f32 %v11573_v29, %v11697_v2 }
 0x56c   : > { %6815 = vmatmul.msk.f32.gmra.mxu0 %vm1316_vm0, %v10978_v43  ;;  %6826 = vmatmul.msk.f32.gmra.mxu1 %vm1316_vm0, %v10978_v43 }
 0x56e   : > { %6842 = vmatmul.msk.f32.gmra.mxu2 %vm1316_vm0, %v11545_v25  ;;  %6853 = vmatmul.msk.f32.gmra.mxu3 %vm1316_vm0, %v11545_v25 }
 0x570   : > { %v4844_v34 = vpop.f32.mrf.mxu2 }
 0x571   : > { %v11709_v31 = vpop.f32.mrf.mxu0  ;;  %v11711_v24 = vpop.f32.mrf.mxu1 }
 0x572   : > { %v4891_v61 = vpop.f32.mrf.mxu3  ;;  %v4517_v29 = vadd.f32 %v11593_v57, %v11709_v31 }
 0x574   : > { %6816 = vmatmul.msk.f32.gmra.mxu0 %vm1316_vm0, %v11021_v42  ;;  %6827 = vmatmul.msk.f32.gmra.mxu1 %vm1316_vm0, %v11021_v42  ;;  %v4493_v42 = vadd.f32 %v11330_v23, %v11441_v7  ;;  %v4496_v23 = vadd.f32 %v11355_v39, %v11485_v49  ;;  %v4546_v49 = vadd.f32 %v11383_v62, %v11531_v18 }
 0x575   : > { %v4502_v62 = vadd.f32 %v11407_v16, %v11565_v54  ;;  %v4552_v54 = vadd.f32 %v11453_v35, %v11591_v6  ;;  %v4508_v35 = vadd.f32 %v11495_v40, %v11621_v51  ;;  %v4558_v51 = vadd.f32 %v11541_v58, %v11665_v63 }
 0x576   : > { %6843 = vmatmul.msk.f32.gmra.mxu2 %vm1316_vm0, %v11575_v28  ;;  %6854 = vmatmul.msk.f32.gmra.mxu3 %vm1316_vm0, %v11575_v28  ;;  %v4514_v58 = vadd.f32 %v11571_v47, %v11695_v17  ;;  %v4564_v17 = vadd.f32 %v11595_v15, %v11711_v24  ;;  %v12715_v15 = vld [vmem:[#allocation24_spill] sm:$0xff]  ;;  %v12717_v24 = vld [vmem:[#allocation26_spill] sm:$0xff] }
 0x578   : > { %v4847_v32 = vpop.f32.mrf.mxu2 }
 0x579   : > { %v11721_v43 = vpop.f32.mrf.mxu0  ;;  %v11723_v10 = vpop.f32.mrf.mxu1 }
 0x57a   : > { %12713 = vst [vmem:[#allocation4_spill] sm:$0xff] %v11721_v43  ;;  %v4894_v60 = vpop.f32.mrf.mxu3 }
 0x57b   : > { %12714 = vst [vmem:[#allocation27_spill] sm:$0xff] %v11723_v10 }
 0x57c   : > { %6817 = vmatmul.msk.f32.gmra.mxu0 %vm1316_vm0, %v11059_v59  ;;  %6828 = vmatmul.msk.f32.gmra.mxu1 %vm1316_vm0, %v11059_v59 }
 0x57e   : > { %6878 = vmatmul.msk.f32.vlgmr.msrb.gmra.mxu2 %vm1316_vm0, %v10952_v44  ;;  %6889 = vmatmul.msk.f32.vlgmr.msrb.gmra.mxu3 %vm1316_vm0, %v10952_v44 }
 0x580   : > { %v11737_v43 = vpop.f32.mrf.mxu2 }
 0x581   : > { %v4655_v13 = vpop.f32.mrf.mxu0  ;;  %v4702_v8 = vpop.f32.mrf.mxu1  ;;  %v12716_v31 = vld [vmem:[#allocation4_spill] sm:$0xff] }
 0x582   : > { %v4732_v10 = vadd.f32 %v4655_v13, %v4493_v42  ;;  %v4733_v56 = vadd.f32 %v4702_v8, %v4540_v3  ;;  %v11739_v12 = vpop.f32.mrf.mxu3  ;;  %v11781_v42 = vld [vmem:[#allocation2 + $0x60] sm:$0xff] }
 0x584   : > { %6818 = vmatmul.msk.f32.gmra.mxu0 %vm1316_vm0, %v11545_v25  ;;  %6829 = vmatmul.msk.f32.gmra.mxu1 %vm1316_vm0, %v11545_v25  ;;  %v11745_v44 = vadd.f32 %v4838_v27, %v4732_v10  ;;  %v11747_v59 = vadd.f32 %v4885_v38, %v4733_v56 }
 0x586   : > { %6879 = vmatmul.msk.f32.gmra.mxu2 %vm1316_vm0, %v11000_v5  ;;  %6890 = vmatmul.msk.f32.gmra.mxu3 %vm1316_vm0, %v11000_v5 }
 0x588   : > { %v11757_v3 = vpop.f32.mrf.mxu2 }
 0x589   : > { %v4658_v7 = vpop.f32.mrf.mxu0  ;;  %v4705_v55 = vpop.f32.mrf.mxu1 }
 0x58a   : > { %v4734_v13 = vadd.f32 %v4658_v7, %v4496_v23  ;;  %v4735_v8 = vadd.f32 %v4705_v55, %v4543_v14  ;;  %v11759_v56 = vpop.f32.mrf.mxu3  ;;  %v11803_v55 = vld [vmem:[#allocation2 + $0x68] sm:$0xff] }
 0x58c   : > { %6819 = vmatmul.msk.f32.gmra.mxu0 %vm1316_vm0, %v11575_v28  ;;  %6830 = vmatmul.msk.f32.gmra.mxu1 %vm1316_vm0, %v11575_v28  ;;  %v11765_v5 = vadd.f32 %v4841_v37, %v4734_v13  ;;  %v11767_v39 = vadd.f32 %v4888_v48, %v4735_v8 }
 0x58e   : > { %6880 = vmatmul.msk.f32.gmra.mxu2 %vm1316_vm0, %v11036_v50  ;;  %6891 = vmatmul.msk.f32.gmra.mxu3 %vm1316_vm0, %v11036_v50 }
 0x590   : > { %v11777_v37 = vpop.f32.mrf.mxu2 }
 0x591   : > { %v4661_v45 = vpop.f32.mrf.mxu0  ;;  %v4708_v27 = vpop.f32.mrf.mxu1 }
 0x592   : > { %v4736_v38 = vadd.f32 %v4661_v45, %v4499_v46  ;;  %v4737_v10 = vadd.f32 %v4708_v27, %v4546_v49  ;;  %v11779_v48 = vpop.f32.mrf.mxu3  ;;  %v7069_v49 = vld [vmem:[#allocation3] sm:$0xff] }
 0x594   : > { %6820 = vmatmul.msk.f32.gmra.mxu0 %vm1316_vm0, %v11781_v42  ;;  %6831 = vmatmul.msk.f32.gmra.mxu1 %vm1316_vm0, %v11781_v42  ;;  %v11787_v50 = vadd.f32 %v4844_v34, %v4736_v38  ;;  %v11789_v41 = vadd.f32 %v4891_v61, %v4737_v10  ;;  %v7070_v10 = vld [vmem:[#allocation3 + $0x8] sm:$0xff] }
 0x596   : > { %6881 = vmatmul.msk.f32.gmra.mxu2 %vm1316_vm0, %v11074_v53  ;;  %6892 = vmatmul.msk.f32.gmra.mxu3 %vm1316_vm0, %v11074_v53 }
 0x598   : > { %v11799_v34 = vpop.f32.mrf.mxu2 }
 0x599   : > { %v4664_v18 = vpop.f32.mrf.mxu0  ;;  %v4711_v23 = vpop.f32.mrf.mxu1 }
 0x59a   : > { %v4738_v14 = vadd.f32 %v4664_v18, %v4502_v62  ;;  %v4739_v7 = vadd.f32 %v4711_v23, %v4549_v4  ;;  %v11801_v61 = vpop.f32.mrf.mxu3 }
 0x59c   : > { %6821 = vmatmul.msk.f32.gmra.mxu0 %vm1316_vm0, %v11803_v55  ;;  %6832 = vmatmul.msk.f32.gmra.mxu1 %vm1316_vm0, %v11803_v55  ;;  %v11809_v53 = vadd.f32 %v4847_v32, %v4738_v14  ;;  %v11811_v16 = vadd.f32 %v4894_v60, %v4739_v7  ;;  %v7071_v14 = vld [vmem:[#allocation3 + $0x10] sm:$0xff] }
 0x59e   : > { %6882 = vmatmul.msk.f32.gmra.mxu2 %vm1316_vm0, %v11124_v20  ;;  %6893 = vmatmul.msk.f32.gmra.mxu3 %vm1316_vm0, %v11124_v20 }
 0x5a0   : > { %v11821_v32 = vpop.f32.mrf.mxu2 }
 0x5a1   : > { %v4667_v30 = vpop.f32.mrf.mxu0  ;;  %v4714_v13 = vpop.f32.mrf.mxu1 }
 0x5a2   : > { %v4740_v8 = vadd.f32 %v4667_v30, %v4505_v22  ;;  %v4741_v46 = vadd.f32 %v4714_v13, %v4552_v54  ;;  %v11823_v60 = vpop.f32.mrf.mxu3  ;;  %v7072_v13 = vld [vmem:[#allocation3 + $0x18] sm:$0xff] }
 0x5a4   : > { %6856 = vmatmul.msk.f32.vlgmr.msrb.gmra.mxu0 %vm1316_vm0, %v7069_v49  ;;  %6867 = vmatmul.msk.f32.vlgmr.msrb.gmra.mxu1 %vm1316_vm0, %v7069_v49  ;;  %v11828_v20 = vadd.f32 %v11737_v43, %v4740_v8  ;;  %v11831_v0 = vadd.f32 %v11739_v12, %v4741_v46 }
 0x5a6   : > { %6883 = vmatmul.msk.f32.gmra.mxu2 %vm1316_vm0, %v11150_v1  ;;  %6894 = vmatmul.msk.f32.gmra.mxu3 %vm1316_vm0, %v11150_v1 }
 0x5a8   : > { %v11841_v38 = vpop.f32.mrf.mxu2 }
 0x5a9   : > { %v4670_v6 = vpop.f32.mrf.mxu0  ;;  %v4717_v45 = vpop.f32.mrf.mxu1 }
 0x5aa   : > { %v4742_v27 = vadd.f32 %v4670_v6, %v4508_v35  ;;  %v4743_v43 = vadd.f32 %v4717_v45, %v4555_v11  ;;  %v11843_v12 = vpop.f32.mrf.mxu3  ;;  %v7073_v11 = vld [vmem:[#allocation3 + $0x20] sm:$0xff]  ;;  %v4520_v45 = vadd.f32 %v12717_v24, %v12716_v31 }
 0x5ac   : > { %6857 = vmatmul.msk.f32.gmra.mxu0 %vm1316_vm0, %v7070_v10  ;;  %6868 = vmatmul.msk.f32.gmra.mxu1 %vm1316_vm0, %v7070_v10  ;;  %v11848_v62 = vadd.f32 %v11757_v3, %v4742_v27  ;;  %v11851_v40 = vadd.f32 %v11759_v56, %v4743_v43  ;;  %v12718_v27 = vld [vmem:[#allocation27_spill] sm:$0xff] }
 0x5ad   : > { %v12719_v43 = vld [vmem:[#allocation15_spill] sm:$0xff] }
 0x5ae   : > { %6884 = vmatmul.msk.f32.gmra.mxu2 %vm1316_vm0, %v11188_v21  ;;  %6895 = vmatmul.msk.f32.gmra.mxu3 %vm1316_vm0, %v11188_v21  ;;  %v4567_v10 = vadd.f32 %v12719_v43, %v12718_v27  ;;  %v5547_v43 = vld [vmem:[#allocation3 + $0x38] sm:$0xff] }
 0x5b0   : > { %v11861_v23 = vpop.f32.mrf.mxu2 }
 0x5b1   : > { %v4673_v19 = vpop.f32.mrf.mxu0  ;;  %v4720_v4 = vpop.f32.mrf.mxu1 }
 0x5b2   : > { %v4744_v18 = vadd.f32 %v4673_v19, %v4511_v52  ;;  %v4745_v3 = vadd.f32 %v4720_v4, %v4558_v51  ;;  %v11863_v56 = vpop.f32.mrf.mxu3 }
 0x5b4   : > { %6858 = vmatmul.msk.f32.gmra.mxu0 %vm1316_vm0, %v7071_v14  ;;  %6869 = vmatmul.msk.f32.gmra.mxu1 %vm1316_vm0, %v7071_v14  ;;  %v11868_v7 = vadd.f32 %v11777_v37, %v4744_v18  ;;  %v11871_v36 = vadd.f32 %v11779_v48, %v4745_v3  ;;  %v7074_v18 = vld [vmem:[#allocation3 + $0x28] sm:$0xff] }
 0x5b6   : > { %6885 = vmatmul.msk.f32.gmra.mxu2 %vm1316_vm0, %v11246_v26  ;;  %6896 = vmatmul.msk.f32.gmra.mxu3 %vm1316_vm0, %v11246_v26 }
 0x5b8   : > { %v11881_v30 = vpop.f32.mrf.mxu2 }
 0x5b9   : > { %v4676_v63 = vpop.f32.mrf.mxu0  ;;  %v4723_v22 = vpop.f32.mrf.mxu1 }
 0x5ba   : > { %v4746_v54 = vadd.f32 %v4676_v63, %v4514_v58  ;;  %v4747_v37 = vadd.f32 %v4723_v22, %v4561_v9  ;;  %v11883_v48 = vpop.f32.mrf.mxu3  ;;  %v5544_v58 = vld [vmem:[#allocation3 + $0x20] sm:$0xff] }
 0x5bc   : > { %6859 = vmatmul.msk.f32.gmra.mxu0 %vm1316_vm0, %v7072_v13  ;;  %6870 = vmatmul.msk.f32.gmra.mxu1 %vm1316_vm0, %v7072_v13  ;;  %v11888_v8 = vadd.f32 %v11799_v34, %v4746_v54  ;;  %v11891_v47 = vadd.f32 %v11801_v61, %v4747_v37  ;;  %v7075_v13 = vld [vmem:[#allocation3 + $0x30] sm:$0xff] }
 0x5be   : > { %6886 = vmatmul.msk.f32.gmra.mxu2 %vm1316_vm0, %v11363_v33  ;;  %6897 = vmatmul.msk.f32.gmra.mxu3 %vm1316_vm0, %v11363_v33 }
 0x5c0   : > { %v11901_v35 = vpop.f32.mrf.mxu2 }
 0x5c1   : > { %v4679_v2 = vpop.f32.mrf.mxu0  ;;  %v4726_v46 = vpop.f32.mrf.mxu1 }
 0x5c2   : > { %v4748_v49 = vadd.f32 %v4679_v2, %v4517_v29  ;;  %v4749_v34 = vadd.f32 %v4726_v46, %v4564_v17  ;;  %v11903_v61 = vpop.f32.mrf.mxu3  ;;  %v5545_v29 = vld [vmem:[#allocation3 + $0x28] sm:$0xff] }
 0x5c4   : > { %6860 = vmatmul.msk.f32.gmra.mxu0 %vm1316_vm0, %v7073_v11  ;;  %6871 = vmatmul.msk.f32.gmra.mxu1 %vm1316_vm0, %v7073_v11  ;;  %v11908_v6 = vadd.f32 %v11821_v32, %v4748_v49  ;;  %v11911_v57 = vadd.f32 %v11823_v60, %v4749_v34  ;;  %v5546_v11 = vld [vmem:[#allocation3 + $0x30] sm:$0xff] }
 0x5c6   : > { %6887 = vmatmul.msk.f32.gmra.mxu2 %vm1316_vm0, %v12715_v15  ;;  %6898 = vmatmul.msk.f32.gmra.mxu3 %vm1316_vm0, %v12715_v15 }
 0x5c8   : > { %v11921_v4 = vpop.f32.mrf.mxu2 }
 0x5c9   : > { %v4682_v52 = vpop.f32.mrf.mxu0  ;;  %v4729_v51 = vpop.f32.mrf.mxu1 }
 0x5ca   : > { %v4750_v19 = vadd.f32 %v4682_v52, %v4520_v45  ;;  %v4751_v32 = vadd.f32 %v4729_v51, %v4567_v10  ;;  %v11923_v60 = vpop.f32.mrf.mxu3 }
 0x5cc   : > { %6861 = vmatmul.msk.f32.gmra.mxu0 %vm1316_vm0, %v7074_v18  ;;  %6872 = vmatmul.msk.f32.gmra.mxu1 %vm1316_vm0, %v7074_v18  ;;  %v11928_v3 = vadd.f32 %v11841_v38, %v4750_v19  ;;  %v11931_v14 = vadd.f32 %v11843_v12, %v4751_v32  ;;  %v5548_v32 = vld [vmem:[#allocation3 + $0x40] sm:$0xff] }
 0x5ce   : > { %6922 = vmatmul.msk.f32.vlgmr.msra.gmra.mxu2 %vm1316_vm0, %v5544_v58  ;;  %6933 = vmatmul.msk.f32.vlgmr.msra.gmra.mxu3 %vm1316_vm0, %v5544_v58 }
 0x5d0   : > { %v11941_v37 = vpop.f32.mrf.mxu2 }
 0x5d1   : > { %v5021_v9 = vpop.f32.mrf.mxu0  ;;  %v5068_v63 = vpop.f32.mrf.mxu1 }
 0x5d2   : > { %v11936_v22 = vadd.f32 %v5021_v9, %v11745_v44  ;;  %v11939_v54 = vadd.f32 %v5068_v63, %v11747_v59  ;;  %v11943_v38 = vpop.f32.mrf.mxu3 }
 0x5d4   : > { %v5118_v12 = vmax.f32 %v11936_v22, %v11939_v54  ;;  %6862 = vmatmul.msk.f32.gmra.mxu0 %vm1316_vm0, %v7075_v13  ;;  %6873 = vmatmul.msk.f32.gmra.mxu1 %vm1316_vm0, %v7075_v13  ;;  %v12720_v13 = vld [vmem:[#allocation25_spill] sm:$0xff]  ;;  %v6978_v54 = vld [vmem:[%s12496_s5 + $0x138] sm:$0xff] }
 0x5d5   : > { %v6958_v22 = vld [vmem:[%s12496_s5 + $0xa8] sm:$0xff] }
 0x5d6   : > { %6923 = vmatmul.msk.f32.gmra.mxu2 %vm1316_vm0, %v5545_v29  ;;  %6934 = vmatmul.msk.f32.gmra.mxu3 %vm1316_vm0, %v5545_v29  ;;  %v5549_v29 = vld [vmem:[#allocation3 + $0x48] sm:$0xff] }
 0x5d9   : > { %v5024_v44 = vpop.f32.mrf.mxu0  ;;  %v5071_v59 = vpop.f32.mrf.mxu1 }
 0x5da   : > { %v11952_v17 = vadd.f32 %v5024_v44, %v11765_v5  ;;  %v11955_v2 = vadd.f32 %v5071_v59, %v11767_v39  ;;  %v11957_v46 = vpop.f32.mrf.mxu2  ;;  %v11959_v49 = vpop.f32.mrf.mxu3 }
 0x5dc   : > { %6863 = vmatmul.msk.f32.gmra.mxu0 %vm1316_vm0, %v11150_v1  ;;  %6874 = vmatmul.msk.f32.gmra.mxu1 %vm1316_vm0, %v11150_v1 }
 0x5de   : > { %6924 = vmatmul.msk.f32.gmra.mxu2 %vm1316_vm0, %v5546_v11  ;;  %6935 = vmatmul.msk.f32.gmra.mxu3 %vm1316_vm0, %v5546_v11 }
 0x5e1   : > { %v5027_v5 = vpop.f32.mrf.mxu0  ;;  %v5074_v39 = vpop.f32.mrf.mxu1 }
 0x5e2   : > { %v11970_v31 = vadd.f32 %v5027_v5, %v11787_v50  ;;  %v11973_v24 = vadd.f32 %v5074_v39, %v11789_v41  ;;  %v11975_v45 = vpop.f32.mrf.mxu2  ;;  %v11977_v27 = vpop.f32.mrf.mxu3 }
 0x5e4   : > { %6864 = vmatmul.msk.f32.gmra.mxu0 %vm1316_vm0, %v11188_v21  ;;  %6875 = vmatmul.msk.f32.gmra.mxu1 %vm1316_vm0, %v11188_v21 }
 0x5e6   : > { %6925 = vmatmul.msk.f32.gmra.mxu2 %vm1316_vm0, %v5547_v43  ;;  %6936 = vmatmul.msk.f32.gmra.mxu3 %vm1316_vm0, %v5547_v43  ;;  %v12721_v43 = vld [vmem:[#allocation9_spill] sm:$0xff] }
 0x5e9   : > { %v5030_v50 = vpop.f32.mrf.mxu0  ;;  %v5077_v41 = vpop.f32.mrf.mxu1 }
 0x5ea   : > { %v11988_v10 = vadd.f32 %v5030_v50, %v11809_v53  ;;  %v11991_v52 = vadd.f32 %v5077_v41, %v11811_v16  ;;  %v11993_v51 = vpop.f32.mrf.mxu2  ;;  %v11995_v19 = vpop.f32.mrf.mxu3 }
 0x5ec   : > { %6865 = vmatmul.msk.f32.gmra.mxu0 %vm1316_vm0, %v11246_v26  ;;  %6876 = vmatmul.msk.f32.gmra.mxu1 %vm1316_vm0, %v11246_v26  ;;  %v7079_v26 = vld [vmem:[#allocation2 + $0x48] sm:$0xff] }
 0x5ee   : > { %6926 = vmatmul.msk.f32.gmra.mxu2 %vm1316_vm0, %v5548_v32  ;;  %6937 = vmatmul.msk.f32.gmra.mxu3 %vm1316_vm0, %v5548_v32 }
 0x5f1   : > { %v5033_v53 = vpop.f32.mrf.mxu0  ;;  %v5080_v16 = vpop.f32.mrf.mxu1 }
 0x5f2   : > { %v12006_v18 = vadd.f32 %v5033_v53, %v11828_v20  ;;  %v12009_v58 = vadd.f32 %v5080_v16, %v11831_v0  ;;  %v12011_v9 = vpop.f32.mrf.mxu2  ;;  %v12013_v63 = vpop.f32.mrf.mxu3  ;;  %v7078_v16 = vld [vmem:[#allocation2 + $0x40] sm:$0xff] }
 0x5f4   : > { %6900 = vmatmul.msk.f32.vlgmr.msra.gmra.mxu0 %vm1316_vm0, %v12720_v13  ;;  %6911 = vmatmul.msk.f32.vlgmr.msra.gmra.mxu1 %vm1316_vm0, %v12720_v13  ;;  %v7076_v13 = vld [vmem:[#allocation2 + $0x30] sm:$0xff] }
 0x5f6   : > { %6927 = vmatmul.msk.f32.gmra.mxu2 %vm1316_vm0, %v5549_v29  ;;  %6938 = vmatmul.msk.f32.gmra.mxu3 %vm1316_vm0, %v5549_v29 }
 0x5f9   : > { %v5036_v20 = vpop.f32.mrf.mxu0  ;;  %v5083_v0 = vpop.f32.mrf.mxu1 }
 0x5fa   : > { %v12024_v44 = vadd.f32 %v5036_v20, %v11848_v62  ;;  %v12027_v59 = vadd.f32 %v5083_v0, %v11851_v40  ;;  %v12029_v11 = vpop.f32.mrf.mxu2  ;;  %v12031_v5 = vpop.f32.mrf.mxu3 }
 0x5fc   : > { %6901 = vmatmul.msk.f32.gmra.mxu0 %vm1316_vm0, %v12721_v43  ;;  %6912 = vmatmul.msk.f32.gmra.mxu1 %vm1316_vm0, %v12721_v43 }
 0x5fe   : > { %6928 = vmatmul.msk.f32.gmra.mxu2 %vm1316_vm0, %v11363_v33  ;;  %6939 = vmatmul.msk.f32.gmra.mxu3 %vm1316_vm0, %v11363_v33 }
 0x601   : > { %v5039_v62 = vpop.f32.mrf.mxu0  ;;  %v5086_v40 = vpop.f32.mrf.mxu1 }
 0x602   : > { %v12044_v50 = vadd.f32 %v5039_v62, %v11868_v7  ;;  %v12047_v41 = vadd.f32 %v5086_v40, %v11871_v36  ;;  %v5333_v32 = vpop.f32.mrf.mxu2  ;;  %v5380_v53 = vpop.f32.mrf.mxu3  ;;  %v7077_v62 = vld [vmem:[#allocation2 + $0x38] sm:$0xff]  ;;  %v5552_v40 = vld [vmem:[#allocation3 + $0x60] sm:$0xff] }
 0x604   : > { %6902 = vmatmul.msk.f32.gmra.mxu0 %vm1316_vm0, %v7076_v13  ;;  %6913 = vmatmul.msk.f32.gmra.mxu1 %vm1316_vm0, %v7076_v13 }
 0x606   : > { %6929 = vmatmul.msk.f32.gmra.mxu2 %vm1316_vm0, %v12715_v15  ;;  %6940 = vmatmul.msk.f32.gmra.mxu3 %vm1316_vm0, %v12715_v15 }
 0x609   : > { %v5042_v33 = vpop.f32.mrf.mxu0  ;;  %v5089_v7 = vpop.f32.mrf.mxu1 }
 0x60a   : > { %v12058_v36 = vadd.f32 %v5042_v33, %v11888_v8  ;;  %v12061_v29 = vadd.f32 %v5089_v7, %v11891_v47  ;;  %v5336_v20 = vpop.f32.mrf.mxu2  ;;  %v5383_v0 = vpop.f32.mrf.mxu3 }
 0x60c   : > { %6903 = vmatmul.msk.f32.gmra.mxu0 %vm1316_vm0, %v7077_v62  ;;  %6914 = vmatmul.msk.f32.gmra.mxu1 %vm1316_vm0, %v7077_v62  ;;  %v5553_v62 = vld [vmem:[#allocation3 + $0x68] sm:$0xff] }
 0x60e   : > { %6930 = vmatmul.msk.f32.gmra.mxu2 %vm1316_vm0, %v5552_v40  ;;  %6941 = vmatmul.msk.f32.gmra.mxu3 %vm1316_vm0, %v5552_v40 }
 0x611   : > { %v5045_v8 = vpop.f32.mrf.mxu0  ;;  %v5092_v15 = vpop.f32.mrf.mxu1 }
 0x612   : > { %v12070_v47 = vadd.f32 %v5045_v8, %v11908_v6  ;;  %v12073_v13 = vadd.f32 %v5092_v15, %v11911_v57  ;;  %v5339_v33 = vpop.f32.mrf.mxu2  ;;  %v5386_v7 = vpop.f32.mrf.mxu3 }
 0x614   : > { %6904 = vmatmul.msk.f32.gmra.mxu0 %vm1316_vm0, %v7078_v16  ;;  %6915 = vmatmul.msk.f32.gmra.mxu1 %vm1316_vm0, %v7078_v16 }
 0x616   : > { %6931 = vmatmul.msk.f32.gmra.mxu2 %vm1316_vm0, %v5553_v62  ;;  %6942 = vmatmul.msk.f32.gmra.mxu3 %vm1316_vm0, %v5553_v62 }
 0x619   : > { %v5048_v6 = vpop.f32.mrf.mxu0  ;;  %v5095_v40 = vpop.f32.mrf.mxu1 }
 0x61a   : > { %v12082_v57 = vadd.f32 %v5048_v6, %v11928_v3  ;;  %v12085_v8 = vadd.f32 %v5095_v40, %v11931_v14  ;;  %v5342_v15 = vpop.f32.mrf.mxu2  ;;  %v5389_v43 = vpop.f32.mrf.mxu3 }
 0x61c   : > { %6905 = vmatmul.msk.f32.gmra.mxu0 %vm1316_vm0, %v7079_v26  ;;  %6916 = vmatmul.msk.f32.gmra.mxu1 %vm1316_vm0, %v7079_v26 }
 0x621   : > { %v5239_v16 = vpop.f32.mrf.mxu0  ;;  %v5286_v62 = vpop.f32.mrf.mxu1 }
 0x622   : > { %v5240_v21 = vadd.f32 %v5239_v16, %v11861_v23  ;;  %v5287_v3 = vadd.f32 %v5286_v62, %v11863_v56  ;;  %v5345_v6 = vpop.f32.mrf.mxu2  ;;  %v5392_v1 = vpop.f32.mrf.mxu3 }
 0x624   : > { %6906 = vmatmul.msk.f32.gmra.mxu0 %vm1316_vm0, %v11545_v25  ;;  %6917 = vmatmul.msk.f32.gmra.mxu1 %vm1316_vm0, %v11545_v25  ;;  %v12097_v14 = vadd.f32 %v5333_v32, %v5240_v21  ;;  %v12099_v40 = vadd.f32 %v5380_v53, %v5287_v3 }
 0x629   : > { %v5242_v39 = vpop.f32.mrf.mxu0  ;;  %v5289_v26 = vpop.f32.mrf.mxu1 }
 0x62a   : > { %v5243_v34 = vadd.f32 %v5242_v39, %v11881_v30  ;;  %v5290_v23 = vadd.f32 %v5289_v26, %v11883_v48  ;;  %v5348_v25 = vpop.f32.mrf.mxu2  ;;  %v5395_v21 = vpop.f32.mrf.mxu3  ;;  %v6954_v48 = vld [vmem:[%s12496_s5 + $0x98] sm:$0xff]  ;;  %v5751_v26 = vld [vmem:[%s12496_s5 + $0x48] sm:$0xff] }
 0x62b   : > { %5810 = vmatpush.msrb.mxu3 %v6954_v48  ;;  %5765 = vmatpush.msrb.mxu0 %v5751_v26 }
 0x62c   : > { %6907 = vmatmul.msk.f32.gmra.mxu0 %vm1316_vm0, %v11575_v28  ;;  %6918 = vmatmul.msk.f32.gmra.mxu1 %vm1316_vm0, %v11575_v28  ;;  %v12107_v56 = vadd.f32 %v5336_v20, %v5243_v34  ;;  %v12109_v16 = vadd.f32 %v5383_v0, %v5290_v23 }
 0x631   : > { %v5245_v32 = vpop.f32.mrf.mxu0  ;;  %v5292_v53 = vpop.f32.mrf.mxu1 }
 0x632   : > { %v5246_v62 = vadd.f32 %v5245_v32, %v11901_v35  ;;  %v5293_v30 = vadd.f32 %v5292_v53, %v11903_v61  ;;  %v5351_v39 = vpop.f32.mrf.mxu2  ;;  %v5398_v20 = vpop.f32.mrf.mxu3 }
 0x634   : > { %6908 = vmatmul.msk.f32.gmra.mxu0 %vm1316_vm0, %v11781_v42  ;;  %6919 = vmatmul.msk.f32.gmra.mxu1 %vm1316_vm0, %v11781_v42  ;;  %v12120_v28 = vadd.f32 %v5339_v33, %v5246_v62  ;;  %v12122_v34 = vadd.f32 %v5386_v7, %v5293_v30  ;;  %v6953_v42 = vld [vmem:[%s12496_s5 + $0x90] sm:$0xff]  ;;  %v6966_v30 = vld [vmem:[%s12496_s5 + $0xe8] sm:$0xff] }
 0x635   : > { %5811 = vmatpush.msrb.mxu3 %v6953_v42  ;;  %5852 = vmatpush.msrb.mxu2 %v6966_v30  ;;  %v5747_v30 = vld [vmem:[%s12496_s5 + $0x28] sm:$0xff] }
 0x639   : > { %v5248_v35 = vpop.f32.mrf.mxu0  ;;  %v5295_v0 = vpop.f32.mrf.mxu1 }
 0x63a   : > { %v5249_v61 = vadd.f32 %v5248_v35, %v11921_v4  ;;  %v5296_v3 = vadd.f32 %v5295_v0, %v11923_v60  ;;  %v5354_v23 = vpop.f32.mrf.mxu2  ;;  %v5401_v32 = vpop.f32.mrf.mxu3 }
 0x63c   : > { %6909 = vmatmul.msk.f32.gmra.mxu0 %vm1316_vm0, %v11803_v55  ;;  %6920 = vmatmul.msk.f32.gmra.mxu1 %vm1316_vm0, %v11803_v55  ;;  %v12136_v33 = vadd.f32 %v5342_v15, %v5249_v61  ;;  %v12138_v4 = vadd.f32 %v5389_v43, %v5296_v3  ;;  %v5750_v55 = vld [vmem:[%s12496_s5 + $0x40] sm:$0xff]  ;;  %v6952_v43 = vld [vmem:[%s12496_s5 + $0x88] sm:$0xff]  ;;  %v5749_v3 = vld [vmem:[%s12496_s5 + $0x38] sm:$0xff] }
 0x63d   : > { %5766 = vmatpush.msrb.mxu0 %v5750_v55  ;;  %5812 = vmatpush.msrb.mxu3 %v6952_v43  ;;  %v6965_v61 = vld [vmem:[%s12496_s5 + $0xe0] sm:$0xff] }
 0x63e   : > { %5853 = vmatpush.msrb.mxu2 %v6965_v61  ;;  %v5746_v55 = vld [vmem:[%s12496_s5 + $0x20] sm:$0xff]  ;;  %v6964_v61 = vld [vmem:[%s12496_s5 + $0xd8] sm:$0xff] }
 0x63f   : > { %5767 = vmatpush.msrb.mxu0 %v5749_v3  ;;  %v6950_v3 = vld [vmem:[%s12496_s5 + $0x78] sm:$0xff] }
 0x640   : > { %5854 = vmatpush.msrb.mxu2 %v6964_v61 }
 0x641   : > { %v5251_v60 = vpop.f32.mrf.mxu0  ;;  %v5298_v7 = vpop.f32.mrf.mxu1 }
 0x642   : > { %v5252_v53 = vadd.f32 %v5251_v60, %v11941_v37  ;;  %v5299_v62 = vadd.f32 %v5298_v7, %v11943_v38  ;;  %v5404_v26 = vpop.f32.mrf.mxu3  ;;  %v5748_v7 = vld [vmem:[%s12496_s5 + $0x30] sm:$0xff] }
 0x643   : > { %5768 = vmatpush.msrb.mxu0 %v5748_v7  ;;  %v6963_v7 = vld [vmem:[%s12496_s5 + $0xd0] sm:$0xff] }
 0x644   : > { %v12151_v15 = vadd.f32 %v5345_v6, %v5252_v53  ;;  %v12153_v37 = vadd.f32 %v5392_v1, %v5299_v62  ;;  %v6951_v6 = vld [vmem:[%s12496_s5 + $0x80] sm:$0xff]  ;;  %v5357_v1 = vpop.f32.mrf.mxu2  ;;  %5855 = vmatpush.msrb.mxu2 %v6963_v7 }
 0x645   : > { %5813 = vmatpush.msrb.mxu3 %v6951_v6  ;;  %5769 = vmatpush.msrb.mxu0 %v5747_v30 }
 0x647   : > { %5770 = vmatpush.msrb.mxu0 %v5746_v55  ;;  %5814 = vmatpush.msrb.mxu3 %v6950_v3 }
 0x649   : > { %v5254_v38 = vpop.f32.mrf.mxu0  ;;  %v5301_v48 = vpop.f32.mrf.mxu1 }
 0x64a   : > { %v5255_v35 = vadd.f32 %v5254_v38, %v11957_v46  ;;  %v5302_v0 = vadd.f32 %v5301_v48, %v11959_v49  ;;  %v5407_v38 = vpop.f32.mrf.mxu3 }
 0x64c   : > { %v12166_v46 = vadd.f32 %v5348_v25, %v5255_v35  ;;  %v12168_v49 = vadd.f32 %v5395_v21, %v5302_v0  ;;  %v5360_v43 = vpop.f32.mrf.mxu2  ;;  %v5743_v0 = vld [vmem:[%s12496_s5 + $0x8] sm:$0xff] }
 0x651   : > { %v5257_v42 = vpop.f32.mrf.mxu0  ;;  %v5304_v60 = vpop.f32.mrf.mxu1 }
 0x652   : > { %v5258_v53 = vadd.f32 %v5257_v42, %v11975_v45  ;;  %v5305_v62 = vadd.f32 %v5304_v60, %v11977_v27  ;;  %v5745_v45 = vld [vmem:[%s12496_s5 + $0x18] sm:$0xff]  ;;  %v5648_v60 = vpop.f32.mrf.mxu3 }
 0x653   : > { %5771 = vmatpush.msrb.mxu0 %v5745_v45 }
 0x654   : > { %v12178_v25 = vadd.f32 %v5351_v39, %v5258_v53  ;;  %v12180_v21 = vadd.f32 %v5398_v20, %v5305_v62  ;;  %v5744_v39 = vld [vmem:[%s12496_s5 + $0x10] sm:$0xff] }
 0x655   : > { %5772 = vmatpush.msrb.mxu0 %v5744_v39 }
 0x657   : > { %5773 = vmatpush.msrb.mxu0 %v5743_v0 }
 0x659   : > { %v5260_v27 = vpop.f32.mrf.mxu0  ;;  %v5307_v48 = vpop.f32.mrf.mxu1 }
 0x65a   : > { %v5261_v20 = vadd.f32 %v5260_v27, %v11993_v51  ;;  %v5308_v35 = vadd.f32 %v5307_v48, %v11995_v19  ;;  %v5742_v51 = vld [vmem:[%s12496_s5] sm:$0xff]  ;;  %v5601_v19 = vpop.f32.mrf.mxu2  ;;  %v6948_v27 = vld [vmem:[%s12496_s5 + $0x68] sm:$0xff]  ;;  %v5651_v0 = vpop.f32.mrf.mxu3 }
 0x65b   : > { %5774 = vmatpush.msrb.mxu0 %v5742_v51 }
 0x65c   : > { %v12202_v6 = vadd.f32 %v5354_v23, %v5261_v20  ;;  %v12204_v42 = vadd.f32 %v5401_v32, %v5308_v35  ;;  %v6949_v23 = vld [vmem:[%s12496_s5 + $0x70] sm:$0xff]  ;;  %v6947_v20 = vld [vmem:[%s12496_s5 + $0x60] sm:$0xff] }
 0x65d   : > { %5815 = vmatpush.msrb.mxu3 %v6949_v23 }
 0x65f   : > { %5816 = vmatpush.msrb.mxu3 %v6948_v27  ;;  %v12250_v27 = vld [vmem:[%s12495_s4] ss:$0 sm:$0xff] }
 0x661   : > { %v5263_v53 = vpop.f32.mrf.mxu0  ;;  %v5310_v32 = vpop.f32.mrf.mxu1  ;;  %5817 = vmatpush.msrb.mxu3 %v6947_v20 }
 0x662   : > { %v5264_v62 = vadd.f32 %v5263_v53, %v12011_v9  ;;  %v5311_v30 = vadd.f32 %v5310_v32, %v12013_v63  ;;  %v5604_v35 = vpop.f32.mrf.mxu2 }
 0x664   : > { %v12217_v55 = vadd.f32 %v5357_v1, %v5264_v62  ;;  %v12219_v45 = vadd.f32 %v5404_v26, %v5311_v30  ;;  %v6946_v1 = vld [vmem:[%s12496_s5 + $0x58] sm:$0xff]  ;;  %v6962_v26 = vld [vmem:[%s12496_s5 + $0xc8] sm:$0xff] }
 0x665   : > { %5818 = vmatpush.msrb.mxu3 %v6946_v1  ;;  %5856 = vmatpush.msrb.mxu2 %v6962_v26 }
 0x669   : > { %v5266_v48 = vpop.f32.mrf.mxu0  ;;  %v5313_v39 = vpop.f32.mrf.mxu1 }
 0x66a   : > { %v5267_v9 = vadd.f32 %v5266_v48, %v12029_v11  ;;  %v5314_v63 = vadd.f32 %v5313_v39, %v12031_v5  ;;  %v6945_v11 = vld [vmem:[%s12496_s5 + $0x50] sm:$0xff]  ;;  %v6961_v5 = vld [vmem:[%s12496_s5 + $0xc0] sm:$0xff]  ;;  %v5607_v53 = vpop.f32.mrf.mxu2  ;;  %v6960_v48 = vld [vmem:[%s12496_s5 + $0xb8] sm:$0xff] }
 0x66b   : > { %5819 = vmatpush.msrb.mxu3 %v6945_v11  ;;  %5857 = vmatpush.msrb.mxu2 %v6961_v5 }
 0x66c   : > { %v12235_v61 = vadd.f32 %v5360_v43, %v5267_v9  ;;  %v12237_v3 = vadd.f32 %v5407_v38, %v5314_v63  ;;  %v5654_v38 = vpop.f32.mrf.mxu3 }
 0x66d   : > { %5858 = vmatpush.msrb.mxu2 %v6960_v48  ;;  %5894 = vmatpush.msra.mxu3 %v6978_v54  ;;  %v6974_v48 = vld [vmem:[%s12496_s5 + $0x118] sm:$0xff] }
 0x671   : > { %v5447_v51 = vpop.f32.mrf.mxu0  ;;  %v5494_v7 = vpop.f32.mrf.mxu1 }
 0x672   : > { %v5524_v23 = vadd.f32 %v5447_v51, %v12097_v14  ;;  %v5525_v43 = vadd.f32 %v5494_v7, %v12099_v40  ;;  %v5610_v26 = vpop.f32.mrf.mxu2 }
 0x674   : > { %v5678_v32 = vadd.f32 %v5601_v19, %v5524_v23  ;;  %v5679_v62 = vadd.f32 %v5648_v60, %v5525_v43  ;;  %v6959_v19 = vld [vmem:[%s12496_s5 + $0xb0] sm:$0xff]  ;;  %v5657_v11 = vpop.f32.mrf.mxu3  ;;  %v6975_v43 = vld [vmem:[%s12496_s5 + $0x120] sm:$0xff] }
 0x675   : > { %5859 = vmatpush.msrb.mxu2 %v6959_v19 }
 0x676   : > { %v5698_v30 = vmax.f32 %v5678_v32, %v5679_v62 }
 0x677   : > { %5860 = vmatpush.msrb.mxu2 %v6958_v22 }
 0x678   : > { %v5708_v14 = vmax.f32 %v5118_v12, %v5698_v30 }
 0x679   : > { %v5450_v40 = vpop.f32.mrf.mxu0  ;;  %v5497_v39 = vpop.f32.mrf.mxu1 }
 0x67a   : > { %v5721_v60 = vadd.f32 %v12250_v27, %v5708_v14  ;;  %v5526_v20 = vadd.f32 %v5450_v40, %v12107_v56  ;;  %v5527_v9 = vadd.f32 %v5497_v39, %v12109_v16  ;;  %v6957_v56 = vld [vmem:[%s12496_s5 + $0xa0] sm:$0xff]  ;;  %v6977_v16 = vld [vmem:[%s12496_s5 + $0x130] sm:$0xff] }
 0x67b   : > { %5861 = vmatpush.msrb.mxu2 %v6957_v56  ;;  %5895 = vmatpush.msra.mxu3 %v6977_v16  ;;  %v6973_v40 = vld [vmem:[%s12496_s5 + $0x110] sm:$0xff] }
 0x67c   : > { %v5731_v12 = vmax.f32 %v5721_v60, 0.0  ;;  %v5680_v63 = vadd.f32 %v5604_v35, %v5526_v20  ;;  %v5681_v1 = vadd.f32 %v5651_v0, %v5527_v9  ;;  %v6976_v35 = vld [vmem:[%s12496_s5 + $0x128] sm:$0xff]  ;;  %v12722_v0 = vmax.f32 %v11952_v17, %v11955_v2  ;;  %v5660_v19 = vpop.f32.mrf.mxu3  ;;  %v6971_v9 = vld [vmem:[%s12496_s5 + $0x100] sm:$0xff] }
 0x67d   : > { %5896 = vmatpush.msra.mxu3 %v6976_v35 }
 0x67e   : > { %v5699_v5 = vmax.f32 %v5680_v63, %v5681_v1  ;;  %6943 = vmatmul.msk.f32.vlgmr.msrb.gmra.mxu0 %vm5752_vm2, %v5731_v12  ;;  %v6970_v63 = vld [vmem:[%s12496_s5 + $0xf8] sm:$0xff] }
 0x67f   : > { %5897 = vmatpush.msra.mxu3 %v6975_v43 }
 0x680   : > { %v5709_v51 = vmax.f32 %v12722_v0, %v5699_v5 }
 0x681   : > { %v5453_v7 = vpop.f32.mrf.mxu0  ;;  %v5500_v23 = vpop.f32.mrf.mxu1  ;;  %5898 = vmatpush.msra.mxu3 %v6974_v48 }
 0x682   : > { %v5528_v32 = vadd.f32 %v5453_v7, %v12120_v28  ;;  %v5529_v62 = vadd.f32 %v5500_v23, %v12122_v34  ;;  %v5722_v30 = vadd.f32 %v12250_v27, %v5709_v51  ;;  %v6972_v28 = vld [vmem:[%s12496_s5 + $0x108] sm:$0xff]  ;;  %v5613_v34 = vpop.f32.mrf.mxu2  ;;  %v6987_v51 = vld [vmem:[%s12496_s5 + $0x170] sm:$0xff] }
 0x683   : > { %5899 = vmatpush.msra.mxu3 %v6973_v40 }
 0x684   : > { %v5682_v17 = vadd.f32 %v5607_v53, %v5528_v32  ;;  %v5683_v2 = vadd.f32 %v5654_v38, %v5529_v62  ;;  %v5732_v14 = vmax.f32 %v5722_v30, 0.0  ;;  %v12723_v53 = vmax.f32 %v11970_v31, %v11973_v24  ;;  %v6990_v31 = vld [vmem:[%s12496_s5 + $0x188] sm:$0xff]  ;;  %v5663_v23 = vpop.f32.mrf.mxu3 }
 0x685   : > { %5900 = vmatpush.msra.mxu3 %v6972_v28  ;;  %5936 = vmatpush.msra.mxu0 %v6990_v31  ;;  %v6983_v28 = vld [vmem:[%s12496_s5 + $0x150] sm:$0xff] }
 0x686   : > { %v5700_v39 = vmax.f32 %v5682_v17, %v5683_v2  ;;  %6944 = vmatmul.msk.f32.gmra.mxu0 %vm5752_vm2, %v5732_v14  ;;  %v6985_v17 = vld [vmem:[%s12496_s5 + $0x160] sm:$0xff] }
 0x687   : > { %5901 = vmatpush.msra.mxu3 %v6971_v9 }
 0x688   : > { %v5710_v38 = vmax.f32 %v12723_v53, %v5700_v39 }
 0x689   : > { %v5456_v60 = vpop.f32.mrf.mxu0  ;;  %v5503_v20 = vpop.f32.mrf.mxu1  ;;  %5902 = vmatpush.msra.mxu3 %v6970_v63 }
 0x68a   : > { %v5723_v22 = vadd.f32 %v12250_v27, %v5710_v38  ;;  %v5530_v54 = vadd.f32 %v5456_v60, %v12136_v33  ;;  %v5531_v12 = vadd.f32 %v5503_v20, %v12138_v4  ;;  %v6969_v33 = vld [vmem:[%s12496_s5 + $0xf0] sm:$0xff]  ;;  %v6989_v4 = vld [vmem:[%s12496_s5 + $0x180] sm:$0xff]  ;;  %v5616_v7 = vpop.f32.mrf.mxu2  ;;  %v6982_v38 = vld [vmem:[%s12496_s5 + $0x148] sm:$0xff] }
 0x68b   : > { %5937 = vmatpush.msra.mxu0 %v6989_v4  ;;  %5903 = vmatpush.msra.mxu3 %v6969_v33 }
 0x68c   : > { %v5733_v24 = vmax.f32 %v5723_v22, 0.0  ;;  %v5684_v1 = vadd.f32 %v5610_v26, %v5530_v54  ;;  %v5685_v56 = vadd.f32 %v5657_v11, %v5531_v12  ;;  %v6988_v26 = vld [vmem:[%s12496_s5 + $0x178] sm:$0xff]  ;;  %v12724_v11 = vmax.f32 %v11988_v10, %v11991_v52  ;;  %v6986_v10 = vld [vmem:[%s12496_s5 + $0x168] sm:$0xff]  ;;  %v6981_v22 = vld [vmem:[%s12496_s5 + $0x140] sm:$0xff] }
 0x68d   : > { %5938 = vmatpush.msra.mxu0 %v6988_v26 }
 0x68e   : > { %v5701_v16 = vmax.f32 %v5684_v1, %v5685_v56  ;;  %6955 = vmatmul.msk.f32.vlgmr.msrb.gmra.mxu3 %vm5752_vm2, %v5733_v24 }
 0x68f   : > { %5939 = vmatpush.msra.mxu0 %v6987_v51 }
 0x690   : > { %v5711_v5 = vmax.f32 %v12724_v11, %v5701_v16 }
 0x691   : > { %v5459_v35 = vpop.f32.mrf.mxu0  ;;  %v5506_v0 = vpop.f32.mrf.mxu1  ;;  %5940 = vmatpush.msra.mxu0 %v6986_v10 }
 0x692   : > { %v5532_v43 = vadd.f32 %v5459_v35, %v12151_v15  ;;  %v5533_v32 = vadd.f32 %v5506_v0, %v12153_v37  ;;  %v5724_v62 = vadd.f32 %v12250_v27, %v5711_v5  ;;  %v6984_v15 = vld [vmem:[%s12496_s5 + $0x158] sm:$0xff]  ;;  %v12725_v37 = vmax.f32 %v12006_v18, %v12009_v58  ;;  %v5619_v18 = vpop.f32.mrf.mxu2  ;;  %v5666_v58 = vpop.f32.mrf.mxu3 }
 0x693   : > { %5941 = vmatpush.msra.mxu0 %v6985_v17 }
 0x694   : > { %v5686_v52 = vadd.f32 %v5613_v34, %v5532_v43  ;;  %v5687_v30 = vadd.f32 %v5660_v19, %v5533_v32  ;;  %v5734_v48 = vmax.f32 %v5724_v62, 0.0 }
 0x695   : > { %5942 = vmatpush.msra.mxu0 %v6984_v15 }
 0x696   : > { %v5702_v2 = vmax.f32 %v5686_v52, %v5687_v30  ;;  %6956 = vmatmul.msk.f32.gmra.mxu3 %vm5752_vm2, %v5734_v48 }
 0x697   : > { %5943 = vmatpush.msra.mxu0 %v6983_v28 }
 0x698   : > { %v5712_v14 = vmax.f32 %v12725_v37, %v5702_v2 }
 0x699   : > { %v5462_v40 = vpop.f32.mrf.mxu0  ;;  %v5509_v39 = vpop.f32.mrf.mxu1  ;;  %5944 = vmatpush.msra.mxu0 %v6982_v38 }
 0x69a   : > { %v5725_v34 = vadd.f32 %v12250_v27, %v5712_v14  ;;  %v5534_v19 = vadd.f32 %v5462_v40, %v12166_v46  ;;  %v5535_v53 = vadd.f32 %v5509_v39, %v12168_v49  ;;  %v12726_v46 = vmax.f32 %v12024_v44, %v12027_v59  ;;  %v5622_v16 = vpop.f32.mrf.mxu2  ;;  %v5669_v26 = vpop.f32.mrf.mxu3  ;;  %v5971_v44 = vld [vmem:[%s12498_s7 + $0x70] sm:$0xff]  ;;  %v5970_v59 = vld [vmem:[%s12498_s7 + $0x68] sm:$0xff] }
 0x69b   : > { %5945 = vmatpush.msra.mxu0 %v6981_v22  ;;  %5984 = vmatpush.msrb.mxu1 %v5971_v44  ;;  %v12729_v40 = vmax.f32 %v12070_v47, %v12073_v13  ;;  %v12730_v47 = vmax.f32 %v12082_v57, %v12085_v8  ;;  %v5967_v57 = vld [vmem:[%s12498_s7 + $0x50] sm:$0xff]  ;;  %v5966_v8 = vld [vmem:[%s12498_s7 + $0x48] sm:$0xff]  ;;  %v7022_v44 = vld [vmem:[%s12497_s6] ss:$0 sm:$0xff] }
 0x69c   : > { %v5735_v60 = vmax.f32 %v5725_v34, 0.0  ;;  %v5688_v20 = vadd.f32 %v5616_v7, %v5534_v19  ;;  %v5689_v9 = vadd.f32 %v5663_v23, %v5535_v53  ;;  %v5963_v22 = vld [vmem:[%s12498_s7 + $0x30] sm:$0xff] }
 0x69d   : > { %5985 = vmatpush.msrb.mxu1 %v5970_v59  ;;  %v6013_v59 = vld [vmem:[%s12500_s9 + $0x28] sm:$0xff] }
 0x69e   : > { %v5703_v54 = vmax.f32 %v5688_v20, %v5689_v9  ;;  %6967 = vmatmul.msk.f32.vlgmr.msrb.gmra.mxu2 %vm5752_vm2, %v5735_v60  ;;  %v5964_v9 = vld [vmem:[%s12498_s7 + $0x38] sm:$0xff] }
 0x6a0   : > { %v5713_v49 = vmax.f32 %v12726_v46, %v5703_v54  ;;  %v5962_v54 = vld [vmem:[%s12498_s7 + $0x28] sm:$0xff]  ;;  %v5961_v46 = vld [vmem:[%s12498_s7 + $0x20] sm:$0xff] }
 0x6a1   : > { %v5465_v12 = vpop.f32.mrf.mxu0  ;;  %v5512_v63 = vpop.f32.mrf.mxu1 }
 0x6a2   : > { %v5536_v31 = vadd.f32 %v5465_v12, %v12178_v25  ;;  %v5537_v24 = vadd.f32 %v5512_v63, %v12180_v21  ;;  %v5726_v1 = vadd.f32 %v12250_v27, %v5713_v49  ;;  %v12727_v25 = vmax.f32 %v12044_v50, %v12047_v41  ;;  %v5625_v10 = vpop.f32.mrf.mxu2  ;;  %v5672_v52 = vpop.f32.mrf.mxu3  ;;  %v5960_v49 = vld [vmem:[%s12498_s7 + $0x18] sm:$0xff]  ;;  %v5959_v12 = vld [vmem:[%s12498_s7 + $0x10] sm:$0xff]  ;;  %v5958_v63 = vld [vmem:[%s12498_s7 + $0x8] sm:$0xff] }
 0x6a3   : > { %v12728_v50 = vmax.f32 %v12058_v36, %v12061_v29 }
 0x6a4   : > { %v5690_v56 = vadd.f32 %v5619_v18, %v5536_v31  ;;  %v5691_v33 = vadd.f32 %v5666_v58, %v5537_v24  ;;  %v5736_v4 = vmax.f32 %v5726_v1, 0.0  ;;  %v5957_v31 = vld [vmem:[%s12498_s7] sm:$0xff]  ;;  %v6018_v1 = vld [vmem:[%s12500_s9 + $0x50] sm:$0xf] }
 0x6a5   : > { %7001 = vmatpush.msk.msra.mxu2 %vm4338_vm1, %v6018_v1 }
 0x6a6   : > { %v5704_v11 = vmax.f32 %v5690_v56, %v5691_v33  ;;  %6968 = vmatmul.msk.f32.gmra.mxu2 %vm5752_vm2, %v5736_v4  ;;  %v6017_v56 = vld [vmem:[%s12500_s9 + $0x48] sm:$0xff]  ;;  %v6016_v4 = vld [vmem:[%s12500_s9 + $0x40] sm:$0xff] }
 0x6a7   : > { %7002 = vmatpush.msra.mxu2 %v6017_v56 }
 0x6a8   : > { %v5714_v21 = vmax.f32 %v12727_v25, %v5704_v11  ;;  %v6014_v11 = vld [vmem:[%s12500_s9 + $0x30] sm:$0xff]  ;;  %v6012_v25 = vld [vmem:[%s12500_s9 + $0x20] sm:$0xff] }
 0x6a9   : > { %v5468_v5 = vpop.f32.mrf.mxu0  ;;  %v5515_v35 = vpop.f32.mrf.mxu1  ;;  %7003 = vmatpush.msra.mxu2 %v6016_v4 }
 0x6aa   : > { %v5727_v0 = vadd.f32 %v12250_v27, %v5714_v21  ;;  %v5538_v51 = vadd.f32 %v5468_v5, %v12202_v6  ;;  %v5539_v7 = vadd.f32 %v5515_v35, %v12204_v42  ;;  %v5628_v34 = vpop.f32.mrf.mxu2  ;;  %v5675_v19 = vpop.f32.mrf.mxu3 }
 0x6ac   : > { %v5737_v23 = vmax.f32 %v5727_v0, 0.0  ;;  %v5692_v43 = vadd.f32 %v5622_v16, %v5538_v51  ;;  %v5693_v32 = vadd.f32 %v5669_v26, %v5539_v7  ;;  %v6015_v16 = vld [vmem:[%s12500_s9 + $0x38] sm:$0xff] }
 0x6ad   : > { %7004 = vmatpush.msra.mxu2 %v6015_v16  ;;  %v6011_v0 = vld [vmem:[%s12500_s9 + $0x18] sm:$0xff] }
 0x6ae   : > { %v5705_v62 = vmax.f32 %v5692_v43, %v5693_v32  ;;  %6979 = vmatmul.msk.f32.vlgmr.msra.gmra.mxu3 %vm5752_vm2, %v5737_v23 }
 0x6af   : > { %7005 = vmatpush.msra.mxu2 %v6014_v11 }
 0x6b0   : > { %v5715_v41 = vmax.f32 %v12728_v50, %v5705_v62 }
 0x6b1   : > { %v5471_v30 = vpop.f32.mrf.mxu0  ;;  %v5518_v48 = vpop.f32.mrf.mxu1  ;;  %7006 = vmatpush.msra.mxu2 %v6013_v59 }
 0x6b2   : > { %v5540_v17 = vadd.f32 %v5471_v30, %v12217_v55  ;;  %v5541_v6 = vadd.f32 %v5518_v48, %v12219_v45  ;;  %v5728_v42 = vadd.f32 %v12250_v27, %v5715_v41 }
 0x6b3   : > { %7007 = vmatpush.msra.mxu2 %v6012_v25 }
 0x6b4   : > { %v5694_v2 = vadd.f32 %v5625_v10, %v5540_v17  ;;  %v5695_v15 = vadd.f32 %v5672_v52, %v5541_v6  ;;  %v5738_v37 = vmax.f32 %v5728_v42, 0.0 }
 0x6b5   : > { %7008 = vmatpush.msra.mxu2 %v6011_v0 }
 0x6b6   : > { %v5706_v14 = vmax.f32 %v5694_v2, %v5695_v15  ;;  %6980 = vmatmul.msk.f32.gmra.mxu3 %vm5752_vm2, %v5738_v37  ;;  %v6010_v15 = vld [vmem:[%s12500_s9 + $0x10] sm:$0xff]  ;;  %v6009_v37 = vld [vmem:[%s12500_s9 + $0x8] sm:$0xff] }
 0x6b7   : > { %7009 = vmatpush.msra.mxu2 %v6010_v15 }
 0x6b8   : > { %v5716_v39 = vmax.f32 %v12729_v40, %v5706_v14  ;;  %v6008_v14 = vld [vmem:[%s12500_s9] sm:$0xff] }
 0x6b9   : > { %v5474_v36 = vpop.f32.mrf.mxu0  ;;  %v5521_v29 = vpop.f32.mrf.mxu1  ;;  %7010 = vmatpush.msra.mxu2 %v6009_v37  ;;  %v7023_v40 = vld [vmem:[%s12499_s8] ss:$0 sm:$0xff] }
 0x6ba   : > { %v5729_v28 = vadd.f32 %v12250_v27, %v5716_v39  ;;  %v5542_v55 = vadd.f32 %v5474_v36, %v12235_v61  ;;  %v5543_v45 = vadd.f32 %v5521_v29, %v12237_v3  ;;  %v5969_v61 = vld [vmem:[%s12498_s7 + $0x60] sm:$0xff]  ;;  %v5968_v3 = vld [vmem:[%s12498_s7 + $0x58] sm:$0xff] }
 0x6bb   : > { %5986 = vmatpush.msrb.mxu1 %v5969_v61  ;;  %7011 = vmatpush.msra.mxu2 %v6008_v14 }
 0x6bc   : > { %v5739_v53 = vmax.f32 %v5729_v28, 0.0  ;;  %v5696_v38 = vadd.f32 %v5628_v34, %v5542_v55  ;;  %v5697_v18 = vadd.f32 %v5675_v19, %v5543_v45  ;;  %v7024_v34 = vld [vmem:[%s12501_s10] ss:$0 sm:$0xff] }
 0x6bd   : > { %5987 = vmatpush.msrb.mxu1 %v5968_v3 }
 0x6be   : > { %v5707_v58 = vmax.f32 %v5696_v38, %v5697_v18  ;;  %6991 = vmatmul.msk.f32.vlgmr.msra.gmra.mxu0 %vm5752_vm2, %v5739_v53 }
 0x6bf   : > { %5988 = vmatpush.msrb.mxu1 %v5967_v57 }
 0x6c0   : > { %v5717_v13 = vmax.f32 %v12730_v47, %v5707_v58 }
 0x6c1   : > { %5989 = vmatpush.msrb.mxu1 %v5966_v8 }
 0x6c2   : > { %v5730_v60 = vadd.f32 %v12250_v27, %v5717_v13  ;;  %v5965_v27 = vld [vmem:[%s12498_s7 + $0x40] sm:$0xff] }
 0x6c3   : > { %5990 = vmatpush.msrb.mxu1 %v5965_v27 }
 0x6c4   : > { %v5740_v20 = vmax.f32 %v5730_v60, 0.0 }
 0x6c5   : > { %5991 = vmatpush.msrb.mxu1 %v5964_v9 }
 0x6c6   : > { %6992 = vmatmul.msk.f32.gmra.mxu0 %vm5752_vm2, %v5740_v20 }
 0x6c7   : > { %5992 = vmatpush.msrb.mxu1 %v5963_v22 }
 0x6c9   : > { %5993 = vmatpush.msrb.mxu1 %v5962_v54 }
 0x6cb   : > { %5994 = vmatpush.msrb.mxu1 %v5961_v46 }
 0x6cd   : > { %5995 = vmatpush.msrb.mxu1 %v5960_v49 }
 0x6cf   : > { %5996 = vmatpush.msrb.mxu1 %v5959_v12 }
 0x6d1   : > { %5997 = vmatpush.msrb.mxu1 %v5958_v63 }
 0x6d3   : > { %5998 = vmatpush.msrb.mxu1 %v5957_v31 }
 0x6d5   : > { %6995 = vmatpush.msk.msra.mxu1 %vm4338_vm1, %v6018_v1 }
 0x6d7   : > { %6038 = vmatpush.msra.mxu1 %v6017_v56 }
 0x6d9   : > { %6039 = vmatpush.msra.mxu1 %v6016_v4 }
 0x6db   : > { %6040 = vmatpush.msra.mxu1 %v6015_v16 }
 0x6dd   : > { %6041 = vmatpush.msra.mxu1 %v6014_v11 }
 0x6df   : > { %6042 = vmatpush.msra.mxu1 %v6013_v59 }
 0x6e1   : > { %6043 = vmatpush.msra.mxu1 %v6012_v25 }
 0x6e3   : > { %6044 = vmatpush.msra.mxu1 %v6011_v0 }
 0x6e5   : > { %6045 = vmatpush.msra.mxu1 %v6010_v15 }
 0x6e7   : > { %6046 = vmatpush.msra.mxu1 %v6009_v37 }
 0x6e9   : > { %6047 = vmatpush.msra.mxu1 %v6008_v14 }
 0x6fb   : > { %v5776_v33 = vpop.f32.mrf.mxu0 }
 0x6fc   : > { %v5785_v35 = vadd.f32 %v7022_v44, %v5776_v33 }
 0x703   : > { %v5779_v21 = vpop.f32.mrf.mxu0 }
 0x704   : > { %v5786_v62 = vadd.f32 %v7022_v44, %v5779_v21 }
 0x711   : > { %v5821_v24 = vpop.f32.mrf.mxu3 }
 0x712   : > { %v5827_v7 = vadd.f32 %v5821_v24, %v5785_v35 }
 0x719   : > { %v5824_v26 = vpop.f32.mrf.mxu3 }
 0x71a   : > { %v5828_v50 = vadd.f32 %v5824_v26, %v5786_v62 }
 0x721   : > { %v5863_v5 = vpop.f32.mrf.mxu2 }
 0x722   : > { %v5869_v23 = vadd.f32 %v5863_v5, %v5827_v7 }
 0x729   : > { %v5866_v52 = vpop.f32.mrf.mxu2 }
 0x72a   : > { %v5870_v48 = vadd.f32 %v5866_v52, %v5828_v50 }
 0x731   : > { %v5905_v51 = vpop.f32.mrf.mxu3 }
 0x732   : > { %v5911_v43 = vadd.f32 %v5905_v51, %v5869_v23 }
 0x739   : > { %v5908_v30 = vpop.f32.mrf.mxu3 }
 0x73a   : > { %v5912_v17 = vadd.f32 %v5908_v30, %v5870_v48 }
 0x73b   : > { %v5947_v32 = vpop.f32.mrf.mxu0 }
 0x73c   : > { %v5953_v10 = vadd.f32 %v5947_v32, %v5911_v43 }
 0x73e   : > { %v5955_v41 = vmax.f32 %v5953_v10, 0.0 }
 0x740   : > { %6993 = vmatmul.msk.f32.vlgmr.msrb.gmra.mxu1 %vm5976_vm3, %v5955_v41 }
 0x743   : > { %v5950_v6 = vpop.f32.mrf.mxu0 }
 0x744   : > { %v5954_v42 = vadd.f32 %v5950_v6, %v5912_v17 }
 0x746   : > { %v5956_v2 = vmax.f32 %v5954_v42, 0.0 }
 0x748   : > { %6994 = vmatmul.msk.f32.gmra.mxu1 %vm5976_vm3, %v5956_v2 }
 0x7bd   : > { %v6000_v39 = vpop.f32.mrf.mxu1 }
 0x7be   : > { %v6001_v36 = vadd.f32 %v7023_v40, %v6000_v39 }
 0x7c0   : > { %v6006_v29 = vmax.f32 %v6001_v36, 0.0 }
 0x7c2   : > { %6996 = vmatmul.msk.f32.vlgmr.msra.gmra.mxu1 %vm1316_vm0, %v6006_v29 }
 0x7c5   : > { %v6003_v28 = vpop.f32.mrf.mxu1 }
 0x7c6   : > { %v6004_v55 = vadd.f32 %v7023_v40, %v6003_v28 }
 0x7c8   : > { %v6007_v45 = vmax.f32 %v6004_v55, 0.0 }
 0x7ca   : > { %6997 = vmatmul.msk.f32.vlgmr.msra.gmra.mxu2 %vm1316_vm0, %v6007_v45 }
 0x83f   : > { %v6049_v19 = vpop.f32.mrf.mxu1 }
 0x840   : > { %v6050_v53 = vadd.f32 %v7024_v34, %v6049_v19 }
 0x842   : > { %6055 = vst [vmem:[%s391_s13] sm:$0xff] %v6050_v53 }
 0x84d   : > { %v6052_v38 = vpop.f32.mrf.mxu2 }
 0x84e   : > { %v6053_v18 = vadd.f32 %v7024_v34, %v6052_v38 }
 0x850   : > { %6056 = vst [vmem:[%s391_s13 + $0x8] sm:$0xff] %v6053_v18 }
 0x851 PF: > { %s21_s17 = sadd.s32 1, %s7086_s17  }
 0x852   : > { %p18_p5 = scmp.ge.s32.totalorder %s21_s17, 4  }
 0x854   :  { %20 = sbr.rel (!%p18_p5) target bundleno = 1 (0x1), region = 106 }

</bundles_post_ra>
